<compile_context>
chip_gen: v6e
topology: v6e:2x2x1
jax: 0.10.0
libtpu: 0.0.40
codegen_flags: <defaults>
</compile_context>

<pallas_src>
import math

import jax
import jax.numpy as jnp
from jax import lax
from jax.experimental import pallas as pl
from jax.experimental.pallas import tpu as pltpu
import numpy as np


# ----------------------------- small host helpers ----------------------------

def _round_up(x, m):
    return ((x + m - 1) // m) * m


def _pick_batch_tile(B, S_pad, target_rows=512):
    """Largest divisor of B whose row slab TB*S_pad stays within target_rows.

    Prefers leaving >= 2 batch tiles (v7x has two TensorCores) when the 256-row
    MXU target is already met.
    """
    divisors = [d for d in range(1, B + 1) if B % d == 0]
    fits = [d for d in divisors if d * S_pad <= target_rows] or [1]
    best = max(fits)
    for d in sorted(fits, reverse=True):
        if B // d >= 2 and d * S_pad >= 256:
            return d
    return best


def _pick_vmem_limit():
    """Per-generation scoped-VMEM budget (v5e/v6e: 128 MiB phys, v7x: 64 MiB)."""
    try:
        cap = int(pltpu.get_tpu_info().vmem_capacity_bytes)
    except Exception:
        cap = 64 * 1024 * 1024          # conservative: v7x per-TensorCore capacity
    return int(min(max(cap * 3 // 4, 32 * 1024 * 1024), 100 * 1024 * 1024))


# ----------------------------- in-kernel helpers -----------------------------

def _gelu(x):
    # tanh-form GELU (EUP). PyTorch default F.gelu is the exact erf form; the tanh
    # approximation deviates by <~1e-3 absolute.
    c = 0.7978845608028654  # sqrt(2/pi)
    return 0.5 * x * (1.0 + jnp.tanh(c * (x + 0.044715 * x * x * x)))


def _layer_norm(x, w, b, n_true, eps=1e-5):
    # LayerNorm over the first `n_true` columns of a zero-padded (N, E_pad) slab.
    # Padded columns are exactly zero, so sum(x)/n_true and sum(x^2)/n_true give the
    # true mean / E[x^2]; padded output columns stay zero because w, b are zero there.
    inv_n = 1.0 / n_true
    mu = jnp.sum(x, axis=-1, keepdims=True) * inv_n
    ms = jnp.sum(x * x, axis=-1, keepdims=True) * inv_n
    var = ms - mu * mu
    return (x - mu) * lax.rsqrt(var + eps) * w + b


# --------------------------------- the kernel --------------------------------

def _make_kernel(sep, S_pad, nhead, HD, E_true, nlayers, TB):
    def kernel(x_ref, enc_w_ref, enc_b_ref,
               qkv_w_ref, out_w_ref, ff1_w_ref, ff2_w_ref, vec_ref,
               dec1_w_ref, dec1_b_ref, dec2_w_ref, dec2_b_ref,
               o_ref,
               src_ref, qkv_ref, ctx_ref, mask_ref):
        # NOTE: the src_ref carry is only correct because the layer axis is the LAST
        # grid axis (iterated innermost, marked "arbitrary") and re-initialised under
        # pl.when(l == 0). Do not reorder the grid axes.
        l = pl.program_id(1)
        N, E_P = src_ref.shape
        QKVW = qkv_ref.shape[1]
        NHID_P = ff1_w_ref.shape[2]

        # ---- l == 0: fused x / gated-y / gate encoder GEMM + attention mask ----
        @pl.when(l == 0)
        def _():
            src_ref[...] = (jnp.dot(x_ref[...], enc_w_ref[...],
                                    preferred_element_type=jnp.float32)
                            + enc_b_ref[...])
            rows = lax.broadcasted_iota(jnp.int32, (S_pad, S_pad), 0)
            cols = lax.broadcasted_iota(jnp.int32, (S_pad, S_pad), 1)
            mask_ref[...] = jnp.where((cols < sep) | (cols == rows),
                                      0.0, -1e30).astype(jnp.float32)

        # ---- per-layer small vectors: one packed DMA per layer ----
        vecs = vec_ref[0]                       # (8, Wmax) f32
        qkv_b = vecs[0:1, :QKVW]
        out_b = vecs[1:2, :E_P]
        ff1_b = vecs[2:3, :NHID_P]
        ff2_b = vecs[3:4, :E_P]
        ln1_w = vecs[4:5, :E_P]
        ln1_b = vecs[5:6, :E_P]
        ln2_w = vecs[6:7, :E_P]
        ln2_b = vecs[7:8, :E_P]

        src = src_ref[...]                      # (N, E_P) f32

        # ---- QKV projection (1/sqrt(head_dim) already folded into Q weights) ----
        qkv_ref[...] = (jnp.dot(src.astype(jnp.bfloat16), qkv_w_ref[0],
                                preferred_element_type=jnp.float32)
                        + qkv_b).astype(jnp.bfloat16)

        # ---- attention: head loop, batched over the TB batch elements ----
        mask = mask_ref[...]                    # (S_pad, S_pad)
        for h in range(nhead):                  # lane-aligned (HD = 128k) views
            q = qkv_ref[:, h * HD:(h + 1) * HD]
            k = qkv_ref[:, (nhead + h) * HD:(nhead + h + 1) * HD]
            v = qkv_ref[:, (2 * nhead + h) * HD:(2 * nhead + h + 1) * HD]
            qb = q.reshape(TB, S_pad, HD)
            kb = k.reshape(TB, S_pad, HD)
            vb = v.reshape(TB, S_pad, HD)
            s = jnp.einsum("bsd,btd->bst", qb, kb,
                           preferred_element_type=jnp.float32) + mask
            m = jnp.max(s, axis=-1, keepdims=True)
            e = jnp.exp(s - m)
            p = e * pl.reciprocal(jnp.sum(e, axis=-1, keepdims=True), approx=True)
            c = jnp.einsum("bst,btd->bsd", p.astype(jnp.bfloat16), vb,
                           preferred_element_type=jnp.float32)
            ctx_ref[:, h * HD:(h + 1) * HD] = c.reshape(N, HD).astype(jnp.bfloat16)

        # ---- out-projection, residual + post-LN, FFN, residual + post-LN ----
        attn = (jnp.dot(ctx_ref[...], out_w_ref[0],
                        preferred_element_type=jnp.float32) + out_b)
        src = _layer_norm(src + attn, ln1_w, ln1_b, E_true)

        ff = (jnp.dot(src.astype(jnp.bfloat16), ff1_w_ref[0],
                      preferred_element_type=jnp.float32) + ff1_b)
        ff = _gelu(ff)
        ff = (jnp.dot(ff.astype(jnp.bfloat16), ff2_w_ref[0],
                      preferred_element_type=jnp.float32) + ff2_b)
        src = _layer_norm(src + ff, ln2_w, ln2_b, E_true)
        src_ref[...] = src

        # ---- last layer: decoder MLP, lane-dense (padded n_out) output store ----
        @pl.when(l == nlayers - 1)
        def _():
            h1 = (jnp.dot(src.astype(jnp.bfloat16), dec1_w_ref[...],
                          preferred_element_type=jnp.float32) + dec1_b_ref[...])
            h1 = _gelu(h1)
            o_ref[...] = (jnp.dot(h1.astype(jnp.bfloat16), dec2_w_ref[...],
                                  preferred_element_type=jnp.float32)
                          + dec2_b_ref[...])

    return kernel


# --------------------------------- wrapper -----------------------------------

def transformer_model_forward(x_sbf, y_sb, params, single_eval_pos, nhead, nlayers,
                              batch_tile=None):
    """Equivalent of TransformerModel.forward((x, y), single_eval_pos=...)."""
    S, B, F = x_sbf.shape
    E = params["enc_w"].shape[0]
    nhid = params["dec1_w"].shape[0]
    n_out = params["dec2_w"].shape[0]
    assert E % nhead == 0
    dh = E // nhead
    sep = int(single_eval_pos)
    L = nlayers

    bf16 = jnp.bfloat16
    f32 = jnp.float32

    # padded / lane-aligned sizes
    HD = _round_up(dh, 128)           # per-head width, head-major QKV layout
    E_P = _round_up(E, 128)
    NHID_P = _round_up(nhid, 128)
    NOUT_P = _round_up(n_out, 128)
    S_P = _round_up(S, 16)            # multiple of 16 -> bf16-tile-friendly reshapes
    QKVW = 3 * nhead * HD
    WMAX = max(QKVW, E_P, NHID_P)
    FA = F + 2                        # [x, gate*y, gate]
    FA_P = _round_up(FA, 128)

    TB = batch_tile if batch_tile is not None else _pick_batch_tile(B, S_P)
    assert B % TB == 0
    N_tile = TB * S_P

    # ---- fused input slab: x, gated y and the gate as extra feature columns ----
    gate_s = (jnp.arange(S) < sep).astype(f32)                       # (S,)
    xb = jnp.transpose(x_sbf, (1, 0, 2)).astype(f32)                 # (B, S, F)
    yb = jnp.transpose(y_sb, (1, 0)).astype(f32)                     # (B, S)
    x_aug = jnp.concatenate(
        [xb, (yb * gate_s)[..., None],
         jnp.broadcast_to(gate_s, (B, S))[..., None]], axis=-1)      # (B, S, F+2)
    x_slab = jnp.zeros((B, S_P, FA_P), bf16).at[:, :S, :FA].set(x_aug.astype(bf16))
    x_slab = x_slab.reshape(B * S_P, FA_P)

    # ---- encoder weights: x-encoder + y-encoder folded into one GEMM ----
    enc_wt = jnp.zeros((FA_P, E_P), f32)
    enc_wt = enc_wt.at[:F, :E].set(params["enc_w"].T)
    enc_wt = enc_wt.at[F, :E].set(params["yenc_w"][:, 0])
    enc_wt = enc_wt.at[F + 1, :E].set(params["yenc_b"][0])
    enc_wt = enc_wt.astype(bf16)
    enc_b = jnp.zeros((1, E_P), f32).at[:, :E].set(params["enc_b"])

    # ---- per-layer attention weights: head-major, head_dim padded to HD ----
    scale = 1.0 / math.sqrt(dh)
    qkv_w = params["qkv_w"]                                          # (L, 3E, E)
    qkv_b_flat = params["qkv_b"][:, 0, :]                            # (L, 3E)

    def head_major_w(w_out_in, sc):
        w = w_out_in.reshape(L, nhead, dh, E) * sc
        w = jnp.transpose(w, (0, 3, 1, 2))                           # (L, E, H, dh)
        wp = jnp.zeros((L, E_P, nhead, HD), f32).at[:, :E, :, :dh].set(w)
        return wp.reshape(L, E_P, nhead * HD)

    def head_major_b(b_flat, sc):
        b = b_flat.reshape(L, nhead, dh) * sc
        bp = jnp.zeros((L, nhead, HD), f32).at[:, :, :dh].set(b)
        return bp.reshape(L, nhead * HD)

    qkv_wt = jnp.concatenate(
        [head_major_w(qkv_w[:, :E, :], scale),
         head_major_w(qkv_w[:, E:2 * E, :], 1.0),
         head_major_w(qkv_w[:, 2 * E:, :], 1.0)], axis=-1).astype(bf16)  # (L,E_P,QKVW)
    qkv_b_row = jnp.concatenate(
        [head_major_b(qkv_b_flat[:, :E], scale),
         head_major_b(qkv_b_flat[:, E:2 * E], 1.0),
         head_major_b(qkv_b_flat[:, 2 * E:], 1.0)], axis=-1)             # (L, QKVW)

    ow = jnp.transpose(params["out_w"], (0, 2, 1)).reshape(L, nhead, dh, E)
    out_wt = (jnp.zeros((L, nhead, HD, E_P), f32).at[:, :, :dh, :E].set(ow)
              .reshape(L, nhead * HD, E_P).astype(bf16))                 # (L,H*HD,E_P)

    ff1_wt = (jnp.zeros((L, E_P, NHID_P), f32)
              .at[:, :E, :nhid].set(jnp.transpose(params["ff1_w"], (0, 2, 1)))
              .astype(bf16))
    ff2_wt = (jnp.zeros((L, NHID_P, E_P), f32)
              .at[:, :nhid, :E].set(jnp.transpose(params["ff2_w"], (0, 2, 1)))
              .astype(bf16))

    # ---- packed per-layer vectors: one streamed tensor instead of eight ----
    vecs = jnp.zeros((L, 8, WMAX), f32)
    vecs = vecs.at[:, 0, :QKVW].set(qkv_b_row)
    vecs = vecs.at[:, 1, :E].set(params["out_b"][:, 0, :])
    vecs = vecs.at[:, 2, :nhid].set(params["ff1_b"][:, 0, :])
    vecs = vecs.at[:, 3, :E].set(params["ff2_b"][:, 0, :])
    vecs = vecs.at[:, 4, :E].set(params["ln1_w"][:, 0, :])
    vecs = vecs.at[:, 5, :E].set(params["ln1_b"][:, 0, :])
    vecs = vecs.at[:, 6, :E].set(params["ln2_w"][:, 0, :])
    vecs = vecs.at[:, 7, :E].set(params["ln2_b"][:, 0, :])

    # ---- decoder MLP (constants, zero-padded so extra columns stay zero) ----
    dec1_wt = (jnp.zeros((E_P, NHID_P), f32)
               .at[:E, :nhid].set(params["dec1_w"].T).astype(bf16))
    dec1_b = jnp.zeros((1, NHID_P), f32).at[:, :nhid].set(params["dec1_b"])
    dec2_wt = (jnp.zeros((NHID_P, NOUT_P), f32)
               .at[:nhid, :n_out].set(params["dec2_w"].T).astype(bf16))
    dec2_b = jnp.zeros((1, NOUT_P), f32).at[:, :n_out].set(params["dec2_b"])

    kernel = _make_kernel(sep=sep, S_pad=S_P, nhead=nhead, HD=HD, E_true=E,
                          nlayers=nlayers, TB=TB)

    def _run(single_buffer):
        mode = pl.Buffered(1) if single_buffer else None

        def cspec(shape, index_map):
            # constant-index blocks: single buffer (their index_map never changes)
            if mode is None:
                return pl.BlockSpec(shape, index_map)
            return pl.BlockSpec(shape, index_map, pipeline_mode=mode)

        in_specs = [
            cspec((N_tile, FA_P), lambda bt, l: (bt, 0)),            # fused input slab
            cspec((FA_P, E_P), lambda bt, l: (0, 0)),                # encoder W
            cspec((1, E_P), lambda bt, l: (0, 0)),                   # encoder b
            pl.BlockSpec((1, E_P, QKVW), lambda bt, l: (l, 0, 0)),        # QKV W (layer)
            pl.BlockSpec((1, nhead * HD, E_P), lambda bt, l: (l, 0, 0)),  # out W (layer)
            pl.BlockSpec((1, E_P, NHID_P), lambda bt, l: (l, 0, 0)),      # FF1 W (layer)
            pl.BlockSpec((1, NHID_P, E_P), lambda bt, l: (l, 0, 0)),      # FF2 W (layer)
            pl.BlockSpec((1, 8, WMAX), lambda bt, l: (l, 0, 0)),          # packed vecs
            cspec((E_P, NHID_P), lambda bt, l: (0, 0)),              # decoder W1
            cspec((1, NHID_P), lambda bt, l: (0, 0)),                # decoder b1
            cspec((NHID_P, NOUT_P), lambda bt, l: (0, 0)),           # decoder W2
            cspec((1, NOUT_P), lambda bt, l: (0, 0)),                # decoder b2
        ]

        return pl.pallas_call(
            kernel,
            out_shape=jax.ShapeDtypeStruct((B * S_P, NOUT_P), f32),
            grid=(B // TB, nlayers),
            in_specs=in_specs,
            out_specs=pl.BlockSpec((N_tile, NOUT_P), lambda bt, l: (bt, 0)),
            scratch_shapes=[
                pltpu.VMEM((N_tile, E_P), f32),          # src carried across layers
                pltpu.VMEM((N_tile, QKVW), bf16),        # head-major QKV
                pltpu.VMEM((N_tile, nhead * HD), bf16),  # attention context
                pltpu.VMEM((S_P, S_P), f32),             # D_q attention mask
            ],
            compiler_params=pltpu.CompilerParams(
                dimension_semantics=("parallel", "arbitrary"),
                vmem_limit_bytes=_pick_vmem_limit(),
            ),
        )(x_slab, enc_wt, enc_b, qkv_wt, out_wt, ff1_wt, ff2_wt, vecs,
          dec1_wt, dec1_b, dec2_wt, dec2_b)

    try:
        out_flat = _run(True)
    except Exception:
        # Fallback for jax versions without BlockSpec(pipeline_mode=...) support.
        out_flat = _run(False)

    out = out_flat.reshape(B, S_P, NOUT_P)[:, sep:S, :n_out]   # drop pad rows / cols
    return jnp.transpose(out, (1, 0, 2))                       # (S - sep, B, n_out)


# --------------------------- deterministic parameters -------------------------

def init_params(key, n_features, ninp, nhead, nhid, nlayers, n_out):
    ks = jax.random.split(key, 16)

    def w(k, shape, scale=0.2):
        return (scale * jax.random.normal(k, shape)).astype(jnp.float32)

    # NOTE: TransformerModel.init_weights() zeros out_proj / linear2; here random
    # deterministic values are used so the full compute path is exercised
    # (forward semantics are unchanged, only parameter values differ).
    return {
        "enc_w": w(ks[0], (ninp, n_features)),            # nn.Linear(n_features, ninp)
        "enc_b": w(ks[1], (1, ninp), 0.1),
        "yenc_w": w(ks[2], (ninp, 1)),                    # nn.Linear(1, ninp)
        "yenc_b": w(ks[3], (1, ninp), 0.1),
        "qkv_w": w(ks[4], (nlayers, 3 * ninp, ninp)),     # MHA in_proj_weight
        "qkv_b": w(ks[5], (nlayers, 1, 3 * ninp), 0.1),
        "out_w": w(ks[6], (nlayers, ninp, ninp)),         # MHA out_proj
        "out_b": w(ks[7], (nlayers, 1, ninp), 0.1),
        "ff1_w": w(ks[8], (nlayers, nhid, ninp)),         # linear1
        "ff1_b": w(ks[9], (nlayers, 1, nhid), 0.1),
        "ff2_w": w(ks[10], (nlayers, ninp, nhid)),        # linear2
        "ff2_b": w(ks[11], (nlayers, 1, ninp), 0.1),
        "ln1_w": jnp.ones((nlayers, 1, ninp), jnp.float32),
        "ln1_b": jnp.zeros((nlayers, 1, ninp), jnp.float32),
        "ln2_w": jnp.ones((nlayers, 1, ninp), jnp.float32),
        "ln2_b": jnp.zeros((nlayers, 1, ninp), jnp.float32),
        "dec1_w": w(ks[12], (nhid, ninp)),                # decoder Linear(ninp, nhid)
        "dec1_b": w(ks[13], (1, nhid), 0.1),
        "dec2_w": w(ks[14], (n_out, nhid)),               # decoder Linear(nhid, n_out)
        "dec2_b": w(ks[15], (1, n_out), 0.1),
    }


# ------------------------------ pure-JAX reference ----------------------------

def reference_forward(x_sbf, y_sb, params, sep, nhead, nlayers):
    E = params["enc_w"].shape[0]
    dh = E // nhead
    S, B, _ = x_sbf.shape

    xe = jnp.einsum("sbf,ef->sbe", x_sbf, params["enc_w"]) + params["enc_b"][0]
    ye = y_sb[..., None] * params["yenc_w"][:, 0][None, None, :] + params["yenc_b"][0]
    seq = jnp.arange(S)[:, None, None]
    src = xe + jnp.where(seq < sep, ye, 0.0)

    rows = jnp.arange(S)[:, None]
    cols = jnp.arange(S)[None, :]
    mask = jnp.where((cols < sep) | (cols == rows), 0.0, -1e30).astype(jnp.float32)

    def ln(t, w, b, eps=1e-5):
        mu = t.mean(-1, keepdims=True)
        var = ((t - mu) ** 2).mean(-1, keepdims=True)
        return (t - mu) * lax.rsqrt(var + eps) * w + b

    for l in range(nlayers):
        qkv = jnp.einsum("sbe,fe->sbf", src, params["qkv_w"][l]) + params["qkv_b"][l, 0]
        q, k, v = jnp.split(qkv, 3, axis=-1)

        def heads(t):
            return t.reshape(S, B, nhead, dh).transpose(1, 2, 0, 3)   # (B, H, S, dh)

        qh, kh, vh = heads(q), heads(k), heads(v)
        sc = jnp.einsum("bhsd,bhtd->bhst", qh, kh) / jnp.sqrt(jnp.float32(dh)) + mask
        pa = jax.nn.softmax(sc, axis=-1)
        oh = jnp.einsum("bhst,bhtd->bhsd", pa, vh)
        o = oh.transpose(2, 0, 1, 3).reshape(S, B, E)
        o = jnp.einsum("sbe,fe->sbf", o, params["out_w"][l]) + params["out_b"][l, 0]
        src = ln(src + o, params["ln1_w"][l, 0], params["ln1_b"][l, 0])

        ff = jnp.einsum("sbe,he->sbh", src, params["ff1_w"][l]) + params["ff1_b"][l, 0]
        ff = jax.nn.gelu(ff, approximate=False)
        ff = jnp.einsum("sbh,eh->sbe", ff, params["ff2_w"][l]) + params["ff2_b"][l, 0]
        src = ln(src + ff, params["ln2_w"][l, 0], params["ln2_b"][l, 0])

    h1 = jax.nn.gelu(jnp.einsum("sbe,he->sbh", src, params["dec1_w"]) + params["dec1_b"][0],
                     approximate=False)
    out = jnp.einsum("sbh,oh->sbo", h1, params["dec2_w"]) + params["dec2_b"][0]
    return out[sep:]


# ------------------------------------ main ------------------------------------

if __name__ == "__main__":
    S, B, F = 12, 2, 4
    NINP, NHEAD, NHID, NLAYERS, NOUT = 32, 4, 64, 2, 4
    SEP = 7  # single_eval_pos

    key = jax.random.PRNGKey(0)
    kx, ky, kp = jax.random.split(key, 3)
    x = jax.random.normal(kx, (S, B, F), dtype=jnp.float32)   # (seq, batch, features)
    y = jax.random.normal(ky, (S, B), dtype=jnp.float32)      # (seq, batch)
    params = init_params(kp, F, NINP, NHEAD, NHID, NLAYERS, NOUT)

    out = transformer_model_forward(x, y, params, SEP, NHEAD, NLAYERS)
    out = jax.block_until_ready(out)

    ref = jax.block_until_ready(reference_forward(x, y, params, SEP, NHEAD, NLAYERS))
    assert out.shape == (S - SEP, B, NOUT), out.shape
    # Kernel uses bf16 matmul operands (f32 accumulation) + tanh GELU + EUP approx
    # reciprocal; compare against the exact-f32 reference with a matching tolerance.
    np.testing.assert_allclose(np.asarray(out), np.asarray(ref), rtol=5e-2, atol=5e-2)

    print("KERNEL_OK")
</pallas_src>

<mosaic_0001>
module attributes {stable_mosaic.version = 11 : i64} {
  func.func @kernel(%arg0: i32, %arg1: i32, %arg2: memref<32x128xbf16, #tpu.memory_space<vmem>>, %arg3: memref<128x128xbf16, #tpu.memory_space<vmem>>, %arg4: memref<1x128xf32, #tpu.memory_space<vmem>>, %arg5: memref<1x128x1536xbf16, #tpu.memory_space<vmem>>, %arg6: memref<1x512x128xbf16, #tpu.memory_space<vmem>>, %arg7: memref<1x128x128xbf16, #tpu.memory_space<vmem>>, %arg8: memref<1x128x128xbf16, #tpu.memory_space<vmem>>, %arg9: memref<1x8x1536xf32, #tpu.memory_space<vmem>>, %arg10: memref<128x128xbf16, #tpu.memory_space<vmem>>, %arg11: memref<1x128xf32, #tpu.memory_space<vmem>>, %arg12: memref<128x128xbf16, #tpu.memory_space<vmem>>, %arg13: memref<1x128xf32, #tpu.memory_space<vmem>>, %arg14: memref<32x128xf32, #tpu.memory_space<vmem>>, %arg15: memref<32x128xf32, #tpu.memory_space<vmem>>, %arg16: memref<32x1536xbf16, #tpu.memory_space<vmem>>, %arg17: memref<32x512xbf16, #tpu.memory_space<vmem>>, %arg18: memref<16x16xf32, #tpu.memory_space<vmem>>) attributes {dimension_semantics = [#tpu.dimension_semantics<parallel>, #tpu.dimension_semantics<arbitrary>], iteration_bounds = array<i64: 1, 2>, scalar_prefetch = 0 : i64, scratch_operands = 4 : i64, tpu.core_type = #tpu.core_type<tc>, window_params = [{pipeline_mode = #tpu.pipeline_mode<synchronous>, transform_indices = @transform_0, window_bounds = array<i64: 32, 128>}, {pipeline_mode = #tpu.pipeline_mode<synchronous>, transform_indices = @transform_1, window_bounds = array<i64: 128, 128>}, {pipeline_mode = #tpu.pipeline_mode<synchronous>, transform_indices = @transform_2, window_bounds = array<i64: 1, 128>}, {transform_indices = @transform_3, window_bounds = array<i64: 1, 128, 1536>}, {transform_indices = @transform_4, window_bounds = array<i64: 1, 512, 128>}, {transform_indices = @transform_5, window_bounds = array<i64: 1, 128, 128>}, {transform_indices = @transform_6, window_bounds = array<i64: 1, 128, 128>}, {transform_indices = @transform_7, window_bounds = array<i64: 1, 8, 1536>}, {pipeline_mode = #tpu.pipeline_mode<synchronous>, transform_indices = @transform_8, window_bounds = array<i64: 128, 128>}, {pipeline_mode = #tpu.pipeline_mode<synchronous>, transform_indices = @transform_9, window_bounds = array<i64: 1, 128>}, {pipeline_mode = #tpu.pipeline_mode<synchronous>, transform_indices = @transform_10, window_bounds = array<i64: 128, 128>}, {pipeline_mode = #tpu.pipeline_mode<synchronous>, transform_indices = @transform_11, window_bounds = array<i64: 1, 128>}, {transform_indices = @transform_12, window_bounds = array<i64: 32, 128>}]} {
    %c0_i32 = arith.constant 0 : i32
    %0 = arith.cmpi eq, %arg1, %c0_i32 : i32
    %1 = arith.extui %0 : i1 to i32
    %c0_i32_0 = arith.constant 0 : i32
    %2 = arith.cmpi ne, %1, %c0_i32_0 : i32
    scf.if %2 {
      %c0_80 = arith.constant 0 : index
      %c0_81 = arith.constant 0 : index
      %204 = vector.load %arg2[%c0_80, %c0_81] : memref<32x128xbf16, #tpu.memory_space<vmem>>, vector<32x128xbf16>
      %c0_82 = arith.constant 0 : index
      %c0_83 = arith.constant 0 : index
      %205 = vector.load %arg3[%c0_82, %c0_83] : memref<128x128xbf16, #tpu.memory_space<vmem>>, vector<128x128xbf16>
      %cst_84 = arith.constant dense<0.000000e+00> : vector<32x128xf32>
      %206 = tpu.matmul %204, %205, %cst_84 {dimension_numbers = #tpu.dot_dimension_numbers<[1], [0], [0], [1], [0, 0, 1, 1], [], []>} : vector<32x128xbf16>, vector<128x128xbf16>, vector<32x128xf32> -> vector<32x128xf32>
      %c0_85 = arith.constant 0 : index
      %c0_86 = arith.constant 0 : index
      %207 = vector.load %arg4[%c0_85, %c0_86] : memref<1x128xf32, #tpu.memory_space<vmem>>, vector<1x128xf32>
      %208 = vector.broadcast %207 : vector<1x128xf32> to vector<32x128xf32>
      %209 = arith.addf %206, %208 : vector<32x128xf32>
      %c0_87 = arith.constant 0 : index
      %c0_88 = arith.constant 0 : index
      %210 = vector.load %arg15[%c0_87, %c0_88] : memref<32x128xf32, #tpu.memory_space<vmem>>, vector<32x128xf32>
      tpu.vector_store %arg15[%c0_87, %c0_88], %209 {strides = array<i32>} : memref<32x128xf32, #tpu.memory_space<vmem>>, vector<32x128xf32>,
      %211 = tpu.iota {dimensions = array<i32: 0>} : vector<16x16xi32>
      %212 = tpu.iota {dimensions = array<i32: 1>} : vector<16x16xi32>
      %c7_i32 = arith.constant 7 : i32
      %213 = vector.broadcast %c7_i32 : i32 to vector<16x16xi32>
      %214 = arith.cmpi slt, %212, %213 : vector<16x16xi32>
      %215 = arith.cmpi eq, %212, %211 : vector<16x16xi32>
      %216 = arith.ori %214, %215 : vector<16x16xi1>
      %cst_89 = arith.constant 0.000000e+00 : f32
      %cst_90 = arith.constant -1.000000e+30 : f32
      %217 = vector.broadcast %cst_89 : f32 to vector<16x16xf32>
      %218 = vector.broadcast %cst_90 : f32 to vector<16x16xf32>
      %219 = arith.select %216, %217, %218 : vector<16x16xi1>, vector<16x16xf32>
      %c0_91 = arith.constant 0 : index
      %c0_92 = arith.constant 0 : index
      %220 = vector.load %arg18[%c0_91, %c0_92] : memref<16x16xf32, #tpu.memory_space<vmem>>, vector<16x16xf32>
      tpu.vector_store %arg18[%c0_91, %c0_92], %219 {strides = array<i32>} : memref<16x16xf32, #tpu.memory_space<vmem>>, vector<16x16xf32>,
    } else {
    }
    %c0 = arith.constant 0 : index
    %c0_1 = arith.constant 0 : index
    %c0_2 = arith.constant 0 : index
    %3 = vector.load %arg9[%c0, %c0_1, %c0_2] : memref<1x8x1536xf32, #tpu.memory_space<vmem>>, vector<1x8x1536xf32>
    %4 = vector.shape_cast %3 : vector<1x8x1536xf32> to vector<8x1536xf32>
    %5 = vector.extract_strided_slice %4 {offsets = [0, 0], sizes = [1, 1536], strides = [1, 1]} : vector<8x1536xf32> to vector<1x1536xf32>
    %6 = vector.extract_strided_slice %4 {offsets = [1, 0], sizes = [1, 128], strides = [1, 1]} : vector<8x1536xf32> to vector<1x128xf32>
    %7 = vector.extract_strided_slice %4 {offsets = [2, 0], sizes = [1, 128], strides = [1, 1]} : vector<8x1536xf32> to vector<1x128xf32>
    %8 = vector.extract_strided_slice %4 {offsets = [3, 0], sizes = [1, 128], strides = [1, 1]} : vector<8x1536xf32> to vector<1x128xf32>
    %9 = vector.extract_strided_slice %4 {offsets = [4, 0], sizes = [1, 128], strides = [1, 1]} : vector<8x1536xf32> to vector<1x128xf32>
    %10 = vector.extract_strided_slice %4 {offsets = [5, 0], sizes = [1, 128], strides = [1, 1]} : vector<8x1536xf32> to vector<1x128xf32>
    %11 = vector.extract_strided_slice %4 {offsets = [6, 0], sizes = [1, 128], strides = [1, 1]} : vector<8x1536xf32> to vector<1x128xf32>
    %12 = vector.extract_strided_slice %4 {offsets = [7, 0], sizes = [1, 128], strides = [1, 1]} : vector<8x1536xf32> to vector<1x128xf32>
    %c0_3 = arith.constant 0 : index
    %c0_4 = arith.constant 0 : index
    %13 = vector.load %arg15[%c0_3, %c0_4] : memref<32x128xf32, #tpu.memory_space<vmem>>, vector<32x128xf32>
    %14 = arith.truncf %13 : vector<32x128xf32> to vector<32x128xbf16>
    %c0_5 = arith.constant 0 : index
    %c0_6 = arith.constant 0 : index
    %c0_7 = arith.constant 0 : index
    %15 = vector.load %arg5[%c0_5, %c0_6, %c0_7] : memref<1x128x1536xbf16, #tpu.memory_space<vmem>>, vector<1x128x1536xbf16>
    %16 = vector.shape_cast %15 : vector<1x128x1536xbf16> to vector<128x1536xbf16>
    %cst = arith.constant dense<0.000000e+00> : vector<32x1536xf32>
    %17 = tpu.matmul %14, %16, %cst {dimension_numbers = #tpu.dot_dimension_numbers<[1], [0], [0], [1], [0, 0, 1, 1], [], []>} : vector<32x128xbf16>, vector<128x1536xbf16>, vector<32x1536xf32> -> vector<32x1536xf32>
    %18 = vector.broadcast %5 : vector<1x1536xf32> to vector<32x1536xf32>
    %19 = arith.addf %17, %18 : vector<32x1536xf32>
    %20 = arith.truncf %19 : vector<32x1536xf32> to vector<32x1536xbf16>
    %c0_8 = arith.constant 0 : index
    %c0_9 = arith.constant 0 : index
    %21 = vector.load %arg16[%c0_8, %c0_9] : memref<32x1536xbf16, #tpu.memory_space<vmem>>, vector<32x1536xbf16>
    tpu.vector_store %arg16[%c0_8, %c0_9], %20 {strides = array<i32>} : memref<32x1536xbf16, #tpu.memory_space<vmem>>, vector<32x1536xbf16>,
    %c0_10 = arith.constant 0 : index
    %c0_11 = arith.constant 0 : index
    %22 = vector.load %arg18[%c0_10, %c0_11] : memref<16x16xf32, #tpu.memory_space<vmem>>, vector<16x16xf32>
    %c0_12 = arith.constant 0 : index
    %c0_13 = arith.constant 0 : index
    %23 = vector.load %arg16[%c0_12, %c0_13] : memref<32x1536xbf16, #tpu.memory_space<vmem>>, vector<32x128xbf16>
    %c0_14 = arith.constant 0 : index
    %c512 = arith.constant 512 : index
    %24 = vector.load %arg16[%c0_14, %c512] : memref<32x1536xbf16, #tpu.memory_space<vmem>>, vector<32x128xbf16>
    %c0_15 = arith.constant 0 : index
    %c1024 = arith.constant 1024 : index
    %25 = vector.load %arg16[%c0_15, %c1024] : memref<32x1536xbf16, #tpu.memory_space<vmem>>, vector<32x128xbf16>
    %26 = vector.shape_cast %23 : vector<32x128xbf16> to vector<2x16x128xbf16>
    %27 = vector.shape_cast %24 : vector<32x128xbf16> to vector<2x16x128xbf16>
    %28 = vector.shape_cast %25 : vector<32x128xbf16> to vector<2x16x128xbf16>
    "tpu.trace_start"() <{level = 10 : i32, message = "bsd,btd->bst"}> : () -> ()
    %cst_16 = arith.constant dense<0.000000e+00> : vector<2x16x16xf32>
    %29 = tpu.matmul %26, %27, %cst_16 {dimension_numbers = #tpu.dot_dimension_numbers<[2], [2], [1], [1], [0, 0, 0, 1, 1, 1], [0], [0]>} : vector<2x16x128xbf16>, vector<2x16x128xbf16>, vector<2x16x16xf32> -> vector<2x16x16xf32>
    "tpu.trace_stop"() : () -> ()
    %30 = vector.shape_cast %22 : vector<16x16xf32> to vector<1x16x16xf32>
    %31 = vector.broadcast %30 : vector<1x16x16xf32> to vector<2x16x16xf32>
    %32 = arith.addf %29, %31 : vector<2x16x16xf32>
    %cst_17 = arith.constant dense<0xFF800000> : vector<2x16xf32>
    %33 = vector.multi_reduction <maximumf>, %32, %cst_17 [2] : vector<2x16x16xf32> to vector<2x16xf32>
    %34 = vector.shape_cast %33 : vector<2x16xf32> to vector<2x16x1xf32>
    %35 = vector.broadcast %34 : vector<2x16x1xf32> to vector<2x16x16xf32>
    %36 = arith.subf %32, %35 : vector<2x16x16xf32>
    %37 = math.exp %36 : vector<2x16x16xf32>
    %cst_18 = arith.constant dense<0.000000e+00> : vector<2x16xf32>
    %38 = vector.multi_reduction <add>, %37, %cst_18 [2] : vector<2x16x16xf32> to vector<2x16xf32>
    %39 = vector.shape_cast %38 : vector<2x16xf32> to vector<2x16x1xf32>
    %40 = tpu.reciprocal %39 {approx = true} : vector<2x16x1xf32> -> vector<2x16x1xf32>
    %41 = vector.broadcast %40 : vector<2x16x1xf32> to vector<2x16x16xf32>
    %42 = arith.mulf %37, %41 : vector<2x16x16xf32>
    %43 = arith.truncf %42 : vector<2x16x16xf32> to vector<2x16x16xbf16>
    "tpu.trace_start"() <{level = 10 : i32, message = "bst,btd->bsd"}> : () -> ()
    %cst_19 = arith.constant dense<0.000000e+00> : vector<2x16x128xf32>
    %44 = tpu.matmul %43, %28, %cst_19 {dimension_numbers = #tpu.dot_dimension_numbers<[2], [1], [1], [2], [0, 0, 0, 1, 1, 2], [0], [0]>} : vector<2x16x16xbf16>, vector<2x16x128xbf16>, vector<2x16x128xf32> -> vector<2x16x128xf32>
    "tpu.trace_stop"() : () -> ()
    %45 = vector.shape_cast %44 : vector<2x16x128xf32> to vector<32x128xf32>
    %46 = arith.truncf %45 : vector<32x128xf32> to vector<32x128xbf16>
    %c0_20 = arith.constant 0 : index
    %c0_21 = arith.constant 0 : index
    %47 = vector.load %arg17[%c0_20, %c0_21] : memref<32x512xbf16, #tpu.memory_space<vmem>>, vector<32x128xbf16>
    tpu.vector_store %arg17[%c0_20, %c0_21], %46 {strides = array<i32>} : memref<32x512xbf16, #tpu.memory_space<vmem>>, vector<32x128xbf16>,
    %c0_22 = arith.constant 0 : index
    %c128 = arith.constant 128 : index
    %48 = vector.load %arg16[%c0_22, %c128] : memref<32x1536xbf16, #tpu.memory_space<vmem>>, vector<32x128xbf16>
    %c0_23 = arith.constant 0 : index
    %c640 = arith.constant 640 : index
    %49 = vector.load %arg16[%c0_23, %c640] : memref<32x1536xbf16, #tpu.memory_space<vmem>>, vector<32x128xbf16>
    %c0_24 = arith.constant 0 : index
    %c1152 = arith.constant 1152 : index
    %50 = vector.load %arg16[%c0_24, %c1152] : memref<32x1536xbf16, #tpu.memory_space<vmem>>, vector<32x128xbf16>
    %51 = vector.shape_cast %48 : vector<32x128xbf16> to vector<2x16x128xbf16>
    %52 = vector.shape_cast %49 : vector<32x128xbf16> to vector<2x16x128xbf16>
    %53 = vector.shape_cast %50 : vector<32x128xbf16> to vector<2x16x128xbf16>
    "tpu.trace_start"() <{level = 10 : i32, message = "bsd,btd->bst"}> : () -> ()
    %cst_25 = arith.constant dense<0.000000e+00> : vector<2x16x16xf32>
    %54 = tpu.matmul %51, %52, %cst_25 {dimension_numbers = #tpu.dot_dimension_numbers<[2], [2], [1], [1], [0, 0, 0, 1, 1, 1], [0], [0]>} : vector<2x16x128xbf16>, vector<2x16x128xbf16>, vector<2x16x16xf32> -> vector<2x16x16xf32>
    "tpu.trace_stop"() : () -> ()
    %55 = vector.shape_cast %22 : vector<16x16xf32> to vector<1x16x16xf32>
    %56 = vector.broadcast %55 : vector<1x16x16xf32> to vector<2x16x16xf32>
    %57 = arith.addf %54, %56 : vector<2x16x16xf32>
    %cst_26 = arith.constant dense<0xFF800000> : vector<2x16xf32>
    %58 = vector.multi_reduction <maximumf>, %57, %cst_26 [2] : vector<2x16x16xf32> to vector<2x16xf32>
    %59 = vector.shape_cast %58 : vector<2x16xf32> to vector<2x16x1xf32>
    %60 = vector.broadcast %59 : vector<2x16x1xf32> to vector<2x16x16xf32>
    %61 = arith.subf %57, %60 : vector<2x16x16xf32>
    %62 = math.exp %61 : vector<2x16x16xf32>
    %cst_27 = arith.constant dense<0.000000e+00> : vector<2x16xf32>
    %63 = vector.multi_reduction <add>, %62, %cst_27 [2] : vector<2x16x16xf32> to vector<2x16xf32>
    %64 = vector.shape_cast %63 : vector<2x16xf32> to vector<2x16x1xf32>
    %65 = tpu.reciprocal %64 {approx = true} : vector<2x16x1xf32> -> vector<2x16x1xf32>
    %66 = vector.broadcast %65 : vector<2x16x1xf32> to vector<2x16x16xf32>
    %67 = arith.mulf %62, %66 : vector<2x16x16xf32>
    %68 = arith.truncf %67 : vector<2x16x16xf32> to vector<2x16x16xbf16>
    "tpu.trace_start"() <{level = 10 : i32, message = "bst,btd->bsd"}> : () -> ()
    %cst_28 = arith.constant dense<0.000000e+00> : vector<2x16x128xf32>
    %69 = tpu.matmul %68, %53, %cst_28 {dimension_numbers = #tpu.dot_dimension_numbers<[2], [1], [1], [2], [0, 0, 0, 1, 1, 2], [0], [0]>} : vector<2x16x16xbf16>, vector<2x16x128xbf16>, vector<2x16x128xf32> -> vector<2x16x128xf32>
    "tpu.trace_stop"() : () -> ()
    %70 = vector.shape_cast %69 : vector<2x16x128xf32> to vector<32x128xf32>
    %71 = arith.truncf %70 : vector<32x128xf32> to vector<32x128xbf16>
    %c0_29 = arith.constant 0 : index
    %c128_30 = arith.constant 128 : index
    %72 = vector.load %arg17[%c0_29, %c128_30] : memref<32x512xbf16, #tpu.memory_space<vmem>>, vector<32x128xbf16>
    tpu.vector_store %arg17[%c0_29, %c128_30], %71 {strides = array<i32>} : memref<32x512xbf16, #tpu.memory_space<vmem>>, vector<32x128xbf16>,
    %c0_31 = arith.constant 0 : index
    %c256 = arith.constant 256 : index
    %73 = vector.load %arg16[%c0_31, %c256] : memref<32x1536xbf16, #tpu.memory_space<vmem>>, vector<32x128xbf16>
    %c0_32 = arith.constant 0 : index
    %c768 = arith.constant 768 : index
    %74 = vector.load %arg16[%c0_32, %c768] : memref<32x1536xbf16, #tpu.memory_space<vmem>>, vector<32x128xbf16>
    %c0_33 = arith.constant 0 : index
    %c1280 = arith.constant 1280 : index
    %75 = vector.load %arg16[%c0_33, %c1280] : memref<32x1536xbf16, #tpu.memory_space<vmem>>, vector<32x128xbf16>
    %76 = vector.shape_cast %73 : vector<32x128xbf16> to vector<2x16x128xbf16>
    %77 = vector.shape_cast %74 : vector<32x128xbf16> to vector<2x16x128xbf16>
    %78 = vector.shape_cast %75 : vector<32x128xbf16> to vector<2x16x128xbf16>
    "tpu.trace_start"() <{level = 10 : i32, message = "bsd,btd->bst"}> : () -> ()
    %cst_34 = arith.constant dense<0.000000e+00> : vector<2x16x16xf32>
    %79 = tpu.matmul %76, %77, %cst_34 {dimension_numbers = #tpu.dot_dimension_numbers<[2], [2], [1], [1], [0, 0, 0, 1, 1, 1], [0], [0]>} : vector<2x16x128xbf16>, vector<2x16x128xbf16>, vector<2x16x16xf32> -> vector<2x16x16xf32>
    "tpu.trace_stop"() : () -> ()
    %80 = vector.shape_cast %22 : vector<16x16xf32> to vector<1x16x16xf32>
    %81 = vector.broadcast %80 : vector<1x16x16xf32> to vector<2x16x16xf32>
    %82 = arith.addf %79, %81 : vector<2x16x16xf32>
    %cst_35 = arith.constant dense<0xFF800000> : vector<2x16xf32>
    %83 = vector.multi_reduction <maximumf>, %82, %cst_35 [2] : vector<2x16x16xf32> to vector<2x16xf32>
    %84 = vector.shape_cast %83 : vector<2x16xf32> to vector<2x16x1xf32>
    %85 = vector.broadcast %84 : vector<2x16x1xf32> to vector<2x16x16xf32>
    %86 = arith.subf %82, %85 : vector<2x16x16xf32>
    %87 = math.exp %86 : vector<2x16x16xf32>
    %cst_36 = arith.constant dense<0.000000e+00> : vector<2x16xf32>
    %88 = vector.multi_reduction <add>, %87, %cst_36 [2] : vector<2x16x16xf32> to vector<2x16xf32>
    %89 = vector.shape_cast %88 : vector<2x16xf32> to vector<2x16x1xf32>
    %90 = tpu.reciprocal %89 {approx = true} : vector<2x16x1xf32> -> vector<2x16x1xf32>
    %91 = vector.broadcast %90 : vector<2x16x1xf32> to vector<2x16x16xf32>
    %92 = arith.mulf %87, %91 : vector<2x16x16xf32>
    %93 = arith.truncf %92 : vector<2x16x16xf32> to vector<2x16x16xbf16>
    "tpu.trace_start"() <{level = 10 : i32, message = "bst,btd->bsd"}> : () -> ()
    %cst_37 = arith.constant dense<0.000000e+00> : vector<2x16x128xf32>
    %94 = tpu.matmul %93, %78, %cst_37 {dimension_numbers = #tpu.dot_dimension_numbers<[2], [1], [1], [2], [0, 0, 0, 1, 1, 2], [0], [0]>} : vector<2x16x16xbf16>, vector<2x16x128xbf16>, vector<2x16x128xf32> -> vector<2x16x128xf32>
    "tpu.trace_stop"() : () -> ()
    %95 = vector.shape_cast %94 : vector<2x16x128xf32> to vector<32x128xf32>
    %96 = arith.truncf %95 : vector<32x128xf32> to vector<32x128xbf16>
    %c0_38 = arith.constant 0 : index
    %c256_39 = arith.constant 256 : index
    %97 = vector.load %arg17[%c0_38, %c256_39] : memref<32x512xbf16, #tpu.memory_space<vmem>>, vector<32x128xbf16>
    tpu.vector_store %arg17[%c0_38, %c256_39], %96 {strides = array<i32>} : memref<32x512xbf16, #tpu.memory_space<vmem>>, vector<32x128xbf16>,
    %c0_40 = arith.constant 0 : index
    %c384 = arith.constant 384 : index
    %98 = vector.load %arg16[%c0_40, %c384] : memref<32x1536xbf16, #tpu.memory_space<vmem>>, vector<32x128xbf16>
    %c0_41 = arith.constant 0 : index
    %c896 = arith.constant 896 : index
    %99 = vector.load %arg16[%c0_41, %c896] : memref<32x1536xbf16, #tpu.memory_space<vmem>>, vector<32x128xbf16>
    %c0_42 = arith.constant 0 : index
    %c1408 = arith.constant 1408 : index
    %100 = vector.load %arg16[%c0_42, %c1408] : memref<32x1536xbf16, #tpu.memory_space<vmem>>, vector<32x128xbf16>
    %101 = vector.shape_cast %98 : vector<32x128xbf16> to vector<2x16x128xbf16>
    %102 = vector.shape_cast %99 : vector<32x128xbf16> to vector<2x16x128xbf16>
    %103 = vector.shape_cast %100 : vector<32x128xbf16> to vector<2x16x128xbf16>
    "tpu.trace_start"() <{level = 10 : i32, message = "bsd,btd->bst"}> : () -> ()
    %cst_43 = arith.constant dense<0.000000e+00> : vector<2x16x16xf32>
    %104 = tpu.matmul %101, %102, %cst_43 {dimension_numbers = #tpu.dot_dimension_numbers<[2], [2], [1], [1], [0, 0, 0, 1, 1, 1], [0], [0]>} : vector<2x16x128xbf16>, vector<2x16x128xbf16>, vector<2x16x16xf32> -> vector<2x16x16xf32>
    "tpu.trace_stop"() : () -> ()
    %105 = vector.shape_cast %22 : vector<16x16xf32> to vector<1x16x16xf32>
    %106 = vector.broadcast %105 : vector<1x16x16xf32> to vector<2x16x16xf32>
    %107 = arith.addf %104, %106 : vector<2x16x16xf32>
    %cst_44 = arith.constant dense<0xFF800000> : vector<2x16xf32>
    %108 = vector.multi_reduction <maximumf>, %107, %cst_44 [2] : vector<2x16x16xf32> to vector<2x16xf32>
    %109 = vector.shape_cast %108 : vector<2x16xf32> to vector<2x16x1xf32>
    %110 = vector.broadcast %109 : vector<2x16x1xf32> to vector<2x16x16xf32>
    %111 = arith.subf %107, %110 : vector<2x16x16xf32>
    %112 = math.exp %111 : vector<2x16x16xf32>
    %cst_45 = arith.constant dense<0.000000e+00> : vector<2x16xf32>
    %113 = vector.multi_reduction <add>, %112, %cst_45 [2] : vector<2x16x16xf32> to vector<2x16xf32>
    %114 = vector.shape_cast %113 : vector<2x16xf32> to vector<2x16x1xf32>
    %115 = tpu.reciprocal %114 {approx = true} : vector<2x16x1xf32> -> vector<2x16x1xf32>
    %116 = vector.broadcast %115 : vector<2x16x1xf32> to vector<2x16x16xf32>
    %117 = arith.mulf %112, %116 : vector<2x16x16xf32>
    %118 = arith.truncf %117 : vector<2x16x16xf32> to vector<2x16x16xbf16>
    "tpu.trace_start"() <{level = 10 : i32, message = "bst,btd->bsd"}> : () -> ()
    %cst_46 = arith.constant dense<0.000000e+00> : vector<2x16x128xf32>
    %119 = tpu.matmul %118, %103, %cst_46 {dimension_numbers = #tpu.dot_dimension_numbers<[2], [1], [1], [2], [0, 0, 0, 1, 1, 2], [0], [0]>} : vector<2x16x16xbf16>, vector<2x16x128xbf16>, vector<2x16x128xf32> -> vector<2x16x128xf32>
    "tpu.trace_stop"() : () -> ()
    %120 = vector.shape_cast %119 : vector<2x16x128xf32> to vector<32x128xf32>
    %121 = arith.truncf %120 : vector<32x128xf32> to vector<32x128xbf16>
    %c0_47 = arith.constant 0 : index
    %c384_48 = arith.constant 384 : index
    %122 = vector.load %arg17[%c0_47, %c384_48] : memref<32x512xbf16, #tpu.memory_space<vmem>>, vector<32x128xbf16>
    tpu.vector_store %arg17[%c0_47, %c384_48], %121 {strides = array<i32>} : memref<32x512xbf16, #tpu.memory_space<vmem>>, vector<32x128xbf16>,
    %c0_49 = arith.constant 0 : index
    %c0_50 = arith.constant 0 : index
    %123 = vector.load %arg17[%c0_49, %c0_50] : memref<32x512xbf16, #tpu.memory_space<vmem>>, vector<32x512xbf16>
    %c0_51 = arith.constant 0 : index
    %c0_52 = arith.constant 0 : index
    %c0_53 = arith.constant 0 : index
    %124 = vector.load %arg6[%c0_51, %c0_52, %c0_53] : memref<1x512x128xbf16, #tpu.memory_space<vmem>>, vector<1x512x128xbf16>
    %125 = vector.shape_cast %124 : vector<1x512x128xbf16> to vector<512x128xbf16>
    %cst_54 = arith.constant dense<0.000000e+00> : vector<32x128xf32>
    %126 = tpu.matmul %123, %125, %cst_54 {dimension_numbers = #tpu.dot_dimension_numbers<[1], [0], [0], [1], [0, 0, 1, 1], [], []>} : vector<32x512xbf16>, vector<512x128xbf16>, vector<32x128xf32> -> vector<32x128xf32>
    %127 = vector.broadcast %6 : vector<1x128xf32> to vector<32x128xf32>
    %128 = arith.addf %126, %127 : vector<32x128xf32>
    %129 = arith.addf %13, %128 : vector<32x128xf32>
    %cst_55 = arith.constant dense<0.000000e+00> : vector<32xf32>
    %130 = vector.multi_reduction <add>, %129, %cst_55 [1] : vector<32x128xf32> to vector<32xf32>
    %131 = vector.shape_cast %130 : vector<32xf32> to vector<32x1xf32>
    %cst_56 = arith.constant 3.125000e-02 : f32
    %132 = vector.broadcast %cst_56 : f32 to vector<32x1xf32>
    %133 = arith.mulf %131, %132 : vector<32x1xf32>
    %134 = arith.mulf %129, %129 : vector<32x128xf32>
    %cst_57 = arith.constant dense<0.000000e+00> : vector<32xf32>
    %135 = vector.multi_reduction <add>, %134, %cst_57 [1] : vector<32x128xf32> to vector<32xf32>
    %136 = vector.shape_cast %135 : vector<32xf32> to vector<32x1xf32>
    %cst_58 = arith.constant 3.125000e-02 : f32
    %137 = vector.broadcast %cst_58 : f32 to vector<32x1xf32>
    %138 = arith.mulf %136, %137 : vector<32x1xf32>
    %139 = arith.mulf %133, %133 : vector<32x1xf32>
    %140 = arith.subf %138, %139 : vector<32x1xf32>
    %141 = vector.broadcast %133 : vector<32x1xf32> to vector<32x128xf32>
    %142 = arith.subf %129, %141 : vector<32x128xf32>
    %cst_59 = arith.constant 9.99999974E-6 : f32
    %143 = vector.broadcast %cst_59 : f32 to vector<32x1xf32>
    %144 = arith.addf %140, %143 : vector<32x1xf32>
    %145 = math.rsqrt %144 : vector<32x1xf32>
    %146 = vector.broadcast %145 : vector<32x1xf32> to vector<32x128xf32>
    %147 = arith.mulf %142, %146 : vector<32x128xf32>
    %148 = vector.broadcast %9 : vector<1x128xf32> to vector<32x128xf32>
    %149 = arith.mulf %147, %148 : vector<32x128xf32>
    %150 = vector.broadcast %10 : vector<1x128xf32> to vector<32x128xf32>
    %151 = arith.addf %149, %150 : vector<32x128xf32>
    %152 = arith.truncf %151 : vector<32x128xf32> to vector<32x128xbf16>
    %c0_60 = arith.constant 0 : index
    %c0_61 = arith.constant 0 : index
    %c0_62 = arith.constant 0 : index
    %153 = vector.load %arg7[%c0_60, %c0_61, %c0_62] : memref<1x128x128xbf16, #tpu.memory_space<vmem>>, vector<1x128x128xbf16>
    %154 = vector.shape_cast %153 : vector<1x128x128xbf16> to vector<128x128xbf16>
    %cst_63 = arith.constant dense<0.000000e+00> : vector<32x128xf32>
    %155 = tpu.matmul %152, %154, %cst_63 {dimension_numbers = #tpu.dot_dimension_numbers<[1], [0], [0], [1], [0, 0, 1, 1], [], []>} : vector<32x128xbf16>, vector<128x128xbf16>, vector<32x128xf32> -> vector<32x128xf32>
    %156 = vector.broadcast %7 : vector<1x128xf32> to vector<32x128xf32>
    %157 = arith.addf %155, %156 : vector<32x128xf32>
    %cst_64 = arith.constant 5.000000e-01 : f32
    %158 = vector.broadcast %cst_64 : f32 to vector<32x128xf32>
    %159 = arith.mulf %158, %157 : vector<32x128xf32>
    %cst_65 = arith.constant 4.471500e-02 : f32
    %160 = vector.broadcast %cst_65 : f32 to vector<32x128xf32>
    %161 = arith.mulf %160, %157 : vector<32x128xf32>
    %162 = arith.mulf %161, %157 : vector<32x128xf32>
    %163 = arith.mulf %162, %157 : vector<32x128xf32>
    %164 = arith.addf %157, %163 : vector<32x128xf32>
    %cst_66 = arith.constant 0.797884583 : f32
    %165 = vector.broadcast %cst_66 : f32 to vector<32x128xf32>
    %166 = arith.mulf %165, %164 : vector<32x128xf32>
    %167 = math.tanh %166 : vector<32x128xf32>
    %cst_67 = arith.constant 1.000000e+00 : f32
    %168 = vector.broadcast %cst_67 : f32 to vector<32x128xf32>
    %169 = arith.addf %168, %167 : vector<32x128xf32>
    %170 = arith.mulf %159, %169 : vector<32x128xf32>
    %171 = arith.truncf %170 : vector<32x128xf32> to vector<32x128xbf16>
    %c0_68 = arith.constant 0 : index
    %c0_69 = arith.constant 0 : index
    %c0_70 = arith.constant 0 : index
    %172 = vector.load %arg8[%c0_68, %c0_69, %c0_70] : memref<1x128x128xbf16, #tpu.memory_space<vmem>>, vector<1x128x128xbf16>
    %173 = vector.shape_cast %172 : vector<1x128x128xbf16> to vector<128x128xbf16>
    %cst_71 = arith.constant dense<0.000000e+00> : vector<32x128xf32>
    %174 = tpu.matmul %171, %173, %cst_71 {dimension_numbers = #tpu.dot_dimension_numbers<[1], [0], [0], [1], [0, 0, 1, 1], [], []>} : vector<32x128xbf16>, vector<128x128xbf16>, vector<32x128xf32> -> vector<32x128xf32>
    %175 = vector.broadcast %8 : vector<1x128xf32> to vector<32x128xf32>
    %176 = arith.addf %174, %175 : vector<32x128xf32>
    %177 = arith.addf %151, %176 : vector<32x128xf32>
    %cst_72 = arith.constant dense<0.000000e+00> : vector<32xf32>
    %178 = vector.multi_reduction <add>, %177, %cst_72 [1] : vector<32x128xf32> to vector<32xf32>
    %179 = vector.shape_cast %178 : vector<32xf32> to vector<32x1xf32>
    %cst_73 = arith.constant 3.125000e-02 : f32
    %180 = vector.broadcast %cst_73 : f32 to vector<32x1xf32>
    %181 = arith.mulf %179, %180 : vector<32x1xf32>
    %182 = arith.mulf %177, %177 : vector<32x128xf32>
    %cst_74 = arith.constant dense<0.000000e+00> : vector<32xf32>
    %183 = vector.multi_reduction <add>, %182, %cst_74 [1] : vector<32x128xf32> to vector<32xf32>
    %184 = vector.shape_cast %183 : vector<32xf32> to vector<32x1xf32>
    %cst_75 = arith.constant 3.125000e-02 : f32
    %185 = vector.broadcast %cst_75 : f32 to vector<32x1xf32>
    %186 = arith.mulf %184, %185 : vector<32x1xf32>
    %187 = arith.mulf %181, %181 : vector<32x1xf32>
    %188 = arith.subf %186, %187 : vector<32x1xf32>
    %189 = vector.broadcast %181 : vector<32x1xf32> to vector<32x128xf32>
    %190 = arith.subf %177, %189 : vector<32x128xf32>
    %cst_76 = arith.constant 9.99999974E-6 : f32
    %191 = vector.broadcast %cst_76 : f32 to vector<32x1xf32>
    %192 = arith.addf %188, %191 : vector<32x1xf32>
    %193 = math.rsqrt %192 : vector<32x1xf32>
    %194 = vector.broadcast %193 : vector<32x1xf32> to vector<32x128xf32>
    %195 = arith.mulf %190, %194 : vector<32x128xf32>
    %196 = vector.broadcast %11 : vector<1x128xf32> to vector<32x128xf32>
    %197 = arith.mulf %195, %196 : vector<32x128xf32>
    %198 = vector.broadcast %12 : vector<1x128xf32> to vector<32x128xf32>
    %199 = arith.addf %197, %198 : vector<32x128xf32>
    %c0_77 = arith.constant 0 : index
    %c0_78 = arith.constant 0 : index
    %200 = vector.load %arg15[%c0_77, %c0_78] : memref<32x128xf32, #tpu.memory_space<vmem>>, vector<32x128xf32>
    tpu.vector_store %arg15[%c0_77, %c0_78], %199 {strides = array<i32>} : memref<32x128xf32, #tpu.memory_space<vmem>>, vector<32x128xf32>,
    %c1_i32 = arith.constant 1 : i32
    %201 = arith.cmpi eq, %arg1, %c1_i32 : i32
    %202 = arith.extui %201 : i1 to i32
    %c0_i32_79 = arith.constant 0 : i32
    %203 = arith.cmpi ne, %202, %c0_i32_79 : i32
    scf.if %203 {
      %204 = arith.truncf %199 : vector<32x128xf32> to vector<32x128xbf16>
      %c0_80 = arith.constant 0 : index
      %c0_81 = arith.constant 0 : index
      %205 = vector.load %arg10[%c0_80, %c0_81] : memref<128x128xbf16, #tpu.memory_space<vmem>>, vector<128x128xbf16>
      %cst_82 = arith.constant dense<0.000000e+00> : vector<32x128xf32>
      %206 = tpu.matmul %204, %205, %cst_82 {dimension_numbers = #tpu.dot_dimension_numbers<[1], [0], [0], [1], [0, 0, 1, 1], [], []>} : vector<32x128xbf16>, vector<128x128xbf16>, vector<32x128xf32> -> vector<32x128xf32>
      %c0_83 = arith.constant 0 : index
      %c0_84 = arith.constant 0 : index
      %207 = vector.load %arg11[%c0_83, %c0_84] : memref<1x128xf32, #tpu.memory_space<vmem>>, vector<1x128xf32>
      %208 = vector.broadcast %207 : vector<1x128xf32> to vector<32x128xf32>
      %209 = arith.addf %206, %208 : vector<32x128xf32>
      %cst_85 = arith.constant 5.000000e-01 : f32
      %210 = vector.broadcast %cst_85 : f32 to vector<32x128xf32>
      %211 = arith.mulf %210, %209 : vector<32x128xf32>
      %cst_86 = arith.constant 4.471500e-02 : f32
      %212 = vector.broadcast %cst_86 : f32 to vector<32x128xf32>
      %213 = arith.mulf %212, %209 : vector<32x128xf32>
      %214 = arith.mulf %213, %209 : vector<32x128xf32>
      %215 = arith.mulf %214, %209 : vector<32x128xf32>
      %216 = arith.addf %209, %215 : vector<32x128xf32>
      %cst_87 = arith.constant 0.797884583 : f32
      %217 = vector.broadcast %cst_87 : f32 to vector<32x128xf32>
      %218 = arith.mulf %217, %216 : vector<32x128xf32>
      %219 = math.tanh %218 : vector<32x128xf32>
      %cst_88 = arith.constant 1.000000e+00 : f32
      %220 = vector.broadcast %cst_88 : f32 to vector<32x128xf32>
      %221 = arith.addf %220, %219 : vector<32x128xf32>
      %222 = arith.mulf %211, %221 : vector<32x128xf32>
      %223 = arith.truncf %222 : vector<32x128xf32> to vector<32x128xbf16>
      %c0_89 = arith.constant 0 : index
      %c0_90 = arith.constant 0 : index
      %224 = vector.load %arg12[%c0_89, %c0_90] : memref<128x128xbf16, #tpu.memory_space<vmem>>, vector<128x128xbf16>
      %cst_91 = arith.constant dense<0.000000e+00> : vector<32x128xf32>
      %225 = tpu.matmul %223, %224, %cst_91 {dimension_numbers = #tpu.dot_dimension_numbers<[1], [0], [0], [1], [0, 0, 1, 1], [], []>} : vector<32x128xbf16>, vector<128x128xbf16>, vector<32x128xf32> -> vector<32x128xf32>
      %c0_92 = arith.constant 0 : index
      %c0_93 = arith.constant 0 : index
      %226 = vector.load %arg13[%c0_92, %c0_93] : memref<1x128xf32, #tpu.memory_space<vmem>>, vector<1x128xf32>
      %227 = vector.broadcast %226 : vector<1x128xf32> to vector<32x128xf32>
      %228 = arith.addf %225, %227 : vector<32x128xf32>
      %c0_94 = arith.constant 0 : index
      %c0_95 = arith.constant 0 : index
      %229 = vector.load %arg14[%c0_94, %c0_95] : memref<32x128xf32, #tpu.memory_space<vmem>>, vector<32x128xf32>
      tpu.vector_store %arg14[%c0_94, %c0_95], %228 {strides = array<i32>} : memref<32x128xf32, #tpu.memory_space<vmem>>, vector<32x128xf32>,
    } else {
    }
    return
  }
  func.func @transform_0(%arg0: i32, %arg1: i32) -> (i32, i32) {
    %c0_i32 = arith.constant 0 : i32
    %c0_i32_0 = arith.constant 0 : i32
    return %arg0, %c0_i32 : i32, i32
  }
  func.func @transform_1(%arg0: i32, %arg1: i32) -> (i32, i32) {
    %c0_i32 = arith.constant 0 : i32
    %c0_i32_0 = arith.constant 0 : i32
    %c0_i32_1 = arith.constant 0 : i32
    return %c0_i32, %c0_i32_0 : i32, i32
  }
  func.func @transform_2(%arg0: i32, %arg1: i32) -> (i32, i32) {
    %c0_i32 = arith.constant 0 : i32
    %c0_i32_0 = arith.constant 0 : i32
    %c0_i32_1 = arith.constant 0 : i32
    return %c0_i32, %c0_i32_0 : i32, i32
  }
  func.func @transform_3(%arg0: i32, %arg1: i32) -> (i32, i32, i32) {
    %c0_i32 = arith.constant 0 : i32
    %c0_i32_0 = arith.constant 0 : i32
    %c0_i32_1 = arith.constant 0 : i32
    return %arg1, %c0_i32, %c0_i32_0 : i32, i32, i32
  }
  func.func @transform_4(%arg0: i32, %arg1: i32) -> (i32, i32, i32) {
    %c0_i32 = arith.constant 0 : i32
    %c0_i32_0 = arith.constant 0 : i32
    %c0_i32_1 = arith.constant 0 : i32
    return %arg1, %c0_i32, %c0_i32_0 : i32, i32, i32
  }
  func.func @transform_5(%arg0: i32, %arg1: i32) -> (i32, i32, i32) {
    %c0_i32 = arith.constant 0 : i32
    %c0_i32_0 = arith.constant 0 : i32
    %c0_i32_1 = arith.constant 0 : i32
    return %arg1, %c0_i32, %c0_i32_0 : i32, i32, i32
  }
  func.func @transform_6(%arg0: i32, %arg1: i32) -> (i32, i32, i32) {
    %c0_i32 = arith.constant 0 : i32
    %c0_i32_0 = arith.constant 0 : i32
    %c0_i32_1 = arith.constant 0 : i32
    return %arg1, %c0_i32, %c0_i32_0 : i32, i32, i32
  }
  func.func @transform_7(%arg0: i32, %arg1: i32) -> (i32, i32, i32) {
    %c0_i32 = arith.constant 0 : i32
    %c0_i32_0 = arith.constant 0 : i32
    %c0_i32_1 = arith.constant 0 : i32
    return %arg1, %c0_i32, %c0_i32_0 : i32, i32, i32
  }
  func.func @transform_8(%arg0: i32, %arg1: i32) -> (i32, i32) {
    %c0_i32 = arith.constant 0 : i32
    %c0_i32_0 = arith.constant 0 : i32
    %c0_i32_1 = arith.constant 0 : i32
    return %c0_i32, %c0_i32_0 : i32, i32
  }
  func.func @transform_9(%arg0: i32, %arg1: i32) -> (i32, i32) {
    %c0_i32 = arith.constant 0 : i32
    %c0_i32_0 = arith.constant 0 : i32
    %c0_i32_1 = arith.constant 0 : i32
    return %c0_i32, %c0_i32_0 : i32, i32
  }
  func.func @transform_10(%arg0: i32, %arg1: i32) -> (i32, i32) {
    %c0_i32 = arith.constant 0 : i32
    %c0_i32_0 = arith.constant 0 : i32
    %c0_i32_1 = arith.constant 0 : i32
    return %c0_i32, %c0_i32_0 : i32, i32
  }
  func.func @transform_11(%arg0: i32, %arg1: i32) -> (i32, i32) {
    %c0_i32 = arith.constant 0 : i32
    %c0_i32_0 = arith.constant 0 : i32
    %c0_i32_1 = arith.constant 0 : i32
    return %c0_i32, %c0_i32_0 : i32, i32
  }
  func.func @transform_12(%arg0: i32, %arg1: i32) -> (i32, i32) {
    %c0_i32 = arith.constant 0 : i32
    %c0_i32_0 = arith.constant 0 : i32
    return %arg0, %c0_i32 : i32, i32
  }
}

module attributes {stable_mosaic.version = 11 : i64} {
  func.func @kernel(%arg0: i32, %arg1: i32, %arg2: memref<32x128xbf16, #tpu.memory_space<vmem>>, %arg3: memref<128x128xbf16, #tpu.memory_space<vmem>>, %arg4: memref<1x128xf32, #tpu.memory_space<vmem>>, %arg5: memref<1x128x1536xbf16, #tpu.memory_space<vmem>>, %arg6: memref<1x512x128xbf16, #tpu.memory_space<vmem>>, %arg7: memref<1x128x128xbf16, #tpu.memory_space<vmem>>, %arg8: memref<1x128x128xbf16, #tpu.memory_space<vmem>>, %arg9: memref<1x8x1536xf32, #tpu.memory_space<vmem>>, %arg10: memref<128x128xbf16, #tpu.memory_space<vmem>>, %arg11: memref<1x128xf32, #tpu.memory_space<vmem>>, %arg12: memref<128x128xbf16, #tpu.memory_space<vmem>>, %arg13: memref<1x128xf32, #tpu.memory_space<vmem>>, %arg14: memref<32x128xf32, #tpu.memory_space<vmem>>, %arg15: memref<32x128xf32, #tpu.memory_space<vmem>>, %arg16: memref<32x1536xbf16, #tpu.memory_space<vmem>>, %arg17: memref<32x512xbf16, #tpu.memory_space<vmem>>, %arg18: memref<16x16xf32, #tpu.memory_space<vmem>>) attributes {dimension_semantics = [#tpu.dimension_semantics<parallel>, #tpu.dimension_semantics<arbitrary>], iteration_bounds = array<i64: 1, 2>, scalar_prefetch = 0 : i64, scratch_operands = 4 : i64, tpu.core_type = #tpu.core_type<tc>, window_params = [{transform_indices = @transform_0, window_bounds = array<i64: 32, 128>}, {pipeline_mode = #tpu.pipeline_mode<synchronous>, transform_indices = @transform_1, window_bounds = array<i64: 128, 128>}, {pipeline_mode = #tpu.pipeline_mode<synchronous>, transform_indices = @transform_2, window_bounds = array<i64: 1, 128>}, {transform_indices = @transform_3, window_bounds = array<i64: 1, 128, 1536>}, {transform_indices = @transform_4, window_bounds = array<i64: 1, 512, 128>}, {transform_indices = @transform_5, window_bounds = array<i64: 1, 128, 128>}, {transform_indices = @transform_6, window_bounds = array<i64: 1, 128, 128>}, {transform_indices = @transform_7, window_bounds = array<i64: 1, 8, 1536>}, {pipeline_mode = #tpu.pipeline_mode<synchronous>, transform_indices = @transform_8, window_bounds = array<i64: 128, 128>}, {pipeline_mode = #tpu.pipeline_mode<synchronous>, transform_indices = @transform_9, window_bounds = array<i64: 1, 128>}, {pipeline_mode = #tpu.pipeline_mode<synchronous>, transform_indices = @transform_10, window_bounds = array<i64: 128, 128>}, {pipeline_mode = #tpu.pipeline_mode<synchronous>, transform_indices = @transform_11, window_bounds = array<i64: 1, 128>}, {transform_indices = @transform_12, window_bounds = array<i64: 32, 128>}]} {
    %c0_i32 = arith.constant 0 : i32
    %0 = arith.cmpi eq, %arg1, %c0_i32 : i32
    %1 = arith.extui %0 : i1 to i32
    %c0_i32_0 = arith.constant 0 : i32
    %2 = arith.cmpi ne, %1, %c0_i32_0 : i32
    scf.if %2 {
      %c0_80 = arith.constant 0 : index
      %c0_81 = arith.constant 0 : index
      %204 = vector.load %arg2[%c0_80, %c0_81] : memref<32x128xbf16, #tpu.memory_space<vmem>>, vector<32x128xbf16>
      %c0_82 = arith.constant 0 : index
      %c0_83 = arith.constant 0 : index
      %205 = vector.load %arg3[%c0_82, %c0_83] : memref<128x128xbf16, #tpu.memory_space<vmem>>, vector<128x128xbf16>
      %cst_84 = arith.constant dense<0.000000e+00> : vector<32x128xf32>
      %206 = tpu.matmul %204, %205, %cst_84 {dimension_numbers = #tpu.dot_dimension_numbers<[1], [0], [0], [1], [0, 0, 1, 1], [], []>} : vector<32x128xbf16>, vector<128x128xbf16>, vector<32x128xf32> -> vector<32x128xf32>
      %c0_85 = arith.constant 0 : index
      %c0_86 = arith.constant 0 : index
      %207 = vector.load %arg4[%c0_85, %c0_86] : memref<1x128xf32, #tpu.memory_space<vmem>>, vector<1x128xf32>
      %208 = vector.broadcast %207 : vector<1x128xf32> to vector<32x128xf32>
      %209 = arith.addf %206, %208 : vector<32x128xf32>
      %c0_87 = arith.constant 0 : index
      %c0_88 = arith.constant 0 : index
      %210 = vector.load %arg15[%c0_87, %c0_88] : memref<32x128xf32, #tpu.memory_space<vmem>>, vector<32x128xf32>
      tpu.vector_store %arg15[%c0_87, %c0_88], %209 {strides = array<i32>} : memref<32x128xf32, #tpu.memory_space<vmem>>, vector<32x128xf32>,
      %211 = tpu.iota {dimensions = array<i32: 0>} : vector<16x16xi32>
      %212 = tpu.iota {dimensions = array<i32: 1>} : vector<16x16xi32>
      %c7_i32 = arith.constant 7 : i32
      %213 = vector.broadcast %c7_i32 : i32 to vector<16x16xi32>
      %214 = arith.cmpi slt, %212, %213 : vector<16x16xi32>
      %215 = arith.cmpi eq, %212, %211 : vector<16x16xi32>
      %216 = arith.ori %214, %215 : vector<16x16xi1>
      %cst_89 = arith.constant 0.000000e+00 : f32
      %cst_90 = arith.constant -1.000000e+30 : f32
      %217 = vector.broadcast %cst_89 : f32 to vector<16x16xf32>
      %218 = vector.broadcast %cst_90 : f32 to vector<16x16xf32>
      %219 = arith.select %216, %217, %218 : vector<16x16xi1>, vector<16x16xf32>
      %c0_91 = arith.constant 0 : index
      %c0_92 = arith.constant 0 : index
      %220 = vector.load %arg18[%c0_91, %c0_92] : memref<16x16xf32, #tpu.memory_space<vmem>>, vector<16x16xf32>
      tpu.vector_store %arg18[%c0_91, %c0_92], %219 {strides = array<i32>} : memref<16x16xf32, #tpu.memory_space<vmem>>, vector<16x16xf32>,
    } else {
    }
    %c0 = arith.constant 0 : index
    %c0_1 = arith.constant 0 : index
    %c0_2 = arith.constant 0 : index
    %3 = vector.load %arg9[%c0, %c0_1, %c0_2] : memref<1x8x1536xf32, #tpu.memory_space<vmem>>, vector<1x8x1536xf32>
    %4 = vector.shape_cast %3 : vector<1x8x1536xf32> to vector<8x1536xf32>
    %5 = vector.extract_strided_slice %4 {offsets = [0, 0], sizes = [1, 1536], strides = [1, 1]} : vector<8x1536xf32> to vector<1x1536xf32>
    %6 = vector.extract_strided_slice %4 {offsets = [1, 0], sizes = [1, 128], strides = [1, 1]} : vector<8x1536xf32> to vector<1x128xf32>
    %7 = vector.extract_strided_slice %4 {offsets = [2, 0], sizes = [1, 128], strides = [1, 1]} : vector<8x1536xf32> to vector<1x128xf32>
    %8 = vector.extract_strided_slice %4 {offsets = [3, 0], sizes = [1, 128], strides = [1, 1]} : vector<8x1536xf32> to vector<1x128xf32>
    %9 = vector.extract_strided_slice %4 {offsets = [4, 0], sizes = [1, 128], strides = [1, 1]} : vector<8x1536xf32> to vector<1x128xf32>
    %10 = vector.extract_strided_slice %4 {offsets = [5, 0], sizes = [1, 128], strides = [1, 1]} : vector<8x1536xf32> to vector<1x128xf32>
    %11 = vector.extract_strided_slice %4 {offsets = [6, 0], sizes = [1, 128], strides = [1, 1]} : vector<8x1536xf32> to vector<1x128xf32>
    %12 = vector.extract_strided_slice %4 {offsets = [7, 0], sizes = [1, 128], strides = [1, 1]} : vector<8x1536xf32> to vector<1x128xf32>
    %c0_3 = arith.constant 0 : index
    %c0_4 = arith.constant 0 : index
    %13 = vector.load %arg15[%c0_3, %c0_4] : memref<32x128xf32, #tpu.memory_space<vmem>>, vector<32x128xf32>
    %14 = arith.truncf %13 : vector<32x128xf32> to vector<32x128xbf16>
    %c0_5 = arith.constant 0 : index
    %c0_6 = arith.constant 0 : index
    %c0_7 = arith.constant 0 : index
    %15 = vector.load %arg5[%c0_5, %c0_6, %c0_7] : memref<1x128x1536xbf16, #tpu.memory_space<vmem>>, vector<1x128x1536xbf16>
    %16 = vector.shape_cast %15 : vector<1x128x1536xbf16> to vector<128x1536xbf16>
    %cst = arith.constant dense<0.000000e+00> : vector<32x1536xf32>
    %17 = tpu.matmul %14, %16, %cst {dimension_numbers = #tpu.dot_dimension_numbers<[1], [0], [0], [1], [0, 0, 1, 1], [], []>} : vector<32x128xbf16>, vector<128x1536xbf16>, vector<32x1536xf32> -> vector<32x1536xf32>
    %18 = vector.broadcast %5 : vector<1x1536xf32> to vector<32x1536xf32>
    %19 = arith.addf %17, %18 : vector<32x1536xf32>
    %20 = arith.truncf %19 : vector<32x1536xf32> to vector<32x1536xbf16>
    %c0_8 = arith.constant 0 : index
    %c0_9 = arith.constant 0 : index
    %21 = vector.load %arg16[%c0_8, %c0_9] : memref<32x1536xbf16, #tpu.memory_space<vmem>>, vector<32x1536xbf16>
    tpu.vector_store %arg16[%c0_8, %c0_9], %20 {strides = array<i32>} : memref<32x1536xbf16, #tpu.memory_space<vmem>>, vector<32x1536xbf16>,
    %c0_10 = arith.constant 0 : index
    %c0_11 = arith.constant 0 : index
    %22 = vector.load %arg18[%c0_10, %c0_11] : memref<16x16xf32, #tpu.memory_space<vmem>>, vector<16x16xf32>
    %c0_12 = arith.constant 0 : index
    %c0_13 = arith.constant 0 : index
    %23 = vector.load %arg16[%c0_12, %c0_13] : memref<32x1536xbf16, #tpu.memory_space<vmem>>, vector<32x128xbf16>
    %c0_14 = arith.constant 0 : index
    %c512 = arith.constant 512 : index
    %24 = vector.load %arg16[%c0_14, %c512] : memref<32x1536xbf16, #tpu.memory_space<vmem>>, vector<32x128xbf16>
    %c0_15 = arith.constant 0 : index
    %c1024 = arith.constant 1024 : index
    %25 = vector.load %arg16[%c0_15, %c1024] : memref<32x1536xbf16, #tpu.memory_space<vmem>>, vector<32x128xbf16>
    %26 = vector.shape_cast %23 : vector<32x128xbf16> to vector<2x16x128xbf16>
    %27 = vector.shape_cast %24 : vector<32x128xbf16> to vector<2x16x128xbf16>
    %28 = vector.shape_cast %25 : vector<32x128xbf16> to vector<2x16x128xbf16>
    "tpu.trace_start"() <{level = 10 : i32, message = "bsd,btd->bst"}> : () -> ()
    %cst_16 = arith.constant dense<0.000000e+00> : vector<2x16x16xf32>
    %29 = tpu.matmul %26, %27, %cst_16 {dimension_numbers = #tpu.dot_dimension_numbers<[2], [2], [1], [1], [0, 0, 0, 1, 1, 1], [0], [0]>} : vector<2x16x128xbf16>, vector<2x16x128xbf16>, vector<2x16x16xf32> -> vector<2x16x16xf32>
    "tpu.trace_stop"() : () -> ()
    %30 = vector.shape_cast %22 : vector<16x16xf32> to vector<1x16x16xf32>
    %31 = vector.broadcast %30 : vector<1x16x16xf32> to vector<2x16x16xf32>
    %32 = arith.addf %29, %31 : vector<2x16x16xf32>
    %cst_17 = arith.constant dense<0xFF800000> : vector<2x16xf32>
    %33 = vector.multi_reduction <maximumf>, %32, %cst_17 [2] : vector<2x16x16xf32> to vector<2x16xf32>
    %34 = vector.shape_cast %33 : vector<2x16xf32> to vector<2x16x1xf32>
    %35 = vector.broadcast %34 : vector<2x16x1xf32> to vector<2x16x16xf32>
    %36 = arith.subf %32, %35 : vector<2x16x16xf32>
    %37 = math.exp %36 : vector<2x16x16xf32>
    %cst_18 = arith.constant dense<0.000000e+00> : vector<2x16xf32>
    %38 = vector.multi_reduction <add>, %37, %cst_18 [2] : vector<2x16x16xf32> to vector<2x16xf32>
    %39 = vector.shape_cast %38 : vector<2x16xf32> to vector<2x16x1xf32>
    %40 = tpu.reciprocal %39 {approx = true} : vector<2x16x1xf32> -> vector<2x16x1xf32>
    %41 = vector.broadcast %40 : vector<2x16x1xf32> to vector<2x16x16xf32>
    %42 = arith.mulf %37, %41 : vector<2x16x16xf32>
    %43 = arith.truncf %42 : vector<2x16x16xf32> to vector<2x16x16xbf16>
    "tpu.trace_start"() <{level = 10 : i32, message = "bst,btd->bsd"}> : () -> ()
    %cst_19 = arith.constant dense<0.000000e+00> : vector<2x16x128xf32>
    %44 = tpu.matmul %43, %28, %cst_19 {dimension_numbers = #tpu.dot_dimension_numbers<[2], [1], [1], [2], [0, 0, 0, 1, 1, 2], [0], [0]>} : vector<2x16x16xbf16>, vector<2x16x128xbf16>, vector<2x16x128xf32> -> vector<2x16x128xf32>
    "tpu.trace_stop"() : () -> ()
    %45 = vector.shape_cast %44 : vector<2x16x128xf32> to vector<32x128xf32>
    %46 = arith.truncf %45 : vector<32x128xf32> to vector<32x128xbf16>
    %c0_20 = arith.constant 0 : index
    %c0_21 = arith.constant 0 : index
    %47 = vector.load %arg17[%c0_20, %c0_21] : memref<32x512xbf16, #tpu.memory_space<vmem>>, vector<32x128xbf16>
    tpu.vector_store %arg17[%c0_20, %c0_21], %46 {strides = array<i32>} : memref<32x512xbf16, #tpu.memory_space<vmem>>, vector<32x128xbf16>,
    %c0_22 = arith.constant 0 : index
    %c128 = arith.constant 128 : index
    %48 = vector.load %arg16[%c0_22, %c128] : memref<32x1536xbf16, #tpu.memory_space<vmem>>, vector<32x128xbf16>
    %c0_23 = arith.constant 0 : index
    %c640 = arith.constant 640 : index
    %49 = vector.load %arg16[%c0_23, %c640] : memref<32x1536xbf16, #tpu.memory_space<vmem>>, vector<32x128xbf16>
    %c0_24 = arith.constant 0 : index
    %c1152 = arith.constant 1152 : index
    %50 = vector.load %arg16[%c0_24, %c1152] : memref<32x1536xbf16, #tpu.memory_space<vmem>>, vector<32x128xbf16>
    %51 = vector.shape_cast %48 : vector<32x128xbf16> to vector<2x16x128xbf16>
    %52 = vector.shape_cast %49 : vector<32x128xbf16> to vector<2x16x128xbf16>
    %53 = vector.shape_cast %50 : vector<32x128xbf16> to vector<2x16x128xbf16>
    "tpu.trace_start"() <{level = 10 : i32, message = "bsd,btd->bst"}> : () -> ()
    %cst_25 = arith.constant dense<0.000000e+00> : vector<2x16x16xf32>
    %54 = tpu.matmul %51, %52, %cst_25 {dimension_numbers = #tpu.dot_dimension_numbers<[2], [2], [1], [1], [0, 0, 0, 1, 1, 1], [0], [0]>} : vector<2x16x128xbf16>, vector<2x16x128xbf16>, vector<2x16x16xf32> -> vector<2x16x16xf32>
    "tpu.trace_stop"() : () -> ()
    %55 = vector.shape_cast %22 : vector<16x16xf32> to vector<1x16x16xf32>
    %56 = vector.broadcast %55 : vector<1x16x16xf32> to vector<2x16x16xf32>
    %57 = arith.addf %54, %56 : vector<2x16x16xf32>
    %cst_26 = arith.constant dense<0xFF800000> : vector<2x16xf32>
    %58 = vector.multi_reduction <maximumf>, %57, %cst_26 [2] : vector<2x16x16xf32> to vector<2x16xf32>
    %59 = vector.shape_cast %58 : vector<2x16xf32> to vector<2x16x1xf32>
    %60 = vector.broadcast %59 : vector<2x16x1xf32> to vector<2x16x16xf32>
    %61 = arith.subf %57, %60 : vector<2x16x16xf32>
    %62 = math.exp %61 : vector<2x16x16xf32>
    %cst_27 = arith.constant dense<0.000000e+00> : vector<2x16xf32>
    %63 = vector.multi_reduction <add>, %62, %cst_27 [2] : vector<2x16x16xf32> to vector<2x16xf32>
    %64 = vector.shape_cast %63 : vector<2x16xf32> to vector<2x16x1xf32>
    %65 = tpu.reciprocal %64 {approx = true} : vector<2x16x1xf32> -> vector<2x16x1xf32>
    %66 = vector.broadcast %65 : vector<2x16x1xf32> to vector<2x16x16xf32>
    %67 = arith.mulf %62, %66 : vector<2x16x16xf32>
    %68 = arith.truncf %67 : vector<2x16x16xf32> to vector<2x16x16xbf16>
    "tpu.trace_start"() <{level = 10 : i32, message = "bst,btd->bsd"}> : () -> ()
    %cst_28 = arith.constant dense<0.000000e+00> : vector<2x16x128xf32>
    %69 = tpu.matmul %68, %53, %cst_28 {dimension_numbers = #tpu.dot_dimension_numbers<[2], [1], [1], [2], [0, 0, 0, 1, 1, 2], [0], [0]>} : vector<2x16x16xbf16>, vector<2x16x128xbf16>, vector<2x16x128xf32> -> vector<2x16x128xf32>
    "tpu.trace_stop"() : () -> ()
    %70 = vector.shape_cast %69 : vector<2x16x128xf32> to vector<32x128xf32>
    %71 = arith.truncf %70 : vector<32x128xf32> to vector<32x128xbf16>
    %c0_29 = arith.constant 0 : index
    %c128_30 = arith.constant 128 : index
    %72 = vector.load %arg17[%c0_29, %c128_30] : memref<32x512xbf16, #tpu.memory_space<vmem>>, vector<32x128xbf16>
    tpu.vector_store %arg17[%c0_29, %c128_30], %71 {strides = array<i32>} : memref<32x512xbf16, #tpu.memory_space<vmem>>, vector<32x128xbf16>,
    %c0_31 = arith.constant 0 : index
    %c256 = arith.constant 256 : index
    %73 = vector.load %arg16[%c0_31, %c256] : memref<32x1536xbf16, #tpu.memory_space<vmem>>, vector<32x128xbf16>
    %c0_32 = arith.constant 0 : index
    %c768 = arith.constant 768 : index
    %74 = vector.load %arg16[%c0_32, %c768] : memref<32x1536xbf16, #tpu.memory_space<vmem>>, vector<32x128xbf16>
    %c0_33 = arith.constant 0 : index
    %c1280 = arith.constant 1280 : index
    %75 = vector.load %arg16[%c0_33, %c1280] : memref<32x1536xbf16, #tpu.memory_space<vmem>>, vector<32x128xbf16>
    %76 = vector.shape_cast %73 : vector<32x128xbf16> to vector<2x16x128xbf16>
    %77 = vector.shape_cast %74 : vector<32x128xbf16> to vector<2x16x128xbf16>
    %78 = vector.shape_cast %75 : vector<32x128xbf16> to vector<2x16x128xbf16>
    "tpu.trace_start"() <{level = 10 : i32, message = "bsd,btd->bst"}> : () -> ()
    %cst_34 = arith.constant dense<0.000000e+00> : vector<2x16x16xf32>
    %79 = tpu.matmul %76, %77, %cst_34 {dimension_numbers = #tpu.dot_dimension_numbers<[2], [2], [1], [1], [0, 0, 0, 1, 1, 1], [0], [0]>} : vector<2x16x128xbf16>, vector<2x16x128xbf16>, vector<2x16x16xf32> -> vector<2x16x16xf32>
    "tpu.trace_stop"() : () -> ()
    %80 = vector.shape_cast %22 : vector<16x16xf32> to vector<1x16x16xf32>
    %81 = vector.broadcast %80 : vector<1x16x16xf32> to vector<2x16x16xf32>
    %82 = arith.addf %79, %81 : vector<2x16x16xf32>
    %cst_35 = arith.constant dense<0xFF800000> : vector<2x16xf32>
    %83 = vector.multi_reduction <maximumf>, %82, %cst_35 [2] : vector<2x16x16xf32> to vector<2x16xf32>
    %84 = vector.shape_cast %83 : vector<2x16xf32> to vector<2x16x1xf32>
    %85 = vector.broadcast %84 : vector<2x16x1xf32> to vector<2x16x16xf32>
    %86 = arith.subf %82, %85 : vector<2x16x16xf32>
    %87 = math.exp %86 : vector<2x16x16xf32>
    %cst_36 = arith.constant dense<0.000000e+00> : vector<2x16xf32>
    %88 = vector.multi_reduction <add>, %87, %cst_36 [2] : vector<2x16x16xf32> to vector<2x16xf32>
    %89 = vector.shape_cast %88 : vector<2x16xf32> to vector<2x16x1xf32>
    %90 = tpu.reciprocal %89 {approx = true} : vector<2x16x1xf32> -> vector<2x16x1xf32>
    %91 = vector.broadcast %90 : vector<2x16x1xf32> to vector<2x16x16xf32>
    %92 = arith.mulf %87, %91 : vector<2x16x16xf32>
    %93 = arith.truncf %92 : vector<2x16x16xf32> to vector<2x16x16xbf16>
    "tpu.trace_start"() <{level = 10 : i32, message = "bst,btd->bsd"}> : () -> ()
    %cst_37 = arith.constant dense<0.000000e+00> : vector<2x16x128xf32>
    %94 = tpu.matmul %93, %78, %cst_37 {dimension_numbers = #tpu.dot_dimension_numbers<[2], [1], [1], [2], [0, 0, 0, 1, 1, 2], [0], [0]>} : vector<2x16x16xbf16>, vector<2x16x128xbf16>, vector<2x16x128xf32> -> vector<2x16x128xf32>
    "tpu.trace_stop"() : () -> ()
    %95 = vector.shape_cast %94 : vector<2x16x128xf32> to vector<32x128xf32>
    %96 = arith.truncf %95 : vector<32x128xf32> to vector<32x128xbf16>
    %c0_38 = arith.constant 0 : index
    %c256_39 = arith.constant 256 : index
    %97 = vector.load %arg17[%c0_38, %c256_39] : memref<32x512xbf16, #tpu.memory_space<vmem>>, vector<32x128xbf16>
    tpu.vector_store %arg17[%c0_38, %c256_39], %96 {strides = array<i32>} : memref<32x512xbf16, #tpu.memory_space<vmem>>, vector<32x128xbf16>,
    %c0_40 = arith.constant 0 : index
    %c384 = arith.constant 384 : index
    %98 = vector.load %arg16[%c0_40, %c384] : memref<32x1536xbf16, #tpu.memory_space<vmem>>, vector<32x128xbf16>
    %c0_41 = arith.constant 0 : index
    %c896 = arith.constant 896 : index
    %99 = vector.load %arg16[%c0_41, %c896] : memref<32x1536xbf16, #tpu.memory_space<vmem>>, vector<32x128xbf16>
    %c0_42 = arith.constant 0 : index
    %c1408 = arith.constant 1408 : index
    %100 = vector.load %arg16[%c0_42, %c1408] : memref<32x1536xbf16, #tpu.memory_space<vmem>>, vector<32x128xbf16>
    %101 = vector.shape_cast %98 : vector<32x128xbf16> to vector<2x16x128xbf16>
    %102 = vector.shape_cast %99 : vector<32x128xbf16> to vector<2x16x128xbf16>
    %103 = vector.shape_cast %100 : vector<32x128xbf16> to vector<2x16x128xbf16>
    "tpu.trace_start"() <{level = 10 : i32, message = "bsd,btd->bst"}> : () -> ()
    %cst_43 = arith.constant dense<0.000000e+00> : vector<2x16x16xf32>
    %104 = tpu.matmul %101, %102, %cst_43 {dimension_numbers = #tpu.dot_dimension_numbers<[2], [2], [1], [1], [0, 0, 0, 1, 1, 1], [0], [0]>} : vector<2x16x128xbf16>, vector<2x16x128xbf16>, vector<2x16x16xf32> -> vector<2x16x16xf32>
    "tpu.trace_stop"() : () -> ()
    %105 = vector.shape_cast %22 : vector<16x16xf32> to vector<1x16x16xf32>
    %106 = vector.broadcast %105 : vector<1x16x16xf32> to vector<2x16x16xf32>
    %107 = arith.addf %104, %106 : vector<2x16x16xf32>
    %cst_44 = arith.constant dense<0xFF800000> : vector<2x16xf32>
    %108 = vector.multi_reduction <maximumf>, %107, %cst_44 [2] : vector<2x16x16xf32> to vector<2x16xf32>
    %109 = vector.shape_cast %108 : vector<2x16xf32> to vector<2x16x1xf32>
    %110 = vector.broadcast %109 : vector<2x16x1xf32> to vector<2x16x16xf32>
    %111 = arith.subf %107, %110 : vector<2x16x16xf32>
    %112 = math.exp %111 : vector<2x16x16xf32>
    %cst_45 = arith.constant dense<0.000000e+00> : vector<2x16xf32>
    %113 = vector.multi_reduction <add>, %112, %cst_45 [2] : vector<2x16x16xf32> to vector<2x16xf32>
    %114 = vector.shape_cast %113 : vector<2x16xf32> to vector<2x16x1xf32>
    %115 = tpu.reciprocal %114 {approx = true} : vector<2x16x1xf32> -> vector<2x16x1xf32>
    %116 = vector.broadcast %115 : vector<2x16x1xf32> to vector<2x16x16xf32>
    %117 = arith.mulf %112, %116 : vector<2x16x16xf32>
    %118 = arith.truncf %117 : vector<2x16x16xf32> to vector<2x16x16xbf16>
    "tpu.trace_start"() <{level = 10 : i32, message = "bst,btd->bsd"}> : () -> ()
    %cst_46 = arith.constant dense<0.000000e+00> : vector<2x16x128xf32>
    %119 = tpu.matmul %118, %103, %cst_46 {dimension_numbers = #tpu.dot_dimension_numbers<[2], [1], [1], [2], [0, 0, 0, 1, 1, 2], [0], [0]>} : vector<2x16x16xbf16>, vector<2x16x128xbf16>, vector<2x16x128xf32> -> vector<2x16x128xf32>
    "tpu.trace_stop"() : () -> ()
    %120 = vector.shape_cast %119 : vector<2x16x128xf32> to vector<32x128xf32>
    %121 = arith.truncf %120 : vector<32x128xf32> to vector<32x128xbf16>
    %c0_47 = arith.constant 0 : index
    %c384_48 = arith.constant 384 : index
    %122 = vector.load %arg17[%c0_47, %c384_48] : memref<32x512xbf16, #tpu.memory_space<vmem>>, vector<32x128xbf16>
    tpu.vector_store %arg17[%c0_47, %c384_48], %121 {strides = array<i32>} : memref<32x512xbf16, #tpu.memory_space<vmem>>, vector<32x128xbf16>,
    %c0_49 = arith.constant 0 : index
    %c0_50 = arith.constant 0 : index
    %123 = vector.load %arg17[%c0_49, %c0_50] : memref<32x512xbf16, #tpu.memory_space<vmem>>, vector<32x512xbf16>
    %c0_51 = arith.constant 0 : index
    %c0_52 = arith.constant 0 : index
    %c0_53 = arith.constant 0 : index
    %124 = vector.load %arg6[%c0_51, %c0_52, %c0_53] : memref<1x512x128xbf16, #tpu.memory_space<vmem>>, vector<1x512x128xbf16>
    %125 = vector.shape_cast %124 : vector<1x512x128xbf16> to vector<512x128xbf16>
    %cst_54 = arith.constant dense<0.000000e+00> : vector<32x128xf32>
    %126 = tpu.matmul %123, %125, %cst_54 {dimension_numbers = #tpu.dot_dimension_numbers<[1], [0], [0], [1], [0, 0, 1, 1], [], []>} : vector<32x512xbf16>, vector<512x128xbf16>, vector<32x128xf32> -> vector<32x128xf32>
    %127 = vector.broadcast %6 : vector<1x128xf32> to vector<32x128xf32>
    %128 = arith.addf %126, %127 : vector<32x128xf32>
    %129 = arith.addf %13, %128 : vector<32x128xf32>
    %cst_55 = arith.constant dense<0.000000e+00> : vector<32xf32>
    %130 = vector.multi_reduction <add>, %129, %cst_55 [1] : vector<32x128xf32> to vector<32xf32>
    %131 = vector.shape_cast %130 : vector<32xf32> to vector<32x1xf32>
    %cst_56 = arith.constant 3.125000e-02 : f32
    %132 = vector.broadcast %cst_56 : f32 to vector<32x1xf32>
    %133 = arith.mulf %131, %132 : vector<32x1xf32>
    %134 = arith.mulf %129, %129 : vector<32x128xf32>
    %cst_57 = arith.constant dense<0.000000e+00> : vector<32xf32>
    %135 = vector.multi_reduction <add>, %134, %cst_57 [1] : vector<32x128xf32> to vector<32xf32>
    %136 = vector.shape_cast %135 : vector<32xf32> to vector<32x1xf32>
    %cst_58 = arith.constant 3.125000e-02 : f32
    %137 = vector.broadcast %cst_58 : f32 to vector<32x1xf32>
    %138 = arith.mulf %136, %137 : vector<32x1xf32>
    %139 = arith.mulf %133, %133 : vector<32x1xf32>
    %140 = arith.subf %138, %139 : vector<32x1xf32>
    %141 = vector.broadcast %133 : vector<32x1xf32> to vector<32x128xf32>
    %142 = arith.subf %129, %141 : vector<32x128xf32>
    %cst_59 = arith.constant 9.99999974E-6 : f32
    %143 = vector.broadcast %cst_59 : f32 to vector<32x1xf32>
    %144 = arith.addf %140, %143 : vector<32x1xf32>
    %145 = math.rsqrt %144 : vector<32x1xf32>
    %146 = vector.broadcast %145 : vector<32x1xf32> to vector<32x128xf32>
    %147 = arith.mulf %142, %146 : vector<32x128xf32>
    %148 = vector.broadcast %9 : vector<1x128xf32> to vector<32x128xf32>
    %149 = arith.mulf %147, %148 : vector<32x128xf32>
    %150 = vector.broadcast %10 : vector<1x128xf32> to vector<32x128xf32>
    %151 = arith.addf %149, %150 : vector<32x128xf32>
    %152 = arith.truncf %151 : vector<32x128xf32> to vector<32x128xbf16>
    %c0_60 = arith.constant 0 : index
    %c0_61 = arith.constant 0 : index
    %c0_62 = arith.constant 0 : index
    %153 = vector.load %arg7[%c0_60, %c0_61, %c0_62] : memref<1x128x128xbf16, #tpu.memory_space<vmem>>, vector<1x128x128xbf16>
    %154 = vector.shape_cast %153 : vector<1x128x128xbf16> to vector<128x128xbf16>
    %cst_63 = arith.constant dense<0.000000e+00> : vector<32x128xf32>
    %155 = tpu.matmul %152, %154, %cst_63 {dimension_numbers = #tpu.dot_dimension_numbers<[1], [0], [0], [1], [0, 0, 1, 1], [], []>} : vector<32x128xbf16>, vector<128x128xbf16>, vector<32x128xf32> -> vector<32x128xf32>
    %156 = vector.broadcast %7 : vector<1x128xf32> to vector<32x128xf32>
    %157 = arith.addf %155, %156 : vector<32x128xf32>
    %cst_64 = arith.constant 5.000000e-01 : f32
    %158 = vector.broadcast %cst_64 : f32 to vector<32x128xf32>
    %159 = arith.mulf %158, %157 : vector<32x128xf32>
    %cst_65 = arith.constant 4.471500e-02 : f32
    %160 = vector.broadcast %cst_65 : f32 to vector<32x128xf32>
    %161 = arith.mulf %160, %157 : vector<32x128xf32>
    %162 = arith.mulf %161, %157 : vector<32x128xf32>
    %163 = arith.mulf %162, %157 : vector<32x128xf32>
    %164 = arith.addf %157, %163 : vector<32x128xf32>
    %cst_66 = arith.constant 0.797884583 : f32
    %165 = vector.broadcast %cst_66 : f32 to vector<32x128xf32>
    %166 = arith.mulf %165, %164 : vector<32x128xf32>
    %167 = math.tanh %166 : vector<32x128xf32>
    %cst_67 = arith.constant 1.000000e+00 : f32
    %168 = vector.broadcast %cst_67 : f32 to vector<32x128xf32>
    %169 = arith.addf %168, %167 : vector<32x128xf32>
    %170 = arith.mulf %159, %169 : vector<32x128xf32>
    %171 = arith.truncf %170 : vector<32x128xf32> to vector<32x128xbf16>
    %c0_68 = arith.constant 0 : index
    %c0_69 = arith.constant 0 : index
    %c0_70 = arith.constant 0 : index
    %172 = vector.load %arg8[%c0_68, %c0_69, %c0_70] : memref<1x128x128xbf16, #tpu.memory_space<vmem>>, vector<1x128x128xbf16>
    %173 = vector.shape_cast %172 : vector<1x128x128xbf16> to vector<128x128xbf16>
    %cst_71 = arith.constant dense<0.000000e+00> : vector<32x128xf32>
    %174 = tpu.matmul %171, %173, %cst_71 {dimension_numbers = #tpu.dot_dimension_numbers<[1], [0], [0], [1], [0, 0, 1, 1], [], []>} : vector<32x128xbf16>, vector<128x128xbf16>, vector<32x128xf32> -> vector<32x128xf32>
    %175 = vector.broadcast %8 : vector<1x128xf32> to vector<32x128xf32>
    %176 = arith.addf %174, %175 : vector<32x128xf32>
    %177 = arith.addf %151, %176 : vector<32x128xf32>
    %cst_72 = arith.constant dense<0.000000e+00> : vector<32xf32>
    %178 = vector.multi_reduction <add>, %177, %cst_72 [1] : vector<32x128xf32> to vector<32xf32>
    %179 = vector.shape_cast %178 : vector<32xf32> to vector<32x1xf32>
    %cst_73 = arith.constant 3.125000e-02 : f32
    %180 = vector.broadcast %cst_73 : f32 to vector<32x1xf32>
    %181 = arith.mulf %179, %180 : vector<32x1xf32>
    %182 = arith.mulf %177, %177 : vector<32x128xf32>
    %cst_74 = arith.constant dense<0.000000e+00> : vector<32xf32>
    %183 = vector.multi_reduction <add>, %182, %cst_74 [1] : vector<32x128xf32> to vector<32xf32>
    %184 = vector.shape_cast %183 : vector<32xf32> to vector<32x1xf32>
    %cst_75 = arith.constant 3.125000e-02 : f32
    %185 = vector.broadcast %cst_75 : f32 to vector<32x1xf32>
    %186 = arith.mulf %184, %185 : vector<32x1xf32>
    %187 = arith.mulf %181, %181 : vector<32x1xf32>
    %188 = arith.subf %186, %187 : vector<32x1xf32>
    %189 = vector.broadcast %181 : vector<32x1xf32> to vector<32x128xf32>
    %190 = arith.subf %177, %189 : vector<32x128xf32>
    %cst_76 = arith.constant 9.99999974E-6 : f32
    %191 = vector.broadcast %cst_76 : f32 to vector<32x1xf32>
    %192 = arith.addf %188, %191 : vector<32x1xf32>
    %193 = math.rsqrt %192 : vector<32x1xf32>
    %194 = vector.broadcast %193 : vector<32x1xf32> to vector<32x128xf32>
    %195 = arith.mulf %190, %194 : vector<32x128xf32>
    %196 = vector.broadcast %11 : vector<1x128xf32> to vector<32x128xf32>
    %197 = arith.mulf %195, %196 : vector<32x128xf32>
    %198 = vector.broadcast %12 : vector<1x128xf32> to vector<32x128xf32>
    %199 = arith.addf %197, %198 : vector<32x128xf32>
    %c0_77 = arith.constant 0 : index
    %c0_78 = arith.constant 0 : index
    %200 = vector.load %arg15[%c0_77, %c0_78] : memref<32x128xf32, #tpu.memory_space<vmem>>, vector<32x128xf32>
    tpu.vector_store %arg15[%c0_77, %c0_78], %199 {strides = array<i32>} : memref<32x128xf32, #tpu.memory_space<vmem>>, vector<32x128xf32>,
    %c1_i32 = arith.constant 1 : i32
    %201 = arith.cmpi eq, %arg1, %c1_i32 : i32
    %202 = arith.extui %201 : i1 to i32
    %c0_i32_79 = arith.constant 0 : i32
    %203 = arith.cmpi ne, %202, %c0_i32_79 : i32
    scf.if %203 {
      %204 = arith.truncf %199 : vector<32x128xf32> to vector<32x128xbf16>
      %c0_80 = arith.constant 0 : index
      %c0_81 = arith.constant 0 : index
      %205 = vector.load %arg10[%c0_80, %c0_81] : memref<128x128xbf16, #tpu.memory_space<vmem>>, vector<128x128xbf16>
      %cst_82 = arith.constant dense<0.000000e+00> : vector<32x128xf32>
      %206 = tpu.matmul %204, %205, %cst_82 {dimension_numbers = #tpu.dot_dimension_numbers<[1], [0], [0], [1], [0, 0, 1, 1], [], []>} : vector<32x128xbf16>, vector<128x128xbf16>, vector<32x128xf32> -> vector<32x128xf32>
      %c0_83 = arith.constant 0 : index
      %c0_84 = arith.constant 0 : index
      %207 = vector.load %arg11[%c0_83, %c0_84] : memref<1x128xf32, #tpu.memory_space<vmem>>, vector<1x128xf32>
      %208 = vector.broadcast %207 : vector<1x128xf32> to vector<32x128xf32>
      %209 = arith.addf %206, %208 : vector<32x128xf32>
      %cst_85 = arith.constant 5.000000e-01 : f32
      %210 = vector.broadcast %cst_85 : f32 to vector<32x128xf32>
      %211 = arith.mulf %210, %209 : vector<32x128xf32>
      %cst_86 = arith.constant 4.471500e-02 : f32
      %212 = vector.broadcast %cst_86 : f32 to vector<32x128xf32>
      %213 = arith.mulf %212, %209 : vector<32x128xf32>
      %214 = arith.mulf %213, %209 : vector<32x128xf32>
      %215 = arith.mulf %214, %209 : vector<32x128xf32>
      %216 = arith.addf %209, %215 : vector<32x128xf32>
      %cst_87 = arith.constant 0.797884583 : f32
      %217 = vector.broadcast %cst_87 : f32 to vector<32x128xf32>
      %218 = arith.mulf %217, %216 : vector<32x128xf32>
      %219 = math.tanh %218 : vector<32x128xf32>
      %cst_88 = arith.constant 1.000000e+00 : f32
      %220 = vector.broadcast %cst_88 : f32 to vector<32x128xf32>
      %221 = arith.addf %220, %219 : vector<32x128xf32>
      %222 = arith.mulf %211, %221 : vector<32x128xf32>
      %223 = arith.truncf %222 : vector<32x128xf32> to vector<32x128xbf16>
      %c0_89 = arith.constant 0 : index
      %c0_90 = arith.constant 0 : index
      %224 = vector.load %arg12[%c0_89, %c0_90] : memref<128x128xbf16, #tpu.memory_space<vmem>>, vector<128x128xbf16>
      %cst_91 = arith.constant dense<0.000000e+00> : vector<32x128xf32>
      %225 = tpu.matmul %223, %224, %cst_91 {dimension_numbers = #tpu.dot_dimension_numbers<[1], [0], [0], [1], [0, 0, 1, 1], [], []>} : vector<32x128xbf16>, vector<128x128xbf16>, vector<32x128xf32> -> vector<32x128xf32>
      %c0_92 = arith.constant 0 : index
      %c0_93 = arith.constant 0 : index
      %226 = vector.load %arg13[%c0_92, %c0_93] : memref<1x128xf32, #tpu.memory_space<vmem>>, vector<1x128xf32>
      %227 = vector.broadcast %226 : vector<1x128xf32> to vector<32x128xf32>
      %228 = arith.addf %225, %227 : vector<32x128xf32>
      %c0_94 = arith.constant 0 : index
      %c0_95 = arith.constant 0 : index
      %229 = vector.load %arg14[%c0_94, %c0_95] : memref<32x128xf32, #tpu.memory_space<vmem>>, vector<32x128xf32>
      tpu.vector_store %arg14[%c0_94, %c0_95], %228 {strides = array<i32>} : memref<32x128xf32, #tpu.memory_space<vmem>>, vector<32x128xf32>,
    } else {
    }
    return
  }
  func.func @transform_0(%arg0: i32, %arg1: i32) -> (i32, i32) {
    %c0_i32 = arith.constant 0 : i32
    %c0_i32_0 = arith.constant 0 : i32
    return %arg0, %c0_i32 : i32, i32
  }
  func.func @transform_1(%arg0: i32, %arg1: i32) -> (i32, i32) {
    %c0_i32 = arith.constant 0 : i32
    %c0_i32_0 = arith.constant 0 : i32
    %c0_i32_1 = arith.constant 0 : i32
    return %c0_i32, %c0_i32_0 : i32, i32
  }
  func.func @transform_2(%arg0: i32, %arg1: i32) -> (i32, i32) {
    %c0_i32 = arith.constant 0 : i32
    %c0_i32_0 = arith.constant 0 : i32
    %c0_i32_1 = arith.constant 0 : i32
    return %c0_i32, %c0_i32_0 : i32, i32
  }
  func.func @transform_3(%arg0: i32, %arg1: i32) -> (i32, i32, i32) {
    %c0_i32 = arith.constant 0 : i32
    %c0_i32_0 = arith.constant 0 : i32
    %c0_i32_1 = arith.constant 0 : i32
    return %arg1, %c0_i32, %c0_i32_0 : i32, i32, i32
  }
  func.func @transform_4(%arg0: i32, %arg1: i32) -> (i32, i32, i32) {
    %c0_i32 = arith.constant 0 : i32
    %c0_i32_0 = arith.constant 0 : i32
    %c0_i32_1 = arith.constant 0 : i32
    return %arg1, %c0_i32, %c0_i32_0 : i32, i32, i32
  }
  func.func @transform_5(%arg0: i32, %arg1: i32) -> (i32, i32, i32) {
    %c0_i32 = arith.constant 0 : i32
    %c0_i32_0 = arith.constant 0 : i32
    %c0_i32_1 = arith.constant 0 : i32
    return %arg1, %c0_i32, %c0_i32_0 : i32, i32, i32
  }
  func.func @transform_6(%arg0: i32, %arg1: i32) -> (i32, i32, i32) {
    %c0_i32 = arith.constant 0 : i32
    %c0_i32_0 = arith.constant 0 : i32
    %c0_i32_1 = arith.constant 0 : i32
    return %arg1, %c0_i32, %c0_i32_0 : i32, i32, i32
  }
  func.func @transform_7(%arg0: i32, %arg1: i32) -> (i32, i32, i32) {
    %c0_i32 = arith.constant 0 : i32
    %c0_i32_0 = arith.constant 0 : i32
    %c0_i32_1 = arith.constant 0 : i32
    return %arg1, %c0_i32, %c0_i32_0 : i32, i32, i32
  }
  func.func @transform_8(%arg0: i32, %arg1: i32) -> (i32, i32) {
    %c0_i32 = arith.constant 0 : i32
    %c0_i32_0 = arith.constant 0 : i32
    %c0_i32_1 = arith.constant 0 : i32
    return %c0_i32, %c0_i32_0 : i32, i32
  }
  func.func @transform_9(%arg0: i32, %arg1: i32) -> (i32, i32) {
    %c0_i32 = arith.constant 0 : i32
    %c0_i32_0 = arith.constant 0 : i32
    %c0_i32_1 = arith.constant 0 : i32
    return %c0_i32, %c0_i32_0 : i32, i32
  }
  func.func @transform_10(%arg0: i32, %arg1: i32) -> (i32, i32) {
    %c0_i32 = arith.constant 0 : i32
    %c0_i32_0 = arith.constant 0 : i32
    %c0_i32_1 = arith.constant 0 : i32
    return %c0_i32, %c0_i32_0 : i32, i32
  }
  func.func @transform_11(%arg0: i32, %arg1: i32) -> (i32, i32) {
    %c0_i32 = arith.constant 0 : i32
    %c0_i32_0 = arith.constant 0 : i32
    %c0_i32_1 = arith.constant 0 : i32
    return %c0_i32, %c0_i32_0 : i32, i32
  }
  func.func @transform_12(%arg0: i32, %arg1: i32) -> (i32, i32) {
    %c0_i32 = arith.constant 0 : i32
    %c0_i32_0 = arith.constant 0 : i32
    return %arg0, %c0_i32 : i32, i32
  }
}

</mosaic_0001>

<bundles_post_ra>
// kernel: tpu_custom_call.1
= control target key start
LH: loop header
LB: loop body
LE: loop exit
PB: predicated region body
PF: predicated region fallthrough
CT: control target
= control target key end

     0   :  { %s6627_s0 = inlined_call_operand.hbm [shape: bf16[32,128], index: 0, kind: input, shape index: {}]   ;;  %s6628_s1 = inlined_call_operand.hbm [shape: bf16[128,128], index: 1, kind: input, shape index: {}]   ;;  %s6629_s2 = inlined_call_operand.vmem [shape: f32[1,128], index: 2, kind: input, shape index: {}]   ;;  %s6630_s3 = inlined_call_operand.hbm [shape: bf16[2,128,1536], index: 3, kind: input, shape index: {}]   ;;  %s6631_s4 = inlined_call_operand.hbm [shape: bf16[2,512,128], index: 4, kind: input, shape index: {}]   ;;  %s6632_s5 = inlined_call_operand.hbm [shape: bf16[2,128,128], index: 5, kind: input, shape index: {}]   ;;  %s6633_s6 = inlined_call_operand.hbm [shape: bf16[2,128,128], index: 6, kind: input, shape index: {}]   ;;  %s6634_s7 = inlined_call_operand.hbm [shape: f32[2,8,1536], index: 7, kind: input, shape index: {}]   ;;  %s6635_s8 = inlined_call_operand.hbm [shape: bf16[128,128], index: 8, kind: input, shape index: {}]   ;;  %s6636_s9 = inlined_call_operand.vmem [shape: f32[1,128], index: 9, kind: input, shape index: {}]   ;;  %s6637_s10 = inlined_call_operand.hbm [shape: bf16[128,128], index: 10, kind: input, shape index: {}]   ;;  %s6638_s11 = inlined_call_operand.vmem [shape: f32[1,128], index: 11, kind: input, shape index: {}]   ;;  %s6639_s12 = inlined_call_operand.hbm [shape: f32[32,128], index: 12, kind: output, shape index: {}]  }
   0x1   :  { %6652 = sst [smem:[#allocation33_spill]] %s6627_s0 }
   0x2   :  { %6653 = sst [smem:[#allocation34_spill]] %s6629_s2 }
   0x3   :  { %6654 = sst [smem:[#allocation35_spill]] %s6630_s3 }
   0x4   :  { %6655 = sst [smem:[#allocation36_spill]] %s6636_s9 }
   0x5   :  { %6656 = sst [smem:[#allocation37_spill]] %s6638_s11 }
   0x6   :  { %6657 = sst [smem:[#allocation38_spill]] %s6639_s12 }
   0x7   :  { %17 = vsyncpa [#allocation7], 0 }
   0x8   :  { %18 = vsyncpa [#allocation10], 0 }
   0x9   :  { %19 = vsyncpa [#allocation18], 0 }
   0xa   :  { %20 = vsyncpa [#allocation8], 0  ;;  %s5966_s21 = smov 0   ;;  %s5968_s22 = smov 0  }
   0xb   :  { %s5970_s23 = smov 0   ;;  %s5972_s24 = smov 0  }
   0xc   :  { %s5974_s25 = smov 0   ;;  %s5976_s26 = smov 0  }
   0xd LB: > { %6658 = sst [smem:[#allocation26_spill]] %s5863_s22  ;;  %s5995_s27 = sadd.s32 4294967295, %s5879_s26   ;;  %s5879_s26 = sphi %s5976_s26, %s26_s26   ;;  %s5875_s25 = sphi %s5974_s25, %s6700_s25   ;;  %s5871_s24 = sphi %s5972_s24, %s6699_s24   ;;  %s5867_s23 = sphi %s5970_s23, %s6697_s23   ;;  %s5863_s22 = sphi %s5968_s22, %s6696_s22   ;;  %s5859_s21 = sphi %s5966_s21, %s6695_s21  }
   0xe   : > { %6659 = sst [smem:[#allocation27_spill]] %s5867_s23  ;;  %p120_p0 = scmp.ne.s32.totalorder %s5867_s23, %s5863_s22 }
   0xf   : > { %6660 = sst [smem:[#allocation28_spill]] %s5871_s24  ;;  %p121_p1 = scmp.eq.s32.totalorder %s5879_s26, 0 }
  0x10   : > { %6661 = sst [smem:[#allocation29_spill]] %s5879_s26  ;;  %p126_p2 = scmp.ne.s32.totalorder %s5863_s22, %s5859_s21 }
  0x11   : > { %p6640_p3 = scmp.eq.s32.totalorder %s5995_s27, 0  ;;  %p6003_p4 = por %p121_p1, %p120_p0 }
  0x12   : > { %p4386_p5 = scmp.ge.s32.totalorder %s5879_s26, 1  ;;  %p351_p7 = scmp.lt.s32.totalorder %s5879_s26, 3 }
  0x13   : > { %p6010_p6 = por %p6640_p3, %p126_p2  ;;  %s5881_s14 = smov [#allocation6]  }
  0x14   : > { %p6015_p8 = pnand %p4386_p5, %p351_p7  ;;  %s366_s15 = sshll.u32 %s5881_s14, 4  ;;  %s367_s15 = int_to_ptr.vmem [resolvable:$true] %s366_s15 }
  0x15   : > { %s6663_s30 = scalar_select %p6010_p6, 1, 0 }
  0x16   : > { %p5083_p9 = pneg %p6015_p8  ;;  %s35_s17 = sadd.s32 1, %s5875_s25 }
  0x17   : > { %6664 = sst [smem:[#allocation30_spill]] %s6663_s30  ;;  %p5116_p11 = scmp.lt.s32.totalorder %s5879_s26, 2 }
  0x18   : > { %p6023_p10 = pnand %p5083_p9, %p6640_p3  ;;  %p6029_p12 = scmp.ge.s32.totalorder %s35_s17, 2 }
  0x19   : > { %s5552_s19 = scalar_lea.vmem %s367_s15, 256  ;;  %p5560_p5 = scmp.lt.s32.totalorder %s367_s15, %s367_s15 }
  0x1a   : > { %p5543_p13 = pneg %p6023_p10  ;;  %p5553_p0 = scmp.ne.s32.totalorder %s367_s15, %s5552_s19 }
  0x1b   : > { %p5561_p7 = scmp.lt.s32.totalorder %s5552_s19, %s5552_s19 }
  0x1c   : > { %p5555_p1 = pnand %p5553_p0, %p5543_p13 }
  0x1d   : > { %p5562_p9 = por %p5561_p7, %p5560_p5 }
  0x1e   : > { %p5556_p2 = pneg %p5555_p1 }
  0x20   : > { %p5563_p3 = pnand %p5562_p9, %p5556_p2 }
  0x22   : > { %5566 = shalt.err (!%p5563_p3)
}
  0x23   : > { %s6641_s20 = smov 64   ;;  %s6643_s21 = smov 4  }
  0x24   : > { %s6668_s0 = sld [smem:[#allocation33_spill]]  ;;  %s6702_s17 = smov (%p6029_p12, %s35_s17), 0 }
  0x25   : > { %6669 = sst [smem:[#allocation31_spill]] %s6702_s17  ;;  %s428_s28 = sand.u32 1, %s5879_s26  }
  0x26   : > { %s6052_s12 = sand.u32 1, %s5867_s23   ;;  %s110_s11 = ssub.s32 %s5875_s25, %s6702_s17 }
  0x27   : > { %p111_p3 = scmp.eq.s32.totalorder %s110_s11, 0  ;;  %s5047_s9 = smul.u32 768, %s6052_s12 }
  0x28   : > { %s5048_s2 = smul.u32 12288, %s5875_s25  ;;  %p6062_p0 = pnand %p5116_p11, %p6003_p4 }
  0x29   : > { %s6673_s3 = sld [smem:[#allocation35_spill]]  ;;  %s4393_s11 = sshll.u32 %s6052_s12, 8 }
  0x2a   : > { %5086 = dma.hbm_to_vmem [thread:$0]  (!%p6023_p10), %s6668_s0, 256, %s367_s15, [#allocation7], %s6641_s20, %s6641_s20, %s6643_s21  }
  0x2b   : > { %s6671_s15 = sadd.s32 1, %s5867_s23  ;;  %s432_s21 = scalar_lea.vmem [#allocation11], %s5047_s9 }
  0x2c   : > { %s6069_s18 = scalar_select %p111_p3, %s5867_s23, %s6671_s15  }
  0x2d   : > { %s439_s0 = sshll.u32 %s432_s21, 4  ;;  %s6075_s17 = scalar_lea.sflag [#allocation7], %s428_s28  ;;  %s440_s0 = int_to_ptr.vmem [resolvable:$true] %s439_s0 }
  0x2e   : > { %6672 = sst [smem:[#allocation32_spill]] %s6069_s18  ;;  %p6079_p12 = pneg %p6062_p0 }
  0x2f   : > { %s438_s20 = scalar_lea.hbm %s6673_s3, %s5048_s2  ;;  %s5580_s26 = scalar_lea.vmem %s440_s0, 12288 }
  0x30   : > { %p5581_p4 = scmp.ne.s32.totalorder %s440_s0, %s5580_s26  ;;  %s5884_s15 = smov [#allocation11]  }
  0x31   : > { %s5585_s14 = sshll.u32 %s5884_s15, 4  ;;  %s5586_s14 = int_to_ptr.vmem [resolvable:$false] %s5585_s14 }
  0x32   : > { %p5583_p11 = pnand %p5581_p4, %p6079_p12  ;;  %s5587_s2 = scalar_lea.vmem %s5586_s14, 24576 }
  0x33   : > { %p5588_p2 = scmp.lt.s32.totalorder %s440_s0, %s5586_s14  ;;  %p5589_p5 = scmp.lt.s32.totalorder %s5587_s2, %s5580_s26 }
  0x34   : > { %p5584_p1 = pneg %p5583_p11 }
  0x35   : > { %p5590_p7 = por %p5589_p5, %p5588_p2 }
  0x37   : > { %p5591_p9 = pnand %p5590_p7, %p5584_p1 }
  0x39   : > { %5594 = shalt.err (!%p5591_p9)
}
  0x3a   : > { %s5885_s9 = smov 768   ;;  %s5886_s28 = smov 48  }
  0x3b   : > { %5099 = dma.hbm_to_vmem [thread:$0]  (!%p6062_p0), %s438_s20, 12288, %s440_s0, %s6075_s17, %s5885_s9, %s5885_s9, %s5886_s28  }
  0x3c   : > { %s4670_s21 = sshll.u32 %s5875_s25, 12  ;;  %s453_s18 = scalar_lea.vmem [#allocation12], %s4393_s11 }
  0x3d   : > { %s459_s15 = scalar_lea.hbm %s6631_s4, %s4670_s21  ;;  %s460_s14 = sshll.u32 %s453_s18, 4  ;;  %s461_s14 = int_to_ptr.vmem [resolvable:$true] %s460_s14 }
  0x3e   : > { %s4396_s26 = sshll.u32 %s6052_s12, 6  ;;  %s5608_s2 = scalar_lea.vmem %s461_s14, 4096 }
  0x3f   : > { %p5609_p3 = scmp.ne.s32.totalorder %s461_s14, %s5608_s2  ;;  %s5887_s23 = smov [#allocation12]  }
  0x40   : > { %s5613_s30 = sshll.u32 %s5887_s23, 4  ;;  %s5614_s30 = int_to_ptr.vmem [resolvable:$false] %s5613_s30 }
  0x41   : > { %p5611_p4 = pnand %p5609_p3, %p6079_p12  ;;  %s5615_s22 = scalar_lea.vmem %s5614_s30, 8192 }
  0x42   : > { %p5616_p1 = scmp.lt.s32.totalorder %s461_s14, %s5614_s30  ;;  %p5617_p2 = scmp.lt.s32.totalorder %s5615_s22, %s5608_s2 }
  0x43   : > { %p5612_p11 = pneg %p5611_p4 }
  0x44   : > { %p5618_p5 = por %p5617_p2, %p5616_p1 }
  0x46   : > { %p5619_p7 = pnand %p5618_p5, %p5612_p11 }
  0x48   : > { %5622 = shalt.err (!%p5619_p7)
}
  0x49   : > { %s6675_s0 = smov 4   ;;  %s6676_s3 = smov 64  }
  0x4a   : > { %5102 = dma.hbm_to_vmem [thread:$0]  (!%p6062_p0), %s459_s15, 4096, %s461_s14, %s6075_s17, %s6676_s3, %s6676_s3, %s6675_s0  }
  0x4b   : > { %s4671_s20 = sshll.u32 %s5875_s25, 10  ;;  %s474_s22 = scalar_lea.vmem [#allocation13], %s4396_s26 }
  0x4c   : > { %s480_s11 = scalar_lea.hbm %s6632_s5, %s4671_s20  ;;  %s481_s30 = sshll.u32 %s474_s22, 4  ;;  %s482_s30 = int_to_ptr.vmem [resolvable:$true] %s481_s30 }
  0x4d   : > { %s5636_s9 = scalar_lea.vmem %s482_s30, 1024  ;;  %s5888_s28 = smov [#allocation13]  }
  0x4e   : > { %p5637_p9 = scmp.ne.s32.totalorder %s482_s30, %s5636_s9  ;;  %s5641_s21 = sshll.u32 %s5888_s28, 4  ;;  %s5642_s21 = int_to_ptr.vmem [resolvable:$false] %s5641_s21 }
  0x4f   : > { %s5643_s19 = scalar_lea.vmem %s5642_s21, 2048  ;;  %p5644_p11 = scmp.lt.s32.totalorder %s482_s30, %s5642_s21 }
  0x50   : > { %p5639_p3 = pnand %p5637_p9, %p6079_p12  ;;  %p5645_p1 = scmp.lt.s32.totalorder %s5643_s19, %s5636_s9 }
  0x52   : > { %p5640_p4 = pneg %p5639_p3  ;;  %p5646_p2 = por %p5645_p1, %p5644_p11 }
  0x54   : > { %p5647_p5 = pnand %p5646_p2, %p5640_p4 }
  0x56   : > { %5650 = shalt.err (!%p5647_p5)
}
  0x57   : > { %5105 = dma.hbm_to_vmem [thread:$0]  (!%p6062_p0), %s480_s11, 1024, %s482_s30, %s6075_s17, %s6676_s3, %s6676_s3, %s6675_s0  }
  0x58   : > { %s5889_s15 = smov [#allocation9]   ;;  %s6118_s23 = scalar_lea.hbm %s6633_s6, %s4671_s20 }
  0x59   : > { %s379_s14 = sshll.u32 %s5889_s15, 4  ;;  %s380_s14 = int_to_ptr.vmem [resolvable:$true] %s379_s14 }
  0x5a   : > { %s5662_s22 = scalar_lea.vmem %s380_s14, 1024  ;;  %p5670_p4 = scmp.lt.s32.totalorder %s380_s14, %s380_s14 }
  0x5b   : > { %p5663_p7 = scmp.ne.s32.totalorder %s380_s14, %s5662_s22  ;;  %p5671_p11 = scmp.lt.s32.totalorder %s5662_s22, %s5662_s22 }
  0x5d   : > { %p5665_p9 = pnand %p5663_p7, %p5543_p13  ;;  %p5672_p1 = por %p5671_p11, %p5670_p4 }
  0x5f   : > { %p5666_p3 = pneg %p5665_p9 }
  0x61   : > { %p5673_p2 = pnand %p5672_p1, %p5666_p3 }
  0x63   : > { %5676 = shalt.err (!%p5673_p2)
}
  0x64   : > { %5089 = dma.hbm_to_vmem [thread:$0]  (!%p6023_p10), %s6628_s1, 1024, %s380_s14, [#allocation10], %s6676_s3, %s6676_s3, %s6675_s0  }
  0x65   : > { %s495_s20 = scalar_lea.vmem [#allocation14], %s4396_s26  ;;  %s5890_s28 = smov [#allocation16]  }
  0x66   : > { %s502_s9 = sshll.u32 %s495_s20, 4  ;;  %s395_s21 = sshll.u32 %s5890_s28, 4  ;;  %s503_s9 = int_to_ptr.vmem [resolvable:$true] %s502_s9  ;;  %s396_s21 = int_to_ptr.vmem [resolvable:$true] %s395_s21 }
  0x67   : > { %s5690_s19 = scalar_lea.vmem %s503_s9, 1024  ;;  %s5891_s15 = smov [#allocation14]  }
  0x68   : > { %p5691_p5 = scmp.ne.s32.totalorder %s503_s9, %s5690_s19  ;;  %s5695_s2 = sshll.u32 %s5891_s15, 4  ;;  %s5696_s2 = int_to_ptr.vmem [resolvable:$false] %s5695_s2 }
  0x69   : > { %s5697_s18 = scalar_lea.vmem %s5696_s2, 2048  ;;  %p5698_p3 = scmp.lt.s32.totalorder %s503_s9, %s5696_s2 }
  0x6a   : > { %p5693_p7 = pnand %p5691_p5, %p6079_p12  ;;  %p5699_p4 = scmp.lt.s32.totalorder %s5697_s18, %s5690_s19 }
  0x6c   : > { %p5694_p9 = pneg %p5693_p7  ;;  %p5700_p11 = por %p5699_p4, %p5698_p3 }
  0x6e   : > { %p5701_p1 = pnand %p5700_p11, %p5694_p9 }
  0x70   : > { %5704 = shalt.err (!%p5701_p1)
}
  0x71   : > { %5108 = dma.hbm_to_vmem [thread:$0]  (!%p6062_p0), %s6118_s23, 1024, %s503_s9, %s6075_s17, %s6676_s3, %s6676_s3, %s6675_s0  }
  0x72   : > { %s5716_s26 = scalar_lea.vmem %s396_s21, 1024  ;;  %p5724_p6 = scmp.lt.s32.totalorder %s396_s21, %s396_s21 }
  0x73   : > { %p5717_p2 = scmp.ne.s32.totalorder %s396_s21, %s5716_s26  ;;  %p5725_p3 = scmp.lt.s32.totalorder %s5716_s26, %s5716_s26 }
  0x75   : > { %p5719_p5 = pnand %p5717_p2, %p5543_p13  ;;  %p5726_p9 = por %p5725_p3, %p5724_p6 }
  0x77   : > { %p5720_p7 = pneg %p5719_p5 }
  0x79   : > { %p5727_p4 = pnand %p5726_p9, %p5720_p7 }
  0x7b   : > { %5730 = shalt.err (!%p5727_p4)
}
  0x7c   : > { %5092 = dma.hbm_to_vmem [thread:$0]  (!%p6023_p10), %s6635_s8, 1024, %s396_s21, [#allocation10], %s6676_s3, %s6676_s3, %s6675_s0  }
  0x7d   : > { %s5892_s23 = smov [#allocation17]   ;;  %s5049_s30 = smul.u32 96, %s6052_s12 }
  0x7e   : > { %s411_s11 = sshll.u32 %s5892_s23, 4  ;;  %s5050_s20 = smul.u32 1536, %s5875_s25  ;;  %s412_s11 = int_to_ptr.vmem [resolvable:$true] %s411_s11 }
  0x7f   : > { %s5742_s9 = scalar_lea.vmem %s412_s11, 1024  ;;  %p5750_p2 = scmp.lt.s32.totalorder %s412_s11, %s412_s11 }
  0x80   : > { %p5743_p6 = scmp.ne.s32.totalorder %s412_s11, %s5742_s9  ;;  %p5751_p5 = scmp.lt.s32.totalorder %s5742_s9, %s5742_s9 }
  0x82   : > { %p5745_p11 = pnand %p5743_p6, %p5543_p13  ;;  %p5752_p7 = por %p5751_p5, %p5750_p2 }
  0x84   : > { %p5746_p1 = pneg %p5745_p11 }
  0x86   : > { %p5753_p3 = pnand %p5752_p7, %p5746_p1 }
  0x88   : > { %5756 = shalt.err (!%p5753_p3)
}
  0x89   : > { %5095 = dma.hbm_to_vmem [thread:$0]  (!%p6023_p10), %s6637_s10, 1024, %s412_s11, [#allocation18], %s6676_s3, %s6676_s3, %s6675_s0  }
  0x8a   : > { %s522_s15 = scalar_lea.hbm %s6634_s7, %s5050_s20  ;;  %s516_s2 = scalar_lea.vmem [#allocation15], %s5049_s30 }
  0x8b   : > { %s524_s18 = sshll.u32 %s516_s2, 4  ;;  %s5893_s16 = smov [#allocation15]   ;;  %s525_s18 = int_to_ptr.vmem [resolvable:$true] %s524_s18 }
  0x8c   : > { %s5770_s26 = scalar_lea.vmem %s525_s18, 1536  ;;  %s5775_s14 = sshll.u32 %s5893_s16, 4  ;;  %s5776_s14 = int_to_ptr.vmem [resolvable:$false] %s5775_s14 }
  0x8d   : > { %p5771_p13 = scmp.ne.s32.totalorder %s525_s18, %s5770_s26  ;;  %s5777_s22 = scalar_lea.vmem %s5776_s14, 3072 }
  0x8e   : > { %p5778_p6 = scmp.lt.s32.totalorder %s525_s18, %s5776_s14  ;;  %p5779_p11 = scmp.lt.s32.totalorder %s5777_s22, %s5770_s26 }
  0x8f   : > { %p5773_p9 = pnand %p5771_p13, %p6079_p12 }
  0x90   : > { %p5780_p1 = por %p5779_p11, %p5778_p6 }
  0x91   : > { %p5774_p4 = pneg %p5773_p9 }
  0x93   : > { %p5781_p10 = pnand %p5780_p1, %p5774_p4 }
  0x95   : > { %5784 = shalt.err (!%p5781_p10)
}
  0x96   : > { %5111 = dma.hbm_to_vmem [thread:$0]  (!%p6062_p0), %s522_s15, 1536, %s525_s18, %s6075_s17  }
  0x97   : > { %533 = sbr.rel (%p6015_p8) target bundleno = 4478 (0x117e), region = 68  ;;  %p6677_p2 = scmp.eq.s32.totalorder (!%p6015_p8), %s5995_s27, 0 }
  0x9c   : > { %5834 = dma.done.wait (%p6677_p2), [#allocation7], 256   ;;  %p6678_p12 = pmov %p6677_p2 }
  0x9d   : > { %p6679_p5 = pmov %p6677_p2 }
  0x9e   : > { %5836 = vsyncadd (%p6678_p12), [#allocation7], 4294967040 }
  0x9f   : > { %5838 = dma.done.wait (%p6679_p5), [#allocation10], 1024   ;;  %p6680_p7 = pmov %p6677_p2 }
  0xa0   : > { %s6681_s29 = sld [smem:[#allocation26_spill]]  ;;  %s543_s0 = sand.u32 1, %s5995_s27  }
  0xa1   : > { %5840 = vsyncadd (%p6680_p7), [#allocation10], 4294966272  ;;  %s6682_s24 = sld [smem:[#allocation30_spill]]  ;;  %s544_s13 = scalar_lea.sflag [#allocation7], %s543_s0 }
  0xa6   : > { %s545_s17 = sand.u32 1, %s6681_s29  }
  0xa7   : > { %s5051_s3 = smul.u32 768, %s545_s17  ;;  %p6683_p8 = scmp.ne.s32.totalorder %s6682_s24, 0 }
  0xa9   : > { %s6186_s23 = scalar_lea.vmem [#allocation11], %s5051_s3 }
  0xaa   : > { %5842 = dma.done.wait (%p6683_p8), %s544_s13, 19968  }
  0xab   : > { %5844 = vsyncadd (%p6683_p8), %s544_s13, 4294947328  ;;  %s4406_s11 = sshll.u32 %s545_s17, 8  ;;  %s4407_s30 = sshll.u32 %s545_s17, 6 }
  0xac   : > { %s5052_s20 = smul.u32 96, %s545_s17  ;;  %s6192_s9 = scalar_lea.vmem [#allocation12], %s4406_s11 }
  0xad   : > { %s6194_s28 = scalar_lea.vmem [#allocation13], %s4407_s30  ;;  %s6196_s12 = scalar_lea.vmem [#allocation14], %s4407_s30 }
  0xae   : > { %s6198_s21 = scalar_lea.vmem [#allocation15], %s5052_s20  ;;  %p6684_p0 = pmov %p6677_p2 }
  0xb0   : > { %5846 = dma.done.wait (%p6684_p0), [#allocation10], 1024   ;;  %p6685_p3 = pmov %p6684_p0 }
  0xb1   : > { %p6686_p13 = pmov %p6684_p0 }
  0xb2   : > { %5848 = vsyncadd (%p6685_p3), [#allocation10], 4294966272 }
  0xb3   : > { %5850 = dma.done.wait (%p6686_p13), [#allocation18], 1024   ;;  %p6687_p9 = pmov %p6684_p0 }
  0xb4   : > { %s6688_s19 = sld [smem:[#allocation28_spill]] }
  0xb5   : > { %5852 = vsyncadd (%p6687_p9), [#allocation18], 4294966272 }
  0xba   : > { %p4411_p4 = scmp.ne.s32.totalorder %s6688_s19, 0 }
  0xbb   : > { %s6689_s18 = sld [smem:[#allocation34_spill]] (!%p4411_p4) }
  0xbc   : > { %653 = sbr.rel (%p4411_p4) target bundleno = 428 (0x1ac), region = 108 }
  0xc1   : > { %v5186_v0 = vld [vmem:[#allocation9 + $0x38] sm:$0xff]   ;;  %v5187_v1 = vld [vmem:[#allocation9 + $0x30] sm:$0xff]   ;;  %v5188_v2 = vld [vmem:[#allocation9 + $0x28] sm:$0xff]   ;;  %v794_v10 = vlaneseq  ;;  %v5894_v14 = vmov -1e+30   ;;  %vm806_vm5 = vcmask 130048  }
  0xc2   : > { %4851 = vmatprep.subr.bf16.mxu0 %v5186_v0  ;;  %v5189_v3 = vld [vmem:[#allocation9 + $0x20] sm:$0xff]   ;;  %v5194_v4 = vld [vmem:[#allocation6] sm:$0xff]   ;;  %v5190_v5 = vld [vmem:[#allocation9 + $0x18] sm:$0xff]  }
  0xc3   : > { %4852 = vmatpush3.bf16.msra.mxu0 %v5186_v0  ;;  %4867 = vmatprep.mubr.bf16.mxu0 %v5194_v4  ;;  %v5191_v6 = vld [vmem:[#allocation9 + $0x10] sm:$0xff]   ;;  %v5192_v7 = vld [vmem:[#allocation9 + $0x8] sm:$0xff]   ;;  %v5193_v8 = vld [vmem:[#allocation9] sm:$0xff]   ;;  %v795_v11 = vshrl.u32 %v794_v10, 7  ;;  %v798_v13 = vand.u32 127, %v794_v10 }
  0xc4   : > { %4853 = vmatprep.subr.bf16.mxu0 %v5187_v1  ;;  %v5195_v9 = vld [vmem:[#allocation6 + $0x8] sm:$0xff]   ;;  %v4412_v17 = vld [vmem:[%s6689_s18] ss:$0 sm:$0xff] }
  0xc5   : > { %v796_v12 = vadd.s32 8, %v795_v11  ;;  %vm799_vm0 = vcmp.lt.s32.totalorder %v798_v13, 7  ;;  %vm800_vm1 = vcmp.eq.s32.totalorder %v798_v13, %v795_v11 }
  0xc6   : > { %vm802_vm3 = vmor %vm799_vm0, %vm800_vm1 }
  0xc7   : > { %4854 = vmatpush3.bf16.msra.mxu0 %v5187_v1  ;;  %vm801_vm2 = vcmp.eq.s32.totalorder %v798_v13, %v796_v12  ;;  %v804_v15 = vsel %vm802_vm3, 0.0, %v5894_v14 }
  0xc8   : > { %4855 = vmatprep.subr.bf16.mxu0 %v5188_v2  ;;  %vm803_vm4 = vmor %vm799_vm0, %vm801_vm2  ;;  %807 = vst.msk [vmem:[#allocation5] sm:$0xff] %vm806_vm5, %v804_v15 }
  0xc9   : > { %v805_v16 = vsel %vm803_vm4, 0.0, %v5894_v14 }
  0xca   : > { %808 = vst.msk [vmem:[#allocation5 + $0x8] sm:$0xff] %vm806_vm5, %v805_v16 }
  0xcb   : > { %4856 = vmatpush3.bf16.msra.mxu0 %v5188_v2 }
  0xcc   : > { %4857 = vmatprep.subr.bf16.mxu0 %v5189_v3 }
  0xcf   : > { %4858 = vmatpush3.bf16.msra.mxu0 %v5189_v3 }
  0xd0   : > { %4859 = vmatprep.subr.bf16.mxu0 %v5190_v5 }
  0xd3   : > { %4860 = vmatpush3.bf16.msra.mxu0 %v5190_v5 }
  0xd4   : > { %4861 = vmatprep.subr.bf16.mxu0 %v5191_v6 }
  0xd7   : > { %4862 = vmatpush3.bf16.msra.mxu0 %v5191_v6 }
  0xd8   : > { %4863 = vmatprep.subr.bf16.mxu0 %v5192_v7 }
  0xdb   : > { %4864 = vmatpush3.bf16.msra.mxu0 %v5192_v7 }
  0xdc   : > { %4865 = vmatprep.subr.bf16.mxu0 %v5193_v8 }
  0xdf   : > { %4866 = vmatpush3.bf16.msra.mxu0 %v5193_v8 }
  0xe2   : > { %4868 = vmatmul.mubr.bf16.vlgmr.msra.gmra.mxu0 %v5195_v9 }
 0x1a2   : > { %v4869_v18 = vpop.f32.mrf.mxu0 }
 0x1a3   : > { %v784_v19 = vadd.f32 %v4869_v18, %v4412_v17 }
 0x1a4   : > { %v775_v20 = vpop.f32.mrf.mxu0 }
 0x1a5   : > { %792 = vst [vmem:[#allocation2 + $0x18] sm:$0xff] %v784_v19  ;;  %v776_v21 = vadd.f32 %v4412_v17, %v775_v20 }
 0x1a6   : > { %v4870_v22 = vpop.f32.mrf.mxu0 }
 0x1a7   : > { %790 = vst [vmem:[#allocation2 + $0x10] sm:$0xff] %v776_v21  ;;  %v787_v23 = vadd.f32 %v4870_v22, %v4412_v17 }
 0x1a8   : > { %v778_v24 = vpop.f32.mrf.mxu0 }
 0x1a9   : > { %793 = vst [vmem:[#allocation2 + $0x8] sm:$0xff] %v787_v23  ;;  %v779_v25 = vadd.f32 %v4412_v17, %v778_v24 }
 0x1ab   : > { %791 = vst [vmem:[#allocation2] sm:$0xff] %v779_v25 }
 0x1ac PF: > { %v5196_v26 = vld [vmem:[%s6186_s23 + $0x2a4] ss:$48 sps:$4 sm:$0xff]   ;;  %v5198_v27 = vld [vmem:[%s6186_s23 + $0x2a0] ss:$48 sps:$4 sm:$0xff]   ;;  %v5895_v28 = vmov 0   ;;  %v823_v57 = vld [vmem:[#allocation2 + $0x18] sm:$0xff] }
 0x1ad   : > { %1483 = vmatprep.mubr.bf16.mxu0 %v5895_v28  ;;  %1536 = vmatprep.mubr.bf16.mxu1 %v5895_v28  ;;  %v5199_v29 = vld [vmem:[%s6186_s23 + $0x244] ss:$48 sps:$4 sm:$0xff]   ;;  %v5201_v30 = vld [vmem:[%s6186_s23 + $0x240] ss:$48 sps:$4 sm:$0xff]   ;;  %v5244_v42 = vld [vmem:[%s6186_s23 + $0x2ac] ss:$48 sps:$4 sm:$0xff]  }
 0x1ae   : > { %1451 = vmatprep.subr.bf16.mxu0 %v5196_v26  ;;  %v5202_v31 = vld [vmem:[%s6186_s23 + $0x1e4] ss:$48 sps:$4 sm:$0xff]   ;;  %v5204_v32 = vld [vmem:[%s6186_s23 + $0x1e0] ss:$48 sps:$4 sm:$0xff]   ;;  %v5246_v43 = vld [vmem:[%s6186_s23 + $0x2a8] ss:$48 sps:$4 sm:$0xff]   ;;  %1504 = vmatprep.subr.bf16.mxu1 %v5244_v42 }
 0x1af   : > { %1452 = vmatpush1.bf16.msra.mxu0 %v5198_v27  ;;  %v5205_v33 = vld [vmem:[%s6186_s23 + $0x184] ss:$48 sps:$4 sm:$0xff]   ;;  %v5207_v34 = vld [vmem:[%s6186_s23 + $0x180] ss:$48 sps:$4 sm:$0xff]   ;;  %v5247_v44 = vld [vmem:[%s6186_s23 + $0x24c] ss:$48 sps:$4 sm:$0xff]   ;;  %1505 = vmatpush1.bf16.msra.mxu1 %v5246_v43 }
 0x1b0   : > { %1453 = vmatprep.subr.bf16.mxu0 %v5199_v29  ;;  %v5208_v35 = vld [vmem:[%s6186_s23 + $0x124] ss:$48 sps:$4 sm:$0xff]   ;;  %v5210_v36 = vld [vmem:[%s6186_s23 + $0x120] ss:$48 sps:$4 sm:$0xff]   ;;  %v5249_v47 = vld [vmem:[%s6186_s23 + $0x248] ss:$48 sps:$4 sm:$0xff]   ;;  %1506 = vmatprep.subr.bf16.mxu1 %v5247_v44 }
 0x1b1   : > { %v5211_v37 = vld [vmem:[%s6186_s23 + $0xc4] ss:$48 sps:$4 sm:$0xff]   ;;  %v5213_v38 = vld [vmem:[%s6186_s23 + $0xc0] ss:$48 sps:$4 sm:$0xff]   ;;  %v5250_v49 = vld [vmem:[%s6186_s23 + $0x1ec] ss:$48 sps:$4 sm:$0xff]  }
 0x1b2   : > { %v5214_v39 = vld [vmem:[%s6186_s23 + $0x64] ss:$48 sps:$4 sm:$0xff]   ;;  %v5216_v40 = vld [vmem:[%s6186_s23 + $0x60] ss:$48 sps:$4 sm:$0xff]   ;;  %v5252_v52 = vld [vmem:[%s6186_s23 + $0x1e8] ss:$48 sps:$4 sm:$0xff]  }
 0x1b3   : > { %1454 = vmatpush1.bf16.msra.mxu0 %v5201_v30  ;;  %v5217_v41 = vld [vmem:[%s6186_s23 + $0x4] ss:$48 sps:$4 sm:$0xff]   ;;  %v5219_v45 = vld [vmem:[%s6186_s23] ss:$48 sps:$4 sm:$0xff]   ;;  %1507 = vmatpush1.bf16.msra.mxu1 %v5249_v47  ;;  %v5253_v55 = vld [vmem:[%s6186_s23 + $0x18c] ss:$48 sps:$4 sm:$0xff]  }
 0x1b4   : > { %1455 = vmatprep.subr.bf16.mxu0 %v5202_v31  ;;  %v821_v46 = vld [vmem:[#allocation2 + $0x10] sm:$0xff]  ;;  %v822_v48 = vld [vmem:[#allocation2] sm:$0xff]  ;;  %1508 = vmatprep.subr.bf16.mxu1 %v5250_v49  ;;  %v5255_v58 = vld [vmem:[%s6186_s23 + $0x188] ss:$48 sps:$4 sm:$0xff]   ;;  %vm5897_vm6 = vmmov 0   ;;  %vm2057_vm7 = vcmask 130048  }
 0x1b5   : > { %v5222_v50 = vld [vmem:[%s6186_s23 + $0x2b4] ss:$48 sps:$4 sm:$0xff]   ;;  %v6236_v51 = vpack.c.bf16 %v822_v48, %v821_v46  ;;  %v5220_v53 = vld [vmem:[%s6186_s23 + $0x2b0] ss:$48 sps:$4 sm:$0xff]   ;;  %v824_v59 = vld [vmem:[#allocation2 + $0x8] sm:$0xff]  ;;  %s6690_s26 = sld [smem:[#allocation28_spill]] }
 0x1b6   : > { %v5225_v54 = vld [vmem:[%s6186_s23 + $0x254] ss:$48 sps:$4 sm:$0xff]   ;;  %v5223_v56 = vld [vmem:[%s6186_s23 + $0x250] ss:$48 sps:$4 sm:$0xff]   ;;  %v5256_v60 = vld [vmem:[%s6186_s23 + $0x12c] ss:$48 sps:$4 sm:$0xff]   ;;  %v6251_v1 = vpack.c.bf16 %v824_v59, %v823_v57 }
 0x1b7   : > { %1456 = vmatpush1.bf16.msra.mxu0 %v5204_v32  ;;  %1509 = vmatpush1.bf16.msra.mxu1 %v5252_v52  ;;  %v5228_v61 = vld [vmem:[%s6186_s23 + $0x1f4] ss:$48 sps:$4 sm:$0xff]   ;;  %v5226_v62 = vld [vmem:[%s6186_s23 + $0x1f0] ss:$48 sps:$4 sm:$0xff]   ;;  %v5258_v63 = vld [vmem:[%s6186_s23 + $0x128] ss:$48 sps:$4 sm:$0xff]  }
 0x1b8   : > { %1457 = vmatprep.subr.bf16.mxu0 %v5205_v33  ;;  %1510 = vmatprep.subr.bf16.mxu1 %v5253_v55  ;;  %v5231_v0 = vld [vmem:[%s6186_s23 + $0x194] ss:$48 sps:$4 sm:$0xff]   ;;  %v5259_v2 = vld [vmem:[%s6186_s23 + $0xcc] ss:$48 sps:$4 sm:$0xff]   ;;  %v5261_v3 = vld [vmem:[%s6186_s23 + $0xc8] ss:$48 sps:$4 sm:$0xff]  }
 0x1b9   : > { %v5229_v4 = vld [vmem:[%s6186_s23 + $0x190] ss:$48 sps:$4 sm:$0xff]   ;;  %v5262_v5 = vld [vmem:[%s6186_s23 + $0x6c] ss:$48 sps:$4 sm:$0xff]   ;;  %v5234_v6 = vld [vmem:[%s6186_s23 + $0x134] ss:$48 sps:$4 sm:$0xff]  }
 0x1ba   : > { %v5264_v7 = vld [vmem:[%s6186_s23 + $0x68] ss:$48 sps:$4 sm:$0xff]   ;;  %v5232_v8 = vld [vmem:[%s6186_s23 + $0x130] ss:$48 sps:$4 sm:$0xff]   ;;  %v5265_v9 = vld [vmem:[%s6186_s23 + $0xc] ss:$48 sps:$4 sm:$0xff]  }
 0x1bb   : > { %1458 = vmatpush1.bf16.msra.mxu0 %v5207_v34  ;;  %1511 = vmatpush1.bf16.msra.mxu1 %v5255_v58  ;;  %v5237_v10 = vld [vmem:[%s6186_s23 + $0xd4] ss:$48 sps:$4 sm:$0xff]   ;;  %v5267_v11 = vld [vmem:[%s6186_s23 + $0x8] ss:$48 sps:$4 sm:$0xff]   ;;  %v5235_v12 = vld [vmem:[%s6186_s23 + $0xd0] ss:$48 sps:$4 sm:$0xff]  }
 0x1bc   : > { %1459 = vmatprep.subr.bf16.mxu0 %v5208_v35  ;;  %1512 = vmatprep.subr.bf16.mxu1 %v5256_v60  ;;  %v5270_v13 = vld [vmem:[%s6186_s23 + $0x2bc] ss:$48 sps:$4 sm:$0xff]   ;;  %v5240_v14 = vld [vmem:[%s6186_s23 + $0x74] ss:$48 sps:$4 sm:$0xff]   ;;  %v5268_v15 = vld [vmem:[%s6186_s23 + $0x2b8] ss:$48 sps:$4 sm:$0xff]  }
 0x1bd   : > { %v5238_v16 = vld [vmem:[%s6186_s23 + $0x70] ss:$48 sps:$4 sm:$0xff]   ;;  %v5273_v17 = vld [vmem:[%s6186_s23 + $0x25c] ss:$48 sps:$4 sm:$0xff]   ;;  %v5243_v18 = vld [vmem:[%s6186_s23 + $0x14] ss:$48 sps:$4 sm:$0xff]  }
 0x1be   : > { %v5271_v19 = vld [vmem:[%s6186_s23 + $0x258] ss:$48 sps:$4 sm:$0xff]   ;;  %v5241_v20 = vld [vmem:[%s6186_s23 + $0x10] ss:$48 sps:$4 sm:$0xff]   ;;  %v5276_v21 = vld [vmem:[%s6186_s23 + $0x1fc] ss:$48 sps:$4 sm:$0xff]  }
 0x1bf   : > { %1460 = vmatpush1.bf16.msra.mxu0 %v5210_v36  ;;  %1513 = vmatpush1.bf16.msra.mxu1 %v5258_v63  ;;  %v5274_v22 = vld [vmem:[%s6186_s23 + $0x1f8] ss:$48 sps:$4 sm:$0xff]   ;;  %v5279_v23 = vld [vmem:[%s6186_s23 + $0x19c] ss:$48 sps:$4 sm:$0xff]   ;;  %v5291_v31 = vld [vmem:[%s6186_s23 + $0x2c4] ss:$48 sps:$4 sm:$0xff]  }
 0x1c0   : > { %1461 = vmatprep.subr.bf16.mxu0 %v5211_v37  ;;  %1514 = vmatprep.subr.bf16.mxu1 %v5259_v2  ;;  %v5277_v24 = vld [vmem:[%s6186_s23 + $0x198] ss:$48 sps:$4 sm:$0xff]   ;;  %v5282_v25 = vld [vmem:[%s6186_s23 + $0x13c] ss:$48 sps:$4 sm:$0xff]   ;;  %v5289_v33 = vld [vmem:[%s6186_s23 + $0x2c0] ss:$48 sps:$4 sm:$0xff]  }
 0x1c1   : > { %v5280_v26 = vld [vmem:[%s6186_s23 + $0x138] ss:$48 sps:$4 sm:$0xff]   ;;  %v5285_v27 = vld [vmem:[%s6186_s23 + $0xdc] ss:$48 sps:$4 sm:$0xff]   ;;  %v5297_v35 = vld [vmem:[%s6186_s23 + $0x264] ss:$48 sps:$4 sm:$0xff]  }
 0x1c2   : > { %v5283_v29 = vld [vmem:[%s6186_s23 + $0xd8] ss:$48 sps:$4 sm:$0xff]   ;;  %v5288_v30 = vld [vmem:[%s6186_s23 + $0x7c] ss:$48 sps:$4 sm:$0xff]   ;;  %v5295_v37 = vld [vmem:[%s6186_s23 + $0x260] ss:$48 sps:$4 sm:$0xff]  }
 0x1c3   : > { %1462 = vmatpush1.bf16.msra.mxu0 %v5213_v38  ;;  %1515 = vmatpush1.bf16.msra.mxu1 %v5261_v3  ;;  %v5286_v32 = vld [vmem:[%s6186_s23 + $0x78] ss:$48 sps:$4 sm:$0xff]   ;;  %v5294_v34 = vld [vmem:[%s6186_s23 + $0x1c] ss:$48 sps:$4 sm:$0xff]   ;;  %v5300_v38 = vld [vmem:[%s6186_s23 + $0x204] ss:$48 sps:$4 sm:$0xff]  }
 0x1c4   : > { %1463 = vmatprep.subr.bf16.mxu0 %v5214_v39  ;;  %1516 = vmatprep.subr.bf16.mxu1 %v5262_v5  ;;  %v5292_v36 = vld [vmem:[%s6186_s23 + $0x18] ss:$48 sps:$4 sm:$0xff]   ;;  %v5303_v39 = vld [vmem:[%s6186_s23 + $0x2cc] ss:$48 sps:$4 sm:$0xff]   ;;  %v5306_v42 = vld [vmem:[%s6186_s23 + $0x1a4] ss:$48 sps:$4 sm:$0xff]   ;;  %v923_v5 = vlaneseq }
 0x1c5   : > { %v5309_v43 = vld [vmem:[%s6186_s23 + $0x26c] ss:$48 sps:$4 sm:$0xff]   ;;  %v5304_v44 = vld [vmem:[%s6186_s23 + $0x1a0] ss:$48 sps:$4 sm:$0xff]   ;;  %v5312_v47 = vld [vmem:[%s6186_s23 + $0x144] ss:$48 sps:$4 sm:$0xff]  }
 0x1c6   : > { %v5310_v46 = vld [vmem:[%s6186_s23 + $0x140] ss:$48 sps:$4 sm:$0xff]   ;;  %v5313_v48 = vld [vmem:[%s6186_s23 + $0x208] ss:$48 sps:$4 sm:$0xff]   ;;  %v5315_v49 = vld [vmem:[%s6186_s23 + $0x20c] ss:$48 sps:$4 sm:$0xff]  }
 0x1c7   : > { %1464 = vmatpush1.bf16.msra.mxu0 %v5216_v40  ;;  %1517 = vmatpush1.bf16.msra.mxu1 %v5264_v7  ;;  %v5298_v40 = vld [vmem:[%s6186_s23 + $0x200] ss:$48 sps:$4 sm:$0xff]   ;;  %v5321_v52 = vld [vmem:[%s6186_s23 + $0x1ac] ss:$48 sps:$4 sm:$0xff]   ;;  %v5324_v55 = vld [vmem:[%s6186_s23 + $0x84] ss:$48 sps:$4 sm:$0xff]  }
 0x1c8   : > { %1465 = vmatprep.subr.bf16.mxu0 %v5217_v41  ;;  %1518 = vmatprep.subr.bf16.mxu1 %v5265_v9  ;;  %v5301_v41 = vld [vmem:[%s6186_s23 + $0x2c8] ss:$48 sps:$4 sm:$0xff]   ;;  %v5322_v57 = vld [vmem:[%s6186_s23 + $0x80] ss:$48 sps:$4 sm:$0xff]   ;;  %v5330_v59 = vld [vmem:[%s6186_s23 + $0x24] ss:$48 sps:$4 sm:$0xff]  }
 0x1c9   : > { %v5325_v58 = vld [vmem:[%s6186_s23 + $0x148] ss:$48 sps:$4 sm:$0xff]   ;;  %v5333_v60 = vld [vmem:[%s6186_s23 + $0xec] ss:$48 sps:$4 sm:$0xff]   ;;  %p4647_p6 = scmp.ne.s32.totalorder %s6690_s26, 1 }
 0x1ca   : > { %v5336_v63 = vld [vmem:[%s6186_s23 + $0x8c] ss:$48 sps:$4 sm:$0xff]   ;;  %v5337_v3 = vld [vmem:[%s6186_s23 + $0x28] ss:$48 sps:$4 sm:$0xff]   ;;  %s6691_s22 = sld [smem:[#allocation36_spill]] (!%p4647_p6) }
 0x1cb   : > { %1466 = vmatpush1.bf16.msra.mxu0 %v5219_v45  ;;  %1519 = vmatpush1.bf16.msra.mxu1 %v5267_v11  ;;  %v5307_v45 = vld [vmem:[%s6186_s23 + $0x268] ss:$48 sps:$4 sm:$0xff]   ;;  %v5339_v2 = vld [vmem:[%s6186_s23 + $0x2c] ss:$48 sps:$4 sm:$0xff]   ;;  %s6692_s0 = sld [smem:[#allocation37_spill]] (!%p4647_p6) }
 0x1cc   : > { %1557 = vmatprep.subr.bf16.mxu0 %v5222_v50  ;;  %1610 = vmatprep.subr.bf16.mxu1 %v5270_v13  ;;  %v5318_v50 = vld [vmem:[%s6186_s23 + $0xe4] ss:$48 sps:$4 sm:$0xff]   ;;  %v810_v7 = vld [vmem:[%s6198_s21 + $0x8] sm:$0xff] }
 0x1ce   : > { %1484 = vmatmul.mubr.bf16.vlgmr.msra.gmra.mxu0 %v6236_v51  ;;  %1537 = vmatmul.mubr.bf16.vlgmr.msra.gmra.mxu1 %v6236_v51 }
 0x1cf   : > { %1558 = vmatpush1.bf16.msra.mxu0 %v5220_v53  ;;  %1493 = vmatprep.mubr.bf16.mxu0 %v5895_v28  ;;  %v5316_v53 = vld [vmem:[%s6186_s23 + $0xe0] ss:$48 sps:$4 sm:$0xff]  }
 0x1d0   : > { %1559 = vmatprep.subr.bf16.mxu0 %v5225_v54  ;;  %1611 = vmatpush1.bf16.msra.mxu1 %v5268_v15  ;;  %v5319_v54 = vld [vmem:[%s6186_s23 + $0x1a8] ss:$48 sps:$4 sm:$0xff]  }
 0x1d1   : > { %1546 = vmatprep.mubr.bf16.mxu1 %v5895_v28  ;;  %1612 = vmatprep.subr.bf16.mxu1 %v5273_v17 }
 0x1d3   : > { %1560 = vmatpush1.bf16.msra.mxu0 %v5223_v56  ;;  %v5327_v56 = vld [vmem:[%s6186_s23 + $0x14c] ss:$48 sps:$4 sm:$0xff]  }
 0x1d4   : > { %1561 = vmatprep.subr.bf16.mxu0 %v5228_v61  ;;  %1613 = vmatpush1.bf16.msra.mxu1 %v5271_v19  ;;  %v5328_v61 = vld [vmem:[%s6186_s23 + $0x20] ss:$48 sps:$4 sm:$0xff]  }
 0x1d5   : > { %1614 = vmatprep.subr.bf16.mxu1 %v5276_v21 }
 0x1d6   : > { %1494 = vmatmul.mubr.bf16.gmra.mxu0 %v6251_v1  ;;  %1547 = vmatmul.mubr.bf16.gmra.mxu1 %v6251_v1 }
 0x1d7   : > { %1562 = vmatpush1.bf16.msra.mxu0 %v5226_v62  ;;  %1589 = vmatprep.mubr.bf16.mxu0 %v5895_v28  ;;  %v5331_v62 = vld [vmem:[%s6186_s23 + $0xe8] ss:$48 sps:$4 sm:$0xff]  }
 0x1d8   : > { %1563 = vmatprep.subr.bf16.mxu0 %v5231_v0  ;;  %1615 = vmatpush1.bf16.msra.mxu1 %v5274_v22  ;;  %v5334_v0 = vld [vmem:[%s6186_s23 + $0x88] ss:$48 sps:$4 sm:$0xff]  }
 0x1d9   : > { %1642 = vmatprep.mubr.bf16.mxu1 %v5895_v28  ;;  %1616 = vmatprep.subr.bf16.mxu1 %v5279_v23 }
 0x1db   : > { %1564 = vmatpush1.bf16.msra.mxu0 %v5229_v4  ;;  %v5896_v4 = vmov 0.0  }
 0x1dc   : > { %1565 = vmatprep.subr.bf16.mxu0 %v5234_v6  ;;  %1617 = vmatpush1.bf16.msra.mxu1 %v5277_v24  ;;  %v6342_v6 = vshrl.u32 %v923_v5, 7 }
 0x1dd   : > { %1618 = vmatprep.subr.bf16.mxu1 %v5282_v25 }
 0x1df   : > { %1566 = vmatpush1.bf16.msra.mxu0 %v5232_v8 }
 0x1e0   : > { %1567 = vmatprep.subr.bf16.mxu0 %v5237_v10  ;;  %1619 = vmatpush1.bf16.msra.mxu1 %v5280_v26 }
 0x1e1   : > { %1620 = vmatprep.subr.bf16.mxu1 %v5285_v27 }
 0x1e3   : > { %1568 = vmatpush1.bf16.msra.mxu0 %v5235_v12 }
 0x1e4   : > { %1569 = vmatprep.subr.bf16.mxu0 %v5240_v14  ;;  %1621 = vmatpush1.bf16.msra.mxu1 %v5283_v29 }
 0x1e5   : > { %1622 = vmatprep.subr.bf16.mxu1 %v5288_v30  ;;  %v811_v30 = vld [vmem:[%s6198_s21 + $0x10] sm:$0xff] }
 0x1e7   : > { %1570 = vmatpush1.bf16.msra.mxu0 %v5238_v16 }
 0x1e8   : > { %1571 = vmatprep.subr.bf16.mxu0 %v5243_v18  ;;  %1623 = vmatpush1.bf16.msra.mxu1 %v5286_v32 }
 0x1e9   : > { %1624 = vmatprep.subr.bf16.mxu1 %v5294_v34 }
 0x1eb   : > { %1572 = vmatpush1.bf16.msra.mxu0 %v5241_v20 }
 0x1ec   : > { %1663 = vmatprep.subr.bf16.mxu0 %v5291_v31  ;;  %1625 = vmatpush1.bf16.msra.mxu1 %v5292_v36  ;;  %v812_v31 = vld [vmem:[%s6198_s21 + $0x18] sm:$0xff] }
 0x1ed   : > { %1716 = vmatprep.subr.bf16.mxu1 %v5303_v39  ;;  %v813_v39 = vld [vmem:[%s6198_s21 + $0x20] sm:$0xff] }
 0x1ee   : > { %1590 = vmatmul.mubr.bf16.vlgmr.msra.gmra.mxu0 %v6236_v51 }
 0x1ef   : > { %1599 = vmatprep.mubr.bf16.mxu0 %v5895_v28  ;;  %1664 = vmatpush1.bf16.msra.mxu0 %v5289_v33 }
 0x1f0   : > { %1665 = vmatprep.subr.bf16.mxu0 %v5297_v35  ;;  %1643 = vmatmul.mubr.bf16.vlgmr.msra.gmra.mxu1 %v6236_v51 }
 0x1f1   : > { %1717 = vmatpush1.bf16.msra.mxu1 %v5301_v41  ;;  %1652 = vmatprep.mubr.bf16.mxu1 %v5895_v28 }
 0x1f2   : > { %1718 = vmatprep.subr.bf16.mxu1 %v5309_v43 }
 0x1f3   : > { %1666 = vmatpush1.bf16.msra.mxu0 %v5295_v37 }
 0x1f4   : > { %1667 = vmatprep.subr.bf16.mxu0 %v5300_v38 }
 0x1f5   : > { %1719 = vmatpush1.bf16.msra.mxu1 %v5307_v45 }
 0x1f6   : > { %1600 = vmatmul.mubr.bf16.gmra.mxu0 %v6251_v1  ;;  %1720 = vmatprep.subr.bf16.mxu1 %v5315_v49 }
 0x1f7   : > { %1695 = vmatprep.mubr.bf16.mxu0 %v5895_v28  ;;  %1668 = vmatpush1.bf16.msra.mxu0 %v5298_v40  ;;  %v814_v40 = vld [vmem:[%s6198_s21 + $0x28] sm:$0xff] }
 0x1f8   : > { %1669 = vmatprep.subr.bf16.mxu0 %v5306_v42  ;;  %1653 = vmatmul.mubr.bf16.gmra.mxu1 %v6251_v1 }
 0x1f9   : > { %1721 = vmatpush1.bf16.msra.mxu1 %v5313_v48  ;;  %1748 = vmatprep.mubr.bf16.mxu1 %v5895_v28 }
 0x1fa   : > { %1722 = vmatprep.subr.bf16.mxu1 %v5321_v52 }
 0x1fb   : > { %1670 = vmatpush1.bf16.msra.mxu0 %v5304_v44 }
 0x1fc   : > { %1671 = vmatprep.subr.bf16.mxu0 %v5312_v47 }
 0x1fd   : > { %1723 = vmatpush1.bf16.msra.mxu1 %v5319_v54 }
 0x1fe   : > { %1724 = vmatprep.subr.bf16.mxu1 %v5327_v56 }
 0x1ff   : > { %1672 = vmatpush1.bf16.msra.mxu0 %v5310_v46 }
 0x200   : > { %1673 = vmatprep.subr.bf16.mxu0 %v5318_v50 }
 0x201   : > { %1725 = vmatpush1.bf16.msra.mxu1 %v5325_v58 }
 0x202   : > { %1726 = vmatprep.subr.bf16.mxu1 %v5333_v60 }
 0x203   : > { %1674 = vmatpush1.bf16.msra.mxu0 %v5316_v53 }
 0x204   : > { %1675 = vmatprep.subr.bf16.mxu0 %v5324_v55 }
 0x205   : > { %1727 = vmatpush1.bf16.msra.mxu1 %v5331_v62 }
 0x206   : > { %1728 = vmatprep.subr.bf16.mxu1 %v5336_v63 }
 0x207   : > { %1676 = vmatpush1.bf16.msra.mxu0 %v5322_v57 }
 0x208   : > { %1677 = vmatprep.subr.bf16.mxu0 %v5330_v59 }
 0x209   : > { %1729 = vmatpush1.bf16.msra.mxu1 %v5334_v0 }
 0x20a   : > { %1730 = vmatprep.subr.bf16.mxu1 %v5339_v2 }
 0x20b   : > { %1678 = vmatpush1.bf16.msra.mxu0 %v5328_v61 }
 0x20c   : > { %4871 = vmatprep.subr.bf16.mxu0 %v5896_v4 }
 0x20d   : > { %1731 = vmatpush1.bf16.msra.mxu1 %v5337_v3 }
 0x20e   : > { %1696 = vmatmul.mubr.bf16.vlgmr.msra.gmra.mxu0 %v6236_v51  ;;  %4877 = vmatprep.subr.bf16.mxu1 %v5896_v4 }
 0x20f   : > { %1705 = vmatprep.mubr.bf16.mxu0 %v5895_v28 }
 0x210   : > { %1749 = vmatmul.mubr.bf16.vlgmr.msra.gmra.mxu1 %v6236_v51  ;;  %v6345_v51 = vsub.s32 0, %v6342_v6 }
 0x211   : > { %1758 = vmatprep.mubr.bf16.mxu1 %v5895_v28  ;;  %v809_v28 = vld [vmem:[%s6198_s21] sm:$0xff] }
 0x212   : > { %v926_v8 = vrot.slane %v809_v28, %v6345_v51  ;;  %v930_v9 = vrot.slane %v810_v7, %v6345_v51  ;;  %v934_v32 = vrot.slane %v811_v30, %v6345_v51  ;;  %v938_v33 = vrot.slane %v812_v31, %v6345_v51 }
 0x213   : > { %v942_v45 = vrot.slane %v813_v39, %v6345_v51  ;;  %v946_v46 = vrot.slane %v814_v40, %v6345_v51 }
 0x216   : > { %1706 = vmatmul.mubr.bf16.gmra.mxu0 %v6251_v1 }
 0x217   : > { %4873 = vmatprep.mubr.msk.bf16.mxu0 %vm5897_vm6, %v5896_v4 }
 0x218   : > { %1759 = vmatmul.mubr.bf16.gmra.mxu1 %v6251_v1 }
 0x219   : > { %4879 = vmatprep.mubr.msk.bf16.mxu1 %vm5897_vm6, %v5896_v4 }
 0x28e   : > { %v1485_v10 = vpop.f32.mrf.mxu0  ;;  %v1538_v34 = vpop.f32.mrf.mxu1 }
 0x28f   : > { %v1486_v11 = vadd.f32 %v1485_v10, %v926_v8  ;;  %v1539_v35 = vadd.f32 %v1538_v34, %v934_v32 }
 0x290   : > { %v1487_v12 = vpop.f32.mrf.mxu0  ;;  %v1540_v36 = vpop.f32.mrf.mxu1 }
 0x291   : > { %v1488_v13 = vadd.f32 %v1487_v12, %v930_v9  ;;  %v1541_v37 = vadd.f32 %v1540_v36, %v938_v33 }
 0x292   : > { %v1489_v1 = vpop.f32.mrf.mxu0  ;;  %v1542_v38 = vpop.f32.mrf.mxu1 }
 0x293   : > { %v4673_v14 = vpack.c.bf16 %v1488_v13, %v1486_v11  ;;  %v1490_v16 = vadd.f32 %v1489_v1, %v926_v8  ;;  %v4674_v41 = vpack.c.bf16 %v1541_v37, %v1539_v35  ;;  %v1543_v42 = vadd.f32 %v1542_v38, %v934_v32 }
 0x294   : > { %v1491_v15 = vpop.f32.mrf.mxu0  ;;  %v1544_v43 = vpop.f32.mrf.mxu1 }
 0x295   : > { %1913 = vst [vmem:[#allocation3] sm:$0xff] %v4673_v14  ;;  %v1492_v17 = vadd.f32 %v1491_v15, %v930_v9  ;;  %1914 = vst [vmem:[#allocation3 + $0x8] sm:$0xff] %v4674_v41  ;;  %v1545_v44 = vadd.f32 %v1544_v43, %v938_v33  ;;  %v817_v43 = vld [vmem:[%s6198_s21 + $0x40] sm:$0xff] }
 0x296   : > { %v1495_v18 = vpop.f32.mrf.mxu0  ;;  %v1548_v47 = vpop.f32.mrf.mxu1 }
 0x297   : > { %v4679_v19 = vpack.c.bf16 %v1492_v17, %v1490_v16  ;;  %v1496_v20 = vadd.f32 %v1495_v18, %v926_v8  ;;  %v4680_v49 = vpack.c.bf16 %v1545_v44, %v1543_v42  ;;  %v1549_v50 = vadd.f32 %v1548_v47, %v934_v32 }
 0x298   : > { %v1497_v21 = vpop.f32.mrf.mxu0  ;;  %v1550_v52 = vpop.f32.mrf.mxu1  ;;  %v958_v47 = vrot.slane %v817_v43, %v6345_v51 }
 0x299   : > { %1919 = vst [vmem:[#allocation3 + $0x30] sm:$0xff] %v4679_v19  ;;  %v1498_v22 = vadd.f32 %v1497_v21, %v930_v9  ;;  %1920 = vst [vmem:[#allocation3 + $0x38] sm:$0xff] %v4680_v49  ;;  %v1551_v54 = vadd.f32 %v1550_v52, %v938_v33  ;;  %v816_v21 = vld [vmem:[%s6198_s21 + $0x38] sm:$0xff] }
 0x29a   : > { %v1499_v23 = vpop.f32.mrf.mxu0  ;;  %v1552_v57 = vpop.f32.mrf.mxu1 }
 0x29b   : > { %v4685_v24 = vpack.c.bf16 %v1498_v22, %v1496_v20  ;;  %v1500_v25 = vadd.f32 %v1499_v23, %v926_v8  ;;  %v4686_v59 = vpack.c.bf16 %v1551_v54, %v1549_v50  ;;  %v1553_v60 = vadd.f32 %v1552_v57, %v934_v32  ;;  %v815_v20 = vld [vmem:[%s6198_s21 + $0x30] sm:$0xff] }
 0x29c   : > { %v1501_v26 = vpop.f32.mrf.mxu0  ;;  %v1554_v62 = vpop.f32.mrf.mxu1  ;;  %v950_v22 = vrot.slane %v815_v20, %v6345_v51  ;;  %v954_v23 = vrot.slane %v816_v21, %v6345_v51  ;;  %v819_v54 = vld [vmem:[%s6198_s21 + $0x50] sm:$0xff] }
 0x29d   : > { %1925 = vst [vmem:[#allocation3 + $0x60] sm:$0xff] %v4685_v24  ;;  %v1502_v27 = vadd.f32 %v1501_v26, %v930_v9  ;;  %1926 = vst [vmem:[#allocation3 + $0x68] sm:$0xff] %v4686_v59  ;;  %v1555_v0 = vadd.f32 %v1554_v62, %v938_v33 }
 0x29f   : > { %v4691_v29 = vpack.c.bf16 %v1502_v27, %v1500_v25  ;;  %v4692_v28 = vpack.c.bf16 %v1555_v0, %v1553_v60  ;;  %v966_v60 = vrot.slane %v819_v54, %v6345_v51 }
 0x2a0   : > { %v5341_v17 = vld [vmem:[#allocation3] ss:$48 sps:$4 sm:$0xff]  }
 0x2a1   : > { %1931 = vst [vmem:[#allocation3 + $0x90] sm:$0xff] %v4691_v29  ;;  %1932 = vst [vmem:[#allocation3 + $0x98] sm:$0xff] %v4692_v28 }
 0x2a8   : > { %v5343_v19 = vld [vmem:[#allocation3 + $0x60] ss:$48 sps:$4 sm:$0xff]  }
 0x2ae   : > { %v1591_v48 = vpop.f32.mrf.mxu0 }
 0x2af   : > { %v1592_v55 = vadd.f32 %v1591_v48, %v942_v45 }
 0x2b0   : > { %v1593_v53 = vpop.f32.mrf.mxu0  ;;  %v1644_v24 = vpop.f32.mrf.mxu1 }
 0x2b1   : > { %v1594_v56 = vadd.f32 %v1593_v53, %v946_v46  ;;  %v1645_v25 = vadd.f32 %v1644_v24, %v950_v22 }
 0x2b2   : > { %v1595_v58 = vpop.f32.mrf.mxu0  ;;  %v1646_v26 = vpop.f32.mrf.mxu1 }
 0x2b3   : > { %v4675_v61 = vpack.c.bf16 %v1594_v56, %v1592_v55  ;;  %v1596_v2 = vadd.f32 %v1595_v58, %v942_v45  ;;  %v1647_v27 = vadd.f32 %v1646_v26, %v954_v23  ;;  %v820_v58 = vld [vmem:[%s6198_s21 + $0x58] sm:$0xff] }
 0x2b4   : > { %v1597_v63 = vpop.f32.mrf.mxu0  ;;  %v1648_v29 = vpop.f32.mrf.mxu1 }
 0x2b5   : > { %1915 = vst [vmem:[#allocation3 + $0x10] sm:$0xff] %v4675_v61  ;;  %v1598_v3 = vadd.f32 %v1597_v63, %v946_v46  ;;  %v4676_v30 = vpack.c.bf16 %v1647_v27, %v1645_v25  ;;  %v1649_v31 = vadd.f32 %v1648_v29, %v950_v22  ;;  %v970_v63 = vrot.slane %v820_v58, %v6345_v51 }
 0x2b6   : > { %v1601_v5 = vpop.f32.mrf.mxu0  ;;  %v1650_v32 = vpop.f32.mrf.mxu1 }
 0x2b7   : > { %v4681_v7 = vpack.c.bf16 %v1598_v3, %v1596_v2  ;;  %v1602_v9 = vadd.f32 %v1601_v5, %v942_v45  ;;  %1916 = vst [vmem:[#allocation3 + $0x18] sm:$0xff] %v4676_v30  ;;  %v1651_v33 = vadd.f32 %v1650_v32, %v954_v23 }
 0x2b8   : > { %v1603_v8 = vpop.f32.mrf.mxu0  ;;  %v1654_v35 = vpop.f32.mrf.mxu1 }
 0x2b9   : > { %1921 = vst [vmem:[#allocation3 + $0x40] sm:$0xff] %v4681_v7  ;;  %v1604_v10 = vadd.f32 %v1603_v8, %v946_v46  ;;  %v4682_v34 = vpack.c.bf16 %v1651_v33, %v1649_v31  ;;  %v1655_v36 = vadd.f32 %v1654_v35, %v950_v22  ;;  %v6379_v33 = vld [vmem:[#allocation5] sm:$0xff] }
 0x2ba   : > { %v1605_v11 = vpop.f32.mrf.mxu0  ;;  %v1656_v37 = vpop.f32.mrf.mxu1 }
 0x2bb   : > { %v4687_v12 = vpack.c.bf16 %v1604_v10, %v1602_v9  ;;  %v1606_v1 = vadd.f32 %v1605_v11, %v942_v45  ;;  %1922 = vst [vmem:[#allocation3 + $0x48] sm:$0xff] %v4682_v34  ;;  %v1657_v38 = vadd.f32 %v1656_v37, %v954_v23  ;;  %v818_v45 = vld [vmem:[%s6198_s21 + $0x48] sm:$0xff] }
 0x2bc   : > { %v1607_v13 = vpop.f32.mrf.mxu0  ;;  %v1658_v39 = vpop.f32.mrf.mxu1  ;;  %v962_v48 = vrot.slane %v818_v45, %v6345_v51  ;;  %v6382_v37 = vld [vmem:[#allocation5 + $0x8] sm:$0xff] }
 0x2bd   : > { %1927 = vst [vmem:[#allocation3 + $0x70] sm:$0xff] %v4687_v12  ;;  %v1608_v14 = vadd.f32 %v1607_v13, %v946_v46  ;;  %v4688_v40 = vpack.c.bf16 %v1657_v38, %v1655_v36  ;;  %v1659_v41 = vadd.f32 %v1658_v39, %v950_v22 }
 0x2be   : > { %v1660_v42 = vpop.f32.mrf.mxu1 }
 0x2bf   : > { %v4693_v15 = vpack.c.bf16 %v1608_v14, %v1606_v1  ;;  %1928 = vst [vmem:[#allocation3 + $0x78] sm:$0xff] %v4688_v40  ;;  %v1661_v44 = vadd.f32 %v1660_v42, %v954_v23 }
 0x2c0   : > { %v5340_v16 = vld [vmem:[#allocation3 + $0x10] ss:$48 sps:$4 sm:$0xff]  }
 0x2c1   : > { %1933 = vst [vmem:[#allocation3 + $0xa0] sm:$0xff] %v4693_v15  ;;  %4872 = vmatpush3.bf16.xpose.msra.mxu0 %v5340_v16  ;;  %v4694_v46 = vpack.c.bf16 %v1661_v44, %v1659_v41 }
 0x2c2   : > { %4883 = vmatprep.subr.bf16.mxu0 %v5896_v4 }
 0x2c3   : > { %1934 = vst [vmem:[#allocation3 + $0xa8] sm:$0xff] %v4694_v46 }
 0x2c8   : > { %v5342_v18 = vld [vmem:[#allocation3 + $0x70] ss:$48 sps:$4 sm:$0xff]   ;;  %4874 = vmatmul.mubr.bf16.vlgmr.msra.gmra.mxu0 %v5341_v17 }
 0x2c9   : > { %4878 = vmatpush3.bf16.xpose.msra.mxu1 %v5342_v18  ;;  %4885 = vmatprep.mubr.msk.bf16.mxu0 %vm5897_vm6, %v5896_v4 }
 0x2ca   : > { %4889 = vmatprep.subr.bf16.mxu1 %v5896_v4 }
 0x2ce   : > { %v1697_v49 = vpop.f32.mrf.mxu0 }
 0x2cf   : > { %v1698_v50 = vadd.f32 %v1697_v49, %v958_v47 }
 0x2d0   : > { %4880 = vmatmul.mubr.bf16.vlgmr.msra.gmra.mxu1 %v5343_v19  ;;  %v1699_v52 = vpop.f32.mrf.mxu0  ;;  %v1750_v3 = vpop.f32.mrf.mxu1 }
 0x2d1   : > { %4891 = vmatprep.mubr.msk.bf16.mxu1 %vm5897_vm6, %v5896_v4  ;;  %v1700_v53 = vadd.f32 %v1699_v52, %v962_v48  ;;  %v1751_v5 = vadd.f32 %v1750_v3, %v966_v60 }
 0x2d2   : > { %v1701_v55 = vpop.f32.mrf.mxu0  ;;  %v1752_v8 = vpop.f32.mrf.mxu1 }
 0x2d3   : > { %v4677_v56 = vpack.c.bf16 %v1700_v53, %v1698_v50  ;;  %v1702_v57 = vadd.f32 %v1701_v55, %v958_v47  ;;  %v1753_v9 = vadd.f32 %v1752_v8, %v970_v63 }
 0x2d4   : > { %v1703_v59 = vpop.f32.mrf.mxu0  ;;  %v1754_v13 = vpop.f32.mrf.mxu1 }
 0x2d5   : > { %1917 = vst [vmem:[#allocation3 + $0x20] sm:$0xff] %v4677_v56  ;;  %v1704_v61 = vadd.f32 %v1703_v59, %v962_v48  ;;  %v4678_v1 = vpack.c.bf16 %v1753_v9, %v1751_v5  ;;  %v1755_v14 = vadd.f32 %v1754_v13, %v966_v60 }
 0x2d6   : > { %v1707_v62 = vpop.f32.mrf.mxu0  ;;  %v1756_v17 = vpop.f32.mrf.mxu1 }
 0x2d7   : > { %v4683_v0 = vpack.c.bf16 %v1704_v61, %v1702_v57  ;;  %v1708_v2 = vadd.f32 %v1707_v62, %v958_v47  ;;  %1918 = vst [vmem:[#allocation3 + $0x28] sm:$0xff] %v4678_v1  ;;  %v1757_v51 = vadd.f32 %v1756_v17, %v970_v63 }
 0x2d8   : > { %v1709_v28 = vpop.f32.mrf.mxu0  ;;  %v1760_v19 = vpop.f32.mrf.mxu1 }
 0x2d9   : > { %1923 = vst [vmem:[#allocation3 + $0x50] sm:$0xff] %v4683_v0  ;;  %v1710_v7 = vadd.f32 %v1709_v28, %v962_v48  ;;  %v4684_v20 = vpack.c.bf16 %v1757_v51, %v1755_v14  ;;  %v1761_v23 = vadd.f32 %v1760_v19, %v966_v60  ;;  %v5346_v51 = vld [vmem:[#allocation3 + $0x14] ss:$48 sps:$4 sm:$0xff]  }
 0x2da   : > { %v1711_v10 = vpop.f32.mrf.mxu0  ;;  %v1762_v22 = vpop.f32.mrf.mxu1 }
 0x2db   : > { %v4689_v11 = vpack.c.bf16 %v1710_v7, %v1708_v2  ;;  %v1712_v12 = vadd.f32 %v1711_v10, %v958_v47  ;;  %1924 = vst [vmem:[#allocation3 + $0x58] sm:$0xff] %v4684_v20  ;;  %v1763_v25 = vadd.f32 %v1762_v22, %v970_v63 }
 0x2dc   : > { %v1713_v15 = vpop.f32.mrf.mxu0  ;;  %v1764_v24 = vpop.f32.mrf.mxu1 }
 0x2dd   : > { %1929 = vst [vmem:[#allocation3 + $0x80] sm:$0xff] %v4689_v11  ;;  %v1714_v16 = vadd.f32 %v1713_v15, %v962_v48  ;;  %v1765_v26 = vadd.f32 %v1764_v24, %v966_v60  ;;  %v4690_v30 = vpack.c.bf16 %v1763_v25, %v1761_v23  ;;  %v5347_v23 = vld [vmem:[#allocation3 + $0x4] ss:$48 sps:$4 sm:$0xff]  }
 0x2de   : > { %v1766_v27 = vpop.f32.mrf.mxu1  ;;  %v5348_v24 = vld [vmem:[#allocation3 + $0x74] ss:$48 sps:$4 sm:$0xff]  }
 0x2df   : > { %v4695_v18 = vpack.c.bf16 %v1714_v16, %v1712_v12  ;;  %v1767_v29 = vadd.f32 %v1766_v27, %v970_v63  ;;  %1930 = vst [vmem:[#allocation3 + $0x88] sm:$0xff] %v4690_v30 }
 0x2e0   : > { %v5344_v21 = vld [vmem:[#allocation3 + $0x20] ss:$48 sps:$4 sm:$0xff]   ;;  %v5349_v25 = vld [vmem:[#allocation3 + $0x24] ss:$48 sps:$4 sm:$0xff]  }
 0x2e1   : > { %1935 = vst [vmem:[#allocation3 + $0xb0] sm:$0xff] %v4695_v18  ;;  %4884 = vmatpush3.bf16.msra.mxu0 %v5344_v21  ;;  %v4696_v31 = vpack.c.bf16 %v1767_v29, %v1765_v26  ;;  %v5350_v26 = vld [vmem:[#allocation3 + $0x64] ss:$48 sps:$4 sm:$0xff]  }
 0x2e2   : > { %4895 = vmatprep.subr.bf16.mxu0 %v5896_v4 }
 0x2e3   : > { %1936 = vst [vmem:[#allocation3 + $0xb8] sm:$0xff] %v4696_v31 }
 0x2e8   : > { %v5345_v32 = vld [vmem:[#allocation3 + $0x80] ss:$48 sps:$4 sm:$0xff]   ;;  %v5351_v27 = vld [vmem:[#allocation3 + $0x84] ss:$48 sps:$4 sm:$0xff]  }
 0x2e9   : > { %4890 = vmatpush3.bf16.msra.mxu1 %v5345_v32 }
 0x2ea   : > { %4901 = vmatprep.subr.bf16.mxu1 %v5896_v4 }
 0x388   : > { %v1997_v34 = vpop.f32.mrf.mxu0 }
 0x389   : > { %v1998_v35 = vadd.f32 %v1997_v34, %v6379_v33 }
 0x38a   : > { %v4875_v36 = vpop.f32.mrf.mxu0 }
 0x38b   : > { %v2058_v38 = vsel %vm2057_vm7, %v1998_v35, -inf }
 0x38c   : > { %2059 = vmax.xlane.f32.xlu0 %v2058_v38  ;;  %v2000_v39 = vpop.f32.mrf.mxu0 }
 0x38d   : > { %v2001_v40 = vadd.f32 %v2000_v39, %v6382_v37 }
 0x38e   : > { %v4876_v41 = vpop.f32.mrf.mxu0 }
 0x38f   : > { %v2061_v42 = vsel %vm2057_vm7, %v2001_v40, -inf }
 0x390   : > { %v2050_v43 = vpop.f32.mrf.mxu1  ;;  %2062 = vmax.xlane.f32.xlu0 %v2061_v42 }
 0x391   : > { %v2051_v44 = vadd.f32 %v2050_v43, %v6379_v33 }
 0x392   : > { %v4881_v45 = vpop.f32.mrf.mxu1 }
 0x393   : > { %v2064_v46 = vsel %vm2057_vm7, %v2051_v44, -inf }
 0x394   : > { %2065 = vmax.xlane.f32.xlu1 %v2064_v46  ;;  %v2053_v47 = vpop.f32.mrf.mxu1 }
 0x395   : > { %v2054_v48 = vadd.f32 %v2053_v47, %v6382_v37 }
 0x396   : > { %v4882_v49 = vpop.f32.mrf.mxu1 }
 0x397   : > { %v2067_v50 = vsel %vm2057_vm7, %v2054_v48, -inf }
 0x398   : > { %2068 = vmax.xlane.f32.xlu1 %v2067_v50 }
 0x415   : > { %v2060_v52 = vpop.xlane.xlu0 %2059 }
 0x416   : > { %v2070_v53 = vsub.f32 %v1998_v35, %v2060_v52 }
 0x418   : > { %v2074_v54 = vmul.f32 1.442695, %v2070_v53 }
 0x419   : > { %v2063_v55 = vpop.xlane.xlu0 %2062 }
 0x41a   : > { %5424 = vpow2.f32 %v2074_v54  ;;  %v2071_v56 = vsub.f32 %v2001_v40, %v2063_v55 }
 0x41c   : > { %v2076_v57 = vmul.f32 1.442695, %v2071_v56 }
 0x41d   : > { %v2066_v58 = vpop.xlane.xlu1 %2065 }
 0x41e   : > { %5426 = vpow2.f32 %v2076_v57  ;;  %v2072_v59 = vsub.f32 %v2051_v44, %v2066_v58 }
 0x420   : > { %v2078_v60 = vmul.f32 1.442695, %v2072_v59 }
 0x421   : > { %v2069_v61 = vpop.xlane.xlu1 %2068 }
 0x422   : > { %5428 = vpow2.f32 %v2078_v60  ;;  %v2073_v62 = vsub.f32 %v2054_v48, %v2069_v61 }
 0x424   : > { %v2080_v63 = vmul.f32 1.442695, %v2073_v62 }
 0x426   : > { %5430 = vpow2.f32 %v2080_v63 }
 0x427   : > { %v5425_v0 = vpop.eup %5424 }
 0x428   : > { %v2082_v2 = vsel %vm2057_vm7, %v5425_v0, 0.0 }
 0x429   : > { %2083 = vadd.xlane.f32.xlu0 %v2082_v2 }
 0x42b   : > { %v5427_v3 = vpop.eup %5426 }
 0x42c   : > { %v2085_v5 = vsel %vm2057_vm7, %v5427_v3, 0.0 }
 0x42d   : > { %2086 = vadd.xlane.f32.xlu1 %v2085_v5 }
 0x42f   : > { %v5429_v28 = vpop.eup %5428 }
 0x430   : > { %v2088_v7 = vsel %vm2057_vm7, %v5429_v28, 0.0 }
 0x431   : > { %2089 = vadd.xlane.f32.xlu0 %v2088_v7 }
 0x433   : > { %v5431_v8 = vpop.eup %5430 }
 0x434   : > { %v2091_v9 = vsel %vm2057_vm7, %v5431_v8, 0.0 }
 0x435   : > { %2092 = vadd.xlane.f32.xlu1 %v2091_v9 }
 0x4b2   : > { %v2084_v10 = vpop.xlane.xlu0 %2083 }
 0x4b3   : > { %5432 = vrcp.f32 %v2084_v10 }
 0x4b6   : > { %v2087_v11 = vpop.xlane.xlu1 %2086 }
 0x4b7   : > { %5434 = vrcp.f32 %v2087_v11 }
 0x4ba   : > { %v2090_v12 = vpop.xlane.xlu0 %2089 }
 0x4bb   : > { %5436 = vrcp.f32 %v2090_v12 }
 0x4be   : > { %v2093_v13 = vpop.xlane.xlu1 %2092 }
 0x4bf   : > { %5438 = vrcp.f32 %v2093_v13 }
 0x4c0   : > { %v5433_v1 = vpop.eup %5432 }
 0x4c1   : > { %v2098_v15 = vmul.f32 %v5433_v1, %v5425_v0 }
 0x4c4   : > { %v5435_v14 = vpop.eup %5434 }
 0x4c5   : > { %v2099_v16 = vmul.f32 %v5435_v14, %v5427_v3 }
 0x4c7   : > { %v2102_v17 = vpack.c.bf16 %v2099_v16, %v2098_v15 }
 0x4c8   : > { %v5437_v18 = vpop.eup %5436 }
 0x4c9   : > { %4886 = vmatmul.mubr.msk.bf16.vlgmr.msra.gmra.mxu0 %vm2057_vm7, %v2102_v17  ;;  %v2100_v20 = vmul.f32 %v5437_v18, %v5429_v28 }
 0x4ca   : > { %4896 = vmatpush3.bf16.xpose.msra.mxu0 %v5346_v51  ;;  %4897 = vmatprep.mubr.msk.bf16.mxu0 %vm5897_vm6, %v5896_v4 }
 0x4cb   : > { %4907 = vmatprep.subr.bf16.mxu0 %v5896_v4 }
 0x4cc   : > { %v5439_v19 = vpop.eup %5438 }
 0x4cd   : > { %v2101_v21 = vmul.f32 %v5439_v19, %v5431_v8 }
 0x4cf   : > { %v2103_v22 = vpack.c.bf16 %v2101_v21, %v2100_v20 }
 0x4d1   : > { %4892 = vmatmul.mubr.msk.bf16.vlgmr.msra.gmra.mxu1 %vm2057_vm7, %v2103_v22  ;;  %4898 = vmatmul.mubr.bf16.vlgmr.msra.gmra.mxu0 %v5347_v23 }
 0x4d2   : > { %4902 = vmatpush3.bf16.xpose.msra.mxu1 %v5348_v24  ;;  %4908 = vmatpush3.bf16.msra.mxu0 %v5349_v25  ;;  %v5352_v25 = vld [vmem:[#allocation3 + $0x18] ss:$48 sps:$4 sm:$0xff]  }
 0x4d3   : > { %4903 = vmatprep.mubr.msk.bf16.mxu1 %vm5897_vm6, %v5896_v4  ;;  %4913 = vmatprep.subr.bf16.mxu1 %v5896_v4 }
 0x4d4   : > { %4909 = vmatprep.mubr.msk.bf16.mxu0 %vm5897_vm6, %v5896_v4  ;;  %4919 = vmatprep.subr.bf16.mxu0 %v5896_v4 }
 0x4d9   : > { %4904 = vmatmul.mubr.bf16.vlgmr.msra.gmra.mxu1 %v5350_v26 }
 0x4da   : > { %4914 = vmatpush3.bf16.msra.mxu1 %v5351_v27  ;;  %4915 = vmatprep.mubr.msk.bf16.mxu1 %vm5897_vm6, %v5896_v4 }
 0x4db   : > { %4925 = vmatprep.subr.bf16.mxu1 %v5896_v4 }
 0x589   : > { %v2147_v29 = vpop.f32.mrf.mxu0 }
 0x58a   : > { %v4697_v30 = vpack.c.bf16 %v2147_v29, %v2147_v29 }
 0x58b   : > { %v4887_v31 = vpop.f32.mrf.mxu0 }
 0x58c   : > { %2220 = vst [vmem:[#allocation4] sm:$0xf] %v4697_v30 }
 0x58d   : > { %v2150_v32 = vpop.f32.mrf.mxu0 }
 0x58e   : > { %v4698_v34 = vpack.c.bf16 %v2150_v32, %v2150_v32  ;;  %v5353_v32 = vld [vmem:[#allocation3 + $0x8] ss:$48 sps:$4 sm:$0xff]  }
 0x58f   : > { %v4888_v35 = vpop.f32.mrf.mxu0 }
 0x590   : > { %2221 = vst [vmem:[#allocation4 + $0x10] sm:$0xf] %v4698_v34  ;;  %v5354_v34 = vld [vmem:[#allocation3 + $0x78] ss:$48 sps:$4 sm:$0xff]  }
 0x591   : > { %v2197_v36 = vpop.f32.mrf.mxu1  ;;  %v2282_v38 = vpop.f32.mrf.mxu0  ;;  %v5355_v35 = vld [vmem:[#allocation3 + $0x28] ss:$48 sps:$4 sm:$0xff]  }
 0x592   : > { %v4699_v39 = vpack.c.bf16 %v2197_v36, %v2197_v36  ;;  %v2283_v40 = vadd.f32 %v2282_v38, %v6379_v33  ;;  %v5356_v36 = vld [vmem:[#allocation3 + $0x68] ss:$48 sps:$4 sm:$0xff]  }
 0x593   : > { %v4893_v41 = vpop.f32.mrf.mxu1  ;;  %v4899_v42 = vpop.f32.mrf.mxu0  ;;  %v5357_v38 = vld [vmem:[#allocation3 + $0x88] ss:$48 sps:$4 sm:$0xff]  }
 0x594   : > { %2222 = vst [vmem:[#allocation4 + $0x20] sm:$0xf] %v4699_v39  ;;  %v2342_v43 = vsel %vm2057_vm7, %v2283_v40, -inf }
 0x595   : > { %v2200_v44 = vpop.f32.mrf.mxu1  ;;  %2343 = vmax.xlane.f32.xlu0 %v2342_v43  ;;  %v2285_v45 = vpop.f32.mrf.mxu0 }
 0x596   : > { %v4700_v46 = vpack.c.bf16 %v2200_v44, %v2200_v44  ;;  %v2286_v47 = vadd.f32 %v2285_v45, %v6382_v37 }
 0x597   : > { %v4894_v48 = vpop.f32.mrf.mxu1  ;;  %v4900_v49 = vpop.f32.mrf.mxu0 }
 0x598   : > { %2223 = vst [vmem:[#allocation4 + $0x30] sm:$0xf] %v4700_v46  ;;  %v2345_v50 = vsel %vm2057_vm7, %v2286_v47, -inf }
 0x599   : > { %v2335_v52 = vpop.f32.mrf.mxu1  ;;  %2346 = vmax.xlane.f32.xlu1 %v2345_v50 }
 0x59a   : > { %v2336_v53 = vadd.f32 %v2335_v52, %v6379_v33 }
 0x59b   : > { %v4905_v54 = vpop.f32.mrf.mxu1 }
 0x59c   : > { %v2348_v55 = vsel %vm2057_vm7, %v2336_v53, -inf }
 0x59d   : > { %v2338_v56 = vpop.f32.mrf.mxu1  ;;  %2349 = vmax.xlane.f32.xlu0 %v2348_v55 }
 0x59e   : > { %v2339_v57 = vadd.f32 %v2338_v56, %v6382_v37 }
 0x59f   : > { %v4906_v58 = vpop.f32.mrf.mxu1 }
 0x5a0   : > { %v2351_v59 = vsel %vm2057_vm7, %v2339_v57, -inf }
 0x5a1   : > { %2352 = vmax.xlane.f32.xlu1 %v2351_v59 }
 0x61e   : > { %v2344_v60 = vpop.xlane.xlu0 %2343 }
 0x61f   : > { %v2354_v61 = vsub.f32 %v2283_v40, %v2344_v60 }
 0x621   : > { %v2358_v62 = vmul.f32 1.442695, %v2354_v61 }
 0x622   : > { %v2347_v63 = vpop.xlane.xlu1 %2346 }
 0x623   : > { %5440 = vpow2.f32 %v2358_v62  ;;  %v2355_v0 = vsub.f32 %v2286_v47, %v2347_v63 }
 0x625   : > { %v2360_v2 = vmul.f32 1.442695, %v2355_v0 }
 0x626   : > { %v2350_v3 = vpop.xlane.xlu0 %2349 }
 0x627   : > { %5442 = vpow2.f32 %v2360_v2  ;;  %v2356_v5 = vsub.f32 %v2336_v53, %v2350_v3 }
 0x629   : > { %v2362_v28 = vmul.f32 1.442695, %v2356_v5 }
 0x62a   : > { %v2353_v7 = vpop.xlane.xlu1 %2352 }
 0x62b   : > { %5444 = vpow2.f32 %v2362_v28  ;;  %v2357_v8 = vsub.f32 %v2339_v57, %v2353_v7 }
 0x62d   : > { %v2364_v9 = vmul.f32 1.442695, %v2357_v8 }
 0x62f   : > { %5446 = vpow2.f32 %v2364_v9 }
 0x630   : > { %v5441_v10 = vpop.eup %5440 }
 0x631   : > { %v2366_v11 = vsel %vm2057_vm7, %v5441_v10, 0.0 }
 0x632   : > { %2367 = vadd.xlane.f32.xlu0 %v2366_v11 }
 0x634   : > { %v5443_v12 = vpop.eup %5442 }
 0x635   : > { %v2369_v13 = vsel %vm2057_vm7, %v5443_v12, 0.0 }
 0x636   : > { %2370 = vadd.xlane.f32.xlu1 %v2369_v13 }
 0x638   : > { %v5445_v1 = vpop.eup %5444 }
 0x639   : > { %v2372_v14 = vsel %vm2057_vm7, %v5445_v1, 0.0 }
 0x63a   : > { %2373 = vadd.xlane.f32.xlu0 %v2372_v14 }
 0x63c   : > { %v5447_v15 = vpop.eup %5446 }
 0x63d   : > { %v2375_v16 = vsel %vm2057_vm7, %v5447_v15, 0.0 }
 0x63e   : > { %2376 = vadd.xlane.f32.xlu1 %v2375_v16 }
 0x6bb   : > { %v2368_v17 = vpop.xlane.xlu0 %2367 }
 0x6bc   : > { %5448 = vrcp.f32 %v2368_v17 }
 0x6bf   : > { %v2371_v51 = vpop.xlane.xlu1 %2370 }
 0x6c0   : > { %5450 = vrcp.f32 %v2371_v51 }
 0x6c3   : > { %v2374_v18 = vpop.xlane.xlu0 %2373 }
 0x6c4   : > { %5452 = vrcp.f32 %v2374_v18 }
 0x6c7   : > { %v2377_v19 = vpop.xlane.xlu1 %2376 }
 0x6c8   : > { %5454 = vrcp.f32 %v2377_v19 }
 0x6c9   : > { %v5449_v20 = vpop.eup %5448 }
 0x6ca   : > { %v2382_v22 = vmul.f32 %v5449_v20, %v5441_v10 }
 0x6cd   : > { %v5451_v21 = vpop.eup %5450 }
 0x6ce   : > { %v2383_v23 = vmul.f32 %v5451_v21, %v5443_v12 }
 0x6d0   : > { %v2386_v24 = vpack.c.bf16 %v2383_v23, %v2382_v22 }
 0x6d1   : > { %v5453_v26 = vpop.eup %5452 }
 0x6d2   : > { %4910 = vmatmul.mubr.msk.bf16.vlgmr.msra.gmra.mxu0 %vm2057_vm7, %v2386_v24  ;;  %v2384_v29 = vmul.f32 %v5453_v26, %v5445_v1 }
 0x6d3   : > { %4920 = vmatpush3.bf16.xpose.msra.mxu0 %v5352_v25  ;;  %4921 = vmatprep.mubr.msk.bf16.mxu0 %vm5897_vm6, %v5896_v4 }
 0x6d4   : > { %4931 = vmatprep.subr.bf16.mxu0 %v5896_v4 }
 0x6d5   : > { %v5455_v27 = vpop.eup %5454 }
 0x6d6   : > { %v2385_v30 = vmul.f32 %v5455_v27, %v5447_v15 }
 0x6d8   : > { %v2387_v31 = vpack.c.bf16 %v2385_v30, %v2384_v29 }
 0x6da   : > { %4916 = vmatmul.mubr.msk.bf16.vlgmr.msra.gmra.mxu1 %vm2057_vm7, %v2387_v31  ;;  %4922 = vmatmul.mubr.bf16.vlgmr.msra.gmra.mxu0 %v5353_v32 }
 0x6db   : > { %4926 = vmatpush3.bf16.xpose.msra.mxu1 %v5354_v34  ;;  %4932 = vmatpush3.bf16.msra.mxu0 %v5355_v35  ;;  %v5358_v35 = vld [vmem:[#allocation3 + $0x1c] ss:$48 sps:$4 sm:$0xff]  }
 0x6dc   : > { %4927 = vmatprep.mubr.msk.bf16.mxu1 %vm5897_vm6, %v5896_v4  ;;  %4937 = vmatprep.subr.bf16.mxu1 %v5896_v4 }
 0x6dd   : > { %4933 = vmatprep.mubr.msk.bf16.mxu0 %vm5897_vm6, %v5896_v4  ;;  %4943 = vmatprep.subr.bf16.mxu0 %v5896_v4 }
 0x6e2   : > { %4928 = vmatmul.mubr.bf16.vlgmr.msra.gmra.mxu1 %v5356_v36 }
 0x6e3   : > { %4938 = vmatpush3.bf16.msra.mxu1 %v5357_v38  ;;  %4939 = vmatprep.mubr.msk.bf16.mxu1 %vm5897_vm6, %v5896_v4 }
 0x6e4   : > { %4949 = vmatprep.subr.bf16.mxu1 %v5896_v4 }
 0x792   : > { %v2431_v39 = vpop.f32.mrf.mxu0 }
 0x793   : > { %v4701_v40 = vpack.c.bf16 %v2431_v39, %v2431_v39 }
 0x794   : > { %v4911_v41 = vpop.f32.mrf.mxu0 }
 0x795   : > { %2504 = vst [vmem:[#allocation4 + $0x4] sm:$0xf] %v4701_v40 }
 0x796   : > { %v2434_v42 = vpop.f32.mrf.mxu0 }
 0x797   : > { %v4702_v43 = vpack.c.bf16 %v2434_v42, %v2434_v42  ;;  %v5359_v42 = vld [vmem:[#allocation3 + $0xc] ss:$48 sps:$4 sm:$0xff]  }
 0x798   : > { %v4912_v44 = vpop.f32.mrf.mxu0 }
 0x799   : > { %2505 = vst [vmem:[#allocation4 + $0x14] sm:$0xf] %v4702_v43  ;;  %v5360_v43 = vld [vmem:[#allocation3 + $0x7c] ss:$48 sps:$4 sm:$0xff]  }
 0x79a   : > { %v2481_v45 = vpop.f32.mrf.mxu1  ;;  %v2566_v46 = vpop.f32.mrf.mxu0  ;;  %v5361_v44 = vld [vmem:[#allocation3 + $0x2c] ss:$48 sps:$4 sm:$0xff]  }
 0x79b   : > { %v4703_v47 = vpack.c.bf16 %v2481_v45, %v2481_v45  ;;  %v2567_v48 = vadd.f32 %v2566_v46, %v6379_v33  ;;  %v5362_v45 = vld [vmem:[#allocation3 + $0x6c] ss:$48 sps:$4 sm:$0xff]  }
 0x79c   : > { %v4917_v49 = vpop.f32.mrf.mxu1  ;;  %v4923_v50 = vpop.f32.mrf.mxu0  ;;  %v5363_v46 = vld [vmem:[#allocation3 + $0x8c] ss:$48 sps:$4 sm:$0xff]  }
 0x79d   : > { %2506 = vst [vmem:[#allocation4 + $0x24] sm:$0xf] %v4703_v47  ;;  %v2626_v52 = vsel %vm2057_vm7, %v2567_v48, -inf }
 0x79e   : > { %v2484_v53 = vpop.f32.mrf.mxu1  ;;  %2627 = vmax.xlane.f32.xlu0 %v2626_v52  ;;  %v2569_v54 = vpop.f32.mrf.mxu0 }
 0x79f   : > { %v4704_v55 = vpack.c.bf16 %v2484_v53, %v2484_v53  ;;  %v2570_v56 = vadd.f32 %v2569_v54, %v6382_v37 }
 0x7a0   : > { %v4918_v57 = vpop.f32.mrf.mxu1  ;;  %v4924_v58 = vpop.f32.mrf.mxu0 }
 0x7a1   : > { %2507 = vst [vmem:[#allocation4 + $0x34] sm:$0xf] %v4704_v55  ;;  %v2629_v59 = vsel %vm2057_vm7, %v2570_v56, -inf }
 0x7a2   : > { %v2619_v60 = vpop.f32.mrf.mxu1  ;;  %2630 = vmax.xlane.f32.xlu1 %v2629_v59 }
 0x7a3   : > { %v2620_v61 = vadd.f32 %v2619_v60, %v6379_v33 }
 0x7a4   : > { %v4929_v62 = vpop.f32.mrf.mxu1 }
 0x7a5   : > { %v2632_v63 = vsel %vm2057_vm7, %v2620_v61, -inf }
 0x7a6   : > { %v2622_v0 = vpop.f32.mrf.mxu1  ;;  %2633 = vmax.xlane.f32.xlu0 %v2632_v63 }
 0x7a7   : > { %v2623_v2 = vadd.f32 %v2622_v0, %v6382_v37 }
 0x7a8   : > { %v4930_v3 = vpop.f32.mrf.mxu1 }
 0x7a9   : > { %v2635_v5 = vsel %vm2057_vm7, %v2623_v2, -inf }
 0x7aa   : > { %2636 = vmax.xlane.f32.xlu1 %v2635_v5 }
 0x827   : > { %v2628_v28 = vpop.xlane.xlu0 %2627 }
 0x828   : > { %v2638_v7 = vsub.f32 %v2567_v48, %v2628_v28 }
 0x82a   : > { %v2642_v8 = vmul.f32 1.442695, %v2638_v7 }
 0x82b   : > { %v2631_v9 = vpop.xlane.xlu1 %2630 }
 0x82c   : > { %5456 = vpow2.f32 %v2642_v8  ;;  %v2639_v10 = vsub.f32 %v2570_v56, %v2631_v9 }
 0x82e   : > { %v2644_v11 = vmul.f32 1.442695, %v2639_v10 }
 0x82f   : > { %v2634_v12 = vpop.xlane.xlu0 %2633 }
 0x830   : > { %5458 = vpow2.f32 %v2644_v11  ;;  %v2640_v13 = vsub.f32 %v2620_v61, %v2634_v12 }
 0x832   : > { %v2646_v1 = vmul.f32 1.442695, %v2640_v13 }
 0x833   : > { %v2637_v14 = vpop.xlane.xlu1 %2636 }
 0x834   : > { %5460 = vpow2.f32 %v2646_v1  ;;  %v2641_v15 = vsub.f32 %v2623_v2, %v2637_v14 }
 0x836   : > { %v2648_v16 = vmul.f32 1.442695, %v2641_v15 }
 0x838   : > { %5462 = vpow2.f32 %v2648_v16 }
 0x839   : > { %v5457_v17 = vpop.eup %5456 }
 0x83a   : > { %v2650_v51 = vsel %vm2057_vm7, %v5457_v17, 0.0 }
 0x83b   : > { %2651 = vadd.xlane.f32.xlu0 %v2650_v51 }
 0x83d   : > { %v5459_v18 = vpop.eup %5458 }
 0x83e   : > { %v2653_v19 = vsel %vm2057_vm7, %v5459_v18, 0.0 }
 0x83f   : > { %2654 = vadd.xlane.f32.xlu1 %v2653_v19 }
 0x841   : > { %v5461_v20 = vpop.eup %5460 }
 0x842   : > { %v2656_v21 = vsel %vm2057_vm7, %v5461_v20, 0.0 }
 0x843   : > { %2657 = vadd.xlane.f32.xlu0 %v2656_v21 }
 0x845   : > { %v5463_v22 = vpop.eup %5462 }
 0x846   : > { %v2659_v23 = vsel %vm2057_vm7, %v5463_v22, 0.0 }
 0x847   : > { %2660 = vadd.xlane.f32.xlu1 %v2659_v23 }
 0x8c4   : > { %v2652_v24 = vpop.xlane.xlu0 %2651 }
 0x8c5   : > { %5464 = vrcp.f32 %v2652_v24 }
 0x8c8   : > { %v2655_v25 = vpop.xlane.xlu1 %2654 }
 0x8c9   : > { %5466 = vrcp.f32 %v2655_v25 }
 0x8cc   : > { %v2658_v26 = vpop.xlane.xlu0 %2657 }
 0x8cd   : > { %5468 = vrcp.f32 %v2658_v26 }
 0x8d0   : > { %v2661_v27 = vpop.xlane.xlu1 %2660 }
 0x8d1   : > { %5470 = vrcp.f32 %v2661_v27 }
 0x8d2   : > { %v5465_v29 = vpop.eup %5464 }
 0x8d3   : > { %v2666_v31 = vmul.f32 %v5465_v29, %v5457_v17 }
 0x8d6   : > { %v5467_v30 = vpop.eup %5466 }
 0x8d7   : > { %v2667_v32 = vmul.f32 %v5467_v30, %v5459_v18  ;;  %v5364_v30 = vld [vmem:[%s6192_s9 + $0x78] sm:$0xff]  }
 0x8d9   : > { %v2670_v34 = vpack.c.bf16 %v2667_v32, %v2666_v31  ;;  %v5386_v31 = vld [vmem:[%s6192_s9 + $0xf8] sm:$0xff]  }
 0x8da   : > { %v5469_v36 = vpop.eup %5468 }
 0x8db   : > { %4934 = vmatmul.mubr.msk.bf16.vlgmr.msra.gmra.mxu0 %vm2057_vm7, %v2670_v34  ;;  %v2668_v39 = vmul.f32 %v5469_v36, %v5461_v20 }
 0x8dc   : > { %4944 = vmatpush3.bf16.xpose.msra.mxu0 %v5358_v35  ;;  %4945 = vmatprep.mubr.msk.bf16.mxu0 %vm5897_vm6, %v5896_v4 }
 0x8dd   : > { %4955 = vmatprep.subr.bf16.mxu0 %v5896_v4 }
 0x8de   : > { %v5471_v38 = vpop.eup %5470 }
 0x8df   : > { %v2669_v40 = vmul.f32 %v5471_v38, %v5463_v22 }
 0x8e1   : > { %v2671_v41 = vpack.c.bf16 %v2669_v40, %v2668_v39 }
 0x8e3   : > { %4940 = vmatmul.mubr.msk.bf16.vlgmr.msra.gmra.mxu1 %vm2057_vm7, %v2671_v41  ;;  %4946 = vmatmul.mubr.bf16.vlgmr.msra.gmra.mxu0 %v5359_v42  ;;  %v5365_v42 = vld [vmem:[%s6192_s9 + $0x38] sm:$0xff]  }
 0x8e4   : > { %4950 = vmatpush3.bf16.xpose.msra.mxu1 %v5360_v43  ;;  %4956 = vmatpush3.bf16.msra.mxu0 %v5361_v44  ;;  %v5369_v44 = vld [vmem:[%s6192_s9 + $0x70] sm:$0xff]  }
 0x8e5   : > { %4951 = vmatprep.mubr.msk.bf16.mxu1 %vm5897_vm6, %v5896_v4  ;;  %4961 = vmatprep.subr.bf16.mxu1 %v5896_v4 }
 0x8e6   : > { %4957 = vmatprep.mubr.msk.bf16.mxu0 %vm5897_vm6, %v5896_v4  ;;  %4755 = vmatprep.subr.bf16.mxu0 %v5364_v30 }
 0x8eb   : > { %4952 = vmatmul.mubr.bf16.vlgmr.msra.gmra.mxu1 %v5362_v45  ;;  %v5368_v45 = vld [vmem:[#allocation4 + $0x4] ss:$16 sps:$4 sm:$0xff]  }
 0x8ec   : > { %4962 = vmatpush3.bf16.msra.mxu1 %v5363_v46  ;;  %4963 = vmatprep.mubr.msk.bf16.mxu1 %vm5897_vm6, %v5896_v4 }
 0x8ed   : > { %4783 = vmatprep.subr.bf16.mxu1 %v5386_v31 }
 0x99b   : > { %v2715_v47 = vpop.f32.mrf.mxu0 }
 0x99c   : > { %v4705_v48 = vpack.c.bf16 %v2715_v47, %v2715_v47  ;;  %v5370_v47 = vld [vmem:[%s6192_s9 + $0x30] sm:$0xff]  }
 0x99d   : > { %v4935_v49 = vpop.f32.mrf.mxu0 }
 0x99e   : > { %2788 = vst [vmem:[#allocation4 + $0x8] sm:$0xf] %v4705_v48  ;;  %v5371_v48 = vld [vmem:[%s6192_s9 + $0x68] sm:$0xff]  }
 0x99f   : > { %v2718_v50 = vpop.f32.mrf.mxu0 }
 0x9a0   : > { %v4706_v52 = vpack.c.bf16 %v2718_v50, %v2718_v50 }
 0x9a1   : > { %v4936_v53 = vpop.f32.mrf.mxu0 }
 0x9a2   : > { %2789 = vst [vmem:[#allocation4 + $0x18] sm:$0xf] %v4706_v52  ;;  %v5372_v53 = vld [vmem:[%s6192_s9 + $0x28] sm:$0xff]  }
 0x9a3   : > { %v2765_v54 = vpop.f32.mrf.mxu1  ;;  %v2850_v55 = vpop.f32.mrf.mxu0 }
 0x9a4   : > { %v4707_v56 = vpack.c.bf16 %v2765_v54, %v2765_v54  ;;  %v2851_v57 = vadd.f32 %v2850_v55, %v6379_v33  ;;  %v5387_v54 = vld [vmem:[%s6192_s9 + $0xb8] sm:$0xff]  }
 0x9a5   : > { %v4941_v58 = vpop.f32.mrf.mxu1  ;;  %v4947_v59 = vpop.f32.mrf.mxu0 }
 0x9a6   : > { %2790 = vst [vmem:[#allocation4 + $0x28] sm:$0xf] %v4707_v56  ;;  %v2910_v60 = vsel %vm2057_vm7, %v2851_v57, -inf  ;;  %v5373_v56 = vld [vmem:[%s6192_s9 + $0x60] sm:$0xff]   ;;  %v5389_v59 = vld [vmem:[%s6192_s9 + $0xb0] sm:$0xff]  }
 0x9a7   : > { %v2768_v61 = vpop.f32.mrf.mxu1  ;;  %2911 = vmax.xlane.f32.xlu0 %v2910_v60  ;;  %v2853_v4 = vpop.f32.mrf.mxu0  ;;  %v5374_v58 = vld [vmem:[%s6192_s9 + $0x20] sm:$0xff]   ;;  %v5375_v60 = vld [vmem:[%s6192_s9 + $0x58] sm:$0xff]  }
 0x9a8   : > { %v4708_v62 = vpack.c.bf16 %v2768_v61, %v2768_v61  ;;  %v2854_v63 = vadd.f32 %v2853_v4, %v6382_v37  ;;  %v5390_v61 = vld [vmem:[%s6192_s9 + $0xe8] sm:$0xff]   ;;  %v5376_v4 = vld [vmem:[%s6192_s9 + $0x18] sm:$0xff]  }
 0x9a9   : > { %v4942_v0 = vpop.f32.mrf.mxu1  ;;  %v4948_v2 = vpop.f32.mrf.mxu0 }
 0x9aa   : > { %2791 = vst [vmem:[#allocation4 + $0x38] sm:$0xf] %v4708_v62  ;;  %v2913_v3 = vsel %vm2057_vm7, %v2854_v63, -inf  ;;  %v5391_v62 = vld [vmem:[%s6192_s9 + $0xa8] sm:$0xff]   ;;  %v5392_v0 = vld [vmem:[%s6192_s9 + $0xe0] sm:$0xff]   ;;  %v5378_v2 = vld [vmem:[%s6192_s9 + $0x10] sm:$0xff]  }
 0x9ab   : > { %v2903_v5 = vpop.f32.mrf.mxu1  ;;  %2914 = vmax.xlane.f32.xlu1 %v2913_v3  ;;  %v5393_v3 = vld [vmem:[%s6192_s9 + $0xa0] sm:$0xff]  }
 0x9ac   : > { %v2904_v28 = vadd.f32 %v2903_v5, %v6379_v33  ;;  %v5379_v5 = vld [vmem:[%s6192_s9 + $0x48] sm:$0xff]  }
 0x9ad   : > { %v4953_v7 = vpop.f32.mrf.mxu1 }
 0x9ae   : > { %v2916_v8 = vsel %vm2057_vm7, %v2904_v28, -inf  ;;  %v5381_v7 = vld [vmem:[%s6192_s9 + $0x40] sm:$0xff]  }
 0x9af   : > { %v2906_v9 = vpop.f32.mrf.mxu1  ;;  %2917 = vmax.xlane.f32.xlu0 %v2916_v8  ;;  %v5382_v8 = vld [vmem:[%s6192_s9] sm:$0xff]  }
 0x9b0   : > { %v2907_v10 = vadd.f32 %v2906_v9, %v6382_v37  ;;  %v5366_v9 = vld [vmem:[#allocation4] ss:$16 sps:$4 sm:$0xff]  }
 0x9b1   : > { %v4954_v11 = vpop.f32.mrf.mxu1 }
 0x9b2   : > { %v2919_v12 = vsel %vm2057_vm7, %v2907_v10, -inf  ;;  %v5385_v11 = vld [vmem:[#allocation4 + $0x20] ss:$16 sps:$4 sm:$0xff]  }
 0x9b3   : > { %2920 = vmax.xlane.f32.xlu1 %v2919_v12  ;;  %v5394_v12 = vld [vmem:[%s6192_s9 + $0xd8] sm:$0xff]  }
 0xa30   : > { %v2912_v13 = vpop.xlane.xlu0 %2911 }
 0xa31   : > { %v2922_v1 = vsub.f32 %v2851_v57, %v2912_v13  ;;  %v5388_v57 = vld [vmem:[%s6192_s9 + $0xf0] sm:$0xff]   ;;  %v5395_v13 = vld [vmem:[%s6192_s9 + $0x98] sm:$0xff]  }
 0xa33   : > { %v2926_v14 = vmul.f32 1.442695, %v2922_v1  ;;  %v5396_v1 = vld [vmem:[%s6192_s9 + $0xd0] sm:$0xff]  }
 0xa34   : > { %v2915_v15 = vpop.xlane.xlu1 %2914 }
 0xa35   : > { %5472 = vpow2.f32 %v2926_v14  ;;  %v2923_v16 = vsub.f32 %v2854_v63, %v2915_v15  ;;  %v5377_v63 = vld [vmem:[%s6192_s9 + $0x50] sm:$0xff]   ;;  %v5398_v15 = vld [vmem:[%s6192_s9 + $0xc8] sm:$0xff]  }
 0xa36   : > { %v5397_v14 = vld [vmem:[%s6192_s9 + $0x90] sm:$0xff]  }
 0xa37   : > { %v2928_v17 = vmul.f32 1.442695, %v2923_v16  ;;  %v5399_v16 = vld [vmem:[%s6192_s9 + $0x88] sm:$0xff]  }
 0xa38   : > { %v2918_v51 = vpop.xlane.xlu0 %2917 }
 0xa39   : > { %5474 = vpow2.f32 %v2928_v17  ;;  %v2924_v33 = vsub.f32 %v2904_v28, %v2918_v51  ;;  %v5380_v28 = vld [vmem:[%s6192_s9 + $0x8] sm:$0xff]   ;;  %v5400_v17 = vld [vmem:[%s6192_s9 + $0xc0] sm:$0xff]  }
 0xa3a   : > { %v5401_v51 = vld [vmem:[%s6192_s9 + $0x80] sm:$0xff]  }
 0xa3b   : > { %v2930_v18 = vmul.f32 1.442695, %v2924_v33 }
 0xa3c   : > { %v2921_v19 = vpop.xlane.xlu1 %2920 }
 0xa3d   : > { %5476 = vpow2.f32 %v2930_v18  ;;  %v2925_v20 = vsub.f32 %v2907_v10, %v2921_v19  ;;  %v5383_v10 = vld [vmem:[#allocation4 + $0x24] ss:$16 sps:$4 sm:$0xff]  }
 0xa3f   : > { %v2932_v37 = vmul.f32 1.442695, %v2925_v20 }
 0xa41   : > { %5478 = vpow2.f32 %v2932_v37 }
 0xa42   : > { %v5473_v21 = vpop.eup %5472 }
 0xa43   : > { %v2934_v22 = vsel %vm2057_vm7, %v5473_v21, 0.0 }
 0xa44   : > { %2935 = vadd.xlane.f32.xlu0 %v2934_v22 }
 0xa46   : > { %v5475_v23 = vpop.eup %5474 }
 0xa47   : > { %v2937_v24 = vsel %vm2057_vm7, %v5475_v23, 0.0 }
 0xa48   : > { %2938 = vadd.xlane.f32.xlu1 %v2937_v24 }
 0xa4a   : > { %v5477_v25 = vpop.eup %5476 }
 0xa4b   : > { %v2940_v26 = vsel %vm2057_vm7, %v5477_v25, 0.0 }
 0xa4c   : > { %2941 = vadd.xlane.f32.xlu0 %v2940_v26 }
 0xa4e   : > { %v5479_v27 = vpop.eup %5478 }
 0xa4f   : > { %v2943_v29 = vsel %vm2057_vm7, %v5479_v27, 0.0 }
 0xa50   : > { %2944 = vadd.xlane.f32.xlu1 %v2943_v29  ;;  %v5402_v29 = vld [vmem:[#allocation4 + $0x8] ss:$16 sps:$4 sm:$0xff]  }
 0xacd   : > { %v2936_v32 = vpop.xlane.xlu0 %2935 }
 0xace   : > { %5480 = vrcp.f32 %v2936_v32  ;;  %v5407_v32 = vld [vmem:[#allocation4 + $0x28] ss:$16 sps:$4 sm:$0xff]  }
 0xad1   : > { %v2939_v34 = vpop.xlane.xlu1 %2938 }
 0xad2   : > { %5482 = vrcp.f32 %v2939_v34 }
 0xad5   : > { %v2942_v35 = vpop.xlane.xlu0 %2941 }
 0xad6   : > { %5484 = vrcp.f32 %v2942_v35 }
 0xad9   : > { %v2945_v36 = vpop.xlane.xlu1 %2944 }
 0xada   : > { %5486 = vrcp.f32 %v2945_v36 }
 0xadb   : > { %v5481_v38 = vpop.eup %5480 }
 0xadc   : > { %v2950_v40 = vmul.f32 %v5481_v38, %v5473_v21 }
 0xadf   : > { %v5483_v39 = vpop.eup %5482 }
 0xae0   : > { %v2951_v41 = vmul.f32 %v5483_v39, %v5475_v23  ;;  %v3150_v39 = vsub.s32 1, %v6342_v6 }
 0xae2   : > { %v2954_v43 = vpack.c.bf16 %v2951_v41, %v2950_v40  ;;  %v6507_v41 = vld [vmem:[%s6198_s21] sm:$0xff] }
 0xae3   : > { %v5485_v46 = vpop.eup %5484 }
 0xae4   : > { %4958 = vmatmul.mubr.msk.bf16.vlgmr.msra.gmra.mxu0 %vm2057_vm7, %v2954_v43  ;;  %v2952_v50 = vmul.f32 %v5485_v46, %v5477_v25 }
 0xae5   : > { %4756 = vmatpush3.bf16.msra.mxu0 %v5365_v42  ;;  %3416 = vmatprep.mubr.bf16.mxu0 %v5368_v45  ;;  %v3151_v42 = vrot.slane %v6507_v41, %v3150_v39 }
 0xae6   : > { %4757 = vmatprep.subr.bf16.mxu0 %v5369_v44 }
 0xae7   : > { %v5487_v49 = vpop.eup %5486 }
 0xae8   : > { %v2953_v52 = vmul.f32 %v5487_v49, %v5479_v27 }
 0xae9   : > { %4758 = vmatpush3.bf16.msra.mxu0 %v5370_v47 }
 0xaea   : > { %4759 = vmatprep.subr.bf16.mxu0 %v5371_v48  ;;  %v2955_v55 = vpack.c.bf16 %v2953_v52, %v2952_v50 }
 0xaec   : > { %4964 = vmatmul.mubr.msk.bf16.vlgmr.msra.gmra.mxu1 %vm2057_vm7, %v2955_v55 }
 0xaed   : > { %4760 = vmatpush3.bf16.msra.mxu0 %v5372_v53  ;;  %4784 = vmatpush3.bf16.msra.mxu1 %v5387_v54 }
 0xaee   : > { %4761 = vmatprep.subr.bf16.mxu0 %v5373_v56  ;;  %4785 = vmatprep.subr.bf16.mxu1 %v5388_v57 }
 0xaf1   : > { %4762 = vmatpush3.bf16.msra.mxu0 %v5374_v58  ;;  %4786 = vmatpush3.bf16.msra.mxu1 %v5389_v59  ;;  %v5513_v58 = vld [vmem:[#allocation2 + $0x10] sm:$0xff] }
 0xaf2   : > { %4763 = vmatprep.subr.bf16.mxu0 %v5375_v60  ;;  %4787 = vmatprep.subr.bf16.mxu1 %v5390_v61 }
 0xaf5   : > { %4764 = vmatpush3.bf16.msra.mxu0 %v5376_v4  ;;  %4788 = vmatpush3.bf16.msra.mxu1 %v5391_v62 }
 0xaf6   : > { %4765 = vmatprep.subr.bf16.mxu0 %v5377_v63  ;;  %4789 = vmatprep.subr.bf16.mxu1 %v5392_v0 }
 0xaf9   : > { %4766 = vmatpush3.bf16.msra.mxu0 %v5378_v2  ;;  %4790 = vmatpush3.bf16.msra.mxu1 %v5393_v3  ;;  %v5514_v3 = vld [vmem:[#allocation2] sm:$0xff] }
 0xafa   : > { %4767 = vmatprep.subr.bf16.mxu0 %v5379_v5  ;;  %4791 = vmatprep.subr.bf16.mxu1 %v5394_v12 }
 0xafd   : > { %4768 = vmatpush3.bf16.msra.mxu0 %v5380_v28  ;;  %4792 = vmatpush3.bf16.msra.mxu1 %v5395_v13  ;;  %v5515_v13 = vld [vmem:[#allocation2 + $0x18] sm:$0xff] }
 0xafe   : > { %4769 = vmatprep.subr.bf16.mxu0 %v5381_v7  ;;  %4793 = vmatprep.subr.bf16.mxu1 %v5396_v1 }
 0xb01   : > { %4770 = vmatpush3.bf16.msra.mxu0 %v5382_v8  ;;  %4794 = vmatpush3.bf16.msra.mxu1 %v5397_v14 }
 0xb02   : > { %4795 = vmatprep.subr.bf16.mxu1 %v5398_v15  ;;  %v5516_v15 = vld [vmem:[#allocation2 + $0x8] sm:$0xff] }
 0xb04   : > { %3417 = vmatmul.mubr.bf16.vlgmr.msra.gmra.mxu0 %v5366_v9 }
 0xb05   : > { %3424 = vmatprep.mubr.bf16.mxu0 %v5383_v10  ;;  %4796 = vmatpush3.bf16.msra.mxu1 %v5399_v16 }
 0xb06   : > { %4797 = vmatprep.subr.bf16.mxu1 %v5400_v17 }
 0xb09   : > { %4798 = vmatpush3.bf16.msra.mxu1 %v5401_v51 }
 0xb0c   : > { %3425 = vmatmul.mubr.bf16.gmra.mxu0 %v5385_v11 }
 0xba4   : > { %v2999_v33 = vpop.f32.mrf.mxu0 }
 0xba5   : > { %v4709_v18 = vpack.c.bf16 %v2999_v33, %v2999_v33  ;;  %v5408_v33 = vld [vmem:[%s6194_s28 + $0x38] sm:$0xff]  }
 0xba6   : > { %v4959_v19 = vpop.f32.mrf.mxu0  ;;  %4967 = vmatprep.subr.bf16.mxu0 %v5408_v33 }
 0xba7   : > { %3072 = vst [vmem:[#allocation4 + $0xc] sm:$0xf] %v4709_v18  ;;  %4968 = vmatpush3.bf16.msra.mxu0 %v5408_v33  ;;  %v5409_v18 = vld [vmem:[%s6194_s28 + $0x30] sm:$0xff]   ;;  %v5410_v19 = vld [vmem:[%s6194_s28 + $0x28] sm:$0xff]  }
 0xba8   : > { %v3002_v20 = vpop.f32.mrf.mxu0  ;;  %4969 = vmatprep.subr.bf16.mxu0 %v5409_v18 }
 0xba9   : > { %v4710_v37 = vpack.c.bf16 %v3002_v20, %v3002_v20  ;;  %v5411_v20 = vld [vmem:[%s6194_s28 + $0x20] sm:$0xff]  }
 0xbaa   : > { %v4960_v21 = vpop.f32.mrf.mxu0 }
 0xbab   : > { %3073 = vst [vmem:[#allocation4 + $0x1c] sm:$0xf] %v4710_v37  ;;  %4970 = vmatpush3.bf16.msra.mxu0 %v5409_v18  ;;  %v5412_v37 = vld [vmem:[%s6194_s28 + $0x18] sm:$0xff]   ;;  %v5413_v21 = vld [vmem:[%s6194_s28 + $0x10] sm:$0xff]  }
 0xbac   : > { %v3049_v22 = vpop.f32.mrf.mxu1  ;;  %4971 = vmatprep.subr.bf16.mxu0 %v5410_v19  ;;  %v5417_v18 = vld [vmem:[%s6196_s12 + $0x30] sm:$0xff]  }
 0xbad   : > { %v4711_v23 = vpack.c.bf16 %v3049_v22, %v3049_v22  ;;  %v5414_v22 = vld [vmem:[%s6194_s28 + $0x8] sm:$0xff]  }
 0xbae   : > { %v4965_v24 = vpop.f32.mrf.mxu1 }
 0xbaf   : > { %3074 = vst [vmem:[#allocation4 + $0x2c] sm:$0xf] %v4711_v23  ;;  %4972 = vmatpush3.bf16.msra.mxu0 %v5410_v19  ;;  %v5415_v23 = vld [vmem:[%s6194_s28] sm:$0xff]   ;;  %v5418_v19 = vld [vmem:[%s6196_s12 + $0x28] sm:$0xff]  }
 0xbb0   : > { %v3052_v25 = vpop.f32.mrf.mxu1  ;;  %4973 = vmatprep.subr.bf16.mxu0 %v5411_v20 }
 0xbb1   : > { %v4712_v26 = vpack.c.bf16 %v3052_v25, %v3052_v25 }
 0xbb2   : > { %v4966_v27 = vpop.f32.mrf.mxu1  ;;  %v5404_v30 = vld [vmem:[#allocation4 + $0xc] ss:$16 sps:$4 sm:$0xff]  }
 0xbb3   : > { %3075 = vst [vmem:[#allocation4 + $0x3c] sm:$0xf] %v4712_v26  ;;  %3465 = vmatprep.mubr.bf16.mxu1 %v5404_v30  ;;  %4974 = vmatpush3.bf16.msra.mxu0 %v5411_v20  ;;  %v5419_v20 = vld [vmem:[%s6196_s12 + $0x20] sm:$0xff]  }
 0xbb4   : > { %3466 = vmatmul.mubr.bf16.vlgmr.msra.gmra.mxu1 %v5402_v29  ;;  %4975 = vmatprep.subr.bf16.mxu0 %v5412_v37 }
 0xbb7   : > { %4976 = vmatpush3.bf16.msra.mxu0 %v5412_v37  ;;  %v5420_v37 = vld [vmem:[%s6196_s12 + $0x18] sm:$0xff]  }
 0xbb8   : > { %4977 = vmatprep.subr.bf16.mxu0 %v5413_v21 }
 0xbba   : > { %v5405_v31 = vld [vmem:[#allocation4 + $0x2c] ss:$16 sps:$4 sm:$0xff]  }
 0xbbb   : > { %3473 = vmatprep.mubr.bf16.mxu1 %v5405_v31  ;;  %4978 = vmatpush3.bf16.msra.mxu0 %v5413_v21  ;;  %v5421_v21 = vld [vmem:[%s6196_s12 + $0x10] sm:$0xff]  }
 0xbbc   : > { %3474 = vmatmul.mubr.bf16.gmra.mxu1 %v5407_v32  ;;  %4979 = vmatprep.subr.bf16.mxu0 %v5414_v22 }
 0xbbf   : > { %4980 = vmatpush3.bf16.msra.mxu0 %v5414_v22  ;;  %v5422_v22 = vld [vmem:[%s6196_s12 + $0x8] sm:$0xff]  }
 0xbc0   : > { %4981 = vmatprep.subr.bf16.mxu0 %v5415_v23 }
 0xbc3   : > { %4982 = vmatpush3.bf16.msra.mxu0 %v5415_v23  ;;  %v5423_v23 = vld [vmem:[%s6196_s12] sm:$0xff]  }
 0xbc4   : > { %v4771_v34 = vpop.f32.mrf.mxu0 }
 0xbc6   : > { %v4772_v35 = vpop.f32.mrf.mxu0 }
 0xbc7   : > { %v4773_v43 = vadd.f32 %v4772_v35, %v4771_v34 }
 0xbc8   : > { %v4774_v36 = vpop.f32.mrf.mxu0 }
 0xbc9   : > { %v3419_v47 = vadd.f32 %v4773_v43, %v3151_v42 }
 0xbca   : > { %v4775_v38 = vpop.f32.mrf.mxu0 }
 0xbcb   : > { %v4776_v48 = vadd.f32 %v4775_v38, %v4774_v36 }
 0xbcc   : > { %v4777_v40 = vpop.f32.mrf.mxu0 }
 0xbcd   : > { %v3422_v56 = vadd.f32 %v4776_v48, %v3151_v42 }
 0xbce   : > { %v4778_v44 = vpop.f32.mrf.mxu0 }
 0xbcf   : > { %v4779_v54 = vadd.f32 %v4778_v44, %v4777_v40 }
 0xbd0   : > { %v4780_v50 = vpop.f32.mrf.mxu0 }
 0xbd1   : > { %v3427_v62 = vadd.f32 %v4779_v54, %v3151_v42 }
 0xbd2   : > { %v4781_v60 = vpop.f32.mrf.mxu0 }
 0xbd3   : > { %v4782_v0 = vadd.f32 %v4781_v60, %v4780_v50 }
 0xbd5   : > { %v3430_v10 = vadd.f32 %v4782_v0, %v3151_v42 }
 0xc74   : > { %v4799_v45 = vpop.f32.mrf.mxu1 }
 0xc76   : > { %v4800_v46 = vpop.f32.mrf.mxu1 }
 0xc77   : > { %v4801_v49 = vadd.f32 %v4800_v46, %v4799_v45 }
 0xc78   : > { %v4802_v52 = vpop.f32.mrf.mxu1 }
 0xc79   : > { %v3468_v53 = vadd.f32 %v4801_v49, %v3419_v47 }
 0xc7a   : > { %v4803_v55 = vpop.f32.mrf.mxu1 }
 0xc7b   : > { %v4804_v57 = vadd.f32 %v4803_v55, %v4802_v52  ;;  %v6510_v59 = vadd.f32 %v5513_v58, %v3468_v53 }
 0xc7c   : > { %v4805_v61 = vpop.f32.mrf.mxu1 }
 0xc7d   : > { %v3471_v4 = vadd.f32 %v4804_v57, %v3422_v56  ;;  %3486 = vadd.xlane.f32.xlu0 %v6510_v59  ;;  %v3498_v28 = vmul.f32 %v6510_v59, %v6510_v59  ;;  %v3540_v57 = vsub.s32 4, %v6342_v6 }
 0xc7e   : > { %v4806_v63 = vpop.f32.mrf.mxu1 }
 0xc7f   : > { %v4807_v2 = vadd.f32 %v4806_v63, %v4805_v61  ;;  %v6513_v5 = vadd.f32 %v5514_v3, %v3471_v4  ;;  %v3541_v4 = vrot.slane %v6507_v41, %v3540_v57 }
 0xc80   : > { %v4808_v7 = vpop.f32.mrf.mxu1 }
 0xc81   : > { %v3476_v8 = vadd.f32 %v4807_v2, %v3427_v62  ;;  %3488 = vadd.xlane.f32.xlu1 %v6513_v5  ;;  %3502 = vadd.xlane.f32.xlu0 %v3498_v28  ;;  %v3499_v12 = vmul.f32 %v6513_v5, %v6513_v5  ;;  %v3548_v62 = vsub.s32 5, %v6342_v6 }
 0xc82   : > { %v4809_v9 = vpop.f32.mrf.mxu1 }
 0xc83   : > { %v4810_v11 = vadd.f32 %v4809_v9, %v4808_v7  ;;  %v6520_v1 = vadd.f32 %v5515_v13, %v3476_v8  ;;  %v3549_v28 = vrot.slane %v6507_v41, %v3548_v62 }
 0xc85   : > { %v3479_v14 = vadd.f32 %v4810_v11, %v3430_v10  ;;  %3504 = vadd.xlane.f32.xlu1 %v3499_v12  ;;  %3490 = vadd.xlane.f32.xlu0 %v6520_v1  ;;  %v3500_v17 = vmul.f32 %v6520_v1, %v6520_v1 }
 0xc87   : > { %v6523_v16 = vadd.f32 %v5516_v15, %v3479_v14 }
 0xc89   : > { %3492 = vadd.xlane.f32.xlu1 %v6523_v16  ;;  %3506 = vadd.xlane.f32.xlu0 %v3500_v17  ;;  %v3501_v51 = vmul.f32 %v6523_v16, %v6523_v16 }
 0xc8d   : > { %3508 = vadd.xlane.f32.xlu1 %v3501_v51 }
 0xd06   : > { %v3487_v24 = vpop.xlane.xlu0 %3486 }
 0xd07   : > { %v3494_v25 = vmul.f32 0.03125, %v3487_v24  ;;  %v3574_v24 = vsub.s32 2, %v6342_v6 }
 0xd09   : > { %v3514_v29 = vmul.f32 %v3494_v25, %v3494_v25  ;;  %v3522_v58 = vsub.f32 %v6510_v59, %v3494_v25  ;;  %v3575_v25 = vrot.slane %v6507_v41, %v3574_v24 }
 0xd0a   : > { %v3489_v26 = vpop.xlane.xlu1 %3488  ;;  %v3503_v27 = vpop.xlane.xlu0 %3502 }
 0xd0b   : > { %v3495_v30 = vmul.f32 0.03125, %v3489_v26  ;;  %v3510_v31 = vmul.f32 0.03125, %v3503_v27 }
 0xd0d   : > { %v3518_v32 = vsub.f32 %v3510_v31, %v3514_v29  ;;  %v3515_v36 = vmul.f32 %v3495_v30, %v3495_v30  ;;  %v3523_v63 = vsub.f32 %v6513_v5, %v3495_v30 }
 0xd0e   : > { %v3505_v34 = vpop.xlane.xlu1 %3504  ;;  %v3491_v35 = vpop.xlane.xlu0 %3490 }
 0xd0f   : > { %v3526_v38 = vadd.f32 1e-05, %v3518_v32  ;;  %v3511_v39 = vmul.f32 0.03125, %v3505_v34  ;;  %v3496_v40 = vmul.f32 0.03125, %v3491_v35 }
 0xd11   : > { %5488 = vrsqrt.f32 %v3526_v38  ;;  %v3519_v42 = vsub.f32 %v3511_v39, %v3515_v36  ;;  %v3516_v46 = vmul.f32 %v3496_v40, %v3496_v40  ;;  %v3524_v7 = vsub.f32 %v6520_v1, %v3496_v40 }
 0xd12   : > { %v3493_v43 = vpop.xlane.xlu1 %3492  ;;  %v3507_v44 = vpop.xlane.xlu0 %3506 }
 0xd13   : > { %v3527_v45 = vadd.f32 1e-05, %v3519_v42  ;;  %v3497_v47 = vmul.f32 0.03125, %v3493_v43  ;;  %v3512_v48 = vmul.f32 0.03125, %v3507_v44 }
 0xd15   : > { %5490 = vrsqrt.f32 %v3527_v45  ;;  %v3520_v49 = vsub.f32 %v3512_v48, %v3516_v46  ;;  %v3517_v52 = vmul.f32 %v3497_v47, %v3497_v47  ;;  %v3525_v12 = vsub.f32 %v6523_v16, %v3497_v47  ;;  %v5416_v16 = vld [vmem:[%s6196_s12 + $0x38] sm:$0xff]  }
 0xd16   : > { %v3509_v50 = vpop.xlane.xlu1 %3508  ;;  %4987 = vmatprep.subr.bf16.mxu1 %v5416_v16 }
 0xd17   : > { %v3528_v53 = vadd.f32 1e-05, %v3520_v49  ;;  %v3513_v54 = vmul.f32 0.03125, %v3509_v50  ;;  %4988 = vmatpush3.bf16.msra.mxu1 %v5416_v16 }
 0xd18   : > { %4989 = vmatprep.subr.bf16.mxu1 %v5417_v18 }
 0xd19   : > { %5492 = vrsqrt.f32 %v3528_v53  ;;  %v3521_v55 = vsub.f32 %v3513_v54, %v3517_v52 }
 0xd1b   : > { %v3529_v56 = vadd.f32 1e-05, %v3521_v55  ;;  %4990 = vmatpush3.bf16.msra.mxu1 %v5417_v18 }
 0xd1c   : > { %4991 = vmatprep.subr.bf16.mxu1 %v5418_v19 }
 0xd1d   : > { %5494 = vrsqrt.f32 %v3529_v56 }
 0xd1e   : > { %v5489_v60 = vpop.eup %5488 }
 0xd1f   : > { %v3534_v61 = vmul.f32 %v5489_v60, %v3522_v58  ;;  %4992 = vmatpush3.bf16.msra.mxu1 %v5418_v19 }
 0xd20   : > { %4993 = vmatprep.subr.bf16.mxu1 %v5419_v20 }
 0xd21   : > { %v3542_v3 = vmul.f32 %v3541_v4, %v3534_v61 }
 0xd22   : > { %v5491_v0 = vpop.eup %5490 }
 0xd23   : > { %v3535_v2 = vmul.f32 %v5491_v0, %v3523_v63  ;;  %v6545_v10 = vadd.f32 %v3549_v28, %v3542_v3  ;;  %4994 = vmatpush3.bf16.msra.mxu1 %v5419_v20 }
 0xd24   : > { %4995 = vmatprep.subr.bf16.mxu1 %v5420_v37 }
 0xd25   : > { %v3543_v8 = vmul.f32 %v3541_v4, %v3535_v2 }
 0xd26   : > { %v5493_v9 = vpop.eup %5492 }
 0xd27   : > { %v3536_v59 = vmul.f32 %v5493_v9, %v3524_v7  ;;  %v6547_v11 = vadd.f32 %v3549_v28, %v3543_v8  ;;  %4996 = vmatpush3.bf16.msra.mxu1 %v5420_v37 }
 0xd28   : > { %4997 = vmatprep.subr.bf16.mxu1 %v5421_v21 }
 0xd29   : > { %v3554_v5 = vpack.c.bf16 %v6547_v11, %v6545_v10  ;;  %v3544_v1 = vmul.f32 %v3541_v4, %v3536_v59 }
 0xd2a   : > { %v5495_v13 = vpop.eup %5494 }
 0xd2b   : > { %v3537_v14 = vmul.f32 %v5495_v13, %v3525_v12  ;;  %4983 = vmatprep.mubr.bf16.mxu0 %v3554_v5  ;;  %v6552_v17 = vadd.f32 %v3549_v28, %v3544_v1  ;;  %4998 = vmatpush3.bf16.msra.mxu1 %v5421_v21 }
 0xd2c   : > { %4999 = vmatprep.subr.bf16.mxu1 %v5422_v22 }
 0xd2d   : > { %v3545_v15 = vmul.f32 %v3541_v4, %v3537_v14 }
 0xd2f   : > { %v6554_v51 = vadd.f32 %v3549_v28, %v3545_v15  ;;  %5000 = vmatpush3.bf16.msra.mxu1 %v5422_v22  ;;  %v3729_v15 = vsub.s32 3, %v6342_v6 }
 0xd30   : > { %5001 = vmatprep.subr.bf16.mxu1 %v5423_v23 }
 0xd31   : > { %v3555_v33 = vpack.c.bf16 %v6554_v51, %v6552_v17 }
 0xd33   : > { %4984 = vmatmul.mubr.bf16.vlgmr.msra.gmra.mxu0 %v3555_v33  ;;  %5002 = vmatpush3.bf16.msra.mxu1 %v5423_v23  ;;  %v3730_v33 = vrot.slane %v6507_v41, %v3729_v15 }
 0xdf3   : > { %v4985_v26 = vpop.f32.mrf.mxu0 }
 0xdf4   : > { %v3667_v27 = vadd.f32 %v4985_v26, %v3575_v25 }
 0xdf5   : > { %v3658_v29 = vpop.f32.mrf.mxu0 }
 0xdf6   : > { %v3679_v30 = vmul.f32 0.044715, %v3667_v27  ;;  %v3659_v31 = vadd.f32 %v3658_v29, %v3575_v25  ;;  %v3675_v9 = vmul.f32 0.5, %v3667_v27 }
 0xdf7   : > { %v4986_v32 = vpop.f32.mrf.mxu0 }
 0xdf8   : > { %v3683_v34 = vmul.f32 %v3679_v30, %v3667_v27  ;;  %v3677_v35 = vmul.f32 0.044715, %v3659_v31  ;;  %v3670_v36 = vadd.f32 %v4986_v32, %v3575_v25  ;;  %v3673_v28 = vmul.f32 0.5, %v3659_v31 }
 0xdf9   : > { %v3661_v38 = vpop.f32.mrf.mxu0 }
 0xdfa   : > { %v3687_v39 = vmul.f32 %v3683_v34, %v3667_v27  ;;  %v3681_v40 = vmul.f32 %v3677_v35, %v3659_v31  ;;  %v3680_v42 = vmul.f32 0.044715, %v3670_v36  ;;  %v3662_v43 = vadd.f32 %v3661_v38, %v3575_v25 }
 0xdfb   : > { %v3676_v2 = vmul.f32 0.5, %v3670_v36 }
 0xdfc   : > { %v3691_v44 = vadd.f32 %v3687_v39, %v3667_v27  ;;  %v3685_v45 = vmul.f32 %v3681_v40, %v3659_v31  ;;  %v3684_v46 = vmul.f32 %v3680_v42, %v3670_v36  ;;  %v3678_v47 = vmul.f32 0.044715, %v3662_v43 }
 0xdfd   : > { %v3674_v7 = vmul.f32 0.5, %v3662_v43 }
 0xdfe   : > { %v3695_v48 = vmul.f32 0.7978846, %v3691_v44  ;;  %v3688_v49 = vmul.f32 %v3684_v46, %v3670_v36  ;;  %v3689_v50 = vadd.f32 %v3685_v45, %v3659_v31  ;;  %v3682_v52 = vmul.f32 %v3678_v47, %v3662_v43 }
 0xe00   : > { %v3692_v53 = vadd.f32 %v3688_v49, %v3670_v36  ;;  %v3693_v54 = vmul.f32 0.7978846, %v3689_v50  ;;  %v3686_v55 = vmul.f32 %v3682_v52, %v3662_v43  ;;  %5496 = vtanh.f32 %v3695_v48 }
 0xe02   : > { %v3696_v56 = vmul.f32 0.7978846, %v3692_v53  ;;  %v3690_v57 = vadd.f32 %v3686_v55, %v3662_v43  ;;  %5498 = vtanh.f32 %v3693_v54 }
 0xe04   : > { %5500 = vtanh.f32 %v3696_v56  ;;  %v3694_v58 = vmul.f32 0.7978846, %v3690_v57 }
 0xe06   : > { %5502 = vtanh.f32 %v3694_v58 }
 0xe0d   : > { %v5497_v60 = vpop.eup %5496 }
 0xe0e   : > { %v3703_v3 = vadd.f32 1.0, %v5497_v60 }
 0xe0f   : > { %v5499_v61 = vpop.eup %5498 }
 0xe10   : > { %v3701_v63 = vadd.f32 1.0, %v5499_v61  ;;  %v3707_v13 = vmul.f32 %v3703_v3, %v3675_v9 }
 0xe11   : > { %v5501_v4 = vpop.eup %5500 }
 0xe12   : > { %v3704_v62 = vadd.f32 1.0, %v5501_v4  ;;  %v3705_v12 = vmul.f32 %v3701_v63, %v3673_v28  ;;  %v3886_v4 = vsub.s32 6, %v6342_v6 }
 0xe13   : > { %v5503_v0 = vpop.eup %5502 }
 0xe14   : > { %v3702_v8 = vadd.f32 1.0, %v5503_v0  ;;  %v3708_v59 = vmul.f32 %v3704_v62, %v3676_v2  ;;  %v3894_v62 = vsub.s32 7, %v6342_v6  ;;  %v3887_v0 = vrot.slane %v6507_v41, %v3886_v4 }
 0xe16   : > { %v3706_v5 = vmul.f32 %v3702_v8, %v3674_v7  ;;  %v3710_v1 = vpack.c.bf16 %v3708_v59, %v3707_v13  ;;  %v3895_v3 = vrot.slane %v6507_v41, %v3894_v62 }
 0xe18   : > { %v3709_v14 = vpack.c.bf16 %v3706_v5, %v3705_v12 }
 0xe1a   : > { %5003 = vmatprep.mubr.bf16.mxu1 %v3709_v14 }
 0xe1b   : > { %5004 = vmatmul.mubr.bf16.vlgmr.msra.gmra.mxu1 %v3710_v1 }
 0xedb   : > { %v5005_v16 = vpop.f32.mrf.mxu1 }
 0xedc   : > { %v3822_v18 = vadd.f32 %v5005_v16, %v3730_v33 }
 0xedd   : > { %v3813_v19 = vpop.f32.mrf.mxu1 }
 0xede   : > { %v6571_v20 = vadd.f32 %v3822_v18, %v6552_v17  ;;  %v3814_v37 = vadd.f32 %v3813_v19, %v3730_v33 }
 0xedf   : > { %v5006_v21 = vpop.f32.mrf.mxu1 }
 0xee0   : > { %v3825_v22 = vadd.f32 %v5006_v21, %v3730_v33  ;;  %3836 = vadd.xlane.f32.xlu0 %v6571_v20  ;;  %v3828_v24 = vadd.f32 %v3814_v37, %v6545_v10  ;;  %v3846_v30 = vmul.f32 %v6571_v20, %v6571_v20 }
 0xee1   : > { %v3816_v23 = vpop.f32.mrf.mxu1 }
 0xee2   : > { %v6576_v25 = vadd.f32 %v3825_v22, %v6554_v51  ;;  %v3817_v26 = vadd.f32 %v3816_v23, %v3730_v33  ;;  %v3844_v29 = vmul.f32 %v3828_v24, %v3828_v24 }
 0xee4   : > { %3838 = vadd.xlane.f32.xlu1 %v6576_v25  ;;  %3832 = vadd.xlane.f32.xlu0 %v3828_v24  ;;  %v3829_v27 = vadd.f32 %v3817_v26, %v6547_v11  ;;  %v3847_v10 = vmul.f32 %v6576_v25, %v6576_v25 }
 0xee6   : > { %v3845_v17 = vmul.f32 %v3829_v27, %v3829_v27 }
 0xee8   : > { %3834 = vadd.xlane.f32.xlu1 %v3829_v27  ;;  %3848 = vadd.xlane.f32.xlu0 %v3844_v29 }
 0xeec   : > { %3850 = vadd.xlane.f32.xlu1 %v3845_v17  ;;  %3852 = vadd.xlane.f32.xlu0 %v3846_v30 }
 0xef0   : > { %3854 = vadd.xlane.f32.xlu1 %v3847_v10 }
 0xf69   : > { %v3837_v51 = vpop.xlane.xlu0 %3836 }
 0xf6a   : > { %v3842_v35 = vmul.f32 0.03125, %v3837_v51 }
 0xf6c   : > { %v3862_v43 = vmul.f32 %v3842_v35, %v3842_v35  ;;  %v3870_v59 = vsub.f32 %v6571_v20, %v3842_v35 }
 0xf6d   : > { %v3839_v31 = vpop.xlane.xlu1 %3838  ;;  %v3833_v32 = vpop.xlane.xlu0 %3832 }
 0xf6e   : > { %v3840_v34 = vmul.f32 0.03125, %v3833_v32  ;;  %v3843_v44 = vmul.f32 0.03125, %v3839_v31 }
 0xf70   : > { %v3860_v38 = vmul.f32 %v3840_v34, %v3840_v34  ;;  %v3863_v55 = vmul.f32 %v3843_v44, %v3843_v44  ;;  %v3868_v63 = vsub.f32 %v3828_v24, %v3840_v34  ;;  %v3871_v1 = vsub.f32 %v6576_v25, %v3843_v44 }
 0xf71   : > { %v3835_v36 = vpop.xlane.xlu1 %3834  ;;  %v3849_v11 = vpop.xlane.xlu0 %3848 }
 0xf72   : > { %v3841_v39 = vmul.f32 0.03125, %v3835_v36  ;;  %v3856_v40 = vmul.f32 0.03125, %v3849_v11 }
 0xf74   : > { %v3864_v42 = vsub.f32 %v3856_v40, %v3860_v38  ;;  %v3861_v47 = vmul.f32 %v3841_v39, %v3841_v39  ;;  %v3869_v7 = vsub.f32 %v3829_v27, %v3841_v39 }
 0xf75   : > { %v3851_v45 = vpop.xlane.xlu1 %3850  ;;  %v3853_v46 = vpop.xlane.xlu0 %3852 }
 0xf76   : > { %v3872_v48 = vadd.f32 1e-05, %v3864_v42  ;;  %v3857_v49 = vmul.f32 0.03125, %v3851_v45  ;;  %v3858_v50 = vmul.f32 0.03125, %v3853_v46 }
 0xf78   : > { %5504 = vrsqrt.f32 %v3872_v48  ;;  %v3865_v52 = vsub.f32 %v3857_v49, %v3861_v47  ;;  %v3866_v53 = vsub.f32 %v3858_v50, %v3862_v43 }
 0xf79   : > { %v3855_v54 = vpop.xlane.xlu1 %3854 }
 0xf7a   : > { %v3873_v56 = vadd.f32 1e-05, %v3865_v52  ;;  %v3874_v57 = vadd.f32 1e-05, %v3866_v53  ;;  %v3859_v58 = vmul.f32 0.03125, %v3855_v54 }
 0xf7c   : > { %5506 = vrsqrt.f32 %v3873_v56  ;;  %v3867_v60 = vsub.f32 %v3859_v58, %v3863_v55 }
 0xf7d   : > { %5508 = vrsqrt.f32 %v3874_v57 }
 0xf7e   : > { %v3875_v61 = vadd.f32 1e-05, %v3867_v60 }
 0xf80   : > { %5510 = vrsqrt.f32 %v3875_v61 }
 0xf85   : > { %v5505_v2 = vpop.eup %5504 }
 0xf86   : > { %v3880_v28 = vmul.f32 %v5505_v2, %v3868_v63 }
 0xf88   : > { %v3888_v8 = vmul.f32 %v3887_v0, %v3880_v28 }
 0xf89   : > { %v5507_v9 = vpop.eup %5506 }
 0xf8a   : > { %v5509_v12 = vpop.eup %5508  ;;  %v3896_v5 = vadd.f32 %v3895_v3, %v3888_v8  ;;  %v3881_v13 = vmul.f32 %v5507_v9, %v3869_v7 }
 0xf8b   : > { %v3882_v14 = vmul.f32 %v5509_v12, %v3870_v59 }
 0xf8c   : > { %3900 = vst [vmem:[#allocation2 + $0x10] sm:$0xff] %v3896_v5  ;;  %v3889_v6 = vmul.f32 %v3887_v0, %v3881_v13 }
 0xf8d   : > { %v5511_v15 = vpop.eup %5510  ;;  %v3890_v33 = vmul.f32 %v3887_v0, %v3882_v14 }
 0xf8e   : > { %v3897_v16 = vadd.f32 %v3895_v3, %v3889_v6  ;;  %v3883_v18 = vmul.f32 %v5511_v15, %v3871_v1 }
 0xf8f   : > { %v3898_v19 = vadd.f32 %v3895_v3, %v3890_v33 }
 0xf90   : > { %3901 = vst [vmem:[#allocation2] sm:$0xff] %v3897_v16  ;;  %v3891_v41 = vmul.f32 %v3887_v0, %v3883_v18  ;;  %3907 = sbr.rel (%p4647_p6) target bundleno = 4456 (0x1168), region = 112 }
 0xf91   : > { %3902 = vst [vmem:[#allocation2 + $0x18] sm:$0xff] %v3898_v19 }
 0xf92   : > { %v3899_v37 = vadd.f32 %v3895_v3, %v3891_v41 }
 0xf94   : > { %3903 = vst [vmem:[#allocation2 + $0x8] sm:$0xff] %v3899_v37 }
 0xf95   : > { %v5517_v20 = vld [vmem:[#allocation16 + $0x38] sm:$0xff]   ;;  %v3908_v21 = vpack.c.bf16 %v3897_v16, %v3896_v5  ;;  %v5518_v22 = vld [vmem:[#allocation16 + $0x30] sm:$0xff]   ;;  %v5519_v23 = vld [vmem:[#allocation16 + $0x28] sm:$0xff]   ;;  %v3909_v17 = vpack.c.bf16 %v3899_v37, %v3898_v19 }
 0xf96   : > { %5007 = vmatprep.subr.bf16.mxu0 %v5517_v20  ;;  %v5520_v24 = vld [vmem:[#allocation16 + $0x20] sm:$0xff]   ;;  %v5521_v25 = vld [vmem:[#allocation16 + $0x18] sm:$0xff]   ;;  %v5522_v26 = vld [vmem:[#allocation16 + $0x10] sm:$0xff]  }
 0xf97   : > { %5023 = vmatprep.mubr.bf16.mxu0 %v3908_v21  ;;  %5008 = vmatpush3.bf16.msra.mxu0 %v5517_v20  ;;  %v5523_v27 = vld [vmem:[#allocation16 + $0x8] sm:$0xff]   ;;  %v5524_v29 = vld [vmem:[#allocation16] sm:$0xff]   ;;  %v5525_v30 = vld [vmem:[#allocation17 + $0x38] sm:$0xff]  }
 0xf98   : > { %5009 = vmatprep.subr.bf16.mxu0 %v5518_v22  ;;  %5027 = vmatprep.subr.bf16.mxu1 %v5525_v30  ;;  %v5526_v10 = vld [vmem:[#allocation17 + $0x30] sm:$0xff]   ;;  %v5527_v51 = vld [vmem:[#allocation17 + $0x28] sm:$0xff]   ;;  %v5528_v31 = vld [vmem:[#allocation17 + $0x20] sm:$0xff]  }
 0xf99   : > { %5028 = vmatpush3.bf16.msra.mxu1 %v5525_v30  ;;  %v5529_v32 = vld [vmem:[#allocation17 + $0x18] sm:$0xff]   ;;  %v5530_v34 = vld [vmem:[#allocation17 + $0x10] sm:$0xff]   ;;  %v5531_v35 = vld [vmem:[#allocation17 + $0x8] sm:$0xff]  }
 0xf9a   : > { %5029 = vmatprep.subr.bf16.mxu1 %v5526_v10  ;;  %v5532_v36 = vld [vmem:[#allocation17] sm:$0xff]  }
 0xf9b   : > { %5010 = vmatpush3.bf16.msra.mxu0 %v5518_v22  ;;  %v4648_v11 = vld [vmem:[%s6691_s22] ss:$0 sm:$0xff] }
 0xf9c   : > { %5011 = vmatprep.subr.bf16.mxu0 %v5519_v23  ;;  %v4657_v21 = vld [vmem:[%s6692_s0] ss:$0 sm:$0xff] }
 0xf9d   : > { %5030 = vmatpush3.bf16.msra.mxu1 %v5526_v10 }
 0xf9e   : > { %5031 = vmatprep.subr.bf16.mxu1 %v5527_v51 }
 0xf9f   : > { %5012 = vmatpush3.bf16.msra.mxu0 %v5519_v23 }
 0xfa0   : > { %5013 = vmatprep.subr.bf16.mxu0 %v5520_v24 }
 0xfa1   : > { %5032 = vmatpush3.bf16.msra.mxu1 %v5527_v51 }
 0xfa2   : > { %5033 = vmatprep.subr.bf16.mxu1 %v5528_v31 }
 0xfa3   : > { %5014 = vmatpush3.bf16.msra.mxu0 %v5520_v24 }
 0xfa4   : > { %5015 = vmatprep.subr.bf16.mxu0 %v5521_v25 }
 0xfa5   : > { %5034 = vmatpush3.bf16.msra.mxu1 %v5528_v31 }
 0xfa6   : > { %5035 = vmatprep.subr.bf16.mxu1 %v5529_v32 }
 0xfa7   : > { %5016 = vmatpush3.bf16.msra.mxu0 %v5521_v25 }
 0xfa8   : > { %5017 = vmatprep.subr.bf16.mxu0 %v5522_v26 }
 0xfa9   : > { %5036 = vmatpush3.bf16.msra.mxu1 %v5529_v32 }
 0xfaa   : > { %5037 = vmatprep.subr.bf16.mxu1 %v5530_v34 }
 0xfab   : > { %5018 = vmatpush3.bf16.msra.mxu0 %v5522_v26 }
 0xfac   : > { %5019 = vmatprep.subr.bf16.mxu0 %v5523_v27 }
 0xfad   : > { %5038 = vmatpush3.bf16.msra.mxu1 %v5530_v34 }
 0xfae   : > { %5039 = vmatprep.subr.bf16.mxu1 %v5531_v35 }
 0xfaf   : > { %5020 = vmatpush3.bf16.msra.mxu0 %v5523_v27 }
 0xfb0   : > { %5021 = vmatprep.subr.bf16.mxu0 %v5524_v29 }
 0xfb1   : > { %5040 = vmatpush3.bf16.msra.mxu1 %v5531_v35 }
 0xfb2   : > { %5041 = vmatprep.subr.bf16.mxu1 %v5532_v36 }
 0xfb3   : > { %5022 = vmatpush3.bf16.msra.mxu0 %v5524_v29 }
 0xfb5   : > { %5042 = vmatpush3.bf16.msra.mxu1 %v5532_v36 }
 0xfb6   : > { %5024 = vmatmul.mubr.bf16.vlgmr.msra.gmra.mxu0 %v3909_v17 }
0x1076   : > { %v5025_v38 = vpop.f32.mrf.mxu0 }
0x1077   : > { %v4024_v39 = vadd.f32 %v5025_v38, %v4648_v11 }
0x1078   : > { %v4015_v40 = vpop.f32.mrf.mxu0 }
0x1079   : > { %v4036_v42 = vmul.f32 0.044715, %v4024_v39  ;;  %v4016_v43 = vadd.f32 %v4648_v11, %v4015_v40  ;;  %v4032_v33 = vmul.f32 0.5, %v4024_v39 }
0x107a   : > { %v5026_v44 = vpop.f32.mrf.mxu0 }
0x107b   : > { %v4040_v45 = vmul.f32 %v4036_v42, %v4024_v39  ;;  %v4034_v46 = vmul.f32 0.044715, %v4016_v43  ;;  %v4027_v47 = vadd.f32 %v5026_v44, %v4648_v11  ;;  %v4030_v1 = vmul.f32 0.5, %v4016_v43 }
0x107c   : > { %v4018_v48 = vpop.f32.mrf.mxu0 }
0x107d   : > { %v4044_v49 = vmul.f32 %v4040_v45, %v4024_v39  ;;  %v4037_v50 = vmul.f32 0.044715, %v4027_v47  ;;  %v4019_v52 = vadd.f32 %v4648_v11, %v4018_v48  ;;  %v4038_v53 = vmul.f32 %v4034_v46, %v4016_v43 }
0x107e   : > { %v4033_v13 = vmul.f32 0.5, %v4027_v47 }
0x107f   : > { %v4041_v54 = vmul.f32 %v4037_v50, %v4027_v47  ;;  %v4035_v55 = vmul.f32 0.044715, %v4019_v52  ;;  %v4042_v56 = vmul.f32 %v4038_v53, %v4016_v43  ;;  %v4048_v57 = vadd.f32 %v4044_v49, %v4024_v39 }
0x1080   : > { %v4031_v6 = vmul.f32 0.5, %v4019_v52 }
0x1081   : > { %v4045_v58 = vmul.f32 %v4041_v54, %v4027_v47  ;;  %v4039_v60 = vmul.f32 %v4035_v55, %v4019_v52  ;;  %v4046_v61 = vadd.f32 %v4042_v56, %v4016_v43  ;;  %v4052_v4 = vmul.f32 0.7978846, %v4048_v57 }
0x1083   : > { %v4043_v62 = vmul.f32 %v4039_v60, %v4019_v52  ;;  %v4050_v63 = vmul.f32 0.7978846, %v4046_v61  ;;  %v4049_v0 = vadd.f32 %v4045_v58, %v4027_v47 }
0x1085   : > { %v4047_v2 = vadd.f32 %v4043_v62, %v4019_v52  ;;  %5533 = vtanh.f32 %v4050_v63  ;;  %v4053_v3 = vmul.f32 0.7978846, %v4049_v0 }
0x1086   : > { %5535 = vtanh.f32 %v4052_v4 }
0x1087   : > { %v4051_v28 = vmul.f32 0.7978846, %v4047_v2  ;;  %5537 = vtanh.f32 %v4053_v3 }
0x1089   : > { %5539 = vtanh.f32 %v4051_v28 }
0x1092   : > { %v5534_v7 = vpop.eup %5533 }
0x1093   : > { %v5536_v8 = vpop.eup %5535  ;;  %v4058_v59 = vadd.f32 1.0, %v5534_v7 }
0x1094   : > { %v5538_v9 = vpop.eup %5537  ;;  %v4060_v14 = vadd.f32 1.0, %v5536_v8 }
0x1095   : > { %v4061_v12 = vadd.f32 1.0, %v5538_v9  ;;  %v4062_v18 = vmul.f32 %v4058_v59, %v4030_v1 }
0x1096   : > { %v5540_v5 = vpop.eup %5539  ;;  %v4064_v41 = vmul.f32 %v4060_v14, %v4032_v33 }
0x1097   : > { %v4059_v15 = vadd.f32 1.0, %v5540_v5  ;;  %v4065_v16 = vmul.f32 %v4061_v12, %v4033_v13 }
0x1099   : > { %v4063_v19 = vmul.f32 %v4059_v15, %v4031_v6  ;;  %v4067_v20 = vpack.c.bf16 %v4065_v16, %v4064_v41 }
0x109b   : > { %v4066_v37 = vpack.c.bf16 %v4063_v19, %v4062_v18 }
0x109d   : > { %5043 = vmatprep.mubr.bf16.mxu1 %v4066_v37 }
0x109e   : > { %5044 = vmatmul.mubr.bf16.vlgmr.msra.gmra.mxu1 %v4067_v20 }
0x115e   : > { %v5045_v22 = vpop.f32.mrf.mxu1 }
0x115f   : > { %v4182_v23 = vadd.f32 %v5045_v22, %v4657_v21 }
0x1160   : > { %v4173_v24 = vpop.f32.mrf.mxu1 }
0x1161   : > { %4190 = vst [vmem:[#allocation19 + $0x10] sm:$0xff] %v4182_v23  ;;  %v4174_v25 = vadd.f32 %v4657_v21, %v4173_v24 }
0x1162   : > { %v5046_v26 = vpop.f32.mrf.mxu1 }
0x1163   : > { %4188 = vst [vmem:[#allocation19] sm:$0xff] %v4174_v25  ;;  %v4185_v27 = vadd.f32 %v5046_v26, %v4657_v21 }
0x1164   : > { %v4176_v29 = vpop.f32.mrf.mxu1 }
0x1165   : > { %4191 = vst [vmem:[#allocation19 + $0x18] sm:$0xff] %v4185_v27  ;;  %v4177_v17 = vadd.f32 %v4657_v21, %v4176_v29 }
0x1167   : > { %4189 = vst [vmem:[#allocation19 + $0x8] sm:$0xff] %v4177_v17 }
0x1168 PF: > { %p5121_p11 = scmp.eq.s32.totalorder %s5995_s27, 1  ;;  %s5898_s17 = smov [#allocation19]  }
0x1169   : > { %s4201_s3 = sshll.u32 %s5898_s17, 4  ;;  %s4202_s3 = int_to_ptr.vmem [resolvable:$true] %s4201_s3 }
0x116a   : > { %s5785_s13 = scalar_lea.vmem %s4202_s3, 512  ;;  %p5792_p12 = scmp.lt.s32.totalorder %s4202_s3, %s4202_s3 }
0x116b   : > { %p5786_p1 = scmp.ne.s32.totalorder %s4202_s3, %s5785_s13  ;;  %p5793_p5 = scmp.lt.s32.totalorder %s5785_s13, %s5785_s13 }
0x116d   : > { %p5787_p10 = pnand %p5786_p1, %p5121_p11  ;;  %p5794_p7 = por %p5793_p5, %p5792_p12 }
0x116f   : > { %p5788_p2 = pneg %p5787_p10 }
0x1171   : > { %p5795_p8 = pnand %p5794_p7, %p5788_p2 }
0x1173   : > { %5798 = shalt.err (!%p5795_p8)
}
0x1174   : > { %s5899_s23 = smov 128   ;;  %s5900_s11 = smov 8  }
0x1175   : > { %s6693_s9 = sld [smem:[#allocation38_spill]] }
0x117b   : > { %5080 = dma.vmem_to_hbm [thread:$0]  (%p5121_p11), %s4202_s3, 512, %s6693_s9, [#allocation8], %s5899_s23, %s5899_s23, %s5900_s11  }
0x117c   : > { %5854 = dma.done.wait (%p5121_p11), [#allocation8], 512  }
0x117d   : > { %5856 = vsyncadd (%p5121_p11), [#allocation8], 4294966784 }
0x117e PF: > { %s6694_s28 = sld [smem:[#allocation29_spill]]  ;;  %s6699_s24 = smov %s5875_s25 }
0x117f   : > { %s6695_s21 = sld [smem:[#allocation26_spill]] }
0x1180   : > { %s6696_s22 = sld [smem:[#allocation27_spill]] }
0x1181   : > { %s6697_s23 = sld [smem:[#allocation32_spill]] }
0x1182   : > { %s6698_s12 = sld [smem:[#allocation31_spill]] }
0x1184   : > { %s26_s26 = sadd.s32 1, %s6694_s28  }
0x1185   : > { %p23_p0 = scmp.ge.s32.totalorder %s26_s26, 4  }
0x1187   :  { %25 = sbr.rel (!%p23_p0) target bundleno = 13 (0xd), region = 174 }
0x1188   : > { %s6700_s25 = smov %s6698_s12 }
0x118c   :  { %4217 = vsyncpa [#allocation7], 1 }
0x118d   :  { %4219 = vsyncpa [#allocation7 + $0x1], 1 }
0x118e   :  { %4220 = vsyncpa [#allocation10], 1 }
0x118f   :  { %4221 = vsyncpa [#allocation18], 1 }
0x1190   :  { %4222 = vsyncpa [#allocation8], 1 }
0x1191   :  { %4224 = vsyncpa [#allocation8 + $0x1], 1 }

// kernel: tpu_custom_call.1
= control target key start
LH: loop header
LB: loop body
LE: loop exit
PB: predicated region body
PF: predicated region fallthrough
CT: control target
= control target key end

     0   :  { %s6627_s0 = inlined_call_operand.hbm [shape: bf16[32,128], index: 0, kind: input, shape index: {}]   ;;  %s6628_s1 = inlined_call_operand.hbm [shape: bf16[128,128], index: 1, kind: input, shape index: {}]   ;;  %s6629_s2 = inlined_call_operand.vmem [shape: f32[1,128], index: 2, kind: input, shape index: {}]   ;;  %s6630_s3 = inlined_call_operand.hbm [shape: bf16[2,128,1536], index: 3, kind: input, shape index: {}]   ;;  %s6631_s4 = inlined_call_operand.hbm [shape: bf16[2,512,128], index: 4, kind: input, shape index: {}]   ;;  %s6632_s5 = inlined_call_operand.hbm [shape: bf16[2,128,128], index: 5, kind: input, shape index: {}]   ;;  %s6633_s6 = inlined_call_operand.hbm [shape: bf16[2,128,128], index: 6, kind: input, shape index: {}]   ;;  %s6634_s7 = inlined_call_operand.hbm [shape: f32[2,8,1536], index: 7, kind: input, shape index: {}]   ;;  %s6635_s8 = inlined_call_operand.hbm [shape: bf16[128,128], index: 8, kind: input, shape index: {}]   ;;  %s6636_s9 = inlined_call_operand.vmem [shape: f32[1,128], index: 9, kind: input, shape index: {}]   ;;  %s6637_s10 = inlined_call_operand.hbm [shape: bf16[128,128], index: 10, kind: input, shape index: {}]   ;;  %s6638_s11 = inlined_call_operand.vmem [shape: f32[1,128], index: 11, kind: input, shape index: {}]   ;;  %s6639_s12 = inlined_call_operand.hbm [shape: f32[32,128], index: 12, kind: output, shape index: {}]  }
   0x1   :  { %6652 = sst [smem:[#allocation33_spill]] %s6627_s0 }
   0x2   :  { %6653 = sst [smem:[#allocation34_spill]] %s6629_s2 }
   0x3   :  { %6654 = sst [smem:[#allocation35_spill]] %s6630_s3 }
   0x4   :  { %6655 = sst [smem:[#allocation36_spill]] %s6636_s9 }
   0x5   :  { %6656 = sst [smem:[#allocation37_spill]] %s6638_s11 }
   0x6   :  { %6657 = sst [smem:[#allocation38_spill]] %s6639_s12 }
   0x7   :  { %17 = vsyncpa [#allocation7], 0 }
   0x8   :  { %18 = vsyncpa [#allocation10], 0 }
   0x9   :  { %19 = vsyncpa [#allocation18], 0 }
   0xa   :  { %20 = vsyncpa [#allocation8], 0  ;;  %s5966_s21 = smov 0   ;;  %s5968_s22 = smov 0  }
   0xb   :  { %s5970_s23 = smov 0   ;;  %s5972_s24 = smov 0  }
   0xc   :  { %s5974_s25 = smov 0   ;;  %s5976_s26 = smov 0  }
   0xd LB: > { %6658 = sst [smem:[#allocation26_spill]] %s5863_s22  ;;  %s5995_s27 = sadd.s32 4294967295, %s5879_s26   ;;  %s5879_s26 = sphi %s5976_s26, %s26_s26   ;;  %s5875_s25 = sphi %s5974_s25, %s6700_s25   ;;  %s5871_s24 = sphi %s5972_s24, %s6699_s24   ;;  %s5867_s23 = sphi %s5970_s23, %s6697_s23   ;;  %s5863_s22 = sphi %s5968_s22, %s6696_s22   ;;  %s5859_s21 = sphi %s5966_s21, %s6695_s21  }
   0xe   : > { %6659 = sst [smem:[#allocation27_spill]] %s5867_s23  ;;  %p120_p0 = scmp.ne.s32.totalorder %s5867_s23, %s5863_s22 }
   0xf   : > { %6660 = sst [smem:[#allocation28_spill]] %s5871_s24  ;;  %p121_p1 = scmp.eq.s32.totalorder %s5879_s26, 0 }
  0x10   : > { %6661 = sst [smem:[#allocation29_spill]] %s5879_s26  ;;  %p126_p2 = scmp.ne.s32.totalorder %s5863_s22, %s5859_s21 }
  0x11   : > { %p6640_p3 = scmp.eq.s32.totalorder %s5995_s27, 0  ;;  %p6003_p4 = por %p121_p1, %p120_p0 }
  0x12   : > { %p4386_p5 = scmp.ge.s32.totalorder %s5879_s26, 1  ;;  %p351_p7 = scmp.lt.s32.totalorder %s5879_s26, 3 }
  0x13   : > { %p6010_p6 = por %p6640_p3, %p126_p2  ;;  %s5881_s14 = smov [#allocation6]  }
  0x14   : > { %p6015_p8 = pnand %p4386_p5, %p351_p7  ;;  %s366_s15 = sshll.u32 %s5881_s14, 4  ;;  %s367_s15 = int_to_ptr.vmem [resolvable:$true] %s366_s15 }
  0x15   : > { %s6663_s30 = scalar_select %p6010_p6, 1, 0 }
  0x16   : > { %p5083_p9 = pneg %p6015_p8  ;;  %s35_s17 = sadd.s32 1, %s5875_s25 }
  0x17   : > { %6664 = sst [smem:[#allocation30_spill]] %s6663_s30  ;;  %p5116_p11 = scmp.lt.s32.totalorder %s5879_s26, 2 }
  0x18   : > { %p6023_p10 = pnand %p5083_p9, %p6640_p3  ;;  %p6029_p12 = scmp.ge.s32.totalorder %s35_s17, 2 }
  0x19   : > { %s5552_s19 = scalar_lea.vmem %s367_s15, 256  ;;  %p5560_p5 = scmp.lt.s32.totalorder %s367_s15, %s367_s15 }
  0x1a   : > { %p5543_p13 = pneg %p6023_p10  ;;  %p5553_p0 = scmp.ne.s32.totalorder %s367_s15, %s5552_s19 }
  0x1b   : > { %p5561_p7 = scmp.lt.s32.totalorder %s5552_s19, %s5552_s19 }
  0x1c   : > { %p5555_p1 = pnand %p5553_p0, %p5543_p13 }
  0x1d   : > { %p5562_p9 = por %p5561_p7, %p5560_p5 }
  0x1e   : > { %p5556_p2 = pneg %p5555_p1 }
  0x20   : > { %p5563_p3 = pnand %p5562_p9, %p5556_p2 }
  0x22   : > { %5566 = shalt.err (!%p5563_p3)
}
  0x23   : > { %s6641_s20 = smov 64   ;;  %s6643_s21 = smov 4  }
  0x24   : > { %s6668_s0 = sld [smem:[#allocation33_spill]]  ;;  %s6702_s17 = smov (%p6029_p12, %s35_s17), 0 }
  0x25   : > { %6669 = sst [smem:[#allocation31_spill]] %s6702_s17  ;;  %s428_s28 = sand.u32 1, %s5879_s26  }
  0x26   : > { %s6052_s12 = sand.u32 1, %s5867_s23   ;;  %s110_s11 = ssub.s32 %s5875_s25, %s6702_s17 }
  0x27   : > { %p111_p3 = scmp.eq.s32.totalorder %s110_s11, 0  ;;  %s5047_s9 = smul.u32 768, %s6052_s12 }
  0x28   : > { %s5048_s2 = smul.u32 12288, %s5875_s25  ;;  %p6062_p0 = pnand %p5116_p11, %p6003_p4 }
  0x29   : > { %s6673_s3 = sld [smem:[#allocation35_spill]]  ;;  %s4393_s11 = sshll.u32 %s6052_s12, 8 }
  0x2a   : > { %5086 = dma.hbm_to_vmem [thread:$0]  (!%p6023_p10), %s6668_s0, 256, %s367_s15, [#allocation7], %s6641_s20, %s6641_s20, %s6643_s21  }
  0x2b   : > { %s6671_s15 = sadd.s32 1, %s5867_s23  ;;  %s432_s21 = scalar_lea.vmem [#allocation11], %s5047_s9 }
  0x2c   : > { %s6069_s18 = scalar_select %p111_p3, %s5867_s23, %s6671_s15  }
  0x2d   : > { %s439_s0 = sshll.u32 %s432_s21, 4  ;;  %s6075_s17 = scalar_lea.sflag [#allocation7], %s428_s28  ;;  %s440_s0 = int_to_ptr.vmem [resolvable:$true] %s439_s0 }
  0x2e   : > { %6672 = sst [smem:[#allocation32_spill]] %s6069_s18  ;;  %p6079_p12 = pneg %p6062_p0 }
  0x2f   : > { %s438_s20 = scalar_lea.hbm %s6673_s3, %s5048_s2  ;;  %s5580_s26 = scalar_lea.vmem %s440_s0, 12288 }
  0x30   : > { %p5581_p4 = scmp.ne.s32.totalorder %s440_s0, %s5580_s26  ;;  %s5884_s15 = smov [#allocation11]  }
  0x31   : > { %s5585_s14 = sshll.u32 %s5884_s15, 4  ;;  %s5586_s14 = int_to_ptr.vmem [resolvable:$false] %s5585_s14 }
  0x32   : > { %p5583_p11 = pnand %p5581_p4, %p6079_p12  ;;  %s5587_s2 = scalar_lea.vmem %s5586_s14, 24576 }
  0x33   : > { %p5588_p2 = scmp.lt.s32.totalorder %s440_s0, %s5586_s14  ;;  %p5589_p5 = scmp.lt.s32.totalorder %s5587_s2, %s5580_s26 }
  0x34   : > { %p5584_p1 = pneg %p5583_p11 }
  0x35   : > { %p5590_p7 = por %p5589_p5, %p5588_p2 }
  0x37   : > { %p5591_p9 = pnand %p5590_p7, %p5584_p1 }
  0x39   : > { %5594 = shalt.err (!%p5591_p9)
}
  0x3a   : > { %s5885_s9 = smov 768   ;;  %s5886_s28 = smov 48  }
  0x3b   : > { %5099 = dma.hbm_to_vmem [thread:$0]  (!%p6062_p0), %s438_s20, 12288, %s440_s0, %s6075_s17, %s5885_s9, %s5885_s9, %s5886_s28  }
  0x3c   : > { %s4670_s21 = sshll.u32 %s5875_s25, 12  ;;  %s453_s18 = scalar_lea.vmem [#allocation12], %s4393_s11 }
  0x3d   : > { %s459_s15 = scalar_lea.hbm %s6631_s4, %s4670_s21  ;;  %s460_s14 = sshll.u32 %s453_s18, 4  ;;  %s461_s14 = int_to_ptr.vmem [resolvable:$true] %s460_s14 }
  0x3e   : > { %s4396_s26 = sshll.u32 %s6052_s12, 6  ;;  %s5608_s2 = scalar_lea.vmem %s461_s14, 4096 }
  0x3f   : > { %p5609_p3 = scmp.ne.s32.totalorder %s461_s14, %s5608_s2  ;;  %s5887_s23 = smov [#allocation12]  }
  0x40   : > { %s5613_s30 = sshll.u32 %s5887_s23, 4  ;;  %s5614_s30 = int_to_ptr.vmem [resolvable:$false] %s5613_s30 }
  0x41   : > { %p5611_p4 = pnand %p5609_p3, %p6079_p12  ;;  %s5615_s22 = scalar_lea.vmem %s5614_s30, 8192 }
  0x42   : > { %p5616_p1 = scmp.lt.s32.totalorder %s461_s14, %s5614_s30  ;;  %p5617_p2 = scmp.lt.s32.totalorder %s5615_s22, %s5608_s2 }
  0x43   : > { %p5612_p11 = pneg %p5611_p4 }
  0x44   : > { %p5618_p5 = por %p5617_p2, %p5616_p1 }
  0x46   : > { %p5619_p7 = pnand %p5618_p5, %p5612_p11 }
  0x48   : > { %5622 = shalt.err (!%p5619_p7)
}
  0x49   : > { %s6675_s0 = smov 4   ;;  %s6676_s3 = smov 64  }
  0x4a   : > { %5102 = dma.hbm_to_vmem [thread:$0]  (!%p6062_p0), %s459_s15, 4096, %s461_s14, %s6075_s17, %s6676_s3, %s6676_s3, %s6675_s0  }
  0x4b   : > { %s4671_s20 = sshll.u32 %s5875_s25, 10  ;;  %s474_s22 = scalar_lea.vmem [#allocation13], %s4396_s26 }
  0x4c   : > { %s480_s11 = scalar_lea.hbm %s6632_s5, %s4671_s20  ;;  %s481_s30 = sshll.u32 %s474_s22, 4  ;;  %s482_s30 = int_to_ptr.vmem [resolvable:$true] %s481_s30 }
  0x4d   : > { %s5636_s9 = scalar_lea.vmem %s482_s30, 1024  ;;  %s5888_s28 = smov [#allocation13]  }
  0x4e   : > { %p5637_p9 = scmp.ne.s32.totalorder %s482_s30, %s5636_s9  ;;  %s5641_s21 = sshll.u32 %s5888_s28, 4  ;;  %s5642_s21 = int_to_ptr.vmem [resolvable:$false] %s5641_s21 }
  0x4f   : > { %s5643_s19 = scalar_lea.vmem %s5642_s21, 2048  ;;  %p5644_p11 = scmp.lt.s32.totalorder %s482_s30, %s5642_s21 }
  0x50   : > { %p5639_p3 = pnand %p5637_p9, %p6079_p12  ;;  %p5645_p1 = scmp.lt.s32.totalorder %s5643_s19, %s5636_s9 }
  0x52   : > { %p5640_p4 = pneg %p5639_p3  ;;  %p5646_p2 = por %p5645_p1, %p5644_p11 }
  0x54   : > { %p5647_p5 = pnand %p5646_p2, %p5640_p4 }
  0x56   : > { %5650 = shalt.err (!%p5647_p5)
}
  0x57   : > { %5105 = dma.hbm_to_vmem [thread:$0]  (!%p6062_p0), %s480_s11, 1024, %s482_s30, %s6075_s17, %s6676_s3, %s6676_s3, %s6675_s0  }
  0x58   : > { %s5889_s15 = smov [#allocation9]   ;;  %s6118_s23 = scalar_lea.hbm %s6633_s6, %s4671_s20 }
  0x59   : > { %s379_s14 = sshll.u32 %s5889_s15, 4  ;;  %s380_s14 = int_to_ptr.vmem [resolvable:$true] %s379_s14 }
  0x5a   : > { %s5662_s22 = scalar_lea.vmem %s380_s14, 1024  ;;  %p5670_p4 = scmp.lt.s32.totalorder %s380_s14, %s380_s14 }
  0x5b   : > { %p5663_p7 = scmp.ne.s32.totalorder %s380_s14, %s5662_s22  ;;  %p5671_p11 = scmp.lt.s32.totalorder %s5662_s22, %s5662_s22 }
  0x5d   : > { %p5665_p9 = pnand %p5663_p7, %p5543_p13  ;;  %p5672_p1 = por %p5671_p11, %p5670_p4 }
  0x5f   : > { %p5666_p3 = pneg %p5665_p9 }
  0x61   : > { %p5673_p2 = pnand %p5672_p1, %p5666_p3 }
  0x63   : > { %5676 = shalt.err (!%p5673_p2)
}
  0x64   : > { %5089 = dma.hbm_to_vmem [thread:$0]  (!%p6023_p10), %s6628_s1, 1024, %s380_s14, [#allocation10], %s6676_s3, %s6676_s3, %s6675_s0  }
  0x65   : > { %s495_s20 = scalar_lea.vmem [#allocation14], %s4396_s26  ;;  %s5890_s28 = smov [#allocation16]  }
  0x66   : > { %s502_s9 = sshll.u32 %s495_s20, 4  ;;  %s395_s21 = sshll.u32 %s5890_s28, 4  ;;  %s503_s9 = int_to_ptr.vmem [resolvable:$true] %s502_s9  ;;  %s396_s21 = int_to_ptr.vmem [resolvable:$true] %s395_s21 }
  0x67   : > { %s5690_s19 = scalar_lea.vmem %s503_s9, 1024  ;;  %s5891_s15 = smov [#allocation14]  }
  0x68   : > { %p5691_p5 = scmp.ne.s32.totalorder %s503_s9, %s5690_s19  ;;  %s5695_s2 = sshll.u32 %s5891_s15, 4  ;;  %s5696_s2 = int_to_ptr.vmem [resolvable:$false] %s5695_s2 }
  0x69   : > { %s5697_s18 = scalar_lea.vmem %s5696_s2, 2048  ;;  %p5698_p3 = scmp.lt.s32.totalorder %s503_s9, %s5696_s2 }
  0x6a   : > { %p5693_p7 = pnand %p5691_p5, %p6079_p12  ;;  %p5699_p4 = scmp.lt.s32.totalorder %s5697_s18, %s5690_s19 }
  0x6c   : > { %p5694_p9 = pneg %p5693_p7  ;;  %p5700_p11 = por %p5699_p4, %p5698_p3 }
  0x6e   : > { %p5701_p1 = pnand %p5700_p11, %p5694_p9 }
  0x70   : > { %5704 = shalt.err (!%p5701_p1)
}
  0x71   : > { %5108 = dma.hbm_to_vmem [thread:$0]  (!%p6062_p0), %s6118_s23, 1024, %s503_s9, %s6075_s17, %s6676_s3, %s6676_s3, %s6675_s0  }
  0x72   : > { %s5716_s26 = scalar_lea.vmem %s396_s21, 1024  ;;  %p5724_p6 = scmp.lt.s32.totalorder %s396_s21, %s396_s21 }
  0x73   : > { %p5717_p2 = scmp.ne.s32.totalorder %s396_s21, %s5716_s26  ;;  %p5725_p3 = scmp.lt.s32.totalorder %s5716_s26, %s5716_s26 }
  0x75   : > { %p5719_p5 = pnand %p5717_p2, %p5543_p13  ;;  %p5726_p9 = por %p5725_p3, %p5724_p6 }
  0x77   : > { %p5720_p7 = pneg %p5719_p5 }
  0x79   : > { %p5727_p4 = pnand %p5726_p9, %p5720_p7 }
  0x7b   : > { %5730 = shalt.err (!%p5727_p4)
}
  0x7c   : > { %5092 = dma.hbm_to_vmem [thread:$0]  (!%p6023_p10), %s6635_s8, 1024, %s396_s21, [#allocation10], %s6676_s3, %s6676_s3, %s6675_s0  }
  0x7d   : > { %s5892_s23 = smov [#allocation17]   ;;  %s5049_s30 = smul.u32 96, %s6052_s12 }
  0x7e   : > { %s411_s11 = sshll.u32 %s5892_s23, 4  ;;  %s5050_s20 = smul.u32 1536, %s5875_s25  ;;  %s412_s11 = int_to_ptr.vmem [resolvable:$true] %s411_s11 }
  0x7f   : > { %s5742_s9 = scalar_lea.vmem %s412_s11, 1024  ;;  %p5750_p2 = scmp.lt.s32.totalorder %s412_s11, %s412_s11 }
  0x80   : > { %p5743_p6 = scmp.ne.s32.totalorder %s412_s11, %s5742_s9  ;;  %p5751_p5 = scmp.lt.s32.totalorder %s5742_s9, %s5742_s9 }
  0x82   : > { %p5745_p11 = pnand %p5743_p6, %p5543_p13  ;;  %p5752_p7 = por %p5751_p5, %p5750_p2 }
  0x84   : > { %p5746_p1 = pneg %p5745_p11 }
  0x86   : > { %p5753_p3 = pnand %p5752_p7, %p5746_p1 }
  0x88   : > { %5756 = shalt.err (!%p5753_p3)
}
  0x89   : > { %5095 = dma.hbm_to_vmem [thread:$0]  (!%p6023_p10), %s6637_s10, 1024, %s412_s11, [#allocation18], %s6676_s3, %s6676_s3, %s6675_s0  }
  0x8a   : > { %s522_s15 = scalar_lea.hbm %s6634_s7, %s5050_s20  ;;  %s516_s2 = scalar_lea.vmem [#allocation15], %s5049_s30 }
  0x8b   : > { %s524_s18 = sshll.u32 %s516_s2, 4  ;;  %s5893_s16 = smov [#allocation15]   ;;  %s525_s18 = int_to_ptr.vmem [resolvable:$true] %s524_s18 }
  0x8c   : > { %s5770_s26 = scalar_lea.vmem %s525_s18, 1536  ;;  %s5775_s14 = sshll.u32 %s5893_s16, 4  ;;  %s5776_s14 = int_to_ptr.vmem [resolvable:$false] %s5775_s14 }
  0x8d   : > { %p5771_p13 = scmp.ne.s32.totalorder %s525_s18, %s5770_s26  ;;  %s5777_s22 = scalar_lea.vmem %s5776_s14, 3072 }
  0x8e   : > { %p5778_p6 = scmp.lt.s32.totalorder %s525_s18, %s5776_s14  ;;  %p5779_p11 = scmp.lt.s32.totalorder %s5777_s22, %s5770_s26 }
  0x8f   : > { %p5773_p9 = pnand %p5771_p13, %p6079_p12 }
  0x90   : > { %p5780_p1 = por %p5779_p11, %p5778_p6 }
  0x91   : > { %p5774_p4 = pneg %p5773_p9 }
  0x93   : > { %p5781_p10 = pnand %p5780_p1, %p5774_p4 }
  0x95   : > { %5784 = shalt.err (!%p5781_p10)
}
  0x96   : > { %5111 = dma.hbm_to_vmem [thread:$0]  (!%p6062_p0), %s522_s15, 1536, %s525_s18, %s6075_s17  }
  0x97   : > { %533 = sbr.rel (%p6015_p8) target bundleno = 4478 (0x117e), region = 68  ;;  %p6677_p2 = scmp.eq.s32.totalorder (!%p6015_p8), %s5995_s27, 0 }
  0x9c   : > { %5834 = dma.done.wait (%p6677_p2), [#allocation7], 256   ;;  %p6678_p12 = pmov %p6677_p2 }
  0x9d   : > { %p6679_p5 = pmov %p6677_p2 }
  0x9e   : > { %5836 = vsyncadd (%p6678_p12), [#allocation7], 4294967040 }
  0x9f   : > { %5838 = dma.done.wait (%p6679_p5), [#allocation10], 1024   ;;  %p6680_p7 = pmov %p6677_p2 }
  0xa0   : > { %s6681_s29 = sld [smem:[#allocation26_spill]]  ;;  %s543_s0 = sand.u32 1, %s5995_s27  }
  0xa1   : > { %5840 = vsyncadd (%p6680_p7), [#allocation10], 4294966272  ;;  %s6682_s24 = sld [smem:[#allocation30_spill]]  ;;  %s544_s13 = scalar_lea.sflag [#allocation7], %s543_s0 }
  0xa6   : > { %s545_s17 = sand.u32 1, %s6681_s29  }
  0xa7   : > { %s5051_s3 = smul.u32 768, %s545_s17  ;;  %p6683_p8 = scmp.ne.s32.totalorder %s6682_s24, 0 }
  0xa9   : > { %s6186_s23 = scalar_lea.vmem [#allocation11], %s5051_s3 }
  0xaa   : > { %5842 = dma.done.wait (%p6683_p8), %s544_s13, 19968  }
  0xab   : > { %5844 = vsyncadd (%p6683_p8), %s544_s13, 4294947328  ;;  %s4406_s11 = sshll.u32 %s545_s17, 8  ;;  %s4407_s30 = sshll.u32 %s545_s17, 6 }
  0xac   : > { %s5052_s20 = smul.u32 96, %s545_s17  ;;  %s6192_s9 = scalar_lea.vmem [#allocation12], %s4406_s11 }
  0xad   : > { %s6194_s28 = scalar_lea.vmem [#allocation13], %s4407_s30  ;;  %s6196_s12 = scalar_lea.vmem [#allocation14], %s4407_s30 }
  0xae   : > { %s6198_s21 = scalar_lea.vmem [#allocation15], %s5052_s20  ;;  %p6684_p0 = pmov %p6677_p2 }
  0xb0   : > { %5846 = dma.done.wait (%p6684_p0), [#allocation10], 1024   ;;  %p6685_p3 = pmov %p6684_p0 }
  0xb1   : > { %p6686_p13 = pmov %p6684_p0 }
  0xb2   : > { %5848 = vsyncadd (%p6685_p3), [#allocation10], 4294966272 }
  0xb3   : > { %5850 = dma.done.wait (%p6686_p13), [#allocation18], 1024   ;;  %p6687_p9 = pmov %p6684_p0 }
  0xb4   : > { %s6688_s19 = sld [smem:[#allocation28_spill]] }
  0xb5   : > { %5852 = vsyncadd (%p6687_p9), [#allocation18], 4294966272 }
  0xba   : > { %p4411_p4 = scmp.ne.s32.totalorder %s6688_s19, 0 }
  0xbb   : > { %s6689_s18 = sld [smem:[#allocation34_spill]] (!%p4411_p4) }
  0xbc   : > { %653 = sbr.rel (%p4411_p4) target bundleno = 428 (0x1ac), region = 108 }
  0xc1   : > { %v5186_v0 = vld [vmem:[#allocation9 + $0x38] sm:$0xff]   ;;  %v5187_v1 = vld [vmem:[#allocation9 + $0x30] sm:$0xff]   ;;  %v5188_v2 = vld [vmem:[#allocation9 + $0x28] sm:$0xff]   ;;  %v794_v10 = vlaneseq  ;;  %v5894_v14 = vmov -1e+30   ;;  %vm806_vm5 = vcmask 130048  }
  0xc2   : > { %4851 = vmatprep.subr.bf16.mxu0 %v5186_v0  ;;  %v5189_v3 = vld [vmem:[#allocation9 + $0x20] sm:$0xff]   ;;  %v5194_v4 = vld [vmem:[#allocation6] sm:$0xff]   ;;  %v5190_v5 = vld [vmem:[#allocation9 + $0x18] sm:$0xff]  }
  0xc3   : > { %4852 = vmatpush3.bf16.msra.mxu0 %v5186_v0  ;;  %4867 = vmatprep.mubr.bf16.mxu0 %v5194_v4  ;;  %v5191_v6 = vld [vmem:[#allocation9 + $0x10] sm:$0xff]   ;;  %v5192_v7 = vld [vmem:[#allocation9 + $0x8] sm:$0xff]   ;;  %v5193_v8 = vld [vmem:[#allocation9] sm:$0xff]   ;;  %v795_v11 = vshrl.u32 %v794_v10, 7  ;;  %v798_v13 = vand.u32 127, %v794_v10 }
  0xc4   : > { %4853 = vmatprep.subr.bf16.mxu0 %v5187_v1  ;;  %v5195_v9 = vld [vmem:[#allocation6 + $0x8] sm:$0xff]   ;;  %v4412_v17 = vld [vmem:[%s6689_s18] ss:$0 sm:$0xff] }
  0xc5   : > { %v796_v12 = vadd.s32 8, %v795_v11  ;;  %vm799_vm0 = vcmp.lt.s32.totalorder %v798_v13, 7  ;;  %vm800_vm1 = vcmp.eq.s32.totalorder %v798_v13, %v795_v11 }
  0xc6   : > { %vm802_vm3 = vmor %vm799_vm0, %vm800_vm1 }
  0xc7   : > { %4854 = vmatpush3.bf16.msra.mxu0 %v5187_v1  ;;  %vm801_vm2 = vcmp.eq.s32.totalorder %v798_v13, %v796_v12  ;;  %v804_v15 = vsel %vm802_vm3, 0.0, %v5894_v14 }
  0xc8   : > { %4855 = vmatprep.subr.bf16.mxu0 %v5188_v2  ;;  %vm803_vm4 = vmor %vm799_vm0, %vm801_vm2  ;;  %807 = vst.msk [vmem:[#allocation5] sm:$0xff] %vm806_vm5, %v804_v15 }
  0xc9   : > { %v805_v16 = vsel %vm803_vm4, 0.0, %v5894_v14 }
  0xca   : > { %808 = vst.msk [vmem:[#allocation5 + $0x8] sm:$0xff] %vm806_vm5, %v805_v16 }
  0xcb   : > { %4856 = vmatpush3.bf16.msra.mxu0 %v5188_v2 }
  0xcc   : > { %4857 = vmatprep.subr.bf16.mxu0 %v5189_v3 }
  0xcf   : > { %4858 = vmatpush3.bf16.msra.mxu0 %v5189_v3 }
  0xd0   : > { %4859 = vmatprep.subr.bf16.mxu0 %v5190_v5 }
  0xd3   : > { %4860 = vmatpush3.bf16.msra.mxu0 %v5190_v5 }
  0xd4   : > { %4861 = vmatprep.subr.bf16.mxu0 %v5191_v6 }
  0xd7   : > { %4862 = vmatpush3.bf16.msra.mxu0 %v5191_v6 }
  0xd8   : > { %4863 = vmatprep.subr.bf16.mxu0 %v5192_v7 }
  0xdb   : > { %4864 = vmatpush3.bf16.msra.mxu0 %v5192_v7 }
  0xdc   : > { %4865 = vmatprep.subr.bf16.mxu0 %v5193_v8 }
  0xdf   : > { %4866 = vmatpush3.bf16.msra.mxu0 %v5193_v8 }
  0xe2   : > { %4868 = vmatmul.mubr.bf16.vlgmr.msra.gmra.mxu0 %v5195_v9 }
 0x1a2   : > { %v4869_v18 = vpop.f32.mrf.mxu0 }
 0x1a3   : > { %v784_v19 = vadd.f32 %v4869_v18, %v4412_v17 }
 0x1a4   : > { %v775_v20 = vpop.f32.mrf.mxu0 }
 0x1a5   : > { %792 = vst [vmem:[#allocation2 + $0x18] sm:$0xff] %v784_v19  ;;  %v776_v21 = vadd.f32 %v4412_v17, %v775_v20 }
 0x1a6   : > { %v4870_v22 = vpop.f32.mrf.mxu0 }
 0x1a7   : > { %790 = vst [vmem:[#allocation2 + $0x10] sm:$0xff] %v776_v21  ;;  %v787_v23 = vadd.f32 %v4870_v22, %v4412_v17 }
 0x1a8   : > { %v778_v24 = vpop.f32.mrf.mxu0 }
 0x1a9   : > { %793 = vst [vmem:[#allocation2 + $0x8] sm:$0xff] %v787_v23  ;;  %v779_v25 = vadd.f32 %v4412_v17, %v778_v24 }
 0x1ab   : > { %791 = vst [vmem:[#allocation2] sm:$0xff] %v779_v25 }
 0x1ac PF: > { %v5196_v26 = vld [vmem:[%s6186_s23 + $0x2a4] ss:$48 sps:$4 sm:$0xff]   ;;  %v5198_v27 = vld [vmem:[%s6186_s23 + $0x2a0] ss:$48 sps:$4 sm:$0xff]   ;;  %v5895_v28 = vmov 0   ;;  %v823_v57 = vld [vmem:[#allocation2 + $0x18] sm:$0xff] }
 0x1ad   : > { %1483 = vmatprep.mubr.bf16.mxu0 %v5895_v28  ;;  %1536 = vmatprep.mubr.bf16.mxu1 %v5895_v28  ;;  %v5199_v29 = vld [vmem:[%s6186_s23 + $0x244] ss:$48 sps:$4 sm:$0xff]   ;;  %v5201_v30 = vld [vmem:[%s6186_s23 + $0x240] ss:$48 sps:$4 sm:$0xff]   ;;  %v5244_v42 = vld [vmem:[%s6186_s23 + $0x2ac] ss:$48 sps:$4 sm:$0xff]  }
 0x1ae   : > { %1451 = vmatprep.subr.bf16.mxu0 %v5196_v26  ;;  %v5202_v31 = vld [vmem:[%s6186_s23 + $0x1e4] ss:$48 sps:$4 sm:$0xff]   ;;  %v5204_v32 = vld [vmem:[%s6186_s23 + $0x1e0] ss:$48 sps:$4 sm:$0xff]   ;;  %v5246_v43 = vld [vmem:[%s6186_s23 + $0x2a8] ss:$48 sps:$4 sm:$0xff]   ;;  %1504 = vmatprep.subr.bf16.mxu1 %v5244_v42 }
 0x1af   : > { %1452 = vmatpush1.bf16.msra.mxu0 %v5198_v27  ;;  %v5205_v33 = vld [vmem:[%s6186_s23 + $0x184] ss:$48 sps:$4 sm:$0xff]   ;;  %v5207_v34 = vld [vmem:[%s6186_s23 + $0x180] ss:$48 sps:$4 sm:$0xff]   ;;  %v5247_v44 = vld [vmem:[%s6186_s23 + $0x24c] ss:$48 sps:$4 sm:$0xff]   ;;  %1505 = vmatpush1.bf16.msra.mxu1 %v5246_v43 }
 0x1b0   : > { %1453 = vmatprep.subr.bf16.mxu0 %v5199_v29  ;;  %v5208_v35 = vld [vmem:[%s6186_s23 + $0x124] ss:$48 sps:$4 sm:$0xff]   ;;  %v5210_v36 = vld [vmem:[%s6186_s23 + $0x120] ss:$48 sps:$4 sm:$0xff]   ;;  %v5249_v47 = vld [vmem:[%s6186_s23 + $0x248] ss:$48 sps:$4 sm:$0xff]   ;;  %1506 = vmatprep.subr.bf16.mxu1 %v5247_v44 }
 0x1b1   : > { %v5211_v37 = vld [vmem:[%s6186_s23 + $0xc4] ss:$48 sps:$4 sm:$0xff]   ;;  %v5213_v38 = vld [vmem:[%s6186_s23 + $0xc0] ss:$48 sps:$4 sm:$0xff]   ;;  %v5250_v49 = vld [vmem:[%s6186_s23 + $0x1ec] ss:$48 sps:$4 sm:$0xff]  }
 0x1b2   : > { %v5214_v39 = vld [vmem:[%s6186_s23 + $0x64] ss:$48 sps:$4 sm:$0xff]   ;;  %v5216_v40 = vld [vmem:[%s6186_s23 + $0x60] ss:$48 sps:$4 sm:$0xff]   ;;  %v5252_v52 = vld [vmem:[%s6186_s23 + $0x1e8] ss:$48 sps:$4 sm:$0xff]  }
 0x1b3   : > { %1454 = vmatpush1.bf16.msra.mxu0 %v5201_v30  ;;  %v5217_v41 = vld [vmem:[%s6186_s23 + $0x4] ss:$48 sps:$4 sm:$0xff]   ;;  %v5219_v45 = vld [vmem:[%s6186_s23] ss:$48 sps:$4 sm:$0xff]   ;;  %1507 = vmatpush1.bf16.msra.mxu1 %v5249_v47  ;;  %v5253_v55 = vld [vmem:[%s6186_s23 + $0x18c] ss:$48 sps:$4 sm:$0xff]  }
 0x1b4   : > { %1455 = vmatprep.subr.bf16.mxu0 %v5202_v31  ;;  %v821_v46 = vld [vmem:[#allocation2 + $0x10] sm:$0xff]  ;;  %v822_v48 = vld [vmem:[#allocation2] sm:$0xff]  ;;  %1508 = vmatprep.subr.bf16.mxu1 %v5250_v49  ;;  %v5255_v58 = vld [vmem:[%s6186_s23 + $0x188] ss:$48 sps:$4 sm:$0xff]   ;;  %vm5897_vm6 = vmmov 0   ;;  %vm2057_vm7 = vcmask 130048  }
 0x1b5   : > { %v5222_v50 = vld [vmem:[%s6186_s23 + $0x2b4] ss:$48 sps:$4 sm:$0xff]   ;;  %v6236_v51 = vpack.c.bf16 %v822_v48, %v821_v46  ;;  %v5220_v53 = vld [vmem:[%s6186_s23 + $0x2b0] ss:$48 sps:$4 sm:$0xff]   ;;  %v824_v59 = vld [vmem:[#allocation2 + $0x8] sm:$0xff]  ;;  %s6690_s26 = sld [smem:[#allocation28_spill]] }
 0x1b6   : > { %v5225_v54 = vld [vmem:[%s6186_s23 + $0x254] ss:$48 sps:$4 sm:$0xff]   ;;  %v5223_v56 = vld [vmem:[%s6186_s23 + $0x250] ss:$48 sps:$4 sm:$0xff]   ;;  %v5256_v60 = vld [vmem:[%s6186_s23 + $0x12c] ss:$48 sps:$4 sm:$0xff]   ;;  %v6251_v1 = vpack.c.bf16 %v824_v59, %v823_v57 }
 0x1b7   : > { %1456 = vmatpush1.bf16.msra.mxu0 %v5204_v32  ;;  %1509 = vmatpush1.bf16.msra.mxu1 %v5252_v52  ;;  %v5228_v61 = vld [vmem:[%s6186_s23 + $0x1f4] ss:$48 sps:$4 sm:$0xff]   ;;  %v5226_v62 = vld [vmem:[%s6186_s23 + $0x1f0] ss:$48 sps:$4 sm:$0xff]   ;;  %v5258_v63 = vld [vmem:[%s6186_s23 + $0x128] ss:$48 sps:$4 sm:$0xff]  }
 0x1b8   : > { %1457 = vmatprep.subr.bf16.mxu0 %v5205_v33  ;;  %1510 = vmatprep.subr.bf16.mxu1 %v5253_v55  ;;  %v5231_v0 = vld [vmem:[%s6186_s23 + $0x194] ss:$48 sps:$4 sm:$0xff]   ;;  %v5259_v2 = vld [vmem:[%s6186_s23 + $0xcc] ss:$48 sps:$4 sm:$0xff]   ;;  %v5261_v3 = vld [vmem:[%s6186_s23 + $0xc8] ss:$48 sps:$4 sm:$0xff]  }
 0x1b9   : > { %v5229_v4 = vld [vmem:[%s6186_s23 + $0x190] ss:$48 sps:$4 sm:$0xff]   ;;  %v5262_v5 = vld [vmem:[%s6186_s23 + $0x6c] ss:$48 sps:$4 sm:$0xff]   ;;  %v5234_v6 = vld [vmem:[%s6186_s23 + $0x134] ss:$48 sps:$4 sm:$0xff]  }
 0x1ba   : > { %v5264_v7 = vld [vmem:[%s6186_s23 + $0x68] ss:$48 sps:$4 sm:$0xff]   ;;  %v5232_v8 = vld [vmem:[%s6186_s23 + $0x130] ss:$48 sps:$4 sm:$0xff]   ;;  %v5265_v9 = vld [vmem:[%s6186_s23 + $0xc] ss:$48 sps:$4 sm:$0xff]  }
 0x1bb   : > { %1458 = vmatpush1.bf16.msra.mxu0 %v5207_v34  ;;  %1511 = vmatpush1.bf16.msra.mxu1 %v5255_v58  ;;  %v5237_v10 = vld [vmem:[%s6186_s23 + $0xd4] ss:$48 sps:$4 sm:$0xff]   ;;  %v5267_v11 = vld [vmem:[%s6186_s23 + $0x8] ss:$48 sps:$4 sm:$0xff]   ;;  %v5235_v12 = vld [vmem:[%s6186_s23 + $0xd0] ss:$48 sps:$4 sm:$0xff]  }
 0x1bc   : > { %1459 = vmatprep.subr.bf16.mxu0 %v5208_v35  ;;  %1512 = vmatprep.subr.bf16.mxu1 %v5256_v60  ;;  %v5270_v13 = vld [vmem:[%s6186_s23 + $0x2bc] ss:$48 sps:$4 sm:$0xff]   ;;  %v5240_v14 = vld [vmem:[%s6186_s23 + $0x74] ss:$48 sps:$4 sm:$0xff]   ;;  %v5268_v15 = vld [vmem:[%s6186_s23 + $0x2b8] ss:$48 sps:$4 sm:$0xff]  }
 0x1bd   : > { %v5238_v16 = vld [vmem:[%s6186_s23 + $0x70] ss:$48 sps:$4 sm:$0xff]   ;;  %v5273_v17 = vld [vmem:[%s6186_s23 + $0x25c] ss:$48 sps:$4 sm:$0xff]   ;;  %v5243_v18 = vld [vmem:[%s6186_s23 + $0x14] ss:$48 sps:$4 sm:$0xff]  }
 0x1be   : > { %v5271_v19 = vld [vmem:[%s6186_s23 + $0x258] ss:$48 sps:$4 sm:$0xff]   ;;  %v5241_v20 = vld [vmem:[%s6186_s23 + $0x10] ss:$48 sps:$4 sm:$0xff]   ;;  %v5276_v21 = vld [vmem:[%s6186_s23 + $0x1fc] ss:$48 sps:$4 sm:$0xff]  }
 0x1bf   : > { %1460 = vmatpush1.bf16.msra.mxu0 %v5210_v36  ;;  %1513 = vmatpush1.bf16.msra.mxu1 %v5258_v63  ;;  %v5274_v22 = vld [vmem:[%s6186_s23 + $0x1f8] ss:$48 sps:$4 sm:$0xff]   ;;  %v5279_v23 = vld [vmem:[%s6186_s23 + $0x19c] ss:$48 sps:$4 sm:$0xff]   ;;  %v5291_v31 = vld [vmem:[%s6186_s23 + $0x2c4] ss:$48 sps:$4 sm:$0xff]  }
 0x1c0   : > { %1461 = vmatprep.subr.bf16.mxu0 %v5211_v37  ;;  %1514 = vmatprep.subr.bf16.mxu1 %v5259_v2  ;;  %v5277_v24 = vld [vmem:[%s6186_s23 + $0x198] ss:$48 sps:$4 sm:$0xff]   ;;  %v5282_v25 = vld [vmem:[%s6186_s23 + $0x13c] ss:$48 sps:$4 sm:$0xff]   ;;  %v5289_v33 = vld [vmem:[%s6186_s23 + $0x2c0] ss:$48 sps:$4 sm:$0xff]  }
 0x1c1   : > { %v5280_v26 = vld [vmem:[%s6186_s23 + $0x138] ss:$48 sps:$4 sm:$0xff]   ;;  %v5285_v27 = vld [vmem:[%s6186_s23 + $0xdc] ss:$48 sps:$4 sm:$0xff]   ;;  %v5297_v35 = vld [vmem:[%s6186_s23 + $0x264] ss:$48 sps:$4 sm:$0xff]  }
 0x1c2   : > { %v5283_v29 = vld [vmem:[%s6186_s23 + $0xd8] ss:$48 sps:$4 sm:$0xff]   ;;  %v5288_v30 = vld [vmem:[%s6186_s23 + $0x7c] ss:$48 sps:$4 sm:$0xff]   ;;  %v5295_v37 = vld [vmem:[%s6186_s23 + $0x260] ss:$48 sps:$4 sm:$0xff]  }
 0x1c3   : > { %1462 = vmatpush1.bf16.msra.mxu0 %v5213_v38  ;;  %1515 = vmatpush1.bf16.msra.mxu1 %v5261_v3  ;;  %v5286_v32 = vld [vmem:[%s6186_s23 + $0x78] ss:$48 sps:$4 sm:$0xff]   ;;  %v5294_v34 = vld [vmem:[%s6186_s23 + $0x1c] ss:$48 sps:$4 sm:$0xff]   ;;  %v5300_v38 = vld [vmem:[%s6186_s23 + $0x204] ss:$48 sps:$4 sm:$0xff]  }
 0x1c4   : > { %1463 = vmatprep.subr.bf16.mxu0 %v5214_v39  ;;  %1516 = vmatprep.subr.bf16.mxu1 %v5262_v5  ;;  %v5292_v36 = vld [vmem:[%s6186_s23 + $0x18] ss:$48 sps:$4 sm:$0xff]   ;;  %v5303_v39 = vld [vmem:[%s6186_s23 + $0x2cc] ss:$48 sps:$4 sm:$0xff]   ;;  %v5306_v42 = vld [vmem:[%s6186_s23 + $0x1a4] ss:$48 sps:$4 sm:$0xff]   ;;  %v923_v5 = vlaneseq }
 0x1c5   : > { %v5309_v43 = vld [vmem:[%s6186_s23 + $0x26c] ss:$48 sps:$4 sm:$0xff]   ;;  %v5304_v44 = vld [vmem:[%s6186_s23 + $0x1a0] ss:$48 sps:$4 sm:$0xff]   ;;  %v5312_v47 = vld [vmem:[%s6186_s23 + $0x144] ss:$48 sps:$4 sm:$0xff]  }
 0x1c6   : > { %v5310_v46 = vld [vmem:[%s6186_s23 + $0x140] ss:$48 sps:$4 sm:$0xff]   ;;  %v5313_v48 = vld [vmem:[%s6186_s23 + $0x208] ss:$48 sps:$4 sm:$0xff]   ;;  %v5315_v49 = vld [vmem:[%s6186_s23 + $0x20c] ss:$48 sps:$4 sm:$0xff]  }
 0x1c7   : > { %1464 = vmatpush1.bf16.msra.mxu0 %v5216_v40  ;;  %1517 = vmatpush1.bf16.msra.mxu1 %v5264_v7  ;;  %v5298_v40 = vld [vmem:[%s6186_s23 + $0x200] ss:$48 sps:$4 sm:$0xff]   ;;  %v5321_v52 = vld [vmem:[%s6186_s23 + $0x1ac] ss:$48 sps:$4 sm:$0xff]   ;;  %v5324_v55 = vld [vmem:[%s6186_s23 + $0x84] ss:$48 sps:$4 sm:$0xff]  }
 0x1c8   : > { %1465 = vmatprep.subr.bf16.mxu0 %v5217_v41  ;;  %1518 = vmatprep.subr.bf16.mxu1 %v5265_v9  ;;  %v5301_v41 = vld [vmem:[%s6186_s23 + $0x2c8] ss:$48 sps:$4 sm:$0xff]   ;;  %v5322_v57 = vld [vmem:[%s6186_s23 + $0x80] ss:$48 sps:$4 sm:$0xff]   ;;  %v5330_v59 = vld [vmem:[%s6186_s23 + $0x24] ss:$48 sps:$4 sm:$0xff]  }
 0x1c9   : > { %v5325_v58 = vld [vmem:[%s6186_s23 + $0x148] ss:$48 sps:$4 sm:$0xff]   ;;  %v5333_v60 = vld [vmem:[%s6186_s23 + $0xec] ss:$48 sps:$4 sm:$0xff]   ;;  %p4647_p6 = scmp.ne.s32.totalorder %s6690_s26, 1 }
 0x1ca   : > { %v5336_v63 = vld [vmem:[%s6186_s23 + $0x8c] ss:$48 sps:$4 sm:$0xff]   ;;  %v5337_v3 = vld [vmem:[%s6186_s23 + $0x28] ss:$48 sps:$4 sm:$0xff]   ;;  %s6691_s22 = sld [smem:[#allocation36_spill]] (!%p4647_p6) }
 0x1cb   : > { %1466 = vmatpush1.bf16.msra.mxu0 %v5219_v45  ;;  %1519 = vmatpush1.bf16.msra.mxu1 %v5267_v11  ;;  %v5307_v45 = vld [vmem:[%s6186_s23 + $0x268] ss:$48 sps:$4 sm:$0xff]   ;;  %v5339_v2 = vld [vmem:[%s6186_s23 + $0x2c] ss:$48 sps:$4 sm:$0xff]   ;;  %s6692_s0 = sld [smem:[#allocation37_spill]] (!%p4647_p6) }
 0x1cc   : > { %1557 = vmatprep.subr.bf16.mxu0 %v5222_v50  ;;  %1610 = vmatprep.subr.bf16.mxu1 %v5270_v13  ;;  %v5318_v50 = vld [vmem:[%s6186_s23 + $0xe4] ss:$48 sps:$4 sm:$0xff]   ;;  %v810_v7 = vld [vmem:[%s6198_s21 + $0x8] sm:$0xff] }
 0x1ce   : > { %1484 = vmatmul.mubr.bf16.vlgmr.msra.gmra.mxu0 %v6236_v51  ;;  %1537 = vmatmul.mubr.bf16.vlgmr.msra.gmra.mxu1 %v6236_v51 }
 0x1cf   : > { %1558 = vmatpush1.bf16.msra.mxu0 %v5220_v53  ;;  %1493 = vmatprep.mubr.bf16.mxu0 %v5895_v28  ;;  %v5316_v53 = vld [vmem:[%s6186_s23 + $0xe0] ss:$48 sps:$4 sm:$0xff]  }
 0x1d0   : > { %1559 = vmatprep.subr.bf16.mxu0 %v5225_v54  ;;  %1611 = vmatpush1.bf16.msra.mxu1 %v5268_v15  ;;  %v5319_v54 = vld [vmem:[%s6186_s23 + $0x1a8] ss:$48 sps:$4 sm:$0xff]  }
 0x1d1   : > { %1546 = vmatprep.mubr.bf16.mxu1 %v5895_v28  ;;  %1612 = vmatprep.subr.bf16.mxu1 %v5273_v17 }
 0x1d3   : > { %1560 = vmatpush1.bf16.msra.mxu0 %v5223_v56  ;;  %v5327_v56 = vld [vmem:[%s6186_s23 + $0x14c] ss:$48 sps:$4 sm:$0xff]  }
 0x1d4   : > { %1561 = vmatprep.subr.bf16.mxu0 %v5228_v61  ;;  %1613 = vmatpush1.bf16.msra.mxu1 %v5271_v19  ;;  %v5328_v61 = vld [vmem:[%s6186_s23 + $0x20] ss:$48 sps:$4 sm:$0xff]  }
 0x1d5   : > { %1614 = vmatprep.subr.bf16.mxu1 %v5276_v21 }
 0x1d6   : > { %1494 = vmatmul.mubr.bf16.gmra.mxu0 %v6251_v1  ;;  %1547 = vmatmul.mubr.bf16.gmra.mxu1 %v6251_v1 }
 0x1d7   : > { %1562 = vmatpush1.bf16.msra.mxu0 %v5226_v62  ;;  %1589 = vmatprep.mubr.bf16.mxu0 %v5895_v28  ;;  %v5331_v62 = vld [vmem:[%s6186_s23 + $0xe8] ss:$48 sps:$4 sm:$0xff]  }
 0x1d8   : > { %1563 = vmatprep.subr.bf16.mxu0 %v5231_v0  ;;  %1615 = vmatpush1.bf16.msra.mxu1 %v5274_v22  ;;  %v5334_v0 = vld [vmem:[%s6186_s23 + $0x88] ss:$48 sps:$4 sm:$0xff]  }
 0x1d9   : > { %1642 = vmatprep.mubr.bf16.mxu1 %v5895_v28  ;;  %1616 = vmatprep.subr.bf16.mxu1 %v5279_v23 }
 0x1db   : > { %1564 = vmatpush1.bf16.msra.mxu0 %v5229_v4  ;;  %v5896_v4 = vmov 0.0  }
 0x1dc   : > { %1565 = vmatprep.subr.bf16.mxu0 %v5234_v6  ;;  %1617 = vmatpush1.bf16.msra.mxu1 %v5277_v24  ;;  %v6342_v6 = vshrl.u32 %v923_v5, 7 }
 0x1dd   : > { %1618 = vmatprep.subr.bf16.mxu1 %v5282_v25 }
 0x1df   : > { %1566 = vmatpush1.bf16.msra.mxu0 %v5232_v8 }
 0x1e0   : > { %1567 = vmatprep.subr.bf16.mxu0 %v5237_v10  ;;  %1619 = vmatpush1.bf16.msra.mxu1 %v5280_v26 }
 0x1e1   : > { %1620 = vmatprep.subr.bf16.mxu1 %v5285_v27 }
 0x1e3   : > { %1568 = vmatpush1.bf16.msra.mxu0 %v5235_v12 }
 0x1e4   : > { %1569 = vmatprep.subr.bf16.mxu0 %v5240_v14  ;;  %1621 = vmatpush1.bf16.msra.mxu1 %v5283_v29 }
 0x1e5   : > { %1622 = vmatprep.subr.bf16.mxu1 %v5288_v30  ;;  %v811_v30 = vld [vmem:[%s6198_s21 + $0x10] sm:$0xff] }
 0x1e7   : > { %1570 = vmatpush1.bf16.msra.mxu0 %v5238_v16 }
 0x1e8   : > { %1571 = vmatprep.subr.bf16.mxu0 %v5243_v18  ;;  %1623 = vmatpush1.bf16.msra.mxu1 %v5286_v32 }
 0x1e9   : > { %1624 = vmatprep.subr.bf16.mxu1 %v5294_v34 }
 0x1eb   : > { %1572 = vmatpush1.bf16.msra.mxu0 %v5241_v20 }
 0x1ec   : > { %1663 = vmatprep.subr.bf16.mxu0 %v5291_v31  ;;  %1625 = vmatpush1.bf16.msra.mxu1 %v5292_v36  ;;  %v812_v31 = vld [vmem:[%s6198_s21 + $0x18] sm:$0xff] }
 0x1ed   : > { %1716 = vmatprep.subr.bf16.mxu1 %v5303_v39  ;;  %v813_v39 = vld [vmem:[%s6198_s21 + $0x20] sm:$0xff] }
 0x1ee   : > { %1590 = vmatmul.mubr.bf16.vlgmr.msra.gmra.mxu0 %v6236_v51 }
 0x1ef   : > { %1599 = vmatprep.mubr.bf16.mxu0 %v5895_v28  ;;  %1664 = vmatpush1.bf16.msra.mxu0 %v5289_v33 }
 0x1f0   : > { %1665 = vmatprep.subr.bf16.mxu0 %v5297_v35  ;;  %1643 = vmatmul.mubr.bf16.vlgmr.msra.gmra.mxu1 %v6236_v51 }
 0x1f1   : > { %1717 = vmatpush1.bf16.msra.mxu1 %v5301_v41  ;;  %1652 = vmatprep.mubr.bf16.mxu1 %v5895_v28 }
 0x1f2   : > { %1718 = vmatprep.subr.bf16.mxu1 %v5309_v43 }
 0x1f3   : > { %1666 = vmatpush1.bf16.msra.mxu0 %v5295_v37 }
 0x1f4   : > { %1667 = vmatprep.subr.bf16.mxu0 %v5300_v38 }
 0x1f5   : > { %1719 = vmatpush1.bf16.msra.mxu1 %v5307_v45 }
 0x1f6   : > { %1600 = vmatmul.mubr.bf16.gmra.mxu0 %v6251_v1  ;;  %1720 = vmatprep.subr.bf16.mxu1 %v5315_v49 }
 0x1f7   : > { %1695 = vmatprep.mubr.bf16.mxu0 %v5895_v28  ;;  %1668 = vmatpush1.bf16.msra.mxu0 %v5298_v40  ;;  %v814_v40 = vld [vmem:[%s6198_s21 + $0x28] sm:$0xff] }
 0x1f8   : > { %1669 = vmatprep.subr.bf16.mxu0 %v5306_v42  ;;  %1653 = vmatmul.mubr.bf16.gmra.mxu1 %v6251_v1 }
 0x1f9   : > { %1721 = vmatpush1.bf16.msra.mxu1 %v5313_v48  ;;  %1748 = vmatprep.mubr.bf16.mxu1 %v5895_v28 }
 0x1fa   : > { %1722 = vmatprep.subr.bf16.mxu1 %v5321_v52 }
 0x1fb   : > { %1670 = vmatpush1.bf16.msra.mxu0 %v5304_v44 }
 0x1fc   : > { %1671 = vmatprep.subr.bf16.mxu0 %v5312_v47 }
 0x1fd   : > { %1723 = vmatpush1.bf16.msra.mxu1 %v5319_v54 }
 0x1fe   : > { %1724 = vmatprep.subr.bf16.mxu1 %v5327_v56 }
 0x1ff   : > { %1672 = vmatpush1.bf16.msra.mxu0 %v5310_v46 }
 0x200   : > { %1673 = vmatprep.subr.bf16.mxu0 %v5318_v50 }
 0x201   : > { %1725 = vmatpush1.bf16.msra.mxu1 %v5325_v58 }
 0x202   : > { %1726 = vmatprep.subr.bf16.mxu1 %v5333_v60 }
 0x203   : > { %1674 = vmatpush1.bf16.msra.mxu0 %v5316_v53 }
 0x204   : > { %1675 = vmatprep.subr.bf16.mxu0 %v5324_v55 }
 0x205   : > { %1727 = vmatpush1.bf16.msra.mxu1 %v5331_v62 }
 0x206   : > { %1728 = vmatprep.subr.bf16.mxu1 %v5336_v63 }
 0x207   : > { %1676 = vmatpush1.bf16.msra.mxu0 %v5322_v57 }
 0x208   : > { %1677 = vmatprep.subr.bf16.mxu0 %v5330_v59 }
 0x209   : > { %1729 = vmatpush1.bf16.msra.mxu1 %v5334_v0 }
 0x20a   : > { %1730 = vmatprep.subr.bf16.mxu1 %v5339_v2 }
 0x20b   : > { %1678 = vmatpush1.bf16.msra.mxu0 %v5328_v61 }
 0x20c   : > { %4871 = vmatprep.subr.bf16.mxu0 %v5896_v4 }
 0x20d   : > { %1731 = vmatpush1.bf16.msra.mxu1 %v5337_v3 }
 0x20e   : > { %1696 = vmatmul.mubr.bf16.vlgmr.msra.gmra.mxu0 %v6236_v51  ;;  %4877 = vmatprep.subr.bf16.mxu1 %v5896_v4 }
 0x20f   : > { %1705 = vmatprep.mubr.bf16.mxu0 %v5895_v28 }
 0x210   : > { %1749 = vmatmul.mubr.bf16.vlgmr.msra.gmra.mxu1 %v6236_v51  ;;  %v6345_v51 = vsub.s32 0, %v6342_v6 }
 0x211   : > { %1758 = vmatprep.mubr.bf16.mxu1 %v5895_v28  ;;  %v809_v28 = vld [vmem:[%s6198_s21] sm:$0xff] }
 0x212   : > { %v926_v8 = vrot.slane %v809_v28, %v6345_v51  ;;  %v930_v9 = vrot.slane %v810_v7, %v6345_v51  ;;  %v934_v32 = vrot.slane %v811_v30, %v6345_v51  ;;  %v938_v33 = vrot.slane %v812_v31, %v6345_v51 }
 0x213   : > { %v942_v45 = vrot.slane %v813_v39, %v6345_v51  ;;  %v946_v46 = vrot.slane %v814_v40, %v6345_v51 }
 0x216   : > { %1706 = vmatmul.mubr.bf16.gmra.mxu0 %v6251_v1 }
 0x217   : > { %4873 = vmatprep.mubr.msk.bf16.mxu0 %vm5897_vm6, %v5896_v4 }
 0x218   : > { %1759 = vmatmul.mubr.bf16.gmra.mxu1 %v6251_v1 }
 0x219   : > { %4879 = vmatprep.mubr.msk.bf16.mxu1 %vm5897_vm6, %v5896_v4 }
 0x28e   : > { %v1485_v10 = vpop.f32.mrf.mxu0  ;;  %v1538_v34 = vpop.f32.mrf.mxu1 }
 0x28f   : > { %v1486_v11 = vadd.f32 %v1485_v10, %v926_v8  ;;  %v1539_v35 = vadd.f32 %v1538_v34, %v934_v32 }
 0x290   : > { %v1487_v12 = vpop.f32.mrf.mxu0  ;;  %v1540_v36 = vpop.f32.mrf.mxu1 }
 0x291   : > { %v1488_v13 = vadd.f32 %v1487_v12, %v930_v9  ;;  %v1541_v37 = vadd.f32 %v1540_v36, %v938_v33 }
 0x292   : > { %v1489_v1 = vpop.f32.mrf.mxu0  ;;  %v1542_v38 = vpop.f32.mrf.mxu1 }
 0x293   : > { %v4673_v14 = vpack.c.bf16 %v1488_v13, %v1486_v11  ;;  %v1490_v16 = vadd.f32 %v1489_v1, %v926_v8  ;;  %v4674_v41 = vpack.c.bf16 %v1541_v37, %v1539_v35  ;;  %v1543_v42 = vadd.f32 %v1542_v38, %v934_v32 }
 0x294   : > { %v1491_v15 = vpop.f32.mrf.mxu0  ;;  %v1544_v43 = vpop.f32.mrf.mxu1 }
 0x295   : > { %1913 = vst [vmem:[#allocation3] sm:$0xff] %v4673_v14  ;;  %v1492_v17 = vadd.f32 %v1491_v15, %v930_v9  ;;  %1914 = vst [vmem:[#allocation3 + $0x8] sm:$0xff] %v4674_v41  ;;  %v1545_v44 = vadd.f32 %v1544_v43, %v938_v33  ;;  %v817_v43 = vld [vmem:[%s6198_s21 + $0x40] sm:$0xff] }
 0x296   : > { %v1495_v18 = vpop.f32.mrf.mxu0  ;;  %v1548_v47 = vpop.f32.mrf.mxu1 }
 0x297   : > { %v4679_v19 = vpack.c.bf16 %v1492_v17, %v1490_v16  ;;  %v1496_v20 = vadd.f32 %v1495_v18, %v926_v8  ;;  %v4680_v49 = vpack.c.bf16 %v1545_v44, %v1543_v42  ;;  %v1549_v50 = vadd.f32 %v1548_v47, %v934_v32 }
 0x298   : > { %v1497_v21 = vpop.f32.mrf.mxu0  ;;  %v1550_v52 = vpop.f32.mrf.mxu1  ;;  %v958_v47 = vrot.slane %v817_v43, %v6345_v51 }
 0x299   : > { %1919 = vst [vmem:[#allocation3 + $0x30] sm:$0xff] %v4679_v19  ;;  %v1498_v22 = vadd.f32 %v1497_v21, %v930_v9  ;;  %1920 = vst [vmem:[#allocation3 + $0x38] sm:$0xff] %v4680_v49  ;;  %v1551_v54 = vadd.f32 %v1550_v52, %v938_v33  ;;  %v816_v21 = vld [vmem:[%s6198_s21 + $0x38] sm:$0xff] }
 0x29a   : > { %v1499_v23 = vpop.f32.mrf.mxu0  ;;  %v1552_v57 = vpop.f32.mrf.mxu1 }
 0x29b   : > { %v4685_v24 = vpack.c.bf16 %v1498_v22, %v1496_v20  ;;  %v1500_v25 = vadd.f32 %v1499_v23, %v926_v8  ;;  %v4686_v59 = vpack.c.bf16 %v1551_v54, %v1549_v50  ;;  %v1553_v60 = vadd.f32 %v1552_v57, %v934_v32  ;;  %v815_v20 = vld [vmem:[%s6198_s21 + $0x30] sm:$0xff] }
 0x29c   : > { %v1501_v26 = vpop.f32.mrf.mxu0  ;;  %v1554_v62 = vpop.f32.mrf.mxu1  ;;  %v950_v22 = vrot.slane %v815_v20, %v6345_v51  ;;  %v954_v23 = vrot.slane %v816_v21, %v6345_v51  ;;  %v819_v54 = vld [vmem:[%s6198_s21 + $0x50] sm:$0xff] }
 0x29d   : > { %1925 = vst [vmem:[#allocation3 + $0x60] sm:$0xff] %v4685_v24  ;;  %v1502_v27 = vadd.f32 %v1501_v26, %v930_v9  ;;  %1926 = vst [vmem:[#allocation3 + $0x68] sm:$0xff] %v4686_v59  ;;  %v1555_v0 = vadd.f32 %v1554_v62, %v938_v33 }
 0x29f   : > { %v4691_v29 = vpack.c.bf16 %v1502_v27, %v1500_v25  ;;  %v4692_v28 = vpack.c.bf16 %v1555_v0, %v1553_v60  ;;  %v966_v60 = vrot.slane %v819_v54, %v6345_v51 }
 0x2a0   : > { %v5341_v17 = vld [vmem:[#allocation3] ss:$48 sps:$4 sm:$0xff]  }
 0x2a1   : > { %1931 = vst [vmem:[#allocation3 + $0x90] sm:$0xff] %v4691_v29  ;;  %1932 = vst [vmem:[#allocation3 + $0x98] sm:$0xff] %v4692_v28 }
 0x2a8   : > { %v5343_v19 = vld [vmem:[#allocation3 + $0x60] ss:$48 sps:$4 sm:$0xff]  }
 0x2ae   : > { %v1591_v48 = vpop.f32.mrf.mxu0 }
 0x2af   : > { %v1592_v55 = vadd.f32 %v1591_v48, %v942_v45 }
 0x2b0   : > { %v1593_v53 = vpop.f32.mrf.mxu0  ;;  %v1644_v24 = vpop.f32.mrf.mxu1 }
 0x2b1   : > { %v1594_v56 = vadd.f32 %v1593_v53, %v946_v46  ;;  %v1645_v25 = vadd.f32 %v1644_v24, %v950_v22 }
 0x2b2   : > { %v1595_v58 = vpop.f32.mrf.mxu0  ;;  %v1646_v26 = vpop.f32.mrf.mxu1 }
 0x2b3   : > { %v4675_v61 = vpack.c.bf16 %v1594_v56, %v1592_v55  ;;  %v1596_v2 = vadd.f32 %v1595_v58, %v942_v45  ;;  %v1647_v27 = vadd.f32 %v1646_v26, %v954_v23  ;;  %v820_v58 = vld [vmem:[%s6198_s21 + $0x58] sm:$0xff] }
 0x2b4   : > { %v1597_v63 = vpop.f32.mrf.mxu0  ;;  %v1648_v29 = vpop.f32.mrf.mxu1 }
 0x2b5   : > { %1915 = vst [vmem:[#allocation3 + $0x10] sm:$0xff] %v4675_v61  ;;  %v1598_v3 = vadd.f32 %v1597_v63, %v946_v46  ;;  %v4676_v30 = vpack.c.bf16 %v1647_v27, %v1645_v25  ;;  %v1649_v31 = vadd.f32 %v1648_v29, %v950_v22  ;;  %v970_v63 = vrot.slane %v820_v58, %v6345_v51 }
 0x2b6   : > { %v1601_v5 = vpop.f32.mrf.mxu0  ;;  %v1650_v32 = vpop.f32.mrf.mxu1 }
 0x2b7   : > { %v4681_v7 = vpack.c.bf16 %v1598_v3, %v1596_v2  ;;  %v1602_v9 = vadd.f32 %v1601_v5, %v942_v45  ;;  %1916 = vst [vmem:[#allocation3 + $0x18] sm:$0xff] %v4676_v30  ;;  %v1651_v33 = vadd.f32 %v1650_v32, %v954_v23 }
 0x2b8   : > { %v1603_v8 = vpop.f32.mrf.mxu0  ;;  %v1654_v35 = vpop.f32.mrf.mxu1 }
 0x2b9   : > { %1921 = vst [vmem:[#allocation3 + $0x40] sm:$0xff] %v4681_v7  ;;  %v1604_v10 = vadd.f32 %v1603_v8, %v946_v46  ;;  %v4682_v34 = vpack.c.bf16 %v1651_v33, %v1649_v31  ;;  %v1655_v36 = vadd.f32 %v1654_v35, %v950_v22  ;;  %v6379_v33 = vld [vmem:[#allocation5] sm:$0xff] }
 0x2ba   : > { %v1605_v11 = vpop.f32.mrf.mxu0  ;;  %v1656_v37 = vpop.f32.mrf.mxu1 }
 0x2bb   : > { %v4687_v12 = vpack.c.bf16 %v1604_v10, %v1602_v9  ;;  %v1606_v1 = vadd.f32 %v1605_v11, %v942_v45  ;;  %1922 = vst [vmem:[#allocation3 + $0x48] sm:$0xff] %v4682_v34  ;;  %v1657_v38 = vadd.f32 %v1656_v37, %v954_v23  ;;  %v818_v45 = vld [vmem:[%s6198_s21 + $0x48] sm:$0xff] }
 0x2bc   : > { %v1607_v13 = vpop.f32.mrf.mxu0  ;;  %v1658_v39 = vpop.f32.mrf.mxu1  ;;  %v962_v48 = vrot.slane %v818_v45, %v6345_v51  ;;  %v6382_v37 = vld [vmem:[#allocation5 + $0x8] sm:$0xff] }
 0x2bd   : > { %1927 = vst [vmem:[#allocation3 + $0x70] sm:$0xff] %v4687_v12  ;;  %v1608_v14 = vadd.f32 %v1607_v13, %v946_v46  ;;  %v4688_v40 = vpack.c.bf16 %v1657_v38, %v1655_v36  ;;  %v1659_v41 = vadd.f32 %v1658_v39, %v950_v22 }
 0x2be   : > { %v1660_v42 = vpop.f32.mrf.mxu1 }
 0x2bf   : > { %v4693_v15 = vpack.c.bf16 %v1608_v14, %v1606_v1  ;;  %1928 = vst [vmem:[#allocation3 + $0x78] sm:$0xff] %v4688_v40  ;;  %v1661_v44 = vadd.f32 %v1660_v42, %v954_v23 }
 0x2c0   : > { %v5340_v16 = vld [vmem:[#allocation3 + $0x10] ss:$48 sps:$4 sm:$0xff]  }
 0x2c1   : > { %1933 = vst [vmem:[#allocation3 + $0xa0] sm:$0xff] %v4693_v15  ;;  %4872 = vmatpush3.bf16.xpose.msra.mxu0 %v5340_v16  ;;  %v4694_v46 = vpack.c.bf16 %v1661_v44, %v1659_v41 }
 0x2c2   : > { %4883 = vmatprep.subr.bf16.mxu0 %v5896_v4 }
 0x2c3   : > { %1934 = vst [vmem:[#allocation3 + $0xa8] sm:$0xff] %v4694_v46 }
 0x2c8   : > { %v5342_v18 = vld [vmem:[#allocation3 + $0x70] ss:$48 sps:$4 sm:$0xff]   ;;  %4874 = vmatmul.mubr.bf16.vlgmr.msra.gmra.mxu0 %v5341_v17 }
 0x2c9   : > { %4878 = vmatpush3.bf16.xpose.msra.mxu1 %v5342_v18  ;;  %4885 = vmatprep.mubr.msk.bf16.mxu0 %vm5897_vm6, %v5896_v4 }
 0x2ca   : > { %4889 = vmatprep.subr.bf16.mxu1 %v5896_v4 }
 0x2ce   : > { %v1697_v49 = vpop.f32.mrf.mxu0 }
 0x2cf   : > { %v1698_v50 = vadd.f32 %v1697_v49, %v958_v47 }
 0x2d0   : > { %4880 = vmatmul.mubr.bf16.vlgmr.msra.gmra.mxu1 %v5343_v19  ;;  %v1699_v52 = vpop.f32.mrf.mxu0  ;;  %v1750_v3 = vpop.f32.mrf.mxu1 }
 0x2d1   : > { %4891 = vmatprep.mubr.msk.bf16.mxu1 %vm5897_vm6, %v5896_v4  ;;  %v1700_v53 = vadd.f32 %v1699_v52, %v962_v48  ;;  %v1751_v5 = vadd.f32 %v1750_v3, %v966_v60 }
 0x2d2   : > { %v1701_v55 = vpop.f32.mrf.mxu0  ;;  %v1752_v8 = vpop.f32.mrf.mxu1 }
 0x2d3   : > { %v4677_v56 = vpack.c.bf16 %v1700_v53, %v1698_v50  ;;  %v1702_v57 = vadd.f32 %v1701_v55, %v958_v47  ;;  %v1753_v9 = vadd.f32 %v1752_v8, %v970_v63 }
 0x2d4   : > { %v1703_v59 = vpop.f32.mrf.mxu0  ;;  %v1754_v13 = vpop.f32.mrf.mxu1 }
 0x2d5   : > { %1917 = vst [vmem:[#allocation3 + $0x20] sm:$0xff] %v4677_v56  ;;  %v1704_v61 = vadd.f32 %v1703_v59, %v962_v48  ;;  %v4678_v1 = vpack.c.bf16 %v1753_v9, %v1751_v5  ;;  %v1755_v14 = vadd.f32 %v1754_v13, %v966_v60 }
 0x2d6   : > { %v1707_v62 = vpop.f32.mrf.mxu0  ;;  %v1756_v17 = vpop.f32.mrf.mxu1 }
 0x2d7   : > { %v4683_v0 = vpack.c.bf16 %v1704_v61, %v1702_v57  ;;  %v1708_v2 = vadd.f32 %v1707_v62, %v958_v47  ;;  %1918 = vst [vmem:[#allocation3 + $0x28] sm:$0xff] %v4678_v1  ;;  %v1757_v51 = vadd.f32 %v1756_v17, %v970_v63 }
 0x2d8   : > { %v1709_v28 = vpop.f32.mrf.mxu0  ;;  %v1760_v19 = vpop.f32.mrf.mxu1 }
 0x2d9   : > { %1923 = vst [vmem:[#allocation3 + $0x50] sm:$0xff] %v4683_v0  ;;  %v1710_v7 = vadd.f32 %v1709_v28, %v962_v48  ;;  %v4684_v20 = vpack.c.bf16 %v1757_v51, %v1755_v14  ;;  %v1761_v23 = vadd.f32 %v1760_v19, %v966_v60  ;;  %v5346_v51 = vld [vmem:[#allocation3 + $0x14] ss:$48 sps:$4 sm:$0xff]  }
 0x2da   : > { %v1711_v10 = vpop.f32.mrf.mxu0  ;;  %v1762_v22 = vpop.f32.mrf.mxu1 }
 0x2db   : > { %v4689_v11 = vpack.c.bf16 %v1710_v7, %v1708_v2  ;;  %v1712_v12 = vadd.f32 %v1711_v10, %v958_v47  ;;  %1924 = vst [vmem:[#allocation3 + $0x58] sm:$0xff] %v4684_v20  ;;  %v1763_v25 = vadd.f32 %v1762_v22, %v970_v63 }
 0x2dc   : > { %v1713_v15 = vpop.f32.mrf.mxu0  ;;  %v1764_v24 = vpop.f32.mrf.mxu1 }
 0x2dd   : > { %1929 = vst [vmem:[#allocation3 + $0x80] sm:$0xff] %v4689_v11  ;;  %v1714_v16 = vadd.f32 %v1713_v15, %v962_v48  ;;  %v1765_v26 = vadd.f32 %v1764_v24, %v966_v60  ;;  %v4690_v30 = vpack.c.bf16 %v1763_v25, %v1761_v23  ;;  %v5347_v23 = vld [vmem:[#allocation3 + $0x4] ss:$48 sps:$4 sm:$0xff]  }
 0x2de   : > { %v1766_v27 = vpop.f32.mrf.mxu1  ;;  %v5348_v24 = vld [vmem:[#allocation3 + $0x74] ss:$48 sps:$4 sm:$0xff]  }
 0x2df   : > { %v4695_v18 = vpack.c.bf16 %v1714_v16, %v1712_v12  ;;  %v1767_v29 = vadd.f32 %v1766_v27, %v970_v63  ;;  %1930 = vst [vmem:[#allocation3 + $0x88] sm:$0xff] %v4690_v30 }
 0x2e0   : > { %v5344_v21 = vld [vmem:[#allocation3 + $0x20] ss:$48 sps:$4 sm:$0xff]   ;;  %v5349_v25 = vld [vmem:[#allocation3 + $0x24] ss:$48 sps:$4 sm:$0xff]  }
 0x2e1   : > { %1935 = vst [vmem:[#allocation3 + $0xb0] sm:$0xff] %v4695_v18  ;;  %4884 = vmatpush3.bf16.msra.mxu0 %v5344_v21  ;;  %v4696_v31 = vpack.c.bf16 %v1767_v29, %v1765_v26  ;;  %v5350_v26 = vld [vmem:[#allocation3 + $0x64] ss:$48 sps:$4 sm:$0xff]  }
 0x2e2   : > { %4895 = vmatprep.subr.bf16.mxu0 %v5896_v4 }
 0x2e3   : > { %1936 = vst [vmem:[#allocation3 + $0xb8] sm:$0xff] %v4696_v31 }
 0x2e8   : > { %v5345_v32 = vld [vmem:[#allocation3 + $0x80] ss:$48 sps:$4 sm:$0xff]   ;;  %v5351_v27 = vld [vmem:[#allocation3 + $0x84] ss:$48 sps:$4 sm:$0xff]  }
 0x2e9   : > { %4890 = vmatpush3.bf16.msra.mxu1 %v5345_v32 }
 0x2ea   : > { %4901 = vmatprep.subr.bf16.mxu1 %v5896_v4 }
 0x388   : > { %v1997_v34 = vpop.f32.mrf.mxu0 }
 0x389   : > { %v1998_v35 = vadd.f32 %v1997_v34, %v6379_v33 }
 0x38a   : > { %v4875_v36 = vpop.f32.mrf.mxu0 }
 0x38b   : > { %v2058_v38 = vsel %vm2057_vm7, %v1998_v35, -inf }
 0x38c   : > { %2059 = vmax.xlane.f32.xlu0 %v2058_v38  ;;  %v2000_v39 = vpop.f32.mrf.mxu0 }
 0x38d   : > { %v2001_v40 = vadd.f32 %v2000_v39, %v6382_v37 }
 0x38e   : > { %v4876_v41 = vpop.f32.mrf.mxu0 }
 0x38f   : > { %v2061_v42 = vsel %vm2057_vm7, %v2001_v40, -inf }
 0x390   : > { %v2050_v43 = vpop.f32.mrf.mxu1  ;;  %2062 = vmax.xlane.f32.xlu0 %v2061_v42 }
 0x391   : > { %v2051_v44 = vadd.f32 %v2050_v43, %v6379_v33 }
 0x392   : > { %v4881_v45 = vpop.f32.mrf.mxu1 }
 0x393   : > { %v2064_v46 = vsel %vm2057_vm7, %v2051_v44, -inf }
 0x394   : > { %2065 = vmax.xlane.f32.xlu1 %v2064_v46  ;;  %v2053_v47 = vpop.f32.mrf.mxu1 }
 0x395   : > { %v2054_v48 = vadd.f32 %v2053_v47, %v6382_v37 }
 0x396   : > { %v4882_v49 = vpop.f32.mrf.mxu1 }
 0x397   : > { %v2067_v50 = vsel %vm2057_vm7, %v2054_v48, -inf }
 0x398   : > { %2068 = vmax.xlane.f32.xlu1 %v2067_v50 }
 0x415   : > { %v2060_v52 = vpop.xlane.xlu0 %2059 }
 0x416   : > { %v2070_v53 = vsub.f32 %v1998_v35, %v2060_v52 }
 0x418   : > { %v2074_v54 = vmul.f32 1.442695, %v2070_v53 }
 0x419   : > { %v2063_v55 = vpop.xlane.xlu0 %2062 }
 0x41a   : > { %5424 = vpow2.f32 %v2074_v54  ;;  %v2071_v56 = vsub.f32 %v2001_v40, %v2063_v55 }
 0x41c   : > { %v2076_v57 = vmul.f32 1.442695, %v2071_v56 }
 0x41d   : > { %v2066_v58 = vpop.xlane.xlu1 %2065 }
 0x41e   : > { %5426 = vpow2.f32 %v2076_v57  ;;  %v2072_v59 = vsub.f32 %v2051_v44, %v2066_v58 }
 0x420   : > { %v2078_v60 = vmul.f32 1.442695, %v2072_v59 }
 0x421   : > { %v2069_v61 = vpop.xlane.xlu1 %2068 }
 0x422   : > { %5428 = vpow2.f32 %v2078_v60  ;;  %v2073_v62 = vsub.f32 %v2054_v48, %v2069_v61 }
 0x424   : > { %v2080_v63 = vmul.f32 1.442695, %v2073_v62 }
 0x426   : > { %5430 = vpow2.f32 %v2080_v63 }
 0x427   : > { %v5425_v0 = vpop.eup %5424 }
 0x428   : > { %v2082_v2 = vsel %vm2057_vm7, %v5425_v0, 0.0 }
 0x429   : > { %2083 = vadd.xlane.f32.xlu0 %v2082_v2 }
 0x42b   : > { %v5427_v3 = vpop.eup %5426 }
 0x42c   : > { %v2085_v5 = vsel %vm2057_vm7, %v5427_v3, 0.0 }
 0x42d   : > { %2086 = vadd.xlane.f32.xlu1 %v2085_v5 }
 0x42f   : > { %v5429_v28 = vpop.eup %5428 }
 0x430   : > { %v2088_v7 = vsel %vm2057_vm7, %v5429_v28, 0.0 }
 0x431   : > { %2089 = vadd.xlane.f32.xlu0 %v2088_v7 }
 0x433   : > { %v5431_v8 = vpop.eup %5430 }
 0x434   : > { %v2091_v9 = vsel %vm2057_vm7, %v5431_v8, 0.0 }
 0x435   : > { %2092 = vadd.xlane.f32.xlu1 %v2091_v9 }
 0x4b2   : > { %v2084_v10 = vpop.xlane.xlu0 %2083 }
 0x4b3   : > { %5432 = vrcp.f32 %v2084_v10 }
 0x4b6   : > { %v2087_v11 = vpop.xlane.xlu1 %2086 }
 0x4b7   : > { %5434 = vrcp.f32 %v2087_v11 }
 0x4ba   : > { %v2090_v12 = vpop.xlane.xlu0 %2089 }
 0x4bb   : > { %5436 = vrcp.f32 %v2090_v12 }
 0x4be   : > { %v2093_v13 = vpop.xlane.xlu1 %2092 }
 0x4bf   : > { %5438 = vrcp.f32 %v2093_v13 }
 0x4c0   : > { %v5433_v1 = vpop.eup %5432 }
 0x4c1   : > { %v2098_v15 = vmul.f32 %v5433_v1, %v5425_v0 }
 0x4c4   : > { %v5435_v14 = vpop.eup %5434 }
 0x4c5   : > { %v2099_v16 = vmul.f32 %v5435_v14, %v5427_v3 }
 0x4c7   : > { %v2102_v17 = vpack.c.bf16 %v2099_v16, %v2098_v15 }
 0x4c8   : > { %v5437_v18 = vpop.eup %5436 }
 0x4c9   : > { %4886 = vmatmul.mubr.msk.bf16.vlgmr.msra.gmra.mxu0 %vm2057_vm7, %v2102_v17  ;;  %v2100_v20 = vmul.f32 %v5437_v18, %v5429_v28 }
 0x4ca   : > { %4896 = vmatpush3.bf16.xpose.msra.mxu0 %v5346_v51  ;;  %4897 = vmatprep.mubr.msk.bf16.mxu0 %vm5897_vm6, %v5896_v4 }
 0x4cb   : > { %4907 = vmatprep.subr.bf16.mxu0 %v5896_v4 }
 0x4cc   : > { %v5439_v19 = vpop.eup %5438 }
 0x4cd   : > { %v2101_v21 = vmul.f32 %v5439_v19, %v5431_v8 }
 0x4cf   : > { %v2103_v22 = vpack.c.bf16 %v2101_v21, %v2100_v20 }
 0x4d1   : > { %4892 = vmatmul.mubr.msk.bf16.vlgmr.msra.gmra.mxu1 %vm2057_vm7, %v2103_v22  ;;  %4898 = vmatmul.mubr.bf16.vlgmr.msra.gmra.mxu0 %v5347_v23 }
 0x4d2   : > { %4902 = vmatpush3.bf16.xpose.msra.mxu1 %v5348_v24  ;;  %4908 = vmatpush3.bf16.msra.mxu0 %v5349_v25  ;;  %v5352_v25 = vld [vmem:[#allocation3 + $0x18] ss:$48 sps:$4 sm:$0xff]  }
 0x4d3   : > { %4903 = vmatprep.mubr.msk.bf16.mxu1 %vm5897_vm6, %v5896_v4  ;;  %4913 = vmatprep.subr.bf16.mxu1 %v5896_v4 }
 0x4d4   : > { %4909 = vmatprep.mubr.msk.bf16.mxu0 %vm5897_vm6, %v5896_v4  ;;  %4919 = vmatprep.subr.bf16.mxu0 %v5896_v4 }
 0x4d9   : > { %4904 = vmatmul.mubr.bf16.vlgmr.msra.gmra.mxu1 %v5350_v26 }
 0x4da   : > { %4914 = vmatpush3.bf16.msra.mxu1 %v5351_v27  ;;  %4915 = vmatprep.mubr.msk.bf16.mxu1 %vm5897_vm6, %v5896_v4 }
 0x4db   : > { %4925 = vmatprep.subr.bf16.mxu1 %v5896_v4 }
 0x589   : > { %v2147_v29 = vpop.f32.mrf.mxu0 }
 0x58a   : > { %v4697_v30 = vpack.c.bf16 %v2147_v29, %v2147_v29 }
 0x58b   : > { %v4887_v31 = vpop.f32.mrf.mxu0 }
 0x58c   : > { %2220 = vst [vmem:[#allocation4] sm:$0xf] %v4697_v30 }
 0x58d   : > { %v2150_v32 = vpop.f32.mrf.mxu0 }
 0x58e   : > { %v4698_v34 = vpack.c.bf16 %v2150_v32, %v2150_v32  ;;  %v5353_v32 = vld [vmem:[#allocation3 + $0x8] ss:$48 sps:$4 sm:$0xff]  }
 0x58f   : > { %v4888_v35 = vpop.f32.mrf.mxu0 }
 0x590   : > { %2221 = vst [vmem:[#allocation4 + $0x10] sm:$0xf] %v4698_v34  ;;  %v5354_v34 = vld [vmem:[#allocation3 + $0x78] ss:$48 sps:$4 sm:$0xff]  }
 0x591   : > { %v2197_v36 = vpop.f32.mrf.mxu1  ;;  %v2282_v38 = vpop.f32.mrf.mxu0  ;;  %v5355_v35 = vld [vmem:[#allocation3 + $0x28] ss:$48 sps:$4 sm:$0xff]  }
 0x592   : > { %v4699_v39 = vpack.c.bf16 %v2197_v36, %v2197_v36  ;;  %v2283_v40 = vadd.f32 %v2282_v38, %v6379_v33  ;;  %v5356_v36 = vld [vmem:[#allocation3 + $0x68] ss:$48 sps:$4 sm:$0xff]  }
 0x593   : > { %v4893_v41 = vpop.f32.mrf.mxu1  ;;  %v4899_v42 = vpop.f32.mrf.mxu0  ;;  %v5357_v38 = vld [vmem:[#allocation3 + $0x88] ss:$48 sps:$4 sm:$0xff]  }
 0x594   : > { %2222 = vst [vmem:[#allocation4 + $0x20] sm:$0xf] %v4699_v39  ;;  %v2342_v43 = vsel %vm2057_vm7, %v2283_v40, -inf }
 0x595   : > { %v2200_v44 = vpop.f32.mrf.mxu1  ;;  %2343 = vmax.xlane.f32.xlu0 %v2342_v43  ;;  %v2285_v45 = vpop.f32.mrf.mxu0 }
 0x596   : > { %v4700_v46 = vpack.c.bf16 %v2200_v44, %v2200_v44  ;;  %v2286_v47 = vadd.f32 %v2285_v45, %v6382_v37 }
 0x597   : > { %v4894_v48 = vpop.f32.mrf.mxu1  ;;  %v4900_v49 = vpop.f32.mrf.mxu0 }
 0x598   : > { %2223 = vst [vmem:[#allocation4 + $0x30] sm:$0xf] %v4700_v46  ;;  %v2345_v50 = vsel %vm2057_vm7, %v2286_v47, -inf }
 0x599   : > { %v2335_v52 = vpop.f32.mrf.mxu1  ;;  %2346 = vmax.xlane.f32.xlu1 %v2345_v50 }
 0x59a   : > { %v2336_v53 = vadd.f32 %v2335_v52, %v6379_v33 }
 0x59b   : > { %v4905_v54 = vpop.f32.mrf.mxu1 }
 0x59c   : > { %v2348_v55 = vsel %vm2057_vm7, %v2336_v53, -inf }
 0x59d   : > { %v2338_v56 = vpop.f32.mrf.mxu1  ;;  %2349 = vmax.xlane.f32.xlu0 %v2348_v55 }
 0x59e   : > { %v2339_v57 = vadd.f32 %v2338_v56, %v6382_v37 }
 0x59f   : > { %v4906_v58 = vpop.f32.mrf.mxu1 }
 0x5a0   : > { %v2351_v59 = vsel %vm2057_vm7, %v2339_v57, -inf }
 0x5a1   : > { %2352 = vmax.xlane.f32.xlu1 %v2351_v59 }
 0x61e   : > { %v2344_v60 = vpop.xlane.xlu0 %2343 }
 0x61f   : > { %v2354_v61 = vsub.f32 %v2283_v40, %v2344_v60 }
 0x621   : > { %v2358_v62 = vmul.f32 1.442695, %v2354_v61 }
 0x622   : > { %v2347_v63 = vpop.xlane.xlu1 %2346 }
 0x623   : > { %5440 = vpow2.f32 %v2358_v62  ;;  %v2355_v0 = vsub.f32 %v2286_v47, %v2347_v63 }
 0x625   : > { %v2360_v2 = vmul.f32 1.442695, %v2355_v0 }
 0x626   : > { %v2350_v3 = vpop.xlane.xlu0 %2349 }
 0x627   : > { %5442 = vpow2.f32 %v2360_v2  ;;  %v2356_v5 = vsub.f32 %v2336_v53, %v2350_v3 }
 0x629   : > { %v2362_v28 = vmul.f32 1.442695, %v2356_v5 }
 0x62a   : > { %v2353_v7 = vpop.xlane.xlu1 %2352 }
 0x62b   : > { %5444 = vpow2.f32 %v2362_v28  ;;  %v2357_v8 = vsub.f32 %v2339_v57, %v2353_v7 }
 0x62d   : > { %v2364_v9 = vmul.f32 1.442695, %v2357_v8 }
 0x62f   : > { %5446 = vpow2.f32 %v2364_v9 }
 0x630   : > { %v5441_v10 = vpop.eup %5440 }
 0x631   : > { %v2366_v11 = vsel %vm2057_vm7, %v5441_v10, 0.0 }
 0x632   : > { %2367 = vadd.xlane.f32.xlu0 %v2366_v11 }
 0x634   : > { %v5443_v12 = vpop.eup %5442 }
 0x635   : > { %v2369_v13 = vsel %vm2057_vm7, %v5443_v12, 0.0 }
 0x636   : > { %2370 = vadd.xlane.f32.xlu1 %v2369_v13 }
 0x638   : > { %v5445_v1 = vpop.eup %5444 }
 0x639   : > { %v2372_v14 = vsel %vm2057_vm7, %v5445_v1, 0.0 }
 0x63a   : > { %2373 = vadd.xlane.f32.xlu0 %v2372_v14 }
 0x63c   : > { %v5447_v15 = vpop.eup %5446 }
 0x63d   : > { %v2375_v16 = vsel %vm2057_vm7, %v5447_v15, 0.0 }
 0x63e   : > { %2376 = vadd.xlane.f32.xlu1 %v2375_v16 }
 0x6bb   : > { %v2368_v17 = vpop.xlane.xlu0 %2367 }
 0x6bc   : > { %5448 = vrcp.f32 %v2368_v17 }
 0x6bf   : > { %v2371_v51 = vpop.xlane.xlu1 %2370 }
 0x6c0   : > { %5450 = vrcp.f32 %v2371_v51 }
 0x6c3   : > { %v2374_v18 = vpop.xlane.xlu0 %2373 }
 0x6c4   : > { %5452 = vrcp.f32 %v2374_v18 }
 0x6c7   : > { %v2377_v19 = vpop.xlane.xlu1 %2376 }
 0x6c8   : > { %5454 = vrcp.f32 %v2377_v19 }
 0x6c9   : > { %v5449_v20 = vpop.eup %5448 }
 0x6ca   : > { %v2382_v22 = vmul.f32 %v5449_v20, %v5441_v10 }
 0x6cd   : > { %v5451_v21 = vpop.eup %5450 }
 0x6ce   : > { %v2383_v23 = vmul.f32 %v5451_v21, %v5443_v12 }
 0x6d0   : > { %v2386_v24 = vpack.c.bf16 %v2383_v23, %v2382_v22 }
 0x6d1   : > { %v5453_v26 = vpop.eup %5452 }
 0x6d2   : > { %4910 = vmatmul.mubr.msk.bf16.vlgmr.msra.gmra.mxu0 %vm2057_vm7, %v2386_v24  ;;  %v2384_v29 = vmul.f32 %v5453_v26, %v5445_v1 }
 0x6d3   : > { %4920 = vmatpush3.bf16.xpose.msra.mxu0 %v5352_v25  ;;  %4921 = vmatprep.mubr.msk.bf16.mxu0 %vm5897_vm6, %v5896_v4 }
 0x6d4   : > { %4931 = vmatprep.subr.bf16.mxu0 %v5896_v4 }
 0x6d5   : > { %v5455_v27 = vpop.eup %5454 }
 0x6d6   : > { %v2385_v30 = vmul.f32 %v5455_v27, %v5447_v15 }
 0x6d8   : > { %v2387_v31 = vpack.c.bf16 %v2385_v30, %v2384_v29 }
 0x6da   : > { %4916 = vmatmul.mubr.msk.bf16.vlgmr.msra.gmra.mxu1 %vm2057_vm7, %v2387_v31  ;;  %4922 = vmatmul.mubr.bf16.vlgmr.msra.gmra.mxu0 %v5353_v32 }
 0x6db   : > { %4926 = vmatpush3.bf16.xpose.msra.mxu1 %v5354_v34  ;;  %4932 = vmatpush3.bf16.msra.mxu0 %v5355_v35  ;;  %v5358_v35 = vld [vmem:[#allocation3 + $0x1c] ss:$48 sps:$4 sm:$0xff]  }
 0x6dc   : > { %4927 = vmatprep.mubr.msk.bf16.mxu1 %vm5897_vm6, %v5896_v4  ;;  %4937 = vmatprep.subr.bf16.mxu1 %v5896_v4 }
 0x6dd   : > { %4933 = vmatprep.mubr.msk.bf16.mxu0 %vm5897_vm6, %v5896_v4  ;;  %4943 = vmatprep.subr.bf16.mxu0 %v5896_v4 }
 0x6e2   : > { %4928 = vmatmul.mubr.bf16.vlgmr.msra.gmra.mxu1 %v5356_v36 }
 0x6e3   : > { %4938 = vmatpush3.bf16.msra.mxu1 %v5357_v38  ;;  %4939 = vmatprep.mubr.msk.bf16.mxu1 %vm5897_vm6, %v5896_v4 }
 0x6e4   : > { %4949 = vmatprep.subr.bf16.mxu1 %v5896_v4 }
 0x792   : > { %v2431_v39 = vpop.f32.mrf.mxu0 }
 0x793   : > { %v4701_v40 = vpack.c.bf16 %v2431_v39, %v2431_v39 }
 0x794   : > { %v4911_v41 = vpop.f32.mrf.mxu0 }
 0x795   : > { %2504 = vst [vmem:[#allocation4 + $0x4] sm:$0xf] %v4701_v40 }
 0x796   : > { %v2434_v42 = vpop.f32.mrf.mxu0 }
 0x797   : > { %v4702_v43 = vpack.c.bf16 %v2434_v42, %v2434_v42  ;;  %v5359_v42 = vld [vmem:[#allocation3 + $0xc] ss:$48 sps:$4 sm:$0xff]  }
 0x798   : > { %v4912_v44 = vpop.f32.mrf.mxu0 }
 0x799   : > { %2505 = vst [vmem:[#allocation4 + $0x14] sm:$0xf] %v4702_v43  ;;  %v5360_v43 = vld [vmem:[#allocation3 + $0x7c] ss:$48 sps:$4 sm:$0xff]  }
 0x79a   : > { %v2481_v45 = vpop.f32.mrf.mxu1  ;;  %v2566_v46 = vpop.f32.mrf.mxu0  ;;  %v5361_v44 = vld [vmem:[#allocation3 + $0x2c] ss:$48 sps:$4 sm:$0xff]  }
 0x79b   : > { %v4703_v47 = vpack.c.bf16 %v2481_v45, %v2481_v45  ;;  %v2567_v48 = vadd.f32 %v2566_v46, %v6379_v33  ;;  %v5362_v45 = vld [vmem:[#allocation3 + $0x6c] ss:$48 sps:$4 sm:$0xff]  }
 0x79c   : > { %v4917_v49 = vpop.f32.mrf.mxu1  ;;  %v4923_v50 = vpop.f32.mrf.mxu0  ;;  %v5363_v46 = vld [vmem:[#allocation3 + $0x8c] ss:$48 sps:$4 sm:$0xff]  }
 0x79d   : > { %2506 = vst [vmem:[#allocation4 + $0x24] sm:$0xf] %v4703_v47  ;;  %v2626_v52 = vsel %vm2057_vm7, %v2567_v48, -inf }
 0x79e   : > { %v2484_v53 = vpop.f32.mrf.mxu1  ;;  %2627 = vmax.xlane.f32.xlu0 %v2626_v52  ;;  %v2569_v54 = vpop.f32.mrf.mxu0 }
 0x79f   : > { %v4704_v55 = vpack.c.bf16 %v2484_v53, %v2484_v53  ;;  %v2570_v56 = vadd.f32 %v2569_v54, %v6382_v37 }
 0x7a0   : > { %v4918_v57 = vpop.f32.mrf.mxu1  ;;  %v4924_v58 = vpop.f32.mrf.mxu0 }
 0x7a1   : > { %2507 = vst [vmem:[#allocation4 + $0x34] sm:$0xf] %v4704_v55  ;;  %v2629_v59 = vsel %vm2057_vm7, %v2570_v56, -inf }
 0x7a2   : > { %v2619_v60 = vpop.f32.mrf.mxu1  ;;  %2630 = vmax.xlane.f32.xlu1 %v2629_v59 }
 0x7a3   : > { %v2620_v61 = vadd.f32 %v2619_v60, %v6379_v33 }
 0x7a4   : > { %v4929_v62 = vpop.f32.mrf.mxu1 }
 0x7a5   : > { %v2632_v63 = vsel %vm2057_vm7, %v2620_v61, -inf }
 0x7a6   : > { %v2622_v0 = vpop.f32.mrf.mxu1  ;;  %2633 = vmax.xlane.f32.xlu0 %v2632_v63 }
 0x7a7   : > { %v2623_v2 = vadd.f32 %v2622_v0, %v6382_v37 }
 0x7a8   : > { %v4930_v3 = vpop.f32.mrf.mxu1 }
 0x7a9   : > { %v2635_v5 = vsel %vm2057_vm7, %v2623_v2, -inf }
 0x7aa   : > { %2636 = vmax.xlane.f32.xlu1 %v2635_v5 }
 0x827   : > { %v2628_v28 = vpop.xlane.xlu0 %2627 }
 0x828   : > { %v2638_v7 = vsub.f32 %v2567_v48, %v2628_v28 }
 0x82a   : > { %v2642_v8 = vmul.f32 1.442695, %v2638_v7 }
 0x82b   : > { %v2631_v9 = vpop.xlane.xlu1 %2630 }
 0x82c   : > { %5456 = vpow2.f32 %v2642_v8  ;;  %v2639_v10 = vsub.f32 %v2570_v56, %v2631_v9 }
 0x82e   : > { %v2644_v11 = vmul.f32 1.442695, %v2639_v10 }
 0x82f   : > { %v2634_v12 = vpop.xlane.xlu0 %2633 }
 0x830   : > { %5458 = vpow2.f32 %v2644_v11  ;;  %v2640_v13 = vsub.f32 %v2620_v61, %v2634_v12 }
 0x832   : > { %v2646_v1 = vmul.f32 1.442695, %v2640_v13 }
 0x833   : > { %v2637_v14 = vpop.xlane.xlu1 %2636 }
 0x834   : > { %5460 = vpow2.f32 %v2646_v1  ;;  %v2641_v15 = vsub.f32 %v2623_v2, %v2637_v14 }
 0x836   : > { %v2648_v16 = vmul.f32 1.442695, %v2641_v15 }
 0x838   : > { %5462 = vpow2.f32 %v2648_v16 }
 0x839   : > { %v5457_v17 = vpop.eup %5456 }
 0x83a   : > { %v2650_v51 = vsel %vm2057_vm7, %v5457_v17, 0.0 }
 0x83b   : > { %2651 = vadd.xlane.f32.xlu0 %v2650_v51 }
 0x83d   : > { %v5459_v18 = vpop.eup %5458 }
 0x83e   : > { %v2653_v19 = vsel %vm2057_vm7, %v5459_v18, 0.0 }
 0x83f   : > { %2654 = vadd.xlane.f32.xlu1 %v2653_v19 }
 0x841   : > { %v5461_v20 = vpop.eup %5460 }
 0x842   : > { %v2656_v21 = vsel %vm2057_vm7, %v5461_v20, 0.0 }
 0x843   : > { %2657 = vadd.xlane.f32.xlu0 %v2656_v21 }
 0x845   : > { %v5463_v22 = vpop.eup %5462 }
 0x846   : > { %v2659_v23 = vsel %vm2057_vm7, %v5463_v22, 0.0 }
 0x847   : > { %2660 = vadd.xlane.f32.xlu1 %v2659_v23 }
 0x8c4   : > { %v2652_v24 = vpop.xlane.xlu0 %2651 }
 0x8c5   : > { %5464 = vrcp.f32 %v2652_v24 }
 0x8c8   : > { %v2655_v25 = vpop.xlane.xlu1 %2654 }
 0x8c9   : > { %5466 = vrcp.f32 %v2655_v25 }
 0x8cc   : > { %v2658_v26 = vpop.xlane.xlu0 %2657 }
 0x8cd   : > { %5468 = vrcp.f32 %v2658_v26 }
 0x8d0   : > { %v2661_v27 = vpop.xlane.xlu1 %2660 }
 0x8d1   : > { %5470 = vrcp.f32 %v2661_v27 }
 0x8d2   : > { %v5465_v29 = vpop.eup %5464 }
 0x8d3   : > { %v2666_v31 = vmul.f32 %v5465_v29, %v5457_v17 }
 0x8d6   : > { %v5467_v30 = vpop.eup %5466 }
 0x8d7   : > { %v2667_v32 = vmul.f32 %v5467_v30, %v5459_v18  ;;  %v5364_v30 = vld [vmem:[%s6192_s9 + $0x78] sm:$0xff]  }
 0x8d9   : > { %v2670_v34 = vpack.c.bf16 %v2667_v32, %v2666_v31  ;;  %v5386_v31 = vld [vmem:[%s6192_s9 + $0xf8] sm:$0xff]  }
 0x8da   : > { %v5469_v36 = vpop.eup %5468 }
 0x8db   : > { %4934 = vmatmul.mubr.msk.bf16.vlgmr.msra.gmra.mxu0 %vm2057_vm7, %v2670_v34  ;;  %v2668_v39 = vmul.f32 %v5469_v36, %v5461_v20 }
 0x8dc   : > { %4944 = vmatpush3.bf16.xpose.msra.mxu0 %v5358_v35  ;;  %4945 = vmatprep.mubr.msk.bf16.mxu0 %vm5897_vm6, %v5896_v4 }
 0x8dd   : > { %4955 = vmatprep.subr.bf16.mxu0 %v5896_v4 }
 0x8de   : > { %v5471_v38 = vpop.eup %5470 }
 0x8df   : > { %v2669_v40 = vmul.f32 %v5471_v38, %v5463_v22 }
 0x8e1   : > { %v2671_v41 = vpack.c.bf16 %v2669_v40, %v2668_v39 }
 0x8e3   : > { %4940 = vmatmul.mubr.msk.bf16.vlgmr.msra.gmra.mxu1 %vm2057_vm7, %v2671_v41  ;;  %4946 = vmatmul.mubr.bf16.vlgmr.msra.gmra.mxu0 %v5359_v42  ;;  %v5365_v42 = vld [vmem:[%s6192_s9 + $0x38] sm:$0xff]  }
 0x8e4   : > { %4950 = vmatpush3.bf16.xpose.msra.mxu1 %v5360_v43  ;;  %4956 = vmatpush3.bf16.msra.mxu0 %v5361_v44  ;;  %v5369_v44 = vld [vmem:[%s6192_s9 + $0x70] sm:$0xff]  }
 0x8e5   : > { %4951 = vmatprep.mubr.msk.bf16.mxu1 %vm5897_vm6, %v5896_v4  ;;  %4961 = vmatprep.subr.bf16.mxu1 %v5896_v4 }
 0x8e6   : > { %4957 = vmatprep.mubr.msk.bf16.mxu0 %vm5897_vm6, %v5896_v4  ;;  %4755 = vmatprep.subr.bf16.mxu0 %v5364_v30 }
 0x8eb   : > { %4952 = vmatmul.mubr.bf16.vlgmr.msra.gmra.mxu1 %v5362_v45  ;;  %v5368_v45 = vld [vmem:[#allocation4 + $0x4] ss:$16 sps:$4 sm:$0xff]  }
 0x8ec   : > { %4962 = vmatpush3.bf16.msra.mxu1 %v5363_v46  ;;  %4963 = vmatprep.mubr.msk.bf16.mxu1 %vm5897_vm6, %v5896_v4 }
 0x8ed   : > { %4783 = vmatprep.subr.bf16.mxu1 %v5386_v31 }
 0x99b   : > { %v2715_v47 = vpop.f32.mrf.mxu0 }
 0x99c   : > { %v4705_v48 = vpack.c.bf16 %v2715_v47, %v2715_v47  ;;  %v5370_v47 = vld [vmem:[%s6192_s9 + $0x30] sm:$0xff]  }
 0x99d   : > { %v4935_v49 = vpop.f32.mrf.mxu0 }
 0x99e   : > { %2788 = vst [vmem:[#allocation4 + $0x8] sm:$0xf] %v4705_v48  ;;  %v5371_v48 = vld [vmem:[%s6192_s9 + $0x68] sm:$0xff]  }
 0x99f   : > { %v2718_v50 = vpop.f32.mrf.mxu0 }
 0x9a0   : > { %v4706_v52 = vpack.c.bf16 %v2718_v50, %v2718_v50 }
 0x9a1   : > { %v4936_v53 = vpop.f32.mrf.mxu0 }
 0x9a2   : > { %2789 = vst [vmem:[#allocation4 + $0x18] sm:$0xf] %v4706_v52  ;;  %v5372_v53 = vld [vmem:[%s6192_s9 + $0x28] sm:$0xff]  }
 0x9a3   : > { %v2765_v54 = vpop.f32.mrf.mxu1  ;;  %v2850_v55 = vpop.f32.mrf.mxu0 }
 0x9a4   : > { %v4707_v56 = vpack.c.bf16 %v2765_v54, %v2765_v54  ;;  %v2851_v57 = vadd.f32 %v2850_v55, %v6379_v33  ;;  %v5387_v54 = vld [vmem:[%s6192_s9 + $0xb8] sm:$0xff]  }
 0x9a5   : > { %v4941_v58 = vpop.f32.mrf.mxu1  ;;  %v4947_v59 = vpop.f32.mrf.mxu0 }
 0x9a6   : > { %2790 = vst [vmem:[#allocation4 + $0x28] sm:$0xf] %v4707_v56  ;;  %v2910_v60 = vsel %vm2057_vm7, %v2851_v57, -inf  ;;  %v5373_v56 = vld [vmem:[%s6192_s9 + $0x60] sm:$0xff]   ;;  %v5389_v59 = vld [vmem:[%s6192_s9 + $0xb0] sm:$0xff]  }
 0x9a7   : > { %v2768_v61 = vpop.f32.mrf.mxu1  ;;  %2911 = vmax.xlane.f32.xlu0 %v2910_v60  ;;  %v2853_v4 = vpop.f32.mrf.mxu0  ;;  %v5374_v58 = vld [vmem:[%s6192_s9 + $0x20] sm:$0xff]   ;;  %v5375_v60 = vld [vmem:[%s6192_s9 + $0x58] sm:$0xff]  }
 0x9a8   : > { %v4708_v62 = vpack.c.bf16 %v2768_v61, %v2768_v61  ;;  %v2854_v63 = vadd.f32 %v2853_v4, %v6382_v37  ;;  %v5390_v61 = vld [vmem:[%s6192_s9 + $0xe8] sm:$0xff]   ;;  %v5376_v4 = vld [vmem:[%s6192_s9 + $0x18] sm:$0xff]  }
 0x9a9   : > { %v4942_v0 = vpop.f32.mrf.mxu1  ;;  %v4948_v2 = vpop.f32.mrf.mxu0 }
 0x9aa   : > { %2791 = vst [vmem:[#allocation4 + $0x38] sm:$0xf] %v4708_v62  ;;  %v2913_v3 = vsel %vm2057_vm7, %v2854_v63, -inf  ;;  %v5391_v62 = vld [vmem:[%s6192_s9 + $0xa8] sm:$0xff]   ;;  %v5392_v0 = vld [vmem:[%s6192_s9 + $0xe0] sm:$0xff]   ;;  %v5378_v2 = vld [vmem:[%s6192_s9 + $0x10] sm:$0xff]  }
 0x9ab   : > { %v2903_v5 = vpop.f32.mrf.mxu1  ;;  %2914 = vmax.xlane.f32.xlu1 %v2913_v3  ;;  %v5393_v3 = vld [vmem:[%s6192_s9 + $0xa0] sm:$0xff]  }
 0x9ac   : > { %v2904_v28 = vadd.f32 %v2903_v5, %v6379_v33  ;;  %v5379_v5 = vld [vmem:[%s6192_s9 + $0x48] sm:$0xff]  }
 0x9ad   : > { %v4953_v7 = vpop.f32.mrf.mxu1 }
 0x9ae   : > { %v2916_v8 = vsel %vm2057_vm7, %v2904_v28, -inf  ;;  %v5381_v7 = vld [vmem:[%s6192_s9 + $0x40] sm:$0xff]  }
 0x9af   : > { %v2906_v9 = vpop.f32.mrf.mxu1  ;;  %2917 = vmax.xlane.f32.xlu0 %v2916_v8  ;;  %v5382_v8 = vld [vmem:[%s6192_s9] sm:$0xff]  }
 0x9b0   : > { %v2907_v10 = vadd.f32 %v2906_v9, %v6382_v37  ;;  %v5366_v9 = vld [vmem:[#allocation4] ss:$16 sps:$4 sm:$0xff]  }
 0x9b1   : > { %v4954_v11 = vpop.f32.mrf.mxu1 }
 0x9b2   : > { %v2919_v12 = vsel %vm2057_vm7, %v2907_v10, -inf  ;;  %v5385_v11 = vld [vmem:[#allocation4 + $0x20] ss:$16 sps:$4 sm:$0xff]  }
 0x9b3   : > { %2920 = vmax.xlane.f32.xlu1 %v2919_v12  ;;  %v5394_v12 = vld [vmem:[%s6192_s9 + $0xd8] sm:$0xff]  }
 0xa30   : > { %v2912_v13 = vpop.xlane.xlu0 %2911 }
 0xa31   : > { %v2922_v1 = vsub.f32 %v2851_v57, %v2912_v13  ;;  %v5388_v57 = vld [vmem:[%s6192_s9 + $0xf0] sm:$0xff]   ;;  %v5395_v13 = vld [vmem:[%s6192_s9 + $0x98] sm:$0xff]  }
 0xa33   : > { %v2926_v14 = vmul.f32 1.442695, %v2922_v1  ;;  %v5396_v1 = vld [vmem:[%s6192_s9 + $0xd0] sm:$0xff]  }
 0xa34   : > { %v2915_v15 = vpop.xlane.xlu1 %2914 }
 0xa35   : > { %5472 = vpow2.f32 %v2926_v14  ;;  %v2923_v16 = vsub.f32 %v2854_v63, %v2915_v15  ;;  %v5377_v63 = vld [vmem:[%s6192_s9 + $0x50] sm:$0xff]   ;;  %v5398_v15 = vld [vmem:[%s6192_s9 + $0xc8] sm:$0xff]  }
 0xa36   : > { %v5397_v14 = vld [vmem:[%s6192_s9 + $0x90] sm:$0xff]  }
 0xa37   : > { %v2928_v17 = vmul.f32 1.442695, %v2923_v16  ;;  %v5399_v16 = vld [vmem:[%s6192_s9 + $0x88] sm:$0xff]  }
 0xa38   : > { %v2918_v51 = vpop.xlane.xlu0 %2917 }
 0xa39   : > { %5474 = vpow2.f32 %v2928_v17  ;;  %v2924_v33 = vsub.f32 %v2904_v28, %v2918_v51  ;;  %v5380_v28 = vld [vmem:[%s6192_s9 + $0x8] sm:$0xff]   ;;  %v5400_v17 = vld [vmem:[%s6192_s9 + $0xc0] sm:$0xff]  }
 0xa3a   : > { %v5401_v51 = vld [vmem:[%s6192_s9 + $0x80] sm:$0xff]  }
 0xa3b   : > { %v2930_v18 = vmul.f32 1.442695, %v2924_v33 }
 0xa3c   : > { %v2921_v19 = vpop.xlane.xlu1 %2920 }
 0xa3d   : > { %5476 = vpow2.f32 %v2930_v18  ;;  %v2925_v20 = vsub.f32 %v2907_v10, %v2921_v19  ;;  %v5383_v10 = vld [vmem:[#allocation4 + $0x24] ss:$16 sps:$4 sm:$0xff]  }
 0xa3f   : > { %v2932_v37 = vmul.f32 1.442695, %v2925_v20 }
 0xa41   : > { %5478 = vpow2.f32 %v2932_v37 }
 0xa42   : > { %v5473_v21 = vpop.eup %5472 }
 0xa43   : > { %v2934_v22 = vsel %vm2057_vm7, %v5473_v21, 0.0 }
 0xa44   : > { %2935 = vadd.xlane.f32.xlu0 %v2934_v22 }
 0xa46   : > { %v5475_v23 = vpop.eup %5474 }
 0xa47   : > { %v2937_v24 = vsel %vm2057_vm7, %v5475_v23, 0.0 }
 0xa48   : > { %2938 = vadd.xlane.f32.xlu1 %v2937_v24 }
 0xa4a   : > { %v5477_v25 = vpop.eup %5476 }
 0xa4b   : > { %v2940_v26 = vsel %vm2057_vm7, %v5477_v25, 0.0 }
 0xa4c   : > { %2941 = vadd.xlane.f32.xlu0 %v2940_v26 }
 0xa4e   : > { %v5479_v27 = vpop.eup %5478 }
 0xa4f   : > { %v2943_v29 = vsel %vm2057_vm7, %v5479_v27, 0.0 }
 0xa50   : > { %2944 = vadd.xlane.f32.xlu1 %v2943_v29  ;;  %v5402_v29 = vld [vmem:[#allocation4 + $0x8] ss:$16 sps:$4 sm:$0xff]  }
 0xacd   : > { %v2936_v32 = vpop.xlane.xlu0 %2935 }
 0xace   : > { %5480 = vrcp.f32 %v2936_v32  ;;  %v5407_v32 = vld [vmem:[#allocation4 + $0x28] ss:$16 sps:$4 sm:$0xff]  }
 0xad1   : > { %v2939_v34 = vpop.xlane.xlu1 %2938 }
 0xad2   : > { %5482 = vrcp.f32 %v2939_v34 }
 0xad5   : > { %v2942_v35 = vpop.xlane.xlu0 %2941 }
 0xad6   : > { %5484 = vrcp.f32 %v2942_v35 }
 0xad9   : > { %v2945_v36 = vpop.xlane.xlu1 %2944 }
 0xada   : > { %5486 = vrcp.f32 %v2945_v36 }
 0xadb   : > { %v5481_v38 = vpop.eup %5480 }
 0xadc   : > { %v2950_v40 = vmul.f32 %v5481_v38, %v5473_v21 }
 0xadf   : > { %v5483_v39 = vpop.eup %5482 }
 0xae0   : > { %v2951_v41 = vmul.f32 %v5483_v39, %v5475_v23  ;;  %v3150_v39 = vsub.s32 1, %v6342_v6 }
 0xae2   : > { %v2954_v43 = vpack.c.bf16 %v2951_v41, %v2950_v40  ;;  %v6507_v41 = vld [vmem:[%s6198_s21] sm:$0xff] }
 0xae3   : > { %v5485_v46 = vpop.eup %5484 }
 0xae4   : > { %4958 = vmatmul.mubr.msk.bf16.vlgmr.msra.gmra.mxu0 %vm2057_vm7, %v2954_v43  ;;  %v2952_v50 = vmul.f32 %v5485_v46, %v5477_v25 }
 0xae5   : > { %4756 = vmatpush3.bf16.msra.mxu0 %v5365_v42  ;;  %3416 = vmatprep.mubr.bf16.mxu0 %v5368_v45  ;;  %v3151_v42 = vrot.slane %v6507_v41, %v3150_v39 }
 0xae6   : > { %4757 = vmatprep.subr.bf16.mxu0 %v5369_v44 }
 0xae7   : > { %v5487_v49 = vpop.eup %5486 }
 0xae8   : > { %v2953_v52 = vmul.f32 %v5487_v49, %v5479_v27 }
 0xae9   : > { %4758 = vmatpush3.bf16.msra.mxu0 %v5370_v47 }
 0xaea   : > { %4759 = vmatprep.subr.bf16.mxu0 %v5371_v48  ;;  %v2955_v55 = vpack.c.bf16 %v2953_v52, %v2952_v50 }
 0xaec   : > { %4964 = vmatmul.mubr.msk.bf16.vlgmr.msra.gmra.mxu1 %vm2057_vm7, %v2955_v55 }
 0xaed   : > { %4760 = vmatpush3.bf16.msra.mxu0 %v5372_v53  ;;  %4784 = vmatpush3.bf16.msra.mxu1 %v5387_v54 }
 0xaee   : > { %4761 = vmatprep.subr.bf16.mxu0 %v5373_v56  ;;  %4785 = vmatprep.subr.bf16.mxu1 %v5388_v57 }
 0xaf1   : > { %4762 = vmatpush3.bf16.msra.mxu0 %v5374_v58  ;;  %4786 = vmatpush3.bf16.msra.mxu1 %v5389_v59  ;;  %v5513_v58 = vld [vmem:[#allocation2 + $0x10] sm:$0xff] }
 0xaf2   : > { %4763 = vmatprep.subr.bf16.mxu0 %v5375_v60  ;;  %4787 = vmatprep.subr.bf16.mxu1 %v5390_v61 }
 0xaf5   : > { %4764 = vmatpush3.bf16.msra.mxu0 %v5376_v4  ;;  %4788 = vmatpush3.bf16.msra.mxu1 %v5391_v62 }
 0xaf6   : > { %4765 = vmatprep.subr.bf16.mxu0 %v5377_v63  ;;  %4789 = vmatprep.subr.bf16.mxu1 %v5392_v0 }
 0xaf9   : > { %4766 = vmatpush3.bf16.msra.mxu0 %v5378_v2  ;;  %4790 = vmatpush3.bf16.msra.mxu1 %v5393_v3  ;;  %v5514_v3 = vld [vmem:[#allocation2] sm:$0xff] }
 0xafa   : > { %4767 = vmatprep.subr.bf16.mxu0 %v5379_v5  ;;  %4791 = vmatprep.subr.bf16.mxu1 %v5394_v12 }
 0xafd   : > { %4768 = vmatpush3.bf16.msra.mxu0 %v5380_v28  ;;  %4792 = vmatpush3.bf16.msra.mxu1 %v5395_v13  ;;  %v5515_v13 = vld [vmem:[#allocation2 + $0x18] sm:$0xff] }
 0xafe   : > { %4769 = vmatprep.subr.bf16.mxu0 %v5381_v7  ;;  %4793 = vmatprep.subr.bf16.mxu1 %v5396_v1 }
 0xb01   : > { %4770 = vmatpush3.bf16.msra.mxu0 %v5382_v8  ;;  %4794 = vmatpush3.bf16.msra.mxu1 %v5397_v14 }
 0xb02   : > { %4795 = vmatprep.subr.bf16.mxu1 %v5398_v15  ;;  %v5516_v15 = vld [vmem:[#allocation2 + $0x8] sm:$0xff] }
 0xb04   : > { %3417 = vmatmul.mubr.bf16.vlgmr.msra.gmra.mxu0 %v5366_v9 }
 0xb05   : > { %3424 = vmatprep.mubr.bf16.mxu0 %v5383_v10  ;;  %4796 = vmatpush3.bf16.msra.mxu1 %v5399_v16 }
 0xb06   : > { %4797 = vmatprep.subr.bf16.mxu1 %v5400_v17 }
 0xb09   : > { %4798 = vmatpush3.bf16.msra.mxu1 %v5401_v51 }
 0xb0c   : > { %3425 = vmatmul.mubr.bf16.gmra.mxu0 %v5385_v11 }
 0xba4   : > { %v2999_v33 = vpop.f32.mrf.mxu0 }
 0xba5   : > { %v4709_v18 = vpack.c.bf16 %v2999_v33, %v2999_v33  ;;  %v5408_v33 = vld [vmem:[%s6194_s28 + $0x38] sm:$0xff]  }
 0xba6   : > { %v4959_v19 = vpop.f32.mrf.mxu0  ;;  %4967 = vmatprep.subr.bf16.mxu0 %v5408_v33 }
 0xba7   : > { %3072 = vst [vmem:[#allocation4 + $0xc] sm:$0xf] %v4709_v18  ;;  %4968 = vmatpush3.bf16.msra.mxu0 %v5408_v33  ;;  %v5409_v18 = vld [vmem:[%s6194_s28 + $0x30] sm:$0xff]   ;;  %v5410_v19 = vld [vmem:[%s6194_s28 + $0x28] sm:$0xff]  }
 0xba8   : > { %v3002_v20 = vpop.f32.mrf.mxu0  ;;  %4969 = vmatprep.subr.bf16.mxu0 %v5409_v18 }
 0xba9   : > { %v4710_v37 = vpack.c.bf16 %v3002_v20, %v3002_v20  ;;  %v5411_v20 = vld [vmem:[%s6194_s28 + $0x20] sm:$0xff]  }
 0xbaa   : > { %v4960_v21 = vpop.f32.mrf.mxu0 }
 0xbab   : > { %3073 = vst [vmem:[#allocation4 + $0x1c] sm:$0xf] %v4710_v37  ;;  %4970 = vmatpush3.bf16.msra.mxu0 %v5409_v18  ;;  %v5412_v37 = vld [vmem:[%s6194_s28 + $0x18] sm:$0xff]   ;;  %v5413_v21 = vld [vmem:[%s6194_s28 + $0x10] sm:$0xff]  }
 0xbac   : > { %v3049_v22 = vpop.f32.mrf.mxu1  ;;  %4971 = vmatprep.subr.bf16.mxu0 %v5410_v19  ;;  %v5417_v18 = vld [vmem:[%s6196_s12 + $0x30] sm:$0xff]  }
 0xbad   : > { %v4711_v23 = vpack.c.bf16 %v3049_v22, %v3049_v22  ;;  %v5414_v22 = vld [vmem:[%s6194_s28 + $0x8] sm:$0xff]  }
 0xbae   : > { %v4965_v24 = vpop.f32.mrf.mxu1 }
 0xbaf   : > { %3074 = vst [vmem:[#allocation4 + $0x2c] sm:$0xf] %v4711_v23  ;;  %4972 = vmatpush3.bf16.msra.mxu0 %v5410_v19  ;;  %v5415_v23 = vld [vmem:[%s6194_s28] sm:$0xff]   ;;  %v5418_v19 = vld [vmem:[%s6196_s12 + $0x28] sm:$0xff]  }
 0xbb0   : > { %v3052_v25 = vpop.f32.mrf.mxu1  ;;  %4973 = vmatprep.subr.bf16.mxu0 %v5411_v20 }
 0xbb1   : > { %v4712_v26 = vpack.c.bf16 %v3052_v25, %v3052_v25 }
 0xbb2   : > { %v4966_v27 = vpop.f32.mrf.mxu1  ;;  %v5404_v30 = vld [vmem:[#allocation4 + $0xc] ss:$16 sps:$4 sm:$0xff]  }
 0xbb3   : > { %3075 = vst [vmem:[#allocation4 + $0x3c] sm:$0xf] %v4712_v26  ;;  %3465 = vmatprep.mubr.bf16.mxu1 %v5404_v30  ;;  %4974 = vmatpush3.bf16.msra.mxu0 %v5411_v20  ;;  %v5419_v20 = vld [vmem:[%s6196_s12 + $0x20] sm:$0xff]  }
 0xbb4   : > { %3466 = vmatmul.mubr.bf16.vlgmr.msra.gmra.mxu1 %v5402_v29  ;;  %4975 = vmatprep.subr.bf16.mxu0 %v5412_v37 }
 0xbb7   : > { %4976 = vmatpush3.bf16.msra.mxu0 %v5412_v37  ;;  %v5420_v37 = vld [vmem:[%s6196_s12 + $0x18] sm:$0xff]  }
 0xbb8   : > { %4977 = vmatprep.subr.bf16.mxu0 %v5413_v21 }
 0xbba   : > { %v5405_v31 = vld [vmem:[#allocation4 + $0x2c] ss:$16 sps:$4 sm:$0xff]  }
 0xbbb   : > { %3473 = vmatprep.mubr.bf16.mxu1 %v5405_v31  ;;  %4978 = vmatpush3.bf16.msra.mxu0 %v5413_v21  ;;  %v5421_v21 = vld [vmem:[%s6196_s12 + $0x10] sm:$0xff]  }
 0xbbc   : > { %3474 = vmatmul.mubr.bf16.gmra.mxu1 %v5407_v32  ;;  %4979 = vmatprep.subr.bf16.mxu0 %v5414_v22 }
 0xbbf   : > { %4980 = vmatpush3.bf16.msra.mxu0 %v5414_v22  ;;  %v5422_v22 = vld [vmem:[%s6196_s12 + $0x8] sm:$0xff]  }
 0xbc0   : > { %4981 = vmatprep.subr.bf16.mxu0 %v5415_v23 }
 0xbc3   : > { %4982 = vmatpush3.bf16.msra.mxu0 %v5415_v23  ;;  %v5423_v23 = vld [vmem:[%s6196_s12] sm:$0xff]  }
 0xbc4   : > { %v4771_v34 = vpop.f32.mrf.mxu0 }
 0xbc6   : > { %v4772_v35 = vpop.f32.mrf.mxu0 }
 0xbc7   : > { %v4773_v43 = vadd.f32 %v4772_v35, %v4771_v34 }
 0xbc8   : > { %v4774_v36 = vpop.f32.mrf.mxu0 }
 0xbc9   : > { %v3419_v47 = vadd.f32 %v4773_v43, %v3151_v42 }
 0xbca   : > { %v4775_v38 = vpop.f32.mrf.mxu0 }
 0xbcb   : > { %v4776_v48 = vadd.f32 %v4775_v38, %v4774_v36 }
 0xbcc   : > { %v4777_v40 = vpop.f32.mrf.mxu0 }
 0xbcd   : > { %v3422_v56 = vadd.f32 %v4776_v48, %v3151_v42 }
 0xbce   : > { %v4778_v44 = vpop.f32.mrf.mxu0 }
 0xbcf   : > { %v4779_v54 = vadd.f32 %v4778_v44, %v4777_v40 }
 0xbd0   : > { %v4780_v50 = vpop.f32.mrf.mxu0 }
 0xbd1   : > { %v3427_v62 = vadd.f32 %v4779_v54, %v3151_v42 }
 0xbd2   : > { %v4781_v60 = vpop.f32.mrf.mxu0 }
 0xbd3   : > { %v4782_v0 = vadd.f32 %v4781_v60, %v4780_v50 }
 0xbd5   : > { %v3430_v10 = vadd.f32 %v4782_v0, %v3151_v42 }
 0xc74   : > { %v4799_v45 = vpop.f32.mrf.mxu1 }
 0xc76   : > { %v4800_v46 = vpop.f32.mrf.mxu1 }
 0xc77   : > { %v4801_v49 = vadd.f32 %v4800_v46, %v4799_v45 }
 0xc78   : > { %v4802_v52 = vpop.f32.mrf.mxu1 }
 0xc79   : > { %v3468_v53 = vadd.f32 %v4801_v49, %v3419_v47 }
 0xc7a   : > { %v4803_v55 = vpop.f32.mrf.mxu1 }
 0xc7b   : > { %v4804_v57 = vadd.f32 %v4803_v55, %v4802_v52  ;;  %v6510_v59 = vadd.f32 %v5513_v58, %v3468_v53 }
 0xc7c   : > { %v4805_v61 = vpop.f32.mrf.mxu1 }
 0xc7d   : > { %v3471_v4 = vadd.f32 %v4804_v57, %v3422_v56  ;;  %3486 = vadd.xlane.f32.xlu0 %v6510_v59  ;;  %v3498_v28 = vmul.f32 %v6510_v59, %v6510_v59  ;;  %v3540_v57 = vsub.s32 4, %v6342_v6 }
 0xc7e   : > { %v4806_v63 = vpop.f32.mrf.mxu1 }
 0xc7f   : > { %v4807_v2 = vadd.f32 %v4806_v63, %v4805_v61  ;;  %v6513_v5 = vadd.f32 %v5514_v3, %v3471_v4  ;;  %v3541_v4 = vrot.slane %v6507_v41, %v3540_v57 }
 0xc80   : > { %v4808_v7 = vpop.f32.mrf.mxu1 }
 0xc81   : > { %v3476_v8 = vadd.f32 %v4807_v2, %v3427_v62  ;;  %3488 = vadd.xlane.f32.xlu1 %v6513_v5  ;;  %3502 = vadd.xlane.f32.xlu0 %v3498_v28  ;;  %v3499_v12 = vmul.f32 %v6513_v5, %v6513_v5  ;;  %v3548_v62 = vsub.s32 5, %v6342_v6 }
 0xc82   : > { %v4809_v9 = vpop.f32.mrf.mxu1 }
 0xc83   : > { %v4810_v11 = vadd.f32 %v4809_v9, %v4808_v7  ;;  %v6520_v1 = vadd.f32 %v5515_v13, %v3476_v8  ;;  %v3549_v28 = vrot.slane %v6507_v41, %v3548_v62 }
 0xc85   : > { %v3479_v14 = vadd.f32 %v4810_v11, %v3430_v10  ;;  %3504 = vadd.xlane.f32.xlu1 %v3499_v12  ;;  %3490 = vadd.xlane.f32.xlu0 %v6520_v1  ;;  %v3500_v17 = vmul.f32 %v6520_v1, %v6520_v1 }
 0xc87   : > { %v6523_v16 = vadd.f32 %v5516_v15, %v3479_v14 }
 0xc89   : > { %3492 = vadd.xlane.f32.xlu1 %v6523_v16  ;;  %3506 = vadd.xlane.f32.xlu0 %v3500_v17  ;;  %v3501_v51 = vmul.f32 %v6523_v16, %v6523_v16 }
 0xc8d   : > { %3508 = vadd.xlane.f32.xlu1 %v3501_v51 }
 0xd06   : > { %v3487_v24 = vpop.xlane.xlu0 %3486 }
 0xd07   : > { %v3494_v25 = vmul.f32 0.03125, %v3487_v24  ;;  %v3574_v24 = vsub.s32 2, %v6342_v6 }
 0xd09   : > { %v3514_v29 = vmul.f32 %v3494_v25, %v3494_v25  ;;  %v3522_v58 = vsub.f32 %v6510_v59, %v3494_v25  ;;  %v3575_v25 = vrot.slane %v6507_v41, %v3574_v24 }
 0xd0a   : > { %v3489_v26 = vpop.xlane.xlu1 %3488  ;;  %v3503_v27 = vpop.xlane.xlu0 %3502 }
 0xd0b   : > { %v3495_v30 = vmul.f32 0.03125, %v3489_v26  ;;  %v3510_v31 = vmul.f32 0.03125, %v3503_v27 }
 0xd0d   : > { %v3518_v32 = vsub.f32 %v3510_v31, %v3514_v29  ;;  %v3515_v36 = vmul.f32 %v3495_v30, %v3495_v30  ;;  %v3523_v63 = vsub.f32 %v6513_v5, %v3495_v30 }
 0xd0e   : > { %v3505_v34 = vpop.xlane.xlu1 %3504  ;;  %v3491_v35 = vpop.xlane.xlu0 %3490 }
 0xd0f   : > { %v3526_v38 = vadd.f32 1e-05, %v3518_v32  ;;  %v3511_v39 = vmul.f32 0.03125, %v3505_v34  ;;  %v3496_v40 = vmul.f32 0.03125, %v3491_v35 }
 0xd11   : > { %5488 = vrsqrt.f32 %v3526_v38  ;;  %v3519_v42 = vsub.f32 %v3511_v39, %v3515_v36  ;;  %v3516_v46 = vmul.f32 %v3496_v40, %v3496_v40  ;;  %v3524_v7 = vsub.f32 %v6520_v1, %v3496_v40 }
 0xd12   : > { %v3493_v43 = vpop.xlane.xlu1 %3492  ;;  %v3507_v44 = vpop.xlane.xlu0 %3506 }
 0xd13   : > { %v3527_v45 = vadd.f32 1e-05, %v3519_v42  ;;  %v3497_v47 = vmul.f32 0.03125, %v3493_v43  ;;  %v3512_v48 = vmul.f32 0.03125, %v3507_v44 }
 0xd15   : > { %5490 = vrsqrt.f32 %v3527_v45  ;;  %v3520_v49 = vsub.f32 %v3512_v48, %v3516_v46  ;;  %v3517_v52 = vmul.f32 %v3497_v47, %v3497_v47  ;;  %v3525_v12 = vsub.f32 %v6523_v16, %v3497_v47  ;;  %v5416_v16 = vld [vmem:[%s6196_s12 + $0x38] sm:$0xff]  }
 0xd16   : > { %v3509_v50 = vpop.xlane.xlu1 %3508  ;;  %4987 = vmatprep.subr.bf16.mxu1 %v5416_v16 }
 0xd17   : > { %v3528_v53 = vadd.f32 1e-05, %v3520_v49  ;;  %v3513_v54 = vmul.f32 0.03125, %v3509_v50  ;;  %4988 = vmatpush3.bf16.msra.mxu1 %v5416_v16 }
 0xd18   : > { %4989 = vmatprep.subr.bf16.mxu1 %v5417_v18 }
 0xd19   : > { %5492 = vrsqrt.f32 %v3528_v53  ;;  %v3521_v55 = vsub.f32 %v3513_v54, %v3517_v52 }
 0xd1b   : > { %v3529_v56 = vadd.f32 1e-05, %v3521_v55  ;;  %4990 = vmatpush3.bf16.msra.mxu1 %v5417_v18 }
 0xd1c   : > { %4991 = vmatprep.subr.bf16.mxu1 %v5418_v19 }
 0xd1d   : > { %5494 = vrsqrt.f32 %v3529_v56 }
 0xd1e   : > { %v5489_v60 = vpop.eup %5488 }
 0xd1f   : > { %v3534_v61 = vmul.f32 %v5489_v60, %v3522_v58  ;;  %4992 = vmatpush3.bf16.msra.mxu1 %v5418_v19 }
 0xd20   : > { %4993 = vmatprep.subr.bf16.mxu1 %v5419_v20 }
 0xd21   : > { %v3542_v3 = vmul.f32 %v3541_v4, %v3534_v61 }
 0xd22   : > { %v5491_v0 = vpop.eup %5490 }
 0xd23   : > { %v3535_v2 = vmul.f32 %v5491_v0, %v3523_v63  ;;  %v6545_v10 = vadd.f32 %v3549_v28, %v3542_v3  ;;  %4994 = vmatpush3.bf16.msra.mxu1 %v5419_v20 }
 0xd24   : > { %4995 = vmatprep.subr.bf16.mxu1 %v5420_v37 }
 0xd25   : > { %v3543_v8 = vmul.f32 %v3541_v4, %v3535_v2 }
 0xd26   : > { %v5493_v9 = vpop.eup %5492 }
 0xd27   : > { %v3536_v59 = vmul.f32 %v5493_v9, %v3524_v7  ;;  %v6547_v11 = vadd.f32 %v3549_v28, %v3543_v8  ;;  %4996 = vmatpush3.bf16.msra.mxu1 %v5420_v37 }
 0xd28   : > { %4997 = vmatprep.subr.bf16.mxu1 %v5421_v21 }
 0xd29   : > { %v3554_v5 = vpack.c.bf16 %v6547_v11, %v6545_v10  ;;  %v3544_v1 = vmul.f32 %v3541_v4, %v3536_v59 }
 0xd2a   : > { %v5495_v13 = vpop.eup %5494 }
 0xd2b   : > { %v3537_v14 = vmul.f32 %v5495_v13, %v3525_v12  ;;  %4983 = vmatprep.mubr.bf16.mxu0 %v3554_v5  ;;  %v6552_v17 = vadd.f32 %v3549_v28, %v3544_v1  ;;  %4998 = vmatpush3.bf16.msra.mxu1 %v5421_v21 }
 0xd2c   : > { %4999 = vmatprep.subr.bf16.mxu1 %v5422_v22 }
 0xd2d   : > { %v3545_v15 = vmul.f32 %v3541_v4, %v3537_v14 }
 0xd2f   : > { %v6554_v51 = vadd.f32 %v3549_v28, %v3545_v15  ;;  %5000 = vmatpush3.bf16.msra.mxu1 %v5422_v22  ;;  %v3729_v15 = vsub.s32 3, %v6342_v6 }
 0xd30   : > { %5001 = vmatprep.subr.bf16.mxu1 %v5423_v23 }
 0xd31   : > { %v3555_v33 = vpack.c.bf16 %v6554_v51, %v6552_v17 }
 0xd33   : > { %4984 = vmatmul.mubr.bf16.vlgmr.msra.gmra.mxu0 %v3555_v33  ;;  %5002 = vmatpush3.bf16.msra.mxu1 %v5423_v23  ;;  %v3730_v33 = vrot.slane %v6507_v41, %v3729_v15 }
 0xdf3   : > { %v4985_v26 = vpop.f32.mrf.mxu0 }
 0xdf4   : > { %v3667_v27 = vadd.f32 %v4985_v26, %v3575_v25 }
 0xdf5   : > { %v3658_v29 = vpop.f32.mrf.mxu0 }
 0xdf6   : > { %v3679_v30 = vmul.f32 0.044715, %v3667_v27  ;;  %v3659_v31 = vadd.f32 %v3658_v29, %v3575_v25  ;;  %v3675_v9 = vmul.f32 0.5, %v3667_v27 }
 0xdf7   : > { %v4986_v32 = vpop.f32.mrf.mxu0 }
 0xdf8   : > { %v3683_v34 = vmul.f32 %v3679_v30, %v3667_v27  ;;  %v3677_v35 = vmul.f32 0.044715, %v3659_v31  ;;  %v3670_v36 = vadd.f32 %v4986_v32, %v3575_v25  ;;  %v3673_v28 = vmul.f32 0.5, %v3659_v31 }
 0xdf9   : > { %v3661_v38 = vpop.f32.mrf.mxu0 }
 0xdfa   : > { %v3687_v39 = vmul.f32 %v3683_v34, %v3667_v27  ;;  %v3681_v40 = vmul.f32 %v3677_v35, %v3659_v31  ;;  %v3680_v42 = vmul.f32 0.044715, %v3670_v36  ;;  %v3662_v43 = vadd.f32 %v3661_v38, %v3575_v25 }
 0xdfb   : > { %v3676_v2 = vmul.f32 0.5, %v3670_v36 }
 0xdfc   : > { %v3691_v44 = vadd.f32 %v3687_v39, %v3667_v27  ;;  %v3685_v45 = vmul.f32 %v3681_v40, %v3659_v31  ;;  %v3684_v46 = vmul.f32 %v3680_v42, %v3670_v36  ;;  %v3678_v47 = vmul.f32 0.044715, %v3662_v43 }
 0xdfd   : > { %v3674_v7 = vmul.f32 0.5, %v3662_v43 }
 0xdfe   : > { %v3695_v48 = vmul.f32 0.7978846, %v3691_v44  ;;  %v3688_v49 = vmul.f32 %v3684_v46, %v3670_v36  ;;  %v3689_v50 = vadd.f32 %v3685_v45, %v3659_v31  ;;  %v3682_v52 = vmul.f32 %v3678_v47, %v3662_v43 }
 0xe00   : > { %v3692_v53 = vadd.f32 %v3688_v49, %v3670_v36  ;;  %v3693_v54 = vmul.f32 0.7978846, %v3689_v50  ;;  %v3686_v55 = vmul.f32 %v3682_v52, %v3662_v43  ;;  %5496 = vtanh.f32 %v3695_v48 }
 0xe02   : > { %v3696_v56 = vmul.f32 0.7978846, %v3692_v53  ;;  %v3690_v57 = vadd.f32 %v3686_v55, %v3662_v43  ;;  %5498 = vtanh.f32 %v3693_v54 }
 0xe04   : > { %5500 = vtanh.f32 %v3696_v56  ;;  %v3694_v58 = vmul.f32 0.7978846, %v3690_v57 }
 0xe06   : > { %5502 = vtanh.f32 %v3694_v58 }
 0xe0d   : > { %v5497_v60 = vpop.eup %5496 }
 0xe0e   : > { %v3703_v3 = vadd.f32 1.0, %v5497_v60 }
 0xe0f   : > { %v5499_v61 = vpop.eup %5498 }
 0xe10   : > { %v3701_v63 = vadd.f32 1.0, %v5499_v61  ;;  %v3707_v13 = vmul.f32 %v3703_v3, %v3675_v9 }
 0xe11   : > { %v5501_v4 = vpop.eup %5500 }
 0xe12   : > { %v3704_v62 = vadd.f32 1.0, %v5501_v4  ;;  %v3705_v12 = vmul.f32 %v3701_v63, %v3673_v28  ;;  %v3886_v4 = vsub.s32 6, %v6342_v6 }
 0xe13   : > { %v5503_v0 = vpop.eup %5502 }
 0xe14   : > { %v3702_v8 = vadd.f32 1.0, %v5503_v0  ;;  %v3708_v59 = vmul.f32 %v3704_v62, %v3676_v2  ;;  %v3894_v62 = vsub.s32 7, %v6342_v6  ;;  %v3887_v0 = vrot.slane %v6507_v41, %v3886_v4 }
 0xe16   : > { %v3706_v5 = vmul.f32 %v3702_v8, %v3674_v7  ;;  %v3710_v1 = vpack.c.bf16 %v3708_v59, %v3707_v13  ;;  %v3895_v3 = vrot.slane %v6507_v41, %v3894_v62 }
 0xe18   : > { %v3709_v14 = vpack.c.bf16 %v3706_v5, %v3705_v12 }
 0xe1a   : > { %5003 = vmatprep.mubr.bf16.mxu1 %v3709_v14 }
 0xe1b   : > { %5004 = vmatmul.mubr.bf16.vlgmr.msra.gmra.mxu1 %v3710_v1 }
 0xedb   : > { %v5005_v16 = vpop.f32.mrf.mxu1 }
 0xedc   : > { %v3822_v18 = vadd.f32 %v5005_v16, %v3730_v33 }
 0xedd   : > { %v3813_v19 = vpop.f32.mrf.mxu1 }
 0xede   : > { %v6571_v20 = vadd.f32 %v3822_v18, %v6552_v17  ;;  %v3814_v37 = vadd.f32 %v3813_v19, %v3730_v33 }
 0xedf   : > { %v5006_v21 = vpop.f32.mrf.mxu1 }
 0xee0   : > { %v3825_v22 = vadd.f32 %v5006_v21, %v3730_v33  ;;  %3836 = vadd.xlane.f32.xlu0 %v6571_v20  ;;  %v3828_v24 = vadd.f32 %v3814_v37, %v6545_v10  ;;  %v3846_v30 = vmul.f32 %v6571_v20, %v6571_v20 }
 0xee1   : > { %v3816_v23 = vpop.f32.mrf.mxu1 }
 0xee2   : > { %v6576_v25 = vadd.f32 %v3825_v22, %v6554_v51  ;;  %v3817_v26 = vadd.f32 %v3816_v23, %v3730_v33  ;;  %v3844_v29 = vmul.f32 %v3828_v24, %v3828_v24 }
 0xee4   : > { %3838 = vadd.xlane.f32.xlu1 %v6576_v25  ;;  %3832 = vadd.xlane.f32.xlu0 %v3828_v24  ;;  %v3829_v27 = vadd.f32 %v3817_v26, %v6547_v11  ;;  %v3847_v10 = vmul.f32 %v6576_v25, %v6576_v25 }
 0xee6   : > { %v3845_v17 = vmul.f32 %v3829_v27, %v3829_v27 }
 0xee8   : > { %3834 = vadd.xlane.f32.xlu1 %v3829_v27  ;;  %3848 = vadd.xlane.f32.xlu0 %v3844_v29 }
 0xeec   : > { %3850 = vadd.xlane.f32.xlu1 %v3845_v17  ;;  %3852 = vadd.xlane.f32.xlu0 %v3846_v30 }
 0xef0   : > { %3854 = vadd.xlane.f32.xlu1 %v3847_v10 }
 0xf69   : > { %v3837_v51 = vpop.xlane.xlu0 %3836 }
 0xf6a   : > { %v3842_v35 = vmul.f32 0.03125, %v3837_v51 }
 0xf6c   : > { %v3862_v43 = vmul.f32 %v3842_v35, %v3842_v35  ;;  %v3870_v59 = vsub.f32 %v6571_v20, %v3842_v35 }
 0xf6d   : > { %v3839_v31 = vpop.xlane.xlu1 %3838  ;;  %v3833_v32 = vpop.xlane.xlu0 %3832 }
 0xf6e   : > { %v3840_v34 = vmul.f32 0.03125, %v3833_v32  ;;  %v3843_v44 = vmul.f32 0.03125, %v3839_v31 }
 0xf70   : > { %v3860_v38 = vmul.f32 %v3840_v34, %v3840_v34  ;;  %v3863_v55 = vmul.f32 %v3843_v44, %v3843_v44  ;;  %v3868_v63 = vsub.f32 %v3828_v24, %v3840_v34  ;;  %v3871_v1 = vsub.f32 %v6576_v25, %v3843_v44 }
 0xf71   : > { %v3835_v36 = vpop.xlane.xlu1 %3834  ;;  %v3849_v11 = vpop.xlane.xlu0 %3848 }
 0xf72   : > { %v3841_v39 = vmul.f32 0.03125, %v3835_v36  ;;  %v3856_v40 = vmul.f32 0.03125, %v3849_v11 }
 0xf74   : > { %v3864_v42 = vsub.f32 %v3856_v40, %v3860_v38  ;;  %v3861_v47 = vmul.f32 %v3841_v39, %v3841_v39  ;;  %v3869_v7 = vsub.f32 %v3829_v27, %v3841_v39 }
 0xf75   : > { %v3851_v45 = vpop.xlane.xlu1 %3850  ;;  %v3853_v46 = vpop.xlane.xlu0 %3852 }
 0xf76   : > { %v3872_v48 = vadd.f32 1e-05, %v3864_v42  ;;  %v3857_v49 = vmul.f32 0.03125, %v3851_v45  ;;  %v3858_v50 = vmul.f32 0.03125, %v3853_v46 }
 0xf78   : > { %5504 = vrsqrt.f32 %v3872_v48  ;;  %v3865_v52 = vsub.f32 %v3857_v49, %v3861_v47  ;;  %v3866_v53 = vsub.f32 %v3858_v50, %v3862_v43 }
 0xf79   : > { %v3855_v54 = vpop.xlane.xlu1 %3854 }
 0xf7a   : > { %v3873_v56 = vadd.f32 1e-05, %v3865_v52  ;;  %v3874_v57 = vadd.f32 1e-05, %v3866_v53  ;;  %v3859_v58 = vmul.f32 0.03125, %v3855_v54 }
 0xf7c   : > { %5506 = vrsqrt.f32 %v3873_v56  ;;  %v3867_v60 = vsub.f32 %v3859_v58, %v3863_v55 }
 0xf7d   : > { %5508 = vrsqrt.f32 %v3874_v57 }
 0xf7e   : > { %v3875_v61 = vadd.f32 1e-05, %v3867_v60 }
 0xf80   : > { %5510 = vrsqrt.f32 %v3875_v61 }
 0xf85   : > { %v5505_v2 = vpop.eup %5504 }
 0xf86   : > { %v3880_v28 = vmul.f32 %v5505_v2, %v3868_v63 }
 0xf88   : > { %v3888_v8 = vmul.f32 %v3887_v0, %v3880_v28 }
 0xf89   : > { %v5507_v9 = vpop.eup %5506 }
 0xf8a   : > { %v5509_v12 = vpop.eup %5508  ;;  %v3896_v5 = vadd.f32 %v3895_v3, %v3888_v8  ;;  %v3881_v13 = vmul.f32 %v5507_v9, %v3869_v7 }
 0xf8b   : > { %v3882_v14 = vmul.f32 %v5509_v12, %v3870_v59 }
 0xf8c   : > { %3900 = vst [vmem:[#allocation2 + $0x10] sm:$0xff] %v3896_v5  ;;  %v3889_v6 = vmul.f32 %v3887_v0, %v3881_v13 }
 0xf8d   : > { %v5511_v15 = vpop.eup %5510  ;;  %v3890_v33 = vmul.f32 %v3887_v0, %v3882_v14 }
 0xf8e   : > { %v3897_v16 = vadd.f32 %v3895_v3, %v3889_v6  ;;  %v3883_v18 = vmul.f32 %v5511_v15, %v3871_v1 }
 0xf8f   : > { %v3898_v19 = vadd.f32 %v3895_v3, %v3890_v33 }
 0xf90   : > { %3901 = vst [vmem:[#allocation2] sm:$0xff] %v3897_v16  ;;  %v3891_v41 = vmul.f32 %v3887_v0, %v3883_v18  ;;  %3907 = sbr.rel (%p4647_p6) target bundleno = 4456 (0x1168), region = 112 }
 0xf91   : > { %3902 = vst [vmem:[#allocation2 + $0x18] sm:$0xff] %v3898_v19 }
 0xf92   : > { %v3899_v37 = vadd.f32 %v3895_v3, %v3891_v41 }
 0xf94   : > { %3903 = vst [vmem:[#allocation2 + $0x8] sm:$0xff] %v3899_v37 }
 0xf95   : > { %v5517_v20 = vld [vmem:[#allocation16 + $0x38] sm:$0xff]   ;;  %v3908_v21 = vpack.c.bf16 %v3897_v16, %v3896_v5  ;;  %v5518_v22 = vld [vmem:[#allocation16 + $0x30] sm:$0xff]   ;;  %v5519_v23 = vld [vmem:[#allocation16 + $0x28] sm:$0xff]   ;;  %v3909_v17 = vpack.c.bf16 %v3899_v37, %v3898_v19 }
 0xf96   : > { %5007 = vmatprep.subr.bf16.mxu0 %v5517_v20  ;;  %v5520_v24 = vld [vmem:[#allocation16 + $0x20] sm:$0xff]   ;;  %v5521_v25 = vld [vmem:[#allocation16 + $0x18] sm:$0xff]   ;;  %v5522_v26 = vld [vmem:[#allocation16 + $0x10] sm:$0xff]  }
 0xf97   : > { %5023 = vmatprep.mubr.bf16.mxu0 %v3908_v21  ;;  %5008 = vmatpush3.bf16.msra.mxu0 %v5517_v20  ;;  %v5523_v27 = vld [vmem:[#allocation16 + $0x8] sm:$0xff]   ;;  %v5524_v29 = vld [vmem:[#allocation16] sm:$0xff]   ;;  %v5525_v30 = vld [vmem:[#allocation17 + $0x38] sm:$0xff]  }
 0xf98   : > { %5009 = vmatprep.subr.bf16.mxu0 %v5518_v22  ;;  %5027 = vmatprep.subr.bf16.mxu1 %v5525_v30  ;;  %v5526_v10 = vld [vmem:[#allocation17 + $0x30] sm:$0xff]   ;;  %v5527_v51 = vld [vmem:[#allocation17 + $0x28] sm:$0xff]   ;;  %v5528_v31 = vld [vmem:[#allocation17 + $0x20] sm:$0xff]  }
 0xf99   : > { %5028 = vmatpush3.bf16.msra.mxu1 %v5525_v30  ;;  %v5529_v32 = vld [vmem:[#allocation17 + $0x18] sm:$0xff]   ;;  %v5530_v34 = vld [vmem:[#allocation17 + $0x10] sm:$0xff]   ;;  %v5531_v35 = vld [vmem:[#allocation17 + $0x8] sm:$0xff]  }
 0xf9a   : > { %5029 = vmatprep.subr.bf16.mxu1 %v5526_v10  ;;  %v5532_v36 = vld [vmem:[#allocation17] sm:$0xff]  }
 0xf9b   : > { %5010 = vmatpush3.bf16.msra.mxu0 %v5518_v22  ;;  %v4648_v11 = vld [vmem:[%s6691_s22] ss:$0 sm:$0xff] }
 0xf9c   : > { %5011 = vmatprep.subr.bf16.mxu0 %v5519_v23  ;;  %v4657_v21 = vld [vmem:[%s6692_s0] ss:$0 sm:$0xff] }
 0xf9d   : > { %5030 = vmatpush3.bf16.msra.mxu1 %v5526_v10 }
 0xf9e   : > { %5031 = vmatprep.subr.bf16.mxu1 %v5527_v51 }
 0xf9f   : > { %5012 = vmatpush3.bf16.msra.mxu0 %v5519_v23 }
 0xfa0   : > { %5013 = vmatprep.subr.bf16.mxu0 %v5520_v24 }
 0xfa1   : > { %5032 = vmatpush3.bf16.msra.mxu1 %v5527_v51 }
 0xfa2   : > { %5033 = vmatprep.subr.bf16.mxu1 %v5528_v31 }
 0xfa3   : > { %5014 = vmatpush3.bf16.msra.mxu0 %v5520_v24 }
 0xfa4   : > { %5015 = vmatprep.subr.bf16.mxu0 %v5521_v25 }
 0xfa5   : > { %5034 = vmatpush3.bf16.msra.mxu1 %v5528_v31 }
 0xfa6   : > { %5035 = vmatprep.subr.bf16.mxu1 %v5529_v32 }
 0xfa7   : > { %5016 = vmatpush3.bf16.msra.mxu0 %v5521_v25 }
 0xfa8   : > { %5017 = vmatprep.subr.bf16.mxu0 %v5522_v26 }
 0xfa9   : > { %5036 = vmatpush3.bf16.msra.mxu1 %v5529_v32 }
 0xfaa   : > { %5037 = vmatprep.subr.bf16.mxu1 %v5530_v34 }
 0xfab   : > { %5018 = vmatpush3.bf16.msra.mxu0 %v5522_v26 }
 0xfac   : > { %5019 = vmatprep.subr.bf16.mxu0 %v5523_v27 }
 0xfad   : > { %5038 = vmatpush3.bf16.msra.mxu1 %v5530_v34 }
 0xfae   : > { %5039 = vmatprep.subr.bf16.mxu1 %v5531_v35 }
 0xfaf   : > { %5020 = vmatpush3.bf16.msra.mxu0 %v5523_v27 }
 0xfb0   : > { %5021 = vmatprep.subr.bf16.mxu0 %v5524_v29 }
 0xfb1   : > { %5040 = vmatpush3.bf16.msra.mxu1 %v5531_v35 }
 0xfb2   : > { %5041 = vmatprep.subr.bf16.mxu1 %v5532_v36 }
 0xfb3   : > { %5022 = vmatpush3.bf16.msra.mxu0 %v5524_v29 }
 0xfb5   : > { %5042 = vmatpush3.bf16.msra.mxu1 %v5532_v36 }
 0xfb6   : > { %5024 = vmatmul.mubr.bf16.vlgmr.msra.gmra.mxu0 %v3909_v17 }
0x1076   : > { %v5025_v38 = vpop.f32.mrf.mxu0 }
0x1077   : > { %v4024_v39 = vadd.f32 %v5025_v38, %v4648_v11 }
0x1078   : > { %v4015_v40 = vpop.f32.mrf.mxu0 }
0x1079   : > { %v4036_v42 = vmul.f32 0.044715, %v4024_v39  ;;  %v4016_v43 = vadd.f32 %v4648_v11, %v4015_v40  ;;  %v4032_v33 = vmul.f32 0.5, %v4024_v39 }
0x107a   : > { %v5026_v44 = vpop.f32.mrf.mxu0 }
0x107b   : > { %v4040_v45 = vmul.f32 %v4036_v42, %v4024_v39  ;;  %v4034_v46 = vmul.f32 0.044715, %v4016_v43  ;;  %v4027_v47 = vadd.f32 %v5026_v44, %v4648_v11  ;;  %v4030_v1 = vmul.f32 0.5, %v4016_v43 }
0x107c   : > { %v4018_v48 = vpop.f32.mrf.mxu0 }
0x107d   : > { %v4044_v49 = vmul.f32 %v4040_v45, %v4024_v39  ;;  %v4037_v50 = vmul.f32 0.044715, %v4027_v47  ;;  %v4019_v52 = vadd.f32 %v4648_v11, %v4018_v48  ;;  %v4038_v53 = vmul.f32 %v4034_v46, %v4016_v43 }
0x107e   : > { %v4033_v13 = vmul.f32 0.5, %v4027_v47 }
0x107f   : > { %v4041_v54 = vmul.f32 %v4037_v50, %v4027_v47  ;;  %v4035_v55 = vmul.f32 0.044715, %v4019_v52  ;;  %v4042_v56 = vmul.f32 %v4038_v53, %v4016_v43  ;;  %v4048_v57 = vadd.f32 %v4044_v49, %v4024_v39 }
0x1080   : > { %v4031_v6 = vmul.f32 0.5, %v4019_v52 }
0x1081   : > { %v4045_v58 = vmul.f32 %v4041_v54, %v4027_v47  ;;  %v4039_v60 = vmul.f32 %v4035_v55, %v4019_v52  ;;  %v4046_v61 = vadd.f32 %v4042_v56, %v4016_v43  ;;  %v4052_v4 = vmul.f32 0.7978846, %v4048_v57 }
0x1083   : > { %v4043_v62 = vmul.f32 %v4039_v60, %v4019_v52  ;;  %v4050_v63 = vmul.f32 0.7978846, %v4046_v61  ;;  %v4049_v0 = vadd.f32 %v4045_v58, %v4027_v47 }
0x1085   : > { %v4047_v2 = vadd.f32 %v4043_v62, %v4019_v52  ;;  %5533 = vtanh.f32 %v4050_v63  ;;  %v4053_v3 = vmul.f32 0.7978846, %v4049_v0 }
0x1086   : > { %5535 = vtanh.f32 %v4052_v4 }
0x1087   : > { %v4051_v28 = vmul.f32 0.7978846, %v4047_v2  ;;  %5537 = vtanh.f32 %v4053_v3 }
0x1089   : > { %5539 = vtanh.f32 %v4051_v28 }
0x1092   : > { %v5534_v7 = vpop.eup %5533 }
0x1093   : > { %v5536_v8 = vpop.eup %5535  ;;  %v4058_v59 = vadd.f32 1.0, %v5534_v7 }
0x1094   : > { %v5538_v9 = vpop.eup %5537  ;;  %v4060_v14 = vadd.f32 1.0, %v5536_v8 }
0x1095   : > { %v4061_v12 = vadd.f32 1.0, %v5538_v9  ;;  %v4062_v18 = vmul.f32 %v4058_v59, %v4030_v1 }
0x1096   : > { %v5540_v5 = vpop.eup %5539  ;;  %v4064_v41 = vmul.f32 %v4060_v14, %v4032_v33 }
0x1097   : > { %v4059_v15 = vadd.f32 1.0, %v5540_v5  ;;  %v4065_v16 = vmul.f32 %v4061_v12, %v4033_v13 }
0x1099   : > { %v4063_v19 = vmul.f32 %v4059_v15, %v4031_v6  ;;  %v4067_v20 = vpack.c.bf16 %v4065_v16, %v4064_v41 }
0x109b   : > { %v4066_v37 = vpack.c.bf16 %v4063_v19, %v4062_v18 }
0x109d   : > { %5043 = vmatprep.mubr.bf16.mxu1 %v4066_v37 }
0x109e   : > { %5044 = vmatmul.mubr.bf16.vlgmr.msra.gmra.mxu1 %v4067_v20 }
0x115e   : > { %v5045_v22 = vpop.f32.mrf.mxu1 }
0x115f   : > { %v4182_v23 = vadd.f32 %v5045_v22, %v4657_v21 }
0x1160   : > { %v4173_v24 = vpop.f32.mrf.mxu1 }
0x1161   : > { %4190 = vst [vmem:[#allocation19 + $0x10] sm:$0xff] %v4182_v23  ;;  %v4174_v25 = vadd.f32 %v4657_v21, %v4173_v24 }
0x1162   : > { %v5046_v26 = vpop.f32.mrf.mxu1 }
0x1163   : > { %4188 = vst [vmem:[#allocation19] sm:$0xff] %v4174_v25  ;;  %v4185_v27 = vadd.f32 %v5046_v26, %v4657_v21 }
0x1164   : > { %v4176_v29 = vpop.f32.mrf.mxu1 }
0x1165   : > { %4191 = vst [vmem:[#allocation19 + $0x18] sm:$0xff] %v4185_v27  ;;  %v4177_v17 = vadd.f32 %v4657_v21, %v4176_v29 }
0x1167   : > { %4189 = vst [vmem:[#allocation19 + $0x8] sm:$0xff] %v4177_v17 }
0x1168 PF: > { %p5121_p11 = scmp.eq.s32.totalorder %s5995_s27, 1  ;;  %s5898_s17 = smov [#allocation19]  }
0x1169   : > { %s4201_s3 = sshll.u32 %s5898_s17, 4  ;;  %s4202_s3 = int_to_ptr.vmem [resolvable:$true] %s4201_s3 }
0x116a   : > { %s5785_s13 = scalar_lea.vmem %s4202_s3, 512  ;;  %p5792_p12 = scmp.lt.s32.totalorder %s4202_s3, %s4202_s3 }
0x116b   : > { %p5786_p1 = scmp.ne.s32.totalorder %s4202_s3, %s5785_s13  ;;  %p5793_p5 = scmp.lt.s32.totalorder %s5785_s13, %s5785_s13 }
0x116d   : > { %p5787_p10 = pnand %p5786_p1, %p5121_p11  ;;  %p5794_p7 = por %p5793_p5, %p5792_p12 }
0x116f   : > { %p5788_p2 = pneg %p5787_p10 }
0x1171   : > { %p5795_p8 = pnand %p5794_p7, %p5788_p2 }
0x1173   : > { %5798 = shalt.err (!%p5795_p8)
}
0x1174   : > { %s5899_s23 = smov 128   ;;  %s5900_s11 = smov 8  }
0x1175   : > { %s6693_s9 = sld [smem:[#allocation38_spill]] }
0x117b   : > { %5080 = dma.vmem_to_hbm [thread:$0]  (%p5121_p11), %s4202_s3, 512, %s6693_s9, [#allocation8], %s5899_s23, %s5899_s23, %s5900_s11  }
0x117c   : > { %5854 = dma.done.wait (%p5121_p11), [#allocation8], 512  }
0x117d   : > { %5856 = vsyncadd (%p5121_p11), [#allocation8], 4294966784 }
0x117e PF: > { %s6694_s28 = sld [smem:[#allocation29_spill]]  ;;  %s6699_s24 = smov %s5875_s25 }
0x117f   : > { %s6695_s21 = sld [smem:[#allocation26_spill]] }
0x1180   : > { %s6696_s22 = sld [smem:[#allocation27_spill]] }
0x1181   : > { %s6697_s23 = sld [smem:[#allocation32_spill]] }
0x1182   : > { %s6698_s12 = sld [smem:[#allocation31_spill]] }
0x1184   : > { %s26_s26 = sadd.s32 1, %s6694_s28  }
0x1185   : > { %p23_p0 = scmp.ge.s32.totalorder %s26_s26, 4  }
0x1187   :  { %25 = sbr.rel (!%p23_p0) target bundleno = 13 (0xd), region = 174 }
0x1188   : > { %s6700_s25 = smov %s6698_s12 }
0x118c   :  { %4217 = vsyncpa [#allocation7], 1 }
0x118d   :  { %4219 = vsyncpa [#allocation7 + $0x1], 1 }
0x118e   :  { %4220 = vsyncpa [#allocation10], 1 }
0x118f   :  { %4221 = vsyncpa [#allocation18], 1 }
0x1190   :  { %4222 = vsyncpa [#allocation8], 1 }
0x1191   :  { %4224 = vsyncpa [#allocation8 + $0x1], 1 }

</bundles_post_ra>
